<compile_context>
chip_gen: v7x
topology: tpu7x:2x2x1
jax: 0.10.0
libtpu: 0.0.40
codegen_flags: <defaults>
</compile_context>

<pallas_src>
import functools

import jax
import jax.numpy as jnp
from jax.experimental import pallas as pl
from jax.experimental.pallas import tpu as pltpu

POOL = 8  # MaxPool2d((8, 8)) in PositionAttentionModule
HIGH = jax.lax.Precision.HIGHEST


def _softmax_last(v):
    m = jnp.max(v, axis=-1, keepdims=True)
    e = jnp.exp(v - m)
    s = jnp.sum(e, axis=-1, keepdims=True)
    return e * pl.reciprocal(s, approx=True)   # divide on the EUP slot


# --------------------------------------------------------------------------
# Pallas kernel: whole DualAttention forward for one batch element
# --------------------------------------------------------------------------
def dual_attention_kernel(x_ref, m1_ref, rw_ref,
                          wbt_ref, bb_ref, wct_ref, bc_ref, wdt_ref, bd_ref,
                          wcv_ref, bcv_ref, ab_ref,
                          o_ref, pad_ref, *, C, H, W):
    Hp, Wp = H // POOL, W // POOL
    HW, HWp = H * W, Hp * Wp
    alpha = ab_ref[0]
    beta = ab_ref[1]

    xa_cf = x_ref[0]                      # (C, HW) channels-first, lane-dense
    xa_cl = jnp.transpose(xa_cf)          # (HW, C): the one in-kernel relayout
    xs = xa_cl.reshape(H, W, C)           # free (leading-dim split)

    # ---------------- position attention branch (pooled 8x8) ----------------
    th = jnp.max(xs.reshape(Hp, POOL, W, C), axis=1)        # (Hp, W, C)
    xp_sp = jnp.max(th.reshape(Hp, Wp, POOL, C), axis=2)    # (Hp, Wp, C)
    xp_cl = xp_sp.reshape(HWp, C)                           # (HWp, C)

    # 1x1 convs as (HWp, C) @ (C, Ck) matmuls (weights pre-transposed).
    fb = jnp.dot(xp_cl, wbt_ref[...], preferred_element_type=jnp.float32) + bb_ref[...]
    fc = jnp.dot(xp_cl, wct_ref[...], preferred_element_type=jnp.float32) + bc_ref[...]
    fd = jnp.dot(xp_cl, wdt_ref[...], preferred_element_type=jnp.float32) + bd_ref[...]

    # energy[p, q] = sum_k feat_b[p, k] * feat_c[k, q]   (A @ B^T form)
    energy = jax.lax.dot_general(fb, fc, (((1,), (1,)), ((), ())),
                                 preferred_element_type=jnp.float32)     # (HWp, HWp)
    attn_s = _softmax_last(energy)
    fe = jnp.dot(attn_s, fd, preferred_element_type=jnp.float32)         # (HWp, C)
    pos_pool = alpha * fe + xp_cl                                        # (HWp, C)

    # Kron-factored bilinear upsample (align_corners=True), linearity lets us
    # upsample (alpha*feat_e + pooled_x) once:
    #   step 1: rows via kron(R_h, I_Wp)   step 2: cols via batched R_w matmul
    u1 = jnp.dot(m1_ref[...], pos_pool,
                 preferred_element_type=jnp.float32)                     # (H*Wp, C)
    u1 = u1.reshape(H, Wp, C)                                            # free
    rw_b = jnp.broadcast_to(rw_ref[...], (H, W, Wp))
    pos = jax.lax.dot_general(rw_b, u1, (((2,), (1,)), ((0,), (0,))),
                              preferred_element_type=jnp.float32)        # (H, W, C)

    # ---------------- channel attention branch ----------------
    # Gram straight from the channels-first input (K = HW on the lane axis).
    gram = jax.lax.dot_general(xa_cf, xa_cf, (((1,), (1,)), ((), ())),
                               preferred_element_type=jnp.float32)       # (C, C)
    attn_c = _softmax_last(jnp.max(gram, axis=-1, keepdims=True) - gram)
    # fe_c[p, c] = sum_d attn_c[c, d] * x[d, p]  (A @ B^T form, channels-last)
    fe_c = jax.lax.dot_general(xa_cl, attn_c, (((1,), (1,)), ((), ())),
                               preferred_element_type=jnp.float32)       # (HW, C)
    chan = beta * fe_c + xa_cl                                           # (HW, C)

    # ---------------- residual sum + final 3x3 conv (padding=1) ----------
    pc = pos + chan.reshape(H, W, C)                                     # (H, W, C)

    @pl.when(pl.program_id(0) == 0)
    def _zero_pad():   # border is never written afterwards -> zero only once
        pad_ref[...] = jnp.zeros_like(pad_ref)

    pad_ref[1:H + 1, 1:W + 1, :] = pc

    # Per-tap accumulating matmuls (no im2col buffer); each tap is an A@B^T
    # contraction that directly produces the channels-first (C, HW) output.
    acc = jnp.broadcast_to(bcv_ref[...], (C, HW))                        # bias
    for t in range(9):
        dy, dx = t // 3, t % 3
        slab = pad_ref[dy:dy + H, dx:dx + W, :].reshape(HW, C)           # (HW, C)
        acc = acc + jax.lax.dot_general(
            wcv_ref[t], slab, (((1,), (1,)), ((), ())),
            preferred_element_type=jnp.float32)                          # (C, HW)

    o_ref[0] = acc.astype(o_ref.dtype)                                   # lane-dense store


# --------------------------------------------------------------------------
# Wrapper: layout plumbing + pallas_call
# --------------------------------------------------------------------------
def _bilinear_matrix(n_in, n_out):
    """(n_out, n_in) interpolation matrix, bilinear align_corners=True."""
    if n_in == 1:
        return jnp.ones((n_out, 1), jnp.float32)
    pos = jnp.arange(n_out, dtype=jnp.float32) * (n_in - 1) / (n_out - 1)
    lo = jnp.clip(jnp.floor(pos), 0, n_in - 2).astype(jnp.int32)
    frac = pos - lo.astype(jnp.float32)
    r = jnp.zeros((n_out, n_in), jnp.float32)
    idx = jnp.arange(n_out)
    r = r.at[idx, lo].add(1.0 - frac)
    r = r.at[idx, lo + 1].add(frac)
    return r


def dual_attention_forward(x_nchw, p):
    N, C, H, W = x_nchw.shape
    assert H % POOL == 0 and W % POOL == 0 and C % 8 == 0
    C8 = C // 8
    Hp, Wp = H // POOL, W // POOL
    HW, HWp = H * W, Hp * Wp

    # Single channels-first activation stream (free reshape of NCHW).
    x_cf = x_nchw.astype(jnp.float32).reshape(N, C, HW)

    # Parameter layout plumbing (tiny, once per call).
    wbt = p["wb"].reshape(C8, C).T                                  # (C, C8)
    wct = p["wc"].reshape(C8, C).T                                  # (C, C8)
    wdt = p["wd"].reshape(C, C).T                                   # (C, C)
    bb = p["bb"].reshape(1, C8)
    bc = p["bc"].reshape(1, C8)
    bd = p["bd"].reshape(1, C)
    wcv = jnp.transpose(p["wconv"], (2, 3, 0, 1)).reshape(9, C, C)  # [tap][o, i]
    bcv = p["bconv"].reshape(C, 1)
    ab = jnp.concatenate([p["alpha"].reshape(1),
                          p["beta"].reshape(1)]).astype(jnp.float32)

    # Kron-factored bilinear (align_corners=True) upsample operators.
    rh = _bilinear_matrix(Hp, H)                                    # (H, Hp)
    rw = _bilinear_matrix(Wp, W)                                    # (W, Wp)
    m1 = jnp.kron(rh, jnp.eye(Wp, dtype=jnp.float32))               # (H*Wp, HWp)

    kern = functools.partial(dual_attention_kernel, C=C, H=H, W=W)
    out_cf = pl.pallas_call(
        kern,
        out_shape=jax.ShapeDtypeStruct((N, C, HW), jnp.float32),
        grid=(N,),
        in_specs=[
            pl.BlockSpec((1, C, HW), lambda i: (i, 0, 0)),          # x channels-first
            pl.BlockSpec((H * Wp, HWp), lambda i: (0, 0)),          # kron(R_h, I_Wp)
            pl.BlockSpec((W, Wp), lambda i: (0, 0)),                # R_w
            pl.BlockSpec((C, C8), lambda i: (0, 0)),                # conv_b W^T
            pl.BlockSpec((1, C8), lambda i: (0, 0)),                # conv_b bias
            pl.BlockSpec((C, C8), lambda i: (0, 0)),                # conv_c W^T
            pl.BlockSpec((1, C8), lambda i: (0, 0)),                # conv_c bias
            pl.BlockSpec((C, C), lambda i: (0, 0)),                 # conv_d W^T
            pl.BlockSpec((1, C), lambda i: (0, 0)),                 # conv_d bias
            pl.BlockSpec((9, C, C), lambda i: (0, 0, 0)),           # 3x3 conv taps [o,i]
            pl.BlockSpec((C, 1), lambda i: (0, 0)),                 # 3x3 conv bias
            pl.BlockSpec(memory_space=pltpu.MemorySpace.SMEM),      # [alpha, beta]
        ],
        out_specs=pl.BlockSpec((1, C, HW), lambda i: (i, 0, 0)),
        scratch_shapes=[pltpu.VMEM((H + 2, W + 2, C), jnp.float32)],   # zero-pad buf
        compiler_params=pltpu.CompilerParams(
            dimension_semantics=("parallel",),
            vmem_limit_bytes=48 * 1024 * 1024),
    )(x_cf, m1, rw, wbt, bb, wct, bc, wdt, bd, wcv, bcv, ab)

    return out_cf.reshape(N, C, H, W)   # free view back to NCHW


# --------------------------------------------------------------------------
# Pure-JAX reference (independent implementation, for in-script validation)
# --------------------------------------------------------------------------
def _upsample_bilinear_ref(x, out_h, out_w):
    """F.interpolate(mode='bilinear', align_corners=True) on NCHW (gather-based)."""
    n, c, h, w = x.shape

    def coords(n_in, n_out):
        if n_in == 1:
            return jnp.zeros((n_out,), jnp.int32), jnp.zeros((n_out,), jnp.float32)
        pos = jnp.arange(n_out, dtype=jnp.float32) * (n_in - 1) / (n_out - 1)
        lo = jnp.clip(jnp.floor(pos), 0, n_in - 2).astype(jnp.int32)
        return lo, pos - lo.astype(jnp.float32)

    y0, fy = coords(h, out_h)
    x0, fx = coords(w, out_w)
    rows0 = x[:, :, y0, :]
    rows1 = x[:, :, y0 + 1, :]
    g00 = rows0[:, :, :, x0]
    g01 = rows0[:, :, :, x0 + 1]
    g10 = rows1[:, :, :, x0]
    g11 = rows1[:, :, :, x0 + 1]
    fy = fy[None, None, :, None]
    fx = fx[None, None, None, :]
    return (g00 * (1 - fy) * (1 - fx) + g01 * (1 - fy) * fx
            + g10 * fy * (1 - fx) + g11 * fy * fx)


def ref_forward(x, p):
    n, c, h, w = x.shape
    c8 = c // 8
    hp, wp = h // POOL, w // POOL

    # position attention
    pooled = jax.lax.reduce_window(x, -jnp.inf, jax.lax.max,
                                   (1, 1, POOL, POOL), (1, 1, POOL, POOL), "VALID")

    def conv1x1(v, wt, b):
        return jnp.einsum("oc,nchw->nohw", wt, v, precision=HIGH) + b[None, :, None, None]

    fb = conv1x1(pooled, p["wb"].reshape(c8, c), p["bb"]).reshape(n, c8, hp * wp)
    fc = conv1x1(pooled, p["wc"].reshape(c8, c), p["bc"]).reshape(n, c8, hp * wp)
    fd = conv1x1(pooled, p["wd"].reshape(c, c), p["bd"]).reshape(n, c, hp * wp)
    energy = jnp.einsum("ncp,ncq->npq", fb, fc, precision=HIGH)
    attn_s = jax.nn.softmax(energy, axis=-1)
    fe = jnp.einsum("ncq,npq->ncp", fd, attn_s, precision=HIGH).reshape(n, c, hp, wp)
    alpha = p["alpha"].reshape(())
    pos = (alpha * _upsample_bilinear_ref(fe, h, w)
           + _upsample_bilinear_ref(pooled, h, w))

    # channel attention
    beta = p["beta"].reshape(())
    xa = x.reshape(n, c, h * w)
    gram = jnp.einsum("ncp,ndp->ncd", xa, xa, precision=HIGH)
    attn_c = jax.nn.softmax(jnp.max(gram, axis=-1, keepdims=True) - gram, axis=-1)
    fe_c = jnp.einsum("ncd,ndp->ncp", attn_c, xa, precision=HIGH).reshape(n, c, h, w)
    chan = beta * fe_c + x

    # final 3x3 conv, padding 1
    out = jax.lax.conv_general_dilated(
        pos + chan, p["wconv"], (1, 1), [(1, 1), (1, 1)],
        dimension_numbers=("NCHW", "OIHW", "NCHW"),
        precision=HIGH) + p["bconv"][None, :, None, None]
    return out


# --------------------------------------------------------------------------
# Deterministic parameter init (PyTorch layouts)
# --------------------------------------------------------------------------
def init_params(key, c):
    c8 = c // 8
    ks = jax.random.split(key, 8)

    def g(k, shape, s=0.2):
        return s * jax.random.normal(k, shape, jnp.float32)

    return dict(
        wb=g(ks[0], (c8, c, 1, 1)), bb=g(ks[1], (c8,)),
        wc=g(ks[2], (c8, c, 1, 1)), bc=g(ks[3], (c8,)),
        wd=g(ks[4], (c, c, 1, 1)), bd=g(ks[5], (c,)),
        wconv=g(ks[6], (c, c, 3, 3), 0.1), bconv=g(ks[7], (c,)),
        # PyTorch inits alpha/beta to zero; nonzero here so both attention
        # branches actually contribute to the validated output.
        alpha=jnp.array([0.7], jnp.float32),
        beta=jnp.array([0.3], jnp.float32),
    )


if __name__ == "__main__":
    key = jax.random.PRNGKey(0)
    kx, kp = jax.random.split(key)

    # DualAttention(channel=16) on a (2, 16, 32, 32) NCHW input.
    # channel must be a multiple of 8 (conv_b/conv_c use in_channels // 8) and
    # H, W multiples of 8 (MaxPool2d((8, 8)) downsample).
    N, C, H, W = 2, 16, 32, 32
    x = jax.random.normal(kx, (N, C, H, W), jnp.float32)
    params = init_params(kp, C)

    out = jax.block_until_ready(dual_attention_forward(x, params))
    ref = jax.block_until_ready(ref_forward(x, params))

    assert out.shape == ref.shape == (N, C, H, W)
    # Tolerance allows for MXU f32 matmuls and the EUP approx-reciprocal
    # softmax normalization vs the HIGHEST-precision XLA reference.
    err = float(jnp.max(jnp.abs(out - ref)))
    assert jnp.allclose(out, ref, atol=1e-2, rtol=1e-2), f"max abs err {err}"
    print("KERNEL_OK")
</pallas_src>

<mosaic_0001>
module attributes {stable_mosaic.version = 11 : i64} {
  func.func @dual_attention_kernel(%arg0: i32, %arg1: memref<1x16x1024xf32, #tpu.memory_space<vmem>>, %arg2: memref<128x16xf32, #tpu.memory_space<vmem>>, %arg3: memref<32x4xf32, #tpu.memory_space<vmem>>, %arg4: memref<16x2xf32, #tpu.memory_space<vmem>>, %arg5: memref<1x2xf32, #tpu.memory_space<vmem>>, %arg6: memref<16x2xf32, #tpu.memory_space<vmem>>, %arg7: memref<1x2xf32, #tpu.memory_space<vmem>>, %arg8: memref<16x16xf32, #tpu.memory_space<vmem>>, %arg9: memref<1x16xf32, #tpu.memory_space<vmem>>, %arg10: memref<9x16x16xf32, #tpu.memory_space<vmem>>, %arg11: memref<16x1xf32, #tpu.memory_space<vmem>>, %arg12: memref<2xf32, #tpu.memory_space<smem>>, %arg13: memref<1x16x1024xf32, #tpu.memory_space<vmem>>, %arg14: memref<34x34x16xf32, #tpu.memory_space<vmem>>) attributes {dimension_semantics = [#tpu.dimension_semantics<parallel>], iteration_bounds = array<i64: 2>, scalar_prefetch = 0 : i64, scratch_operands = 1 : i64, tpu.core_type = #tpu.core_type<tc>, window_params = [{transform_indices = @transform_0, window_bounds = array<i64: 1, 16, 1024>}, {pipeline_mode = #tpu.pipeline_mode<synchronous>, transform_indices = @transform_1, window_bounds = array<i64: 128, 16>}, {pipeline_mode = #tpu.pipeline_mode<synchronous>, transform_indices = @transform_2, window_bounds = array<i64: 32, 4>}, {pipeline_mode = #tpu.pipeline_mode<synchronous>, transform_indices = @transform_3, window_bounds = array<i64: 16, 2>}, {pipeline_mode = #tpu.pipeline_mode<synchronous>, transform_indices = @transform_4, window_bounds = array<i64: 1, 2>}, {pipeline_mode = #tpu.pipeline_mode<synchronous>, transform_indices = @transform_5, window_bounds = array<i64: 16, 2>}, {pipeline_mode = #tpu.pipeline_mode<synchronous>, transform_indices = @transform_6, window_bounds = array<i64: 1, 2>}, {pipeline_mode = #tpu.pipeline_mode<synchronous>, transform_indices = @transform_7, window_bounds = array<i64: 16, 16>}, {pipeline_mode = #tpu.pipeline_mode<synchronous>, transform_indices = @transform_8, window_bounds = array<i64: 1, 16>}, {pipeline_mode = #tpu.pipeline_mode<synchronous>, transform_indices = @transform_9, window_bounds = array<i64: 9, 16, 16>}, {pipeline_mode = #tpu.pipeline_mode<synchronous>, transform_indices = @transform_10, window_bounds = array<i64: 16, 1>}, {transform_indices = @transform_11, window_bounds = array<i64: 2>}, {transform_indices = @transform_12, window_bounds = array<i64: 1, 16, 1024>}]} {
    %c0 = arith.constant 0 : index
    %0 = memref.load %arg12[%c0] : memref<2xf32, #tpu.memory_space<smem>>
    %c1 = arith.constant 1 : index
    %1 = memref.load %arg12[%c1] : memref<2xf32, #tpu.memory_space<smem>>
    %c0_0 = arith.constant 0 : index
    %c0_1 = arith.constant 0 : index
    %c0_2 = arith.constant 0 : index
    %2 = vector.load %arg1[%c0_0, %c0_1, %c0_2] : memref<1x16x1024xf32, #tpu.memory_space<vmem>>, vector<1x16x1024xf32>
    %3 = vector.shape_cast %2 : vector<1x16x1024xf32> to vector<16x1024xf32>
    %4 = tpu.transpose %3, [1, 0] : vector<16x1024xf32> -> vector<1024x16xf32>
    %5 = vector.shape_cast %4 : vector<1024x16xf32> to vector<32x32x16xf32>
    %6 = vector.shape_cast %5 : vector<32x32x16xf32> to vector<4x8x32x16xf32>
    %cst = arith.constant dense<0xFF800000> : vector<4x32x16xf32>
    %7 = vector.multi_reduction <maximumf>, %6, %cst [1] : vector<4x8x32x16xf32> to vector<4x32x16xf32>
    %8 = vector.shape_cast %7 : vector<4x32x16xf32> to vector<4x4x8x16xf32>
    %cst_3 = arith.constant dense<0xFF800000> : vector<4x4x16xf32>
    %9 = vector.multi_reduction <maximumf>, %8, %cst_3 [2] : vector<4x4x8x16xf32> to vector<4x4x16xf32>
    %10 = vector.shape_cast %9 : vector<4x4x16xf32> to vector<16x16xf32>
    %c0_4 = arith.constant 0 : index
    %c0_5 = arith.constant 0 : index
    %11 = vector.load %arg4[%c0_4, %c0_5] : memref<16x2xf32, #tpu.memory_space<vmem>>, vector<16x2xf32>
    %cst_6 = arith.constant dense<0.000000e+00> : vector<16x2xf32>
    %12 = tpu.matmul %10, %11, %cst_6 {dimension_numbers = #tpu.dot_dimension_numbers<[1], [0], [0], [1], [0, 0, 1, 1], [], []>} : vector<16x16xf32>, vector<16x2xf32>, vector<16x2xf32> -> vector<16x2xf32>
    %c0_7 = arith.constant 0 : index
    %c0_8 = arith.constant 0 : index
    %13 = vector.load %arg5[%c0_7, %c0_8] : memref<1x2xf32, #tpu.memory_space<vmem>>, vector<1x2xf32>
    %14 = vector.broadcast %13 : vector<1x2xf32> to vector<16x2xf32>
    %15 = arith.addf %12, %14 : vector<16x2xf32>
    %c0_9 = arith.constant 0 : index
    %c0_10 = arith.constant 0 : index
    %16 = vector.load %arg6[%c0_9, %c0_10] : memref<16x2xf32, #tpu.memory_space<vmem>>, vector<16x2xf32>
    %cst_11 = arith.constant dense<0.000000e+00> : vector<16x2xf32>
    %17 = tpu.matmul %10, %16, %cst_11 {dimension_numbers = #tpu.dot_dimension_numbers<[1], [0], [0], [1], [0, 0, 1, 1], [], []>} : vector<16x16xf32>, vector<16x2xf32>, vector<16x2xf32> -> vector<16x2xf32>
    %c0_12 = arith.constant 0 : index
    %c0_13 = arith.constant 0 : index
    %18 = vector.load %arg7[%c0_12, %c0_13] : memref<1x2xf32, #tpu.memory_space<vmem>>, vector<1x2xf32>
    %19 = vector.broadcast %18 : vector<1x2xf32> to vector<16x2xf32>
    %20 = arith.addf %17, %19 : vector<16x2xf32>
    %c0_14 = arith.constant 0 : index
    %c0_15 = arith.constant 0 : index
    %21 = vector.load %arg8[%c0_14, %c0_15] : memref<16x16xf32, #tpu.memory_space<vmem>>, vector<16x16xf32>
    %cst_16 = arith.constant dense<0.000000e+00> : vector<16x16xf32>
    %22 = tpu.matmul %10, %21, %cst_16 {dimension_numbers = #tpu.dot_dimension_numbers<[1], [0], [0], [1], [0, 0, 1, 1], [], []>} : vector<16x16xf32>, vector<16x16xf32>, vector<16x16xf32> -> vector<16x16xf32>
    %c0_17 = arith.constant 0 : index
    %c0_18 = arith.constant 0 : index
    %23 = vector.load %arg9[%c0_17, %c0_18] : memref<1x16xf32, #tpu.memory_space<vmem>>, vector<1x16xf32>
    %24 = vector.broadcast %23 : vector<1x16xf32> to vector<16x16xf32>
    %25 = arith.addf %22, %24 : vector<16x16xf32>
    %cst_19 = arith.constant dense<0.000000e+00> : vector<16x16xf32>
    %26 = tpu.matmul %15, %20, %cst_19 {dimension_numbers = #tpu.dot_dimension_numbers<[1], [1], [0], [0], [0, 0, 1, 0], [], []>} : vector<16x2xf32>, vector<16x2xf32>, vector<16x16xf32> -> vector<16x16xf32>
    %cst_20 = arith.constant dense<0xFF800000> : vector<16xf32>
    %27 = vector.multi_reduction <maximumf>, %26, %cst_20 [1] : vector<16x16xf32> to vector<16xf32>
    %28 = vector.shape_cast %27 : vector<16xf32> to vector<16x1xf32>
    %29 = vector.broadcast %28 : vector<16x1xf32> to vector<16x16xf32>
    %30 = arith.subf %26, %29 : vector<16x16xf32>
    %31 = math.exp %30 : vector<16x16xf32>
    %cst_21 = arith.constant dense<0.000000e+00> : vector<16xf32>
    %32 = vector.multi_reduction <add>, %31, %cst_21 [1] : vector<16x16xf32> to vector<16xf32>
    %33 = vector.shape_cast %32 : vector<16xf32> to vector<16x1xf32>
    %34 = tpu.reciprocal %33 {approx = true} : vector<16x1xf32> -> vector<16x1xf32>
    %35 = vector.broadcast %34 : vector<16x1xf32> to vector<16x16xf32>
    %36 = arith.mulf %31, %35 : vector<16x16xf32>
    %cst_22 = arith.constant dense<0.000000e+00> : vector<16x16xf32>
    %37 = tpu.matmul %36, %25, %cst_22 {dimension_numbers = #tpu.dot_dimension_numbers<[1], [0], [0], [1], [0, 0, 1, 1], [], []>} : vector<16x16xf32>, vector<16x16xf32>, vector<16x16xf32> -> vector<16x16xf32>
    %38 = vector.broadcast %0 : f32 to vector<16x16xf32>
    %39 = arith.mulf %38, %37 : vector<16x16xf32>
    %40 = arith.addf %39, %10 : vector<16x16xf32>
    %c0_23 = arith.constant 0 : index
    %c0_24 = arith.constant 0 : index
    %41 = vector.load %arg2[%c0_23, %c0_24] : memref<128x16xf32, #tpu.memory_space<vmem>>, vector<128x16xf32>
    %cst_25 = arith.constant dense<0.000000e+00> : vector<128x16xf32>
    %42 = tpu.matmul %41, %40, %cst_25 {dimension_numbers = #tpu.dot_dimension_numbers<[1], [0], [0], [1], [0, 0, 1, 1], [], []>} : vector<128x16xf32>, vector<16x16xf32>, vector<128x16xf32> -> vector<128x16xf32>
    %43 = vector.shape_cast %42 : vector<128x16xf32> to vector<32x4x16xf32>
    %c0_26 = arith.constant 0 : index
    %c0_27 = arith.constant 0 : index
    %44 = vector.load %arg3[%c0_26, %c0_27] : memref<32x4xf32, #tpu.memory_space<vmem>>, vector<32x4xf32>
    %45 = vector.shape_cast %44 : vector<32x4xf32> to vector<1x32x4xf32>
    %46 = vector.broadcast %45 : vector<1x32x4xf32> to vector<32x32x4xf32>
    %cst_28 = arith.constant dense<0.000000e+00> : vector<32x32x16xf32>
    %47 = tpu.matmul %46, %43, %cst_28 {dimension_numbers = #tpu.dot_dimension_numbers<[2], [1], [1], [2], [0, 0, 0, 1, 1, 2], [0], [0]>} : vector<32x32x4xf32>, vector<32x4x16xf32>, vector<32x32x16xf32> -> vector<32x32x16xf32>
    %cst_29 = arith.constant dense<0.000000e+00> : vector<16x16xf32>
    %48 = tpu.matmul %3, %3, %cst_29 {dimension_numbers = #tpu.dot_dimension_numbers<[1], [1], [0], [0], [0, 0, 1, 0], [], []>} : vector<16x1024xf32>, vector<16x1024xf32>, vector<16x16xf32> -> vector<16x16xf32>
    %cst_30 = arith.constant dense<0xFF800000> : vector<16xf32>
    %49 = vector.multi_reduction <maximumf>, %48, %cst_30 [1] : vector<16x16xf32> to vector<16xf32>
    %50 = vector.shape_cast %49 : vector<16xf32> to vector<16x1xf32>
    %51 = vector.broadcast %50 : vector<16x1xf32> to vector<16x16xf32>
    %52 = arith.subf %51, %48 : vector<16x16xf32>
    %cst_31 = arith.constant dense<0xFF800000> : vector<16xf32>
    %53 = vector.multi_reduction <maximumf>, %52, %cst_31 [1] : vector<16x16xf32> to vector<16xf32>
    %54 = vector.shape_cast %53 : vector<16xf32> to vector<16x1xf32>
    %55 = vector.broadcast %54 : vector<16x1xf32> to vector<16x16xf32>
    %56 = arith.subf %52, %55 : vector<16x16xf32>
    %57 = math.exp %56 : vector<16x16xf32>
    %cst_32 = arith.constant dense<0.000000e+00> : vector<16xf32>
    %58 = vector.multi_reduction <add>, %57, %cst_32 [1] : vector<16x16xf32> to vector<16xf32>
    %59 = vector.shape_cast %58 : vector<16xf32> to vector<16x1xf32>
    %60 = tpu.reciprocal %59 {approx = true} : vector<16x1xf32> -> vector<16x1xf32>
    %61 = vector.broadcast %60 : vector<16x1xf32> to vector<16x16xf32>
    %62 = arith.mulf %57, %61 : vector<16x16xf32>
    %cst_33 = arith.constant dense<0.000000e+00> : vector<1024x16xf32>
    %63 = tpu.matmul %4, %62, %cst_33 {dimension_numbers = #tpu.dot_dimension_numbers<[1], [1], [0], [0], [0, 0, 1, 0], [], []>} : vector<1024x16xf32>, vector<16x16xf32>, vector<1024x16xf32> -> vector<1024x16xf32>
    %64 = vector.broadcast %1 : f32 to vector<1024x16xf32>
    %65 = arith.mulf %64, %63 : vector<1024x16xf32>
    %66 = arith.addf %65, %4 : vector<1024x16xf32>
    %67 = vector.shape_cast %66 : vector<1024x16xf32> to vector<32x32x16xf32>
    %68 = arith.addf %47, %67 : vector<32x32x16xf32>
    %c0_i32 = arith.constant 0 : i32
    %69 = arith.cmpi eq, %arg0, %c0_i32 : i32
    %70 = arith.extui %69 : i1 to i32
    %c0_i32_34 = arith.constant 0 : i32
    %71 = arith.cmpi ne, %70, %c0_i32_34 : i32
    scf.if %71 {
      %cst_99 = arith.constant 0.000000e+00 : f32
      %133 = vector.broadcast %cst_99 : f32 to vector<34x34x16xf32>
      %c0_100 = arith.constant 0 : index
      %c0_101 = arith.constant 0 : index
      %c0_102 = arith.constant 0 : index
      %134 = vector.load %arg14[%c0_100, %c0_101, %c0_102] : memref<34x34x16xf32, #tpu.memory_space<vmem>>, vector<34x34x16xf32>
      tpu.vector_store %arg14[%c0_100, %c0_101, %c0_102], %133 {strides = array<i32>} : memref<34x34x16xf32, #tpu.memory_space<vmem>>, vector<34x34x16xf32>,
    } else {
    }
    %c1_35 = arith.constant 1 : index
    %c1_36 = arith.constant 1 : index
    %c0_37 = arith.constant 0 : index
    %72 = vector.load %arg14[%c1_35, %c1_36, %c0_37] : memref<34x34x16xf32, #tpu.memory_space<vmem>>, vector<32x32x16xf32>
    tpu.vector_store %arg14[%c1_35, %c1_36, %c0_37], %68 {strides = array<i32>} : memref<34x34x16xf32, #tpu.memory_space<vmem>>, vector<32x32x16xf32>,
    %c0_38 = arith.constant 0 : index
    %c0_39 = arith.constant 0 : index
    %73 = vector.load %arg11[%c0_38, %c0_39] : memref<16x1xf32, #tpu.memory_space<vmem>>, vector<16x1xf32>
    %74 = vector.shape_cast %73 : vector<16x1xf32> to vector<16x1xf32>
    %75 = vector.broadcast %74 : vector<16x1xf32> to vector<16x1024xf32>
    %c0_40 = arith.constant 0 : index
    %c0_41 = arith.constant 0 : index
    %c0_42 = arith.constant 0 : index
    %76 = vector.load %arg14[%c0_40, %c0_41, %c0_42] : memref<34x34x16xf32, #tpu.memory_space<vmem>>, vector<32x32x16xf32>
    %77 = vector.shape_cast %76 : vector<32x32x16xf32> to vector<1024x16xf32>
    %c0_43 = arith.constant 0 : index
    %c0_44 = arith.constant 0 : index
    %c0_45 = arith.constant 0 : index
    %78 = vector.load %arg10[%c0_43, %c0_44, %c0_45] : memref<9x16x16xf32, #tpu.memory_space<vmem>>, vector<1x16x16xf32>
    %79 = vector.shape_cast %78 : vector<1x16x16xf32> to vector<16x16xf32>
    %cst_46 = arith.constant dense<0.000000e+00> : vector<16x1024xf32>
    %80 = tpu.matmul %79, %77, %cst_46 {dimension_numbers = #tpu.dot_dimension_numbers<[1], [1], [0], [0], [0, 0, 1, 0], [], []>} : vector<16x16xf32>, vector<1024x16xf32>, vector<16x1024xf32> -> vector<16x1024xf32>
    %81 = arith.addf %75, %80 : vector<16x1024xf32>
    %c0_47 = arith.constant 0 : index
    %c1_48 = arith.constant 1 : index
    %c0_49 = arith.constant 0 : index
    %82 = vector.load %arg14[%c0_47, %c1_48, %c0_49] : memref<34x34x16xf32, #tpu.memory_space<vmem>>, vector<32x32x16xf32>
    %83 = vector.shape_cast %82 : vector<32x32x16xf32> to vector<1024x16xf32>
    %c1_50 = arith.constant 1 : index
    %c0_51 = arith.constant 0 : index
    %c0_52 = arith.constant 0 : index
    %84 = vector.load %arg10[%c1_50, %c0_51, %c0_52] : memref<9x16x16xf32, #tpu.memory_space<vmem>>, vector<1x16x16xf32>
    %85 = vector.shape_cast %84 : vector<1x16x16xf32> to vector<16x16xf32>
    %cst_53 = arith.constant dense<0.000000e+00> : vector<16x1024xf32>
    %86 = tpu.matmul %85, %83, %cst_53 {dimension_numbers = #tpu.dot_dimension_numbers<[1], [1], [0], [0], [0, 0, 1, 0], [], []>} : vector<16x16xf32>, vector<1024x16xf32>, vector<16x1024xf32> -> vector<16x1024xf32>
    %87 = arith.addf %81, %86 : vector<16x1024xf32>
    %c0_54 = arith.constant 0 : index
    %c2 = arith.constant 2 : index
    %c0_55 = arith.constant 0 : index
    %88 = vector.load %arg14[%c0_54, %c2, %c0_55] : memref<34x34x16xf32, #tpu.memory_space<vmem>>, vector<32x32x16xf32>
    %89 = vector.shape_cast %88 : vector<32x32x16xf32> to vector<1024x16xf32>
    %c2_56 = arith.constant 2 : index
    %c0_57 = arith.constant 0 : index
    %c0_58 = arith.constant 0 : index
    %90 = vector.load %arg10[%c2_56, %c0_57, %c0_58] : memref<9x16x16xf32, #tpu.memory_space<vmem>>, vector<1x16x16xf32>
    %91 = vector.shape_cast %90 : vector<1x16x16xf32> to vector<16x16xf32>
    %cst_59 = arith.constant dense<0.000000e+00> : vector<16x1024xf32>
    %92 = tpu.matmul %91, %89, %cst_59 {dimension_numbers = #tpu.dot_dimension_numbers<[1], [1], [0], [0], [0, 0, 1, 0], [], []>} : vector<16x16xf32>, vector<1024x16xf32>, vector<16x1024xf32> -> vector<16x1024xf32>
    %93 = arith.addf %87, %92 : vector<16x1024xf32>
    %c1_60 = arith.constant 1 : index
    %c0_61 = arith.constant 0 : index
    %c0_62 = arith.constant 0 : index
    %94 = vector.load %arg14[%c1_60, %c0_61, %c0_62] : memref<34x34x16xf32, #tpu.memory_space<vmem>>, vector<32x32x16xf32>
    %95 = vector.shape_cast %94 : vector<32x32x16xf32> to vector<1024x16xf32>
    %c3 = arith.constant 3 : index
    %c0_63 = arith.constant 0 : index
    %c0_64 = arith.constant 0 : index
    %96 = vector.load %arg10[%c3, %c0_63, %c0_64] : memref<9x16x16xf32, #tpu.memory_space<vmem>>, vector<1x16x16xf32>
    %97 = vector.shape_cast %96 : vector<1x16x16xf32> to vector<16x16xf32>
    %cst_65 = arith.constant dense<0.000000e+00> : vector<16x1024xf32>
    %98 = tpu.matmul %97, %95, %cst_65 {dimension_numbers = #tpu.dot_dimension_numbers<[1], [1], [0], [0], [0, 0, 1, 0], [], []>} : vector<16x16xf32>, vector<1024x16xf32>, vector<16x1024xf32> -> vector<16x1024xf32>
    %99 = arith.addf %93, %98 : vector<16x1024xf32>
    %c1_66 = arith.constant 1 : index
    %c1_67 = arith.constant 1 : index
    %c0_68 = arith.constant 0 : index
    %100 = vector.load %arg14[%c1_66, %c1_67, %c0_68] : memref<34x34x16xf32, #tpu.memory_space<vmem>>, vector<32x32x16xf32>
    %101 = vector.shape_cast %100 : vector<32x32x16xf32> to vector<1024x16xf32>
    %c4 = arith.constant 4 : index
    %c0_69 = arith.constant 0 : index
    %c0_70 = arith.constant 0 : index
    %102 = vector.load %arg10[%c4, %c0_69, %c0_70] : memref<9x16x16xf32, #tpu.memory_space<vmem>>, vector<1x16x16xf32>
    %103 = vector.shape_cast %102 : vector<1x16x16xf32> to vector<16x16xf32>
    %cst_71 = arith.constant dense<0.000000e+00> : vector<16x1024xf32>
    %104 = tpu.matmul %103, %101, %cst_71 {dimension_numbers = #tpu.dot_dimension_numbers<[1], [1], [0], [0], [0, 0, 1, 0], [], []>} : vector<16x16xf32>, vector<1024x16xf32>, vector<16x1024xf32> -> vector<16x1024xf32>
    %105 = arith.addf %99, %104 : vector<16x1024xf32>
    %c1_72 = arith.constant 1 : index
    %c2_73 = arith.constant 2 : index
    %c0_74 = arith.constant 0 : index
    %106 = vector.load %arg14[%c1_72, %c2_73, %c0_74] : memref<34x34x16xf32, #tpu.memory_space<vmem>>, vector<32x32x16xf32>
    %107 = vector.shape_cast %106 : vector<32x32x16xf32> to vector<1024x16xf32>
    %c5 = arith.constant 5 : index
    %c0_75 = arith.constant 0 : index
    %c0_76 = arith.constant 0 : index
    %108 = vector.load %arg10[%c5, %c0_75, %c0_76] : memref<9x16x16xf32, #tpu.memory_space<vmem>>, vector<1x16x16xf32>
    %109 = vector.shape_cast %108 : vector<1x16x16xf32> to vector<16x16xf32>
    %cst_77 = arith.constant dense<0.000000e+00> : vector<16x1024xf32>
    %110 = tpu.matmul %109, %107, %cst_77 {dimension_numbers = #tpu.dot_dimension_numbers<[1], [1], [0], [0], [0, 0, 1, 0], [], []>} : vector<16x16xf32>, vector<1024x16xf32>, vector<16x1024xf32> -> vector<16x1024xf32>
    %111 = arith.addf %105, %110 : vector<16x1024xf32>
    %c2_78 = arith.constant 2 : index
    %c0_79 = arith.constant 0 : index
    %c0_80 = arith.constant 0 : index
    %112 = vector.load %arg14[%c2_78, %c0_79, %c0_80] : memref<34x34x16xf32, #tpu.memory_space<vmem>>, vector<32x32x16xf32>
    %113 = vector.shape_cast %112 : vector<32x32x16xf32> to vector<1024x16xf32>
    %c6 = arith.constant 6 : index
    %c0_81 = arith.constant 0 : index
    %c0_82 = arith.constant 0 : index
    %114 = vector.load %arg10[%c6, %c0_81, %c0_82] : memref<9x16x16xf32, #tpu.memory_space<vmem>>, vector<1x16x16xf32>
    %115 = vector.shape_cast %114 : vector<1x16x16xf32> to vector<16x16xf32>
    %cst_83 = arith.constant dense<0.000000e+00> : vector<16x1024xf32>
    %116 = tpu.matmul %115, %113, %cst_83 {dimension_numbers = #tpu.dot_dimension_numbers<[1], [1], [0], [0], [0, 0, 1, 0], [], []>} : vector<16x16xf32>, vector<1024x16xf32>, vector<16x1024xf32> -> vector<16x1024xf32>
    %117 = arith.addf %111, %116 : vector<16x1024xf32>
    %c2_84 = arith.constant 2 : index
    %c1_85 = arith.constant 1 : index
    %c0_86 = arith.constant 0 : index
    %118 = vector.load %arg14[%c2_84, %c1_85, %c0_86] : memref<34x34x16xf32, #tpu.memory_space<vmem>>, vector<32x32x16xf32>
    %119 = vector.shape_cast %118 : vector<32x32x16xf32> to vector<1024x16xf32>
    %c7 = arith.constant 7 : index
    %c0_87 = arith.constant 0 : index
    %c0_88 = arith.constant 0 : index
    %120 = vector.load %arg10[%c7, %c0_87, %c0_88] : memref<9x16x16xf32, #tpu.memory_space<vmem>>, vector<1x16x16xf32>
    %121 = vector.shape_cast %120 : vector<1x16x16xf32> to vector<16x16xf32>
    %cst_89 = arith.constant dense<0.000000e+00> : vector<16x1024xf32>
    %122 = tpu.matmul %121, %119, %cst_89 {dimension_numbers = #tpu.dot_dimension_numbers<[1], [1], [0], [0], [0, 0, 1, 0], [], []>} : vector<16x16xf32>, vector<1024x16xf32>, vector<16x1024xf32> -> vector<16x1024xf32>
    %123 = arith.addf %117, %122 : vector<16x1024xf32>
    %c2_90 = arith.constant 2 : index
    %c2_91 = arith.constant 2 : index
    %c0_92 = arith.constant 0 : index
    %124 = vector.load %arg14[%c2_90, %c2_91, %c0_92] : memref<34x34x16xf32, #tpu.memory_space<vmem>>, vector<32x32x16xf32>
    %125 = vector.shape_cast %124 : vector<32x32x16xf32> to vector<1024x16xf32>
    %c8 = arith.constant 8 : index
    %c0_93 = arith.constant 0 : index
    %c0_94 = arith.constant 0 : index
    %126 = vector.load %arg10[%c8, %c0_93, %c0_94] : memref<9x16x16xf32, #tpu.memory_space<vmem>>, vector<1x16x16xf32>
    %127 = vector.shape_cast %126 : vector<1x16x16xf32> to vector<16x16xf32>
    %cst_95 = arith.constant dense<0.000000e+00> : vector<16x1024xf32>
    %128 = tpu.matmul %127, %125, %cst_95 {dimension_numbers = #tpu.dot_dimension_numbers<[1], [1], [0], [0], [0, 0, 1, 0], [], []>} : vector<16x16xf32>, vector<1024x16xf32>, vector<16x1024xf32> -> vector<16x1024xf32>
    %129 = arith.addf %123, %128 : vector<16x1024xf32>
    %c0_96 = arith.constant 0 : index
    %c0_97 = arith.constant 0 : index
    %c0_98 = arith.constant 0 : index
    %130 = vector.load %arg13[%c0_96, %c0_97, %c0_98] : memref<1x16x1024xf32, #tpu.memory_space<vmem>>, vector<1x16x1024xf32>
    %131 = vector.shape_cast %130 : vector<1x16x1024xf32> to vector<16x1024xf32>
    %132 = vector.shape_cast %129 : vector<16x1024xf32> to vector<1x16x1024xf32>
    tpu.vector_store %arg13[%c0_96, %c0_97, %c0_98], %132 {strides = array<i32>} : memref<1x16x1024xf32, #tpu.memory_space<vmem>>, vector<1x16x1024xf32>,
    return
  }
  func.func @transform_0(%arg0: i32) -> (i32, i32, i32) {
    %c0_i32 = arith.constant 0 : i32
    %c0_i32_0 = arith.constant 0 : i32
    %c0_i32_1 = arith.constant 0 : i32
    return %arg0, %c0_i32, %c0_i32_0 : i32, i32, i32
  }
  func.func @transform_1(%arg0: i32) -> (i32, i32) {
    %c0_i32 = arith.constant 0 : i32
    %c0_i32_0 = arith.constant 0 : i32
    %c0_i32_1 = arith.constant 0 : i32
    return %c0_i32, %c0_i32_0 : i32, i32
  }
  func.func @transform_2(%arg0: i32) -> (i32, i32) {
    %c0_i32 = arith.constant 0 : i32
    %c0_i32_0 = arith.constant 0 : i32
    %c0_i32_1 = arith.constant 0 : i32
    return %c0_i32, %c0_i32_0 : i32, i32
  }
  func.func @transform_3(%arg0: i32) -> (i32, i32) {
    %c0_i32 = arith.constant 0 : i32
    %c0_i32_0 = arith.constant 0 : i32
    %c0_i32_1 = arith.constant 0 : i32
    return %c0_i32, %c0_i32_0 : i32, i32
  }
  func.func @transform_4(%arg0: i32) -> (i32, i32) {
    %c0_i32 = arith.constant 0 : i32
    %c0_i32_0 = arith.constant 0 : i32
    %c0_i32_1 = arith.constant 0 : i32
    return %c0_i32, %c0_i32_0 : i32, i32
  }
  func.func @transform_5(%arg0: i32) -> (i32, i32) {
    %c0_i32 = arith.constant 0 : i32
    %c0_i32_0 = arith.constant 0 : i32
    %c0_i32_1 = arith.constant 0 : i32
    return %c0_i32, %c0_i32_0 : i32, i32
  }
  func.func @transform_6(%arg0: i32) -> (i32, i32) {
    %c0_i32 = arith.constant 0 : i32
    %c0_i32_0 = arith.constant 0 : i32
    %c0_i32_1 = arith.constant 0 : i32
    return %c0_i32, %c0_i32_0 : i32, i32
  }
  func.func @transform_7(%arg0: i32) -> (i32, i32) {
    %c0_i32 = arith.constant 0 : i32
    %c0_i32_0 = arith.constant 0 : i32
    %c0_i32_1 = arith.constant 0 : i32
    return %c0_i32, %c0_i32_0 : i32, i32
  }
  func.func @transform_8(%arg0: i32) -> (i32, i32) {
    %c0_i32 = arith.constant 0 : i32
    %c0_i32_0 = arith.constant 0 : i32
    %c0_i32_1 = arith.constant 0 : i32
    return %c0_i32, %c0_i32_0 : i32, i32
  }
  func.func @transform_9(%arg0: i32) -> (i32, i32, i32) {
    %c0_i32 = arith.constant 0 : i32
    %c0_i32_0 = arith.constant 0 : i32
    %c0_i32_1 = arith.constant 0 : i32
    %c0_i32_2 = arith.constant 0 : i32
    return %c0_i32, %c0_i32_0, %c0_i32_1 : i32, i32, i32
  }
  func.func @transform_10(%arg0: i32) -> (i32, i32) {
    %c0_i32 = arith.constant 0 : i32
    %c0_i32_0 = arith.constant 0 : i32
    %c0_i32_1 = arith.constant 0 : i32
    return %c0_i32, %c0_i32_0 : i32, i32
  }
  func.func @transform_11(%arg0: i32) -> i32 {
    %c0_i32 = arith.constant 0 : i32
    %c0_i32_0 = arith.constant 0 : i32
    return %c0_i32 : i32
  }
  func.func @transform_12(%arg0: i32) -> (i32, i32, i32) {
    %c0_i32 = arith.constant 0 : i32
    %c0_i32_0 = arith.constant 0 : i32
    %c0_i32_1 = arith.constant 0 : i32
    return %arg0, %c0_i32, %c0_i32_0 : i32, i32, i32
  }
}

</mosaic_0001>

<bundles_post_ra>
// kernel: tpu_custom_call.1
= control target key start
LH: loop header
LB: loop body
LE: loop exit
PB: predicated region body
PF: predicated region fallthrough
CT: control target
= control target key end

     0   :  { %s25048_s0 = inlined_call_operand.hbm [shape: f32[2,16,1024], index: 0, kind: input, shape index: {}]   ;;  %s25049_s1 = inlined_call_operand.vmem [shape: f32[128,16], index: 1, kind: input, shape index: {}]   ;;  %s25050_s2 = inlined_call_operand.vmem [shape: f32[32,4], index: 2, kind: input, shape index: {}]   ;;  %s25051_s3 = inlined_call_operand.vmem [shape: f32[16,2], index: 3, kind: input, shape index: {}]   ;;  %s25052_s4 = inlined_call_operand.vmem [shape: f32[1,2], index: 4, kind: input, shape index: {}]   ;;  %s25053_s5 = inlined_call_operand.vmem [shape: f32[16,2], index: 5, kind: input, shape index: {}]   ;;  %s25054_s6 = inlined_call_operand.vmem [shape: f32[1,2], index: 6, kind: input, shape index: {}]   ;;  %s25055_s7 = inlined_call_operand.vmem [shape: f32[16,16], index: 7, kind: input, shape index: {}]   ;;  %s25056_s8 = inlined_call_operand.vmem [shape: f32[1,16], index: 8, kind: input, shape index: {}]   ;;  %s25057_s9 = inlined_call_operand.vmem [shape: f32[9,16,16], index: 9, kind: input, shape index: {}]   ;;  %s25058_s10 = inlined_call_operand.vmem [shape: f32[16,1], index: 10, kind: input, shape index: {}]   ;;  %s25059_s11 = inlined_call_operand.vmem [shape: f32[2], index: 11, kind: input, shape index: {}]   ;;  %s25060_s12 = inlined_call_operand.hbm [shape: f32[2,16,1024], index: 12, kind: output, shape index: {}]  }
   0x1   :  { %25273 = sst [smem:[#allocation183_spill]] %s25059_s11 }
   0x2   :  { %17 = vsyncpa [#allocation4], 0 }
   0x3   :  { %19 = vsyncpa [#allocation4 + $0x1], 0 }
   0x4   :  { %20 = vsyncpa [#allocation6], 0 }
   0x5   :  { %21 = vsyncpa [#allocation5], 0 }
   0x6   :  { %23 = vsyncpa [#allocation5 + $0x1], 0  ;;  %s20263_s21 = smov 0   ;;  %s20265_s22 = smov 0  }
   0x7   :  { %s20267_s23 = smov 0   ;;  %s20269_s24 = smov 0  }
   0x8 LB: > { %25274 = sst [smem:[#allocation12_spill]] %s20175_s21  ;;  %s20284_s25 = sadd.s32 4294967295, %s20187_s24   ;;  %s20187_s24 = sphi %s20269_s24, %s25975_s24   ;;  %s20183_s23 = sphi %s20267_s23, %s25977_s23   ;;  %s20179_s22 = sphi %s20265_s22, %s25979_s22   ;;  %s20175_s21 = sphi %s20263_s21, %s25978_s21  }
   0x9   : > { %25275 = sst [smem:[#allocation13_spill]] %s20183_s23  ;;  %s14325_s26 = sadd.s32 4294967294, %s20187_s24  }
   0xa   : > { %s20288_s27 = sadd.s32 1, %s20187_s24   ;;  %s36_s28 = sadd.s32 1, %s20183_s23 }
   0xb   : > { %25276 = sst [smem:[#allocation14_spill]] %s20288_s27  ;;  %s33_s29 = ssub.s32 %s20187_s24, %s20288_s27 }
   0xc   : > { %p43_p0 = scmp.ne.s32.totalorder %s20183_s23, %s20179_s22  ;;  %p34_p1 = scmp.eq.s32.totalorder %s33_s29, 0 }
   0xd   : > { %p44_p2 = scmp.eq.s32.totalorder %s20187_s24, 0  ;;  %p49_p3 = scmp.ne.s32.totalorder %s20179_s22, %s20175_s21 }
   0xe   : > { %p25062_p4 = scmp.eq.s32.totalorder %s20284_s25, 0  ;;  %p304_p7 = scmp.eq.s32.totalorder %s20284_s25, 1 }
   0xf   : > { %s20300_s30 = scalar_select %p34_p1, %s20183_s23, %s36_s28  }
  0x10   : > { %p20302_p5 = por %p44_p2, %p43_p0  ;;  %p20308_p6 = por %p25062_p4, %p49_p3 }
  0x11   : > { %25277 = sst [smem:[#allocation15_spill]] %s20300_s30  ;;  %p310_p8 = scmp.eq.s32.totalorder %s14325_s26, 1 }
  0x12   : > { %s25279_s14 = scalar_select %p20308_p6, 1, 0 }
  0x13   : > { %p14326_p9 = scmp.ge.s32.totalorder %s20187_s24, 1  ;;  %p317_p10 = scmp.lt.s32.totalorder %s20187_s24, 3 }
  0x14   : > { %p20315_p11 = por %p304_p7, %p43_p0  ;;  %p20319_p12 = por %p310_p8, %p49_p3 }
  0x15   : > { %p20323_p13 = pnand %p14326_p9, %p317_p10  ;;  %s25284_s11 = sld [smem:[#allocation183_spill]] }
  0x16   : > { %s25280_s15 = scalar_select %p20315_p11, 1, 0 }
  0x17   : > { %s25281_s16 = scalar_select %p20319_p12, 1, 0 }
  0x18   : > { %p19983_p2 = pneg %p20323_p13  ;;  %p19996_p7 = scmp.lt.s32.totalorder %s20187_s24, 2 }
  0x19   : > { %25282 = sst [smem:[#allocation16_spill]] %s25281_s16  ;;  %s371_s28 = sand.u32 1, %s20183_s23  }
  0x1a   : > { %p20337_p3 = pnand %p19983_p2, %p25062_p4  ;;  %p20344_p8 = pnand %p19996_p7, %p20302_p5 }
  0x1b   : > { %s360_s20 = sshll.u32 %s25284_s11, 4  ;;  %s14329_s30 = sshll.u32 %s371_s28, 7  ;;  %s361_s20 = int_to_ptr.vmem [resolvable:$true] %s360_s20 }
  0x1c   : > { %s20072_s18 = scalar_lea.vmem %s361_s20, 16  ;;  %p20074_p10 = pneg %p20337_p3 }
  0x1d   : > { %p20073_p9 = scmp.ne.s32.totalorder %s361_s20, %s20072_s18  ;;  %p20080_p12 = scmp.lt.s32.totalorder %s361_s20, %s361_s20 }
  0x1e   : > { %p20081_p11 = scmp.lt.s32.totalorder %s20072_s18, %s20072_s18 }
  0x1f   : > { %p20075_p1 = pnand %p20074_p10, %p20073_p9 }
  0x20   : > { %p20082_p2 = por %p20081_p11, %p20080_p12 }
  0x21   : > { %p20076_p0 = pneg %p20075_p1 }
  0x23   : > { %p20083_p4 = pnand %p20082_p2, %p20076_p0 }
  0x25   : > { %20086 = shalt.err (!%p20083_p4)
}
  0x26   : > { %s20189_s19 = smov [#allocation7]   ;;  %s15904_s13 = sshll.u32 %s20187_s24, 11 }
  0x27   : > { %19986 = dma.vmem_to_smem (!%p20337_p3), %s361_s20, 16, %s20189_s19, [#allocation6]  }
  0x28   : > { %s375_s11 = scalar_lea.vmem [#allocation3], %s14329_s30  ;;  %s20356_s21 = scalar_lea.hbm %s25048_s0, %s15904_s13 }
  0x29   : > { %s382_s23 = sshll.u32 %s375_s11, 4  ;;  %s20360_s18 = scalar_lea.sflag [#allocation4], %s371_s28  ;;  %s20358_s23 = int_to_ptr.vmem [resolvable:$true] %s382_s23 }
  0x2a   : > { %s20087_s26 = scalar_lea.hbm %s20356_s21, 2048  ;;  %p20089_p5 = pneg %p20344_p8 }
  0x2b   : > { %p20088_p4 = scmp.ne.s32.totalorder %s20356_s21, %s20087_s26  ;;  %s20092_s30 = scalar_lea.hbm %s25048_s0, 4096 }
  0x2c   : > { %p20093_p1 = scmp.lt.u32.totalorder %s20356_s21, %s25048_s0  ;;  %p20094_p0 = scmp.lt.u32.totalorder %s20092_s30, %s20087_s26 }
  0x2d   : > { %p20090_p11 = pnand %p20089_p5, %p20088_p4  ;;  %p20096_p3 = scmp.lt.u32.totalorder %s20087_s26, %s20356_s21 }
  0x2e   : > { %p20095_p7 = por %p20094_p0, %p20093_p1 }
  0x2f   : > { %p20091_p12 = pneg %p20090_p11 }
  0x30   : > { %p20097_p9 = por %p20096_p3, %p20095_p7 }
  0x32   : > { %p20098_p10 = pnand %p20097_p9, %p20091_p12 }
  0x34   : > { %20101 = shalt.err (!%p20098_p10)
}
  0x35   : > { %s20102_s28 = scalar_lea.vmem %s20358_s23, 2048  ;;  %s20190_s19 = smov [#allocation3]  }
  0x36   : > { %p20103_p2 = scmp.ne.s32.totalorder %s20358_s23, %s20102_s28  ;;  %s20107_s13 = sshll.u32 %s20190_s19, 4  ;;  %s20108_s13 = int_to_ptr.vmem [resolvable:$false] %s20107_s13 }
  0x37   : > { %s20109_s11 = scalar_lea.vmem %s20108_s13, 4096  ;;  %p20110_p6 = scmp.lt.s32.totalorder %s20358_s23, %s20108_s13 }
  0x38   : > { %p20105_p4 = pnand %p20103_p2, %p20089_p5  ;;  %p20111_p1 = scmp.lt.s32.totalorder %s20109_s11, %s20102_s28 }
  0x3a   : > { %p20106_p11 = pneg %p20105_p4  ;;  %p20112_p0 = por %p20111_p1, %p20110_p6 }
  0x3c   : > { %p20113_p7 = pnand %p20112_p0, %p20106_p11 }
  0x3e   : > { %20116 = shalt.err (!%p20113_p7)
}
  0x3f   : > { %s20191_s26 = smov 1024   ;;  %s20192_s27 = smov 64  }
  0x40   : > { %19990 = dma.hbm_to_vmem [thread:$0]  (!%p20344_p8), %s20356_s21, 2048, %s20358_s23, %s20360_s18, %s20191_s26, %s20191_s26, %s20192_s27  }
  0x41   : > { %394 = sbr.rel (%p20323_p13) target bundleno = 4183 (0x1057), region = 68 }
  0x48   : > { %s20391_s30 = sand.u32 1, %s20179_s22   ;;  %p25287_p6 = scmp.ne.s32.totalorder %s25279_s14, 0 }
  0x49   : > { %s14333_s16 = sshll.u32 %s20391_s30, 7  ;;  %s397_s20 = scalar_lea.sflag [#allocation4], %s20391_s30 }
  0x4a   : > { %s20397_s28 = scalar_lea.vmem [#allocation3], %s14333_s16 }
  0x4b   : > { %20162 = dma.done.wait (%p25287_p6), %s397_s20, 2048  }
  0x4c   : > { %20164 = vsyncadd (%p25287_p6), %s397_s20, 4294965248  ;;  %p25288_p8 = scmp.eq.s32.totalorder %s20284_s25, 0 }
  0x4e   : > { %20166 = dma.done.wait (%p25288_p8), [#allocation6], 16   ;;  %p25289_p13 = pmov %p25288_p8 }
  0x50   : > { %20168 = vsyncadd (%p25289_p13), [#allocation6], 4294967280 }
  0x51   : > { %409 = sfence }
  0x52   : > { %v452_v0 = vld [vmem:[%s20397_s28 + $0x20] sm:$0xff]  ;;  %v453_v4 = vld [vmem:[%s20397_s28 + $0x28] sm:$0xff]  ;;  %v454_v5 = vld [vmem:[%s20397_s28 + $0x30] sm:$0xff]  ;;  %vm720_vm0 = vcmask 130048   ;;  %vm1098_vm1 = vcmask 1041409   ;;  %vm1100_vm2 = vcmask 1042434  }
  0x53   : > { %v448_v1 = vld [vmem:[%s20397_s28] sm:$0xff]  ;;  %592 = vxpose.xlu1.b32.start [1/2] (short) %v452_v0, 128  ;;  %2023 = vmatprep.mubr.f32.mxu1 %v453_v4  ;;  %v450_v6 = vld [vmem:[%s20397_s28 + $0x10] sm:$0xff]  ;;  %v449_v9 = vld [vmem:[%s20397_s28 + $0x8] sm:$0xff]  ;;  %vm1102_vm3 = vcmask 1043459   ;;  %vm1104_vm4 = vcmask 1044484   ;;  %vm1106_vm5 = vcmask 1045509  }
  0x54   : > { %464 = vxpose.xlu0.b32.start [1/2] (short) %v448_v1, 128  ;;  %v460_v2 = vld [vmem:[%s20397_s28 + $0x60] sm:$0xff]  ;;  %v462_v7 = vld [vmem:[%s20397_s28 + $0x70] sm:$0xff]  ;;  %v461_v10 = vld [vmem:[%s20397_s28 + $0x68] sm:$0xff]  ;;  %vm1108_vm6 = vcmask 1046534   ;;  %vm1110_vm7 = vcmask 1047559   ;;  %vm1366_vm8 = vcmask 15360  }
  0x55   : > { %v456_v3 = vld [vmem:[%s20397_s28 + $0x40] sm:$0xff]  ;;  %v458_v8 = vld [vmem:[%s20397_s28 + $0x50] sm:$0xff]  ;;  %v457_v11 = vld [vmem:[%s20397_s28 + $0x48] sm:$0xff]  ;;  %s446_s11 = sld [smem:[#allocation7]]  ;;  %vm3491_vm10 = vcmask 31744   ;;  %vm3504_vm11 = vcmask 1043456  }
  0x56   : > { %v455_v40 = vld [vmem:[%s20397_s28 + $0x38] sm:$0xff]  ;;  %vm18058_vm9 = vmpackc.low %vm1366_vm8, %vm1366_vm8  ;;  %s14336_s27 = sld [smem:[#allocation7 + $0x1]]  ;;  %s22845_s20 = scalar_lea.vmem [#allocation8], %s14333_s16 }
  0x57   : > { %593 = vxpose.xlu1.b32.end [2/2] (short) %v460_v2, 128  ;;  %v451_v41 = vld [vmem:[%s20397_s28 + $0x18] sm:$0xff]  ;;  %vm21683_vm12 = vmpackc.low %vm720_vm0, %vm720_vm0  ;;  %p25887_p5 = scmp.ne.s32.totalorder %s20284_s25, 0 }
  0x58   : > { %465 = vxpose.xlu0.b32.end [2/2] (short) %v456_v3, 128  ;;  %v463_v44 = vld [vmem:[%s20397_s28 + $0x78] sm:$0xff]  ;;  %vm6297_vm13 = vcmask (!%p25887_p5), 123904  }
  0x59   : > { %v459_v45 = vld [vmem:[%s20397_s28 + $0x58] sm:$0xff] }
  0x90   : > { %656 = vxpose.xlu1.b32.start [1/2] (short) %v454_v5, 128 }
  0x91   : > { %528 = vxpose.xlu0.b32.start [1/2] (short) %v450_v6, 128 }
  0x94   : > { %657 = vxpose.xlu1.b32.end [2/2] (short) %v462_v7, 128 }
  0x95   : > { %529 = vxpose.xlu0.b32.end [2/2] (short) %v458_v8, 128 }
  0xcd   : > { %624 = vxpose.xlu1.b32.start [1/2] (short) %v453_v4, 128 }
  0xce   : > { %496 = vxpose.xlu0.b32.start [1/2] (short) %v449_v9, 128 }
  0xd1   : > { %625 = vxpose.xlu1.b32.end [2/2] (short) %v461_v10, 128 }
  0xd2   : > { %497 = vxpose.xlu0.b32.end [2/2] (short) %v457_v11, 128 }
  0xd3   : > { %v20419_v12 = vpop.trf.xlu1 }
  0xd4   : > { %25290 = vst [vmem:[#allocation17_spill] sm:$0xff] %v20419_v12  ;;  %v20421_v13 = vpop.trf.xlu0 }
  0xd5   : > { %25291 = vst [vmem:[#allocation18_spill] sm:$0xff] %v20421_v13 }
  0xd7   : > { %v20423_v14 = vpop.trf.xlu1 }
  0xd8   : > { %25292 = vst [vmem:[#allocation19_spill] sm:$0xff] %v20423_v14  ;;  %v20425_v15 = vpop.trf.xlu0 }
  0xd9   : > { %25293 = vst [vmem:[#allocation20_spill] sm:$0xff] %v20425_v15 }
  0xdb   : > { %v20427_v16 = vpop.trf.xlu1 }
  0xdc   : > { %25294 = vst [vmem:[#allocation21_spill] sm:$0xff] %v20427_v16  ;;  %v20429_v17 = vpop.trf.xlu0 }
  0xdd   : > { %25295 = vst [vmem:[#allocation22_spill] sm:$0xff] %v20429_v17 }
  0xdf   : > { %v20431_v18 = vpop.trf.xlu1 }
  0xe0   : > { %25296 = vst [vmem:[#allocation23_spill] sm:$0xff] %v20431_v18  ;;  %v20433_v19 = vpop.trf.xlu0 }
  0xe1   : > { %25297 = vst [vmem:[#allocation24_spill] sm:$0xff] %v20433_v19 }
  0xe3   : > { %v20435_v20 = vpop.trf.xlu1 }
  0xe4   : > { %25298 = vst [vmem:[#allocation25_spill] sm:$0xff] %v20435_v20  ;;  %v20437_v21 = vpop.trf.xlu0 }
  0xe5   : > { %25299 = vst [vmem:[#allocation26_spill] sm:$0xff] %v20437_v21 }
  0xe7   : > { %v20439_v22 = vpop.trf.xlu1 }
  0xe8   : > { %25300 = vst [vmem:[#allocation27_spill] sm:$0xff] %v20439_v22  ;;  %v20441_v23 = vpop.trf.xlu0 }
  0xe9   : > { %25301 = vst [vmem:[#allocation28_spill] sm:$0xff] %v20441_v23 }
  0xeb   : > { %v20443_v24 = vpop.trf.xlu1 }
  0xec   : > { %25302 = vst [vmem:[#allocation29_spill] sm:$0xff] %v20443_v24  ;;  %v20445_v25 = vpop.trf.xlu0 }
  0xed   : > { %25303 = vst [vmem:[#allocation30_spill] sm:$0xff] %v20445_v25 }
  0xef   : > { %v20447_v26 = vpop.trf.xlu1 }
  0xf0   : > { %25304 = vst [vmem:[#allocation31_spill] sm:$0xff] %v20447_v26  ;;  %v20449_v27 = vpop.trf.xlu0 }
  0xf1   : > { %25305 = vst [vmem:[#allocation32_spill] sm:$0xff] %v20449_v27 }
  0xf3   : > { %v20451_v28 = vpop.trf.xlu1 }
  0xf4   : > { %25306 = vst [vmem:[#allocation33_spill] sm:$0xff] %v20451_v28  ;;  %v20453_v29 = vpop.trf.xlu0 }
  0xf5   : > { %25307 = vst [vmem:[#allocation34_spill] sm:$0xff] %v20453_v29 }
  0xf7   : > { %v20455_v30 = vpop.trf.xlu1 }
  0xf8   : > { %25308 = vst [vmem:[#allocation35_spill] sm:$0xff] %v20455_v30  ;;  %v20457_v31 = vpop.trf.xlu0 }
  0xf9   : > { %25309 = vst [vmem:[#allocation36_spill] sm:$0xff] %v20457_v31 }
  0xfb   : > { %v20459_v32 = vpop.trf.xlu1 }
  0xfc   : > { %25310 = vst [vmem:[#allocation37_spill] sm:$0xff] %v20459_v32  ;;  %v20461_v33 = vpop.trf.xlu0 }
  0xfd   : > { %25311 = vst [vmem:[#allocation38_spill] sm:$0xff] %v20461_v33 }
  0xff   : > { %v20463_v34 = vpop.trf.xlu1 }
 0x100   : > { %25312 = vst [vmem:[#allocation39_spill] sm:$0xff] %v20463_v34  ;;  %v20465_v35 = vpop.trf.xlu0 }
 0x101   : > { %25313 = vst [vmem:[#allocation40_spill] sm:$0xff] %v20465_v35 }
 0x103   : > { %v20467_v36 = vpop.trf.xlu1 }
 0x104   : > { %25314 = vst [vmem:[#allocation41_spill] sm:$0xff] %v20467_v36  ;;  %v20469_v37 = vpop.trf.xlu0 }
 0x105   : > { %25315 = vst [vmem:[#allocation42_spill] sm:$0xff] %v20469_v37 }
 0x107   : > { %v20471_v38 = vpop.trf.xlu1 }
 0x108   : > { %25316 = vst [vmem:[#allocation43_spill] sm:$0xff] %v20471_v38  ;;  %v20473_v39 = vpop.trf.xlu0 }
 0x109   : > { %25317 = vst [vmem:[#allocation44_spill] sm:$0xff] %v20473_v39 }
 0x10b   : > { %v20477_v42 = vpop.trf.xlu1  ;;  %688 = vxpose.xlu1.b32.start [1/2] (short) %v455_v40, 128 }
 0x10c   : > { %25318 = vst [vmem:[#allocation45_spill] sm:$0xff] %v20477_v42  ;;  %v20479_v43 = vpop.trf.xlu0  ;;  %560 = vxpose.xlu0.b32.start [1/2] (short) %v451_v41, 128 }
 0x10d   : > { %25319 = vst [vmem:[#allocation46_spill] sm:$0xff] %v20479_v43 }
 0x10f   : > { %v20483_v46 = vpop.trf.xlu1  ;;  %689 = vxpose.xlu1.b32.end [2/2] (short) %v463_v44, 128 }
 0x110   : > { %25320 = vst [vmem:[#allocation47_spill] sm:$0xff] %v20483_v46  ;;  %v20485_v47 = vpop.trf.xlu0  ;;  %561 = vxpose.xlu0.b32.end [2/2] (short) %v459_v45, 128 }
 0x111   : > { %25321 = vst [vmem:[#allocation48_spill] sm:$0xff] %v20485_v47 }
 0x113   : > { %v20487_v48 = vpop.trf.xlu1 }
 0x114   : > { %25322 = vst [vmem:[#allocation49_spill] sm:$0xff] %v20487_v48  ;;  %v20489_v49 = vpop.trf.xlu0 }
 0x115   : > { %25323 = vst [vmem:[#allocation50_spill] sm:$0xff] %v20489_v49 }
 0x117   : > { %v20491_v50 = vpop.trf.xlu1 }
 0x118   : > { %25324 = vst [vmem:[#allocation51_spill] sm:$0xff] %v20491_v50  ;;  %v20493_v51 = vpop.trf.xlu0 }
 0x119   : > { %25325 = vst [vmem:[#allocation52_spill] sm:$0xff] %v20493_v51 }
 0x11b   : > { %v20495_v52 = vpop.trf.xlu1 }
 0x11c   : > { %25326 = vst [vmem:[#allocation53_spill] sm:$0xff] %v20495_v52  ;;  %v20497_v53 = vpop.trf.xlu0 }
 0x11d   : > { %25327 = vst [vmem:[#allocation54_spill] sm:$0xff] %v20497_v53 }
 0x11f   : > { %v20499_v54 = vpop.trf.xlu1 }
 0x120   : > { %25328 = vst [vmem:[#allocation55_spill] sm:$0xff] %v20499_v54  ;;  %v20501_v55 = vpop.trf.xlu0 }
 0x121   : > { %25329 = vst [vmem:[#allocation56_spill] sm:$0xff] %v20501_v55 }
 0x123   : > { %v20503_v56 = vpop.trf.xlu1 }
 0x124   : > { %25330 = vst [vmem:[#allocation57_spill] sm:$0xff] %v20503_v56  ;;  %v20505_v57 = vpop.trf.xlu0 }
 0x125   : > { %25331 = vst [vmem:[#allocation58_spill] sm:$0xff] %v20505_v57 }
 0x127   : > { %v20507_v58 = vpop.trf.xlu1 }
 0x128   : > { %25332 = vst [vmem:[#allocation59_spill] sm:$0xff] %v20507_v58  ;;  %v20509_v59 = vpop.trf.xlu0 }
 0x129   : > { %25333 = vst [vmem:[#allocation60_spill] sm:$0xff] %v20509_v59 }
 0x12b   : > { %v20511_v60 = vpop.trf.xlu1 }
 0x12c   : > { %25334 = vst [vmem:[#allocation61_spill] sm:$0xff] %v20511_v60  ;;  %v20513_v61 = vpop.trf.xlu0  ;;  %v721_v60 = vsel %vm720_vm0, %v20421_v13, -inf }
 0x12d   : > { %25335 = vst [vmem:[#allocation62_spill] sm:$0xff] %v20513_v61 }
 0x12f   : > { %v20515_v62 = vpop.trf.xlu1 }
 0x130   : > { %25336 = vst [vmem:[#allocation63_spill] sm:$0xff] %v20515_v62  ;;  %v20517_v63 = vpop.trf.xlu0 }
 0x131   : > { %25337 = vst [vmem:[#allocation64_spill] sm:$0xff] %v20517_v63 }
 0x133   : > { %v20519_v0 = vpop.trf.xlu1 }
 0x134   : > { %25338 = vst [vmem:[#allocation65_spill] sm:$0xff] %v20519_v0  ;;  %v20521_v1 = vpop.trf.xlu0 }
 0x135   : > { %25339 = vst [vmem:[#allocation66_spill] sm:$0xff] %v20521_v1 }
 0x137   : > { %v20523_v2 = vpop.trf.xlu1 }
 0x138   : > { %25340 = vst [vmem:[#allocation67_spill] sm:$0xff] %v20523_v2  ;;  %v20525_v3 = vpop.trf.xlu0 }
 0x139   : > { %25341 = vst [vmem:[#allocation68_spill] sm:$0xff] %v20525_v3  ;;  %v1199_v3 = vld [vmem:[%s25053_s5 + $0x8] sm:$0xff] }
 0x13b   : > { %v20527_v4 = vpop.trf.xlu1 }
 0x13c   : > { %25342 = vst [vmem:[#allocation69_spill] sm:$0xff] %v20527_v4  ;;  %v20529_v5 = vpop.trf.xlu0  ;;  %v1198_v4 = vld [vmem:[%s25053_s5] sm:$0xff] }
 0x13d   : > { %25343 = vst [vmem:[#allocation70_spill] sm:$0xff] %v20529_v5 }
 0x13f   : > { %v20531_v6 = vpop.trf.xlu1 }
 0x140   : > { %25344 = vst [vmem:[#allocation71_spill] sm:$0xff] %v20531_v6  ;;  %v20533_v7 = vpop.trf.xlu0 }
 0x141   : > { %25345 = vst [vmem:[#allocation72_spill] sm:$0xff] %v20533_v7 }
 0x143   : > { %v20535_v8 = vpop.trf.xlu1 }
 0x144   : > { %25346 = vst [vmem:[#allocation73_spill] sm:$0xff] %v20535_v8  ;;  %v20537_v9 = vpop.trf.xlu0 }
 0x145   : > { %25347 = vst [vmem:[#allocation74_spill] sm:$0xff] %v20537_v9 }
 0x147   : > { %v20539_v10 = vpop.trf.xlu1 }
 0x148   : > { %25348 = vst [vmem:[#allocation75_spill] sm:$0xff] %v20539_v10  ;;  %v20541_v11 = vpop.trf.xlu0 }
 0x149   : > { %25349 = vst [vmem:[#allocation76_spill] sm:$0xff] %v20541_v11 }
 0x14b   : > { %v20543_v40 = vpop.trf.xlu1 }
 0x14c   : > { %25350 = vst [vmem:[#allocation77_spill] sm:$0xff] %v20543_v40  ;;  %v20545_v41 = vpop.trf.xlu0 }
 0x14d   : > { %25351 = vst [vmem:[#allocation78_spill] sm:$0xff] %v20545_v41  ;;  %v1073_v41 = vld [vmem:[%s25051_s3] sm:$0xff] }
 0x14f   : > { %v20547_v44 = vpop.trf.xlu1 }
 0x150   : > { %25352 = vst [vmem:[#allocation79_spill] sm:$0xff] %v20547_v44  ;;  %v20549_v45 = vpop.trf.xlu0 }
 0x151   : > { %25353 = vst [vmem:[#allocation80_spill] sm:$0xff] %v20549_v45  ;;  %v1074_v45 = vld [vmem:[%s25051_s3 + $0x8] sm:$0xff] }
 0x152   : > { %v18045_v44 = vpack.c.bf16 %v1074_v45, %v1073_v41 }
 0x153   : > { %v20551_v5 = vpop.trf.xlu1 }
 0x154   : > { %25354 = vst [vmem:[#allocation81_spill] sm:$0xff] %v20551_v5  ;;  %v20553_v6 = vpop.trf.xlu0  ;;  %18046 = vmatprep.subr.bf16.mxu0 %v18045_v44 }
 0x155   : > { %25355 = vst [vmem:[#allocation82_spill] sm:$0xff] %v20553_v6  ;;  %18048 = vmatpush3.bf16.msra.mxu0 %v18045_v44 }
 0x157   : > { %v20555_v7 = vpop.trf.xlu1 }
 0x158   : > { %25356 = vst [vmem:[#allocation83_spill] sm:$0xff] %v20555_v7  ;;  %v20557_v8 = vpop.trf.xlu0 }
 0x159   : > { %25357 = vst [vmem:[#allocation84_spill] sm:$0xff] %v20557_v8 }
 0x15b   : > { %v20559_v9 = vpop.trf.xlu1 }
 0x15c   : > { %25358 = vst [vmem:[#allocation85_spill] sm:$0xff] %v20559_v9  ;;  %v20561_v10 = vpop.trf.xlu0  ;;  %v20583_v9 = vpack.c.bf16 %v1199_v3, %v1198_v4 }
 0x15d   : > { %25359 = vst [vmem:[#allocation86_spill] sm:$0xff] %v20561_v10 }
 0x15e   : > { %25364 = vst [vmem:[#allocation91_spill] sm:$0xff] %v20583_v9  ;;  %18050 = vmatprep.subr.bf16.mxu0 %v20583_v9 }
 0x15f   : > { %v20569_v40 = vpop.trf.xlu1 }
 0x160   : > { %25360 = vst [vmem:[#allocation87_spill] sm:$0xff] %v20569_v40  ;;  %v20571_v11 = vpop.trf.xlu0 }
 0x161   : > { %25361 = vst [vmem:[#allocation88_spill] sm:$0xff] %v20571_v11 }
 0x163   : > { %v20579_v2 = vpop.trf.xlu1 }
 0x164   : > { %25362 = vst [vmem:[#allocation89_spill] sm:$0xff] %v20579_v2  ;;  %v20581_v10 = vpop.trf.xlu0 }
 0x165   : > { %25363 = vst [vmem:[#allocation90_spill] sm:$0xff] %v20581_v10 }
 0x167   : > { %v20586_v41 = vpop.trf.xlu1 }
 0x168   : > { %25365 = vst [vmem:[#allocation92_spill] sm:$0xff] %v20586_v41  ;;  %v20588_v45 = vpop.trf.xlu0 }
 0x169   : > { %25366 = vst [vmem:[#allocation93_spill] sm:$0xff] %v20588_v45 }
 0x16b   : > { %v20590_v44 = vpop.trf.xlu1 }
 0x16c   : > { %25367 = vst [vmem:[#allocation94_spill] sm:$0xff] %v20590_v44  ;;  %v20592_v11 = vpop.trf.xlu0 }
 0x16d   : > { %25368 = vst [vmem:[#allocation95_spill] sm:$0xff] %v20592_v11  ;;  %v841_v11 = vsel %vm720_vm0, %v20419_v12, -inf  ;;  %v766_v12 = vsel %vm720_vm0, %v20433_v19, -inf  ;;  %v752_v19 = vsel %vm720_vm0, %v20445_v25, -inf }
 0x16f   : > { %v20594_v40 = vpop.trf.xlu1 }
 0x170   : > { %25369 = vst [vmem:[#allocation96_spill] sm:$0xff] %v20594_v40  ;;  %v20596_v1 = vpop.trf.xlu0 }
 0x171   : > { %25370 = vst [vmem:[#allocation97_spill] sm:$0xff] %v20596_v1 }
 0x173   : > { %v20598_v0 = vpop.trf.xlu1 }
 0x174   : > { %25371 = vst [vmem:[#allocation98_spill] sm:$0xff] %v20598_v0  ;;  %v20600_v63 = vpop.trf.xlu0 }
 0x175   : > { %25372 = vst [vmem:[#allocation99_spill] sm:$0xff] %v20600_v63 }
 0x177   : > { %v20602_v3 = vpop.trf.xlu1 }
 0x178   : > { %25373 = vst [vmem:[#allocation100_spill] sm:$0xff] %v20602_v3  ;;  %v20604_v4 = vpop.trf.xlu0 }
 0x179   : > { %25374 = vst [vmem:[#allocation101_spill] sm:$0xff] %v20604_v4 }
 0x17b   : > { %v20606_v9 = vpop.trf.xlu1 }
 0x17c   : > { %25375 = vst [vmem:[#allocation102_spill] sm:$0xff] %v20606_v9  ;;  %v20608_v62 = vpop.trf.xlu0  ;;  %v856_v9 = vsel %vm720_vm0, %v20423_v14, -inf  ;;  %v842_v14 = vsel %vm720_vm0, %v20435_v20, -inf  ;;  %v767_v20 = vsel %vm720_vm0, %v20449_v27, -inf }
 0x17d   : > { %25376 = vst [vmem:[#allocation103_spill] sm:$0xff] %v20608_v62  ;;  %v736_v62 = vsel %vm720_vm0, %v20425_v15, -inf  ;;  %v722_v15 = vsel %vm720_vm0, %v20437_v21, -inf  ;;  %v844_v21 = vsel %vm720_vm0, %v20451_v28, -inf  ;;  %v768_v10 = vmax.f32 %v766_v12, %v767_v20 }
 0x17e   : > { %v723_v25 = vmax.f32 %v721_v60, %v722_v15  ;;  %v889_v15 = vsel %vm720_vm0, %v20463_v34, -inf  ;;  %v726_v12 = vsel %vm720_vm0, %v20469_v37, -inf }
 0x17f   : > { %v20610_v61 = vpop.trf.xlu1 }
 0x180   : > { %25377 = vst [vmem:[#allocation104_spill] sm:$0xff] %v20610_v61  ;;  %v20612_v44 = vpop.trf.xlu0  ;;  %v751_v61 = vsel %vm720_vm0, %v20429_v17, -inf  ;;  %v737_v17 = vsel %vm720_vm0, %v20441_v23, -inf  ;;  %v859_v23 = vsel %vm720_vm0, %v20455_v30, -inf  ;;  %v874_v30 = vsel %vm720_vm0, %v20459_v32, -inf  ;;  %v25396_v32 = vld [vmem:[#allocation101_spill] sm:$0xff] }
 0x181   : > { %25378 = vst [vmem:[#allocation105_spill] sm:$0xff] %v20612_v44  ;;  %v871_v44 = vsel %vm720_vm0, %v20427_v16, -inf  ;;  %v857_v16 = vsel %vm720_vm0, %v20439_v22, -inf  ;;  %v724_v22 = vsel %vm720_vm0, %v20453_v29, -inf  ;;  %v738_v0 = vmax.f32 %v736_v62, %v737_v17 }
 0x182   : > { %v858_v63 = vmax.f32 %v856_v9, %v857_v16  ;;  %v753_v3 = vmax.f32 %v751_v61, %v752_v19  ;;  %v725_v29 = vmax.f32 %v723_v25, %v724_v22  ;;  %v769_v16 = vsel %vm720_vm0, %v20465_v35, -inf }
 0x183   : > { %v20614_v40 = vpop.trf.xlu1  ;;  %v861_v17 = vsel %vm720_vm0, %v20471_v38, -inf  ;;  %v20692_v22 = vsel %vm720_vm0, %v20479_v43, -inf  ;;  %v20708_v62 = vmax.f32 %v768_v10, %v769_v16  ;;  %v20752_v16 = vsel %vm720_vm0, %v20501_v55, -inf }
 0x184   : > { %25379 = vst [vmem:[#allocation106_spill] sm:$0xff] %v20614_v40  ;;  %v20616_v1 = vpop.trf.xlu0  ;;  %v860_v59 = vmax.f32 %v858_v63, %v859_v23  ;;  %v20696_v23 = vsel %vm720_vm0, %v20483_v46, -inf  ;;  %v25393_v46 = vld [vmem:[#allocation89_spill] sm:$0xff] }
 0x185   : > { %25380 = vst [vmem:[#allocation107_spill] sm:$0xff] %v20616_v1  ;;  %v886_v1 = vsel %vm720_vm0, %v20431_v18, -inf  ;;  %v872_v18 = vsel %vm720_vm0, %v20443_v24, -inf  ;;  %v739_v24 = vsel %vm720_vm0, %v20457_v31, -inf }
 0x186   : > { %v873_v27 = vmax.f32 %v871_v44, %v872_v18  ;;  %v740_v58 = vmax.f32 %v738_v0, %v739_v24  ;;  %v741_v18 = vsel %vm720_vm0, %v20473_v39, -inf  ;;  %v20700_v24 = vsel %vm720_vm0, %v20485_v47, -inf }
 0x187   : > { %v20634_v40 = vpop.trf.xlu1  ;;  %v727_v0 = vmax.f32 %v725_v29, %v726_v12  ;;  %v20724_v29 = vsel %vm720_vm0, %v20487_v48, -inf  ;;  %v20740_v44 = vsel %vm720_vm0, %v20495_v52, -inf  ;;  %v782_v12 = vsel %vm720_vm0, %v20505_v57, -inf  ;;  %v25391_v52 = vld [vmem:[#allocation59_spill] sm:$0xff] }
 0x188   : > { %25381 = vst [vmem:[#allocation108_spill] sm:$0xff] %v20634_v40  ;;  %v20636_v13 = vpop.trf.xlu0  ;;  %v843_v40 = vmax.f32 %v841_v11, %v842_v14  ;;  %v754_v14 = vsel %vm720_vm0, %v20461_v33, -inf  ;;  %v20702_v25 = vmax.f32 %v873_v27, %v874_v30  ;;  %v742_v9 = vmax.f32 %v740_v58, %v741_v18 }
 0x189   : > { %25382 = vst [vmem:[#allocation109_spill] sm:$0xff] %v20636_v13  ;;  %v887_v13 = vsel %vm720_vm0, %v20447_v26, -inf  ;;  %v20704_v60 = vmax.f32 %v753_v3, %v754_v14  ;;  %v20728_v58 = vsel %vm720_vm0, %v20489_v49, -inf  ;;  %v20744_v3 = vsel %vm720_vm0, %v20497_v53, -inf }
 0x18a   : > { %v888_v28 = vmax.f32 %v886_v1, %v887_v13  ;;  %v845_v2 = vmax.f32 %v843_v40, %v844_v21  ;;  %v846_v13 = vsel %vm720_vm0, %v20467_v36, -inf  ;;  %v20688_v21 = vsel %vm720_vm0, %v20477_v42, -inf  ;;  %v25394_v42 = vld [vmem:[#allocation90_spill] sm:$0xff]  ;;  %v25395_v36 = vld [vmem:[#allocation100_spill] sm:$0xff] }
 0x18b   : > { %v20662_v26 = vpop.trf.xlu1  ;;  %v862_v1 = vmax.f32 %v860_v59, %v861_v17  ;;  %v20732_v59 = vsel %vm720_vm0, %v20491_v50, -inf  ;;  %v863_v14 = vsel %vm720_vm0, %v20555_v7, -inf  ;;  %v20760_v17 = vsel %vm720_vm0, %v20499_v54, -inf  ;;  %v25392_v50 = vld [vmem:[#allocation60_spill] sm:$0xff] }
 0x18c   : > { %25383 = vst [vmem:[#allocation110_spill] sm:$0xff] %v20662_v26  ;;  %v20664_v4 = vpop.trf.xlu0  ;;  %v20706_v61 = vmax.f32 %v888_v28, %v889_v15  ;;  %v847_v63 = vmax.f32 %v845_v2, %v846_v13  ;;  %v20736_v2 = vsel %vm720_vm0, %v20493_v51, -inf  ;;  %v743_v15 = vsel %vm720_vm0, %v20557_v8, -inf }
 0x18d   : > { %25384 = vst [vmem:[#allocation111_spill] sm:$0xff] %v20664_v4  ;;  %v902_v13 = vsel %vm720_vm0, %v20503_v56, -inf  ;;  %v848_v18 = vsel %vm720_vm0, %v20551_v5, -inf  ;;  %v728_v30 = vsel %vm720_vm0, %v20553_v6, -inf  ;;  %v865_v27 = vsel %vm720_vm0, %v20586_v41, -inf  ;;  %v25423_v6 = vld [vmem:[#allocation87_spill] sm:$0xff] }
 0x18e   : > { %v745_v40 = vsel %vm720_vm0, %v20588_v45, -inf  ;;  %v20776_v54 = vsel %vm720_vm0, %v25391_v52, -inf  ;;  %v20780_v48 = vsel %vm720_vm0, %v25392_v50, -inf  ;;  %v864_v7 = vmax.f32 %v862_v1, %v863_v14  ;;  %v25397_v50 = vld [vmem:[#allocation98_spill] sm:$0xff] }
 0x18f   : > { %v20682_v19 = vpop.trf.xlu1  ;;  %v744_v5 = vmax.f32 %v742_v9, %v743_v15  ;;  %v850_v41 = vsel %vm720_vm0, %v25393_v46, -inf  ;;  %v730_v38 = vsel %vm720_vm0, %v25394_v42, -inf  ;;  %v867_v34 = vsel %vm720_vm0, %v25395_v36, -inf  ;;  %v25398_v9 = vld [vmem:[#allocation99_spill] sm:$0xff]  ;;  %v25399_v15 = vld [vmem:[#allocation108_spill] sm:$0xff] }
 0x190   : > { %25385 = vst [vmem:[#allocation112_spill] sm:$0xff] %v20682_v19  ;;  %v20684_v20 = vpop.trf.xlu0  ;;  %v747_v57 = vsel %vm720_vm0, %v25396_v32, -inf  ;;  %v849_v52 = vmax.f32 %v847_v63, %v848_v18  ;;  %v729_v55 = vmax.f32 %v727_v0, %v728_v30  ;;  %v866_v53 = vmax.f32 %v864_v7, %v865_v27  ;;  %v25400_v49 = vld [vmem:[#allocation109_spill] sm:$0xff]  ;;  %v25404_v30 = vld [vmem:[#allocation62_spill] sm:$0xff] }
 0x191   : > { %25386 = vst [vmem:[#allocation113_spill] sm:$0xff] %v20684_v20  ;;  %v746_v51 = vmax.f32 %v744_v5, %v745_v40  ;;  %v852_v1 = vsel %vm720_vm0, %v25397_v50, -inf  ;;  %v732_v14 = vsel %vm720_vm0, %v25398_v9, -inf  ;;  %v869_v46 = vsel %vm720_vm0, %v25399_v15, -inf  ;;  %v25403_v40 = vld [vmem:[#allocation61_spill] sm:$0xff]  ;;  %v25405_v15 = vld [vmem:[#allocation106_spill] sm:$0xff] }
 0x192   : > { %v749_v45 = vsel %vm720_vm0, %v25400_v49, -inf  ;;  %v851_v63 = vmax.f32 %v849_v52, %v850_v41  ;;  %v731_v0 = vmax.f32 %v729_v55, %v730_v38  ;;  %v868_v7 = vmax.f32 %v866_v53, %v867_v34  ;;  %v25406_v49 = vld [vmem:[#allocation107_spill] sm:$0xff]  ;;  %v25408_v55 = vld [vmem:[#allocation64_spill] sm:$0xff] }
 0x193   : > { %v20718_v28 = vpop.trf.xlu1  ;;  %v748_v5 = vmax.f32 %v746_v51, %v747_v57  ;;  %v20804_v27 = vsel %vm720_vm0, %v25403_v40, -inf  ;;  %v20808_v18 = vsel %vm720_vm0, %v25404_v30, -inf  ;;  %v854_v50 = vsel %vm720_vm0, %v25405_v15, -inf  ;;  %v25407_v51 = vld [vmem:[#allocation63_spill] sm:$0xff] }
 0x194   : > { %25387 = vst [vmem:[#allocation114_spill] sm:$0xff] %v20718_v28  ;;  %v20720_v10 = vpop.trf.xlu0  ;;  %v734_v32 = vsel %vm720_vm0, %v25406_v49, -inf  ;;  %v853_v9 = vmax.f32 %v851_v63, %v852_v1  ;;  %v733_v8 = vmax.f32 %v731_v0, %v732_v14  ;;  %v870_v52 = vmax.f32 %v868_v7, %v869_v46  ;;  %v25411_v1 = vld [vmem:[#allocation65_spill] sm:$0xff]  ;;  %v25414_v63 = vld [vmem:[#allocation86_spill] sm:$0xff] }
 0x195   : > { %25388 = vst [vmem:[#allocation115_spill] sm:$0xff] %v20720_v10  ;;  %v750_v38 = vmax.f32 %v748_v5, %v749_v45  ;;  %v783_v34 = vmax.f32 %v20728_v58, %v782_v12  ;;  %v20817_v53 = vsel %vm720_vm0, %v25407_v51, -inf  ;;  %v20821_v57 = vsel %vm720_vm0, %v25408_v55, -inf  ;;  %v25412_v45 = vld [vmem:[#allocation66_spill] sm:$0xff]  ;;  %v25413_v0 = vld [vmem:[#allocation85_spill] sm:$0xff]  ;;  %v25417_v51 = vld [vmem:[#allocation67_spill] sm:$0xff] }
 0x196   : > { %v903_v41 = vmax.f32 %v20724_v29, %v902_v13  ;;  %v904_v46 = vsel %vm720_vm0, %v25411_v1, -inf  ;;  %v784_v58 = vsel %vm720_vm0, %v25412_v45, -inf  ;;  %v855_v12 = vmax.f32 %v853_v9, %v854_v50 }
 0x197   : > { %v20770_v11 = vpop.trf.xlu1  ;;  %v735_v14 = vmax.f32 %v733_v8, %v734_v32  ;;  %v1024_v32 = vsel %vm720_vm0, %v870_v52, -inf  ;;  %v968_v50 = vsel %vm720_vm0, %v750_v38, -inf  ;;  %v20848_v9 = vmax.f32 %v783_v34, %v784_v58  ;;  %v25418_v52 = vld [vmem:[#allocation68_spill] sm:$0xff] }
 0x198   : > { %25389 = vst [vmem:[#allocation116_spill] sm:$0xff] %v20770_v11  ;;  %v20772_v56 = vpop.trf.xlu0  ;;  %v20846_v8 = vmax.f32 %v903_v41, %v904_v46  ;;  %v878_v29 = vsel %vm720_vm0, %v25413_v0, -inf  ;;  %v758_v13 = vsel %vm720_vm0, %v25414_v63, -inf  ;;  %v919_v5 = vsel %vm720_vm0, %v25417_v51, -inf  ;;  %v25419_v46 = vld [vmem:[#allocation94_spill] sm:$0xff]  ;;  %v25420_v0 = vld [vmem:[#allocation95_spill] sm:$0xff] }
 0x199   : > { %25390 = vst [vmem:[#allocation117_spill] sm:$0xff] %v20772_v56  ;;  %v799_v38 = vsel %vm720_vm0, %v25418_v52, -inf  ;;  %v1017_v41 = vsel %vm720_vm0, %v855_v12, -inf  ;;  %v961_v34 = vsel %vm720_vm0, %v735_v14, -inf  ;;  %v880_v58 = vsel %vm720_vm0, %v25419_v46, -inf  ;;  %v25424_v14 = vld [vmem:[#allocation88_spill] sm:$0xff] }
 0x19a   : > { %v760_v45 = vsel %vm720_vm0, %v25420_v0, -inf  ;;  %v1025_v55 = vrot.slane %v1024_v32, 4  ;;  %v969_v30 = vrot.slane %v968_v50, 4  ;;  %v25421_v49 = vmax.f32 %v20702_v25, %v20688_v21  ;;  %v25425_v46 = vld [vmem:[#allocation102_spill] sm:$0xff]  ;;  %v25426_v0 = vld [vmem:[#allocation103_spill] sm:$0xff] }
 0x19b   : > { %v20798_v36 = vpop.trf.xlu1  ;;  %v25422_v51 = vmax.f32 %v20704_v60, %v20692_v22  ;;  %v893_v12 = vsel %vm720_vm0, %v25423_v6, -inf  ;;  %v773_v47 = vsel %vm720_vm0, %v25424_v14, -inf  ;;  %v882_v43 = vsel %vm720_vm0, %v25425_v46, -inf  ;;  %v25429_v60 = vld [vmem:[#allocation96_spill] sm:$0xff] }
 0x19c   : > { %25401 = vst [vmem:[#allocation118_spill] sm:$0xff] %v20798_v36  ;;  %v20800_v42 = vpop.trf.xlu0  ;;  %v879_v63 = vmax.f32 %v25421_v49, %v878_v29  ;;  %v762_v39 = vsel %vm720_vm0, %v25426_v0, -inf  ;;  %v1018_v37 = vrot.slane %v1017_v41, 4  ;;  %v962_v35 = vrot.slane %v961_v34, 4  ;;  %v25430_v29 = vld [vmem:[#allocation97_spill] sm:$0xff] }
 0x19d   : > { %25402 = vst [vmem:[#allocation119_spill] sm:$0xff] %v20800_v42  ;;  %v759_v52 = vmax.f32 %v25422_v51, %v758_v13  ;;  %v895_v51 = vsel %vm720_vm0, %v25429_v60, -inf  ;;  %v775_v13 = vsel %vm720_vm0, %v25430_v29, -inf  ;;  %v1026_v6 = vmax.f32 %v1024_v32, %v1025_v55  ;;  %v25433_v60 = vld [vmem:[#allocation104_spill] sm:$0xff] }
 0x19e   : > { %v881_v22 = vmax.f32 %v879_v63, %v880_v58  ;;  %v970_v14 = vmax.f32 %v968_v50, %v969_v30  ;;  %v884_v46 = vsel %vm720_vm0, %v20662_v26, -inf  ;;  %v764_v0 = vsel %vm720_vm0, %v20664_v4, -inf  ;;  %v25434_v30 = vld [vmem:[#allocation105_spill] sm:$0xff] }
 0x19f   : > { %v20824_v40 = vpop.trf.xlu1  ;;  %v761_v25 = vmax.f32 %v759_v52, %v760_v45  ;;  %v25431_v33 = vmax.f32 %v20706_v61, %v20696_v23  ;;  %v25432_v45 = vmax.f32 %v20708_v62, %v20700_v24  ;;  %v897_v55 = vsel %vm720_vm0, %v25433_v60, -inf  ;;  %v25437_v62 = vld [vmem:[#allocation69_spill] sm:$0xff] }
 0x1a0   : > { %25409 = vst [vmem:[#allocation120_spill] sm:$0xff] %v20824_v40  ;;  %v20826_v15 = vpop.trf.xlu0  ;;  %v883_v52 = vmax.f32 %v881_v22, %v882_v43  ;;  %v777_v32 = vsel %vm720_vm0, %v25434_v30, -inf  ;;  %v1019_v50 = vmax.f32 %v1017_v41, %v1018_v37  ;;  %v963_v26 = vmax.f32 %v961_v34, %v962_v35  ;;  %v25438_v35 = vld [vmem:[#allocation70_spill] sm:$0xff] }
 0x1a1   : > { %25410 = vst [vmem:[#allocation121_spill] sm:$0xff] %v20826_v15  ;;  %v894_v31 = vmax.f32 %v25431_v33, %v893_v12  ;;  %v774_v63 = vmax.f32 %v25432_v45, %v773_v47  ;;  %v763_v58 = vmax.f32 %v761_v25, %v762_v39  ;;  %v1027_v24 = vrot.slane %v1026_v6, 2 }
 0x1a2   : > { %v885_v61 = vmax.f32 %v883_v52, %v884_v46  ;;  %v971_v47 = vrot.slane %v970_v14, 2  ;;  %v899_v39 = vsel %vm720_vm0, %v20682_v19, -inf  ;;  %v779_v43 = vsel %vm720_vm0, %v20684_v20, -inf }
 0x1a3   : > { %v20854_v1 = vpop.trf.xlu1  ;;  %v896_v23 = vmax.f32 %v894_v31, %v895_v51  ;;  %v776_v33 = vmax.f32 %v774_v63, %v775_v13  ;;  %v765_v12 = vmax.f32 %v763_v58, %v764_v0  ;;  %v934_v37 = vsel %vm720_vm0, %v25437_v62, -inf  ;;  %v25439_v31 = vld [vmem:[#allocation71_spill] sm:$0xff]  ;;  %v25440_v0 = vld [vmem:[#allocation72_spill] sm:$0xff] }
 0x1a4   : > { %25415 = vst [vmem:[#allocation122_spill] sm:$0xff] %v20854_v1  ;;  %v20856_v7 = vpop.trf.xlu0  ;;  %v814_v41 = vsel %vm720_vm0, %v25438_v35, -inf  ;;  %v949_v46 = vsel %vm720_vm0, %v25439_v31, -inf  ;;  %v829_v25 = vsel %vm720_vm0, %v25440_v0, -inf  ;;  %v1020_v51 = vrot.slane %v1019_v50, 2 }
 0x1a5   : > { %25416 = vst [vmem:[#allocation123_spill] sm:$0xff] %v20856_v7  ;;  %v898_v34 = vmax.f32 %v896_v23, %v897_v55  ;;  %v778_v22 = vmax.f32 %v776_v33, %v777_v32  ;;  %v964_v13 = vrot.slane %v963_v26, 2  ;;  %v25443_v52 = vmax.f32 %v20732_v59, %v20776_v54 }
 0x1a6   : > { %v25444_v55 = vmax.f32 %v20736_v2, %v20780_v48  ;;  %v1028_v31 = vmax.f32 %v1026_v6, %v1027_v24  ;;  %v972_v62 = vmax.f32 %v970_v14, %v971_v47  ;;  %v1031_v19 = vsel %vm720_vm0, %v885_v61, -inf }
 0x1a7   : > { %v20882_v21 = vpop.trf.xlu1  ;;  %v20927_v58 = vmax.f32 %v25443_v52, %v919_v5  ;;  %v900_v23 = vmax.f32 %v898_v34, %v899_v39  ;;  %v780_v33 = vmax.f32 %v778_v22, %v779_v43  ;;  %v975_v60 = vsel %vm720_vm0, %v765_v12, -inf  ;;  %v25454_v39 = vld [vmem:[#allocation76_spill] sm:$0xff]  ;;  %v25455_v34 = vld [vmem:[#allocation77_spill] sm:$0xff] }
 0x1a8   : > { %25427 = vst [vmem:[#allocation124_spill] sm:$0xff] %v20882_v21  ;;  %v20884_v49 = vpop.trf.xlu0  ;;  %v20932_v32 = vmax.f32 %v25444_v55, %v799_v38  ;;  %v25445_v0 = vmax.f32 %v20740_v44, %v20804_v27  ;;  %v25446_v54 = vmax.f32 %v20744_v3, %v20808_v18  ;;  %v25447_v48 = vmax.f32 %v20760_v17, %v20817_v53  ;;  %v25449_v38 = vld [vmem:[#allocation73_spill] sm:$0xff]  ;;  %v25450_v27 = vld [vmem:[#allocation74_spill] sm:$0xff] }
 0x1a9   : > { %25428 = vst [vmem:[#allocation125_spill] sm:$0xff] %v20884_v49  ;;  %v25448_v6 = vmax.f32 %v20752_v16, %v20821_v57  ;;  %v906_v44 = vsel %vm720_vm0, %v25449_v38, -inf  ;;  %v786_v14 = vsel %vm720_vm0, %v25450_v27, -inf  ;;  %v1021_v3 = vmax.f32 %v1019_v50, %v1020_v51  ;;  %v25453_v57 = vld [vmem:[#allocation75_spill] sm:$0xff] }
 0x1aa   : > { %v20939_v35 = vmax.f32 %v25445_v0, %v934_v37  ;;  %v20944_v59 = vmax.f32 %v25446_v54, %v814_v41  ;;  %v20949_v2 = vmax.f32 %v25447_v48, %v949_v46  ;;  %v965_v18 = vmax.f32 %v963_v26, %v964_v13  ;;  %v25456_v46 = vld [vmem:[#allocation78_spill] sm:$0xff]  ;;  %v25459_v48 = vld [vmem:[#allocation79_spill] sm:$0xff] }
 0x1ab   : > { %v20904_v29 = vpop.trf.xlu1  ;;  %v20954_v5 = vmax.f32 %v25448_v6, %v829_v25  ;;  %v1032_v17 = vrot.slane %v1031_v19, 4  ;;  %v976_v53 = vrot.slane %v975_v60, 4  ;;  %v1038_v24 = vsel %vm720_vm0, %v900_v23, -inf }
 0x1ac   : > { %25435 = vst [vmem:[#allocation126_spill] sm:$0xff] %v20904_v29  ;;  %v20906_v4 = vpop.trf.xlu0  ;;  %v982_v16 = vsel %vm720_vm0, %v780_v33, -inf  ;;  %v921_v47 = vsel %vm720_vm0, %v25453_v57, -inf  ;;  %v801_v43 = vsel %vm720_vm0, %v25454_v39, -inf  ;;  %v1029_v37 = vrot.slane %v1028_v31, 1 }
 0x1ad   : > { %25436 = vst [vmem:[#allocation127_spill] sm:$0xff] %v20906_v4  ;;  %v973_v41 = vrot.slane %v972_v62, 1  ;;  %v907_v26 = vmax.f32 %v20846_v8, %v906_v44  ;;  %v787_v50 = vmax.f32 %v20848_v9, %v786_v14  ;;  %v936_v22 = vsel %vm720_vm0, %v25455_v34, -inf  ;;  %v25460_v44 = vld [vmem:[#allocation80_spill] sm:$0xff] }
 0x1ae   : > { %v816_v0 = vsel %vm720_vm0, %v25456_v46, -inf  ;;  %v1022_v25 = vrot.slane %v1021_v3, 1  ;;  %v966_v51 = vrot.slane %v965_v18, 1  ;;  %v1039_v13 = vrot.slane %v1038_v24, 4 }
 0x1af   : > { %v20920_v45 = vpop.trf.xlu1  ;;  %v983_v52 = vrot.slane %v982_v16, 4  ;;  %v922_v33 = vmax.f32 %v20927_v58, %v921_v47  ;;  %v802_v8 = vmax.f32 %v20932_v32, %v801_v43  ;;  %v20982_v54 = vmax.f32 %v1031_v19, %v1032_v17 }
 0x1b0   : > { %25441 = vst [vmem:[#allocation128_spill] sm:$0xff] %v20920_v45  ;;  %v20922_v63 = vpop.trf.xlu0  ;;  %v20984_v9 = vmax.f32 %v975_v60, %v976_v53  ;;  %v951_v6 = vsel %vm720_vm0, %v25459_v48, -inf  ;;  %v831_v14 = vsel %vm720_vm0, %v25460_v44, -inf  ;;  %v1030_v34 = vmax.f32 %v1028_v31, %v1029_v37 }
 0x1b1   : > { %25442 = vst [vmem:[#allocation129_spill] sm:$0xff] %v20922_v63  ;;  %v974_v57 = vmax.f32 %v972_v62, %v973_v41  ;;  %v937_v38 = vmax.f32 %v20939_v35, %v936_v22  ;;  %v817_v46 = vmax.f32 %v20944_v59, %v816_v0  ;;  %v908_v58 = vsel %vm720_vm0, %v20718_v28, -inf }
 0x1b2   : > { %v788_v19 = vsel %vm720_vm0, %v20720_v10, -inf  ;;  %v1023_v60 = vmax.f32 %v1021_v3, %v1022_v25  ;;  %v967_v32 = vmax.f32 %v965_v18, %v966_v51  ;;  %v20996_v17 = vmax.f32 %v1038_v24, %v1039_v13 }
 0x1b3   : > { %v20960_v61 = vpop.trf.xlu1  ;;  %v20998_v53 = vmax.f32 %v982_v16, %v983_v52  ;;  %v952_v62 = vmax.f32 %v20949_v2, %v951_v6  ;;  %v832_v35 = vmax.f32 %v20954_v5, %v831_v14  ;;  %v909_v18 = vmax.f32 %v907_v26, %v908_v58 }
 0x1b4   : > { %25451 = vst [vmem:[#allocation130_spill] sm:$0xff] %v20960_v61  ;;  %v20962_v12 = vpop.trf.xlu0  ;;  %v21009_v37 = vsel %vm1098_vm1, %v1030_v34, %v1023_v60  ;;  %v21012_v3 = vsel %vm1098_vm1, %v974_v57, %v967_v32  ;;  %v789_v24 = vmax.f32 %v787_v50, %v788_v19  ;;  %v923_v16 = vsel %vm720_vm0, %v20770_v11, -inf }
 0x1b5   : > { %25452 = vst [vmem:[#allocation131_spill] sm:$0xff] %v20962_v12  ;;  %v803_v2 = vsel %vm720_vm0, %v20772_v56, -inf  ;;  %v910_v5 = vsel %vm720_vm0, %v20854_v1, -inf  ;;  %v790_v41 = vsel %vm720_vm0, %v20856_v7, -inf  ;;  %v938_v57 = vsel %vm720_vm0, %v20798_v36, -inf }
 0x1b6   : > { %v818_v26 = vsel %vm720_vm0, %v20800_v42, -inf  ;;  %v953_v25 = vsel %vm720_vm0, %v20824_v40, -inf  ;;  %v833_v51 = vsel %vm720_vm0, %v20826_v15, -inf  ;;  %v912_v13 = vsel %vm720_vm0, %v20960_v61, -inf }
 0x1b7   : > { %v20976_v55 = vpop.trf.xlu1  ;;  %v792_v52 = vsel %vm720_vm0, %v20962_v12, -inf  ;;  %v924_v6 = vmax.f32 %v922_v33, %v923_v16  ;;  %v804_v14 = vmax.f32 %v802_v8, %v803_v2  ;;  %v911_v58 = vmax.f32 %v909_v18, %v910_v5 }
 0x1b8   : > { %25457 = vst [vmem:[#allocation132_spill] sm:$0xff] %v20976_v55  ;;  %v20978_v23 = vpop.trf.xlu0  ;;  %v791_v19 = vmax.f32 %v789_v24, %v790_v41  ;;  %v939_v60 = vmax.f32 %v937_v38, %v938_v57  ;;  %v819_v32 = vmax.f32 %v817_v46, %v818_v26  ;;  %v925_v22 = vsel %vm720_vm0, %v20882_v21, -inf }
 0x1b9   : > { %25458 = vst [vmem:[#allocation133_spill] sm:$0xff] %v20978_v23  ;;  %v805_v34 = vsel %vm720_vm0, %v20884_v49, -inf  ;;  %v954_v43 = vmax.f32 %v952_v62, %v953_v25  ;;  %v834_v59 = vmax.f32 %v832_v35, %v833_v51  ;;  %v913_v1 = vmax.f32 %v911_v58, %v912_v13 }
 0x1ba   : > { %v793_v40 = vmax.f32 %v791_v19, %v792_v52  ;;  %v927_v33 = vsel %vm720_vm0, %v20976_v55, -inf  ;;  %v807_v38 = vsel %vm720_vm0, %v20978_v23, -inf  ;;  %v926_v62 = vmax.f32 %v924_v6, %v925_v22 }
 0x1bb   : > { %v21000_v47 = vpop.trf.xlu1  ;;  %v806_v35 = vmax.f32 %v804_v14, %v805_v34  ;;  %v940_v16 = vsel %vm720_vm0, %v20904_v29, -inf  ;;  %v820_v2 = vsel %vm720_vm0, %v20906_v4, -inf  ;;  %v955_v5 = vsel %vm720_vm0, %v20920_v45, -inf }
 0x1bc   : > { %25461 = vst [vmem:[#allocation134_spill] sm:$0xff] %v21000_v47  ;;  %v21002_v31 = vpop.trf.xlu0  ;;  %v835_v41 = vsel %vm720_vm0, %v20922_v63, -inf  ;;  %v928_v57 = vmax.f32 %v926_v62, %v927_v33  ;;  %v942_v6 = vsel %vm720_vm0, %v21000_v47, -inf  ;;  %v941_v33 = vmax.f32 %v939_v60, %v940_v16 }
 0x1bd   : > { %25462 = vst [vmem:[#allocation135_spill] sm:$0xff] %v21002_v31  ;;  %v808_v26 = vmax.f32 %v806_v35, %v807_v38  ;;  %v822_v14 = vsel %vm720_vm0, %v21002_v31, -inf  ;;  %v821_v38 = vmax.f32 %v819_v32, %v820_v2  ;;  %v956_v62 = vmax.f32 %v954_v43, %v955_v5 }
 0x1be   : > { %v836_v35 = vmax.f32 %v834_v59, %v835_v41  ;;  %v943_v47 = vmax.f32 %v941_v33, %v942_v6  ;;  %v25476_v33 = vrot.slane %v20998_v53, 2 }
 0x1bf   : > { %v21028_v50 = vpop.trf.xlu1  ;;  %v823_v55 = vmax.f32 %v821_v38, %v822_v14 }
 0x1c0   : > { %25463 = vst [vmem:[#allocation136_spill] sm:$0xff] %v21028_v50  ;;  %v21030_v0 = vpop.trf.xlu0  ;;  %v957_v60 = vsel %vm720_vm0, %v21028_v50, -inf  ;;  %v986_v38 = vmax.f32 %v20998_v53, %v25476_v33 }
 0x1c1   : > { %25464 = vst [vmem:[#allocation137_spill] sm:$0xff] %v21030_v0  ;;  %v837_v32 = vsel %vm720_vm0, %v21030_v0, -inf  ;;  %v958_v6 = vmax.f32 %v956_v62, %v957_v60 }
 0x1c2   : > { %v838_v14 = vmax.f32 %v836_v35, %v837_v32 }
 0x1c3   : > { %v21044_v61 = vpop.trf.xlu1 }
 0x1c4   : > { %25465 = vst [vmem:[#allocation138_spill] sm:$0xff] %v21044_v61  ;;  %v21046_v36 = vpop.trf.xlu0  ;;  %v914_v46 = vsel %vm720_vm0, %v21044_v61, -inf }
 0x1c5   : > { %25466 = vst [vmem:[#allocation139_spill] sm:$0xff] %v21046_v36  ;;  %v794_v8 = vsel %vm720_vm0, %v21046_v36, -inf  ;;  %v915_v18 = vmax.f32 %v913_v1, %v914_v46 }
 0x1c6   : > { %v795_v24 = vmax.f32 %v793_v40, %v794_v8 }
 0x1c7   : > { %v1045_v25 = vsel %vm720_vm0, %v915_v18, -inf  ;;  %v21066_v1 = vpop.trf.xlu1 }
 0x1c8   : > { %v989_v34 = vsel %vm720_vm0, %v795_v24, -inf  ;;  %25467 = vst [vmem:[#allocation140_spill] sm:$0xff] %v21066_v1  ;;  %v21068_v40 = vpop.trf.xlu0  ;;  %v1046_v22 = vrot.slane %v1045_v25, 4  ;;  %v929_v13 = vsel %vm720_vm0, %v21066_v1, -inf }
 0x1c9   : > { %25468 = vst [vmem:[#allocation141_spill] sm:$0xff] %v21068_v40  ;;  %v990_v51 = vrot.slane %v989_v34, 4  ;;  %v809_v52 = vsel %vm720_vm0, %v21068_v40, -inf  ;;  %v930_v58 = vmax.f32 %v928_v57, %v929_v13  ;;  %v25471_v57 = vrot.slane %v20982_v54, 2 }
 0x1ca   : > { %v810_v19 = vmax.f32 %v808_v26, %v809_v52  ;;  %v1047_v46 = vmax.f32 %v1045_v25, %v1046_v22  ;;  %v25472_v25 = vrot.slane %v20984_v9, 2 }
 0x1cb   : > { %v991_v8 = vmax.f32 %v989_v34, %v990_v51  ;;  %v1052_v18 = vsel %vm720_vm0, %v930_v58, -inf  ;;  %v21080_v1 = vpop.trf.xlu1  ;;  %v1035_v26 = vmax.f32 %v20982_v54, %v25471_v57 }
 0x1cc   : > { %v996_v24 = vsel %vm720_vm0, %v810_v19, -inf  ;;  %25469 = vst [vmem:[#allocation142_spill] sm:$0xff] %v21080_v1  ;;  %v21082_v61 = vpop.trf.xlu0  ;;  %v1053_v45 = vrot.slane %v1052_v18, 4  ;;  %v944_v59 = vsel %vm720_vm0, %v21080_v1, -inf  ;;  %v1048_v16 = vrot.slane %v1047_v46, 2 }
 0x1cd   : > { %25470 = vst [vmem:[#allocation143_spill] sm:$0xff] %v21082_v61  ;;  %v997_v29 = vrot.slane %v996_v24, 4  ;;  %v824_v43 = vsel %vm720_vm0, %v21082_v61, -inf  ;;  %v992_v2 = vrot.slane %v991_v8, 2  ;;  %v979_v34 = vmax.f32 %v20984_v9, %v25472_v25 }
 0x1ce   : > { %v1054_v5 = vmax.f32 %v1052_v18, %v1053_v45  ;;  %v945_v22 = vmax.f32 %v943_v47, %v944_v59  ;;  %v825_v51 = vmax.f32 %v823_v55, %v824_v43  ;;  %v25475_v55 = vrot.slane %v20996_v17, 2 }
 0x1cf   : > { %v998_v41 = vmax.f32 %v996_v24, %v997_v29  ;;  %v21098_v13 = vpop.trf.xlu1  ;;  %v1049_v62 = vmax.f32 %v1047_v46, %v1048_v16  ;;  %v993_v35 = vmax.f32 %v991_v8, %v992_v2  ;;  %v1036_v59 = vrot.slane %v1035_v26, 1 }
 0x1d0   : > { %25473 = vst [vmem:[#allocation144_spill] sm:$0xff] %v21098_v13  ;;  %v21100_v52 = vpop.trf.xlu0  ;;  %v1055_v58 = vrot.slane %v1054_v5, 2  ;;  %v1059_v29 = vsel %vm720_vm0, %v945_v22, -inf  ;;  %v1003_v45 = vsel %vm720_vm0, %v825_v51, -inf  ;;  %v959_v54 = vsel %vm720_vm0, %v21098_v13, -inf }
 0x1d1   : > { %25474 = vst [vmem:[#allocation145_spill] sm:$0xff] %v21100_v52  ;;  %v999_v19 = vrot.slane %v998_v41, 2  ;;  %v839_v9 = vsel %vm720_vm0, %v21100_v52, -inf  ;;  %v1042_v47 = vmax.f32 %v20996_v17, %v25475_v55  ;;  %v1060_v18 = vrot.slane %v1059_v29, 4 }
 0x1d2   : > { %v1004_v24 = vrot.slane %v1003_v45, 4  ;;  %v960_v60 = vmax.f32 %v958_v6, %v959_v54  ;;  %v840_v32 = vmax.f32 %v838_v14, %v839_v9  ;;  %v980_v43 = vrot.slane %v979_v34, 1 }
 0x1d3   : > { %v1056_v57 = vmax.f32 %v1054_v5, %v1055_v58  ;;  %v1000_v25 = vmax.f32 %v998_v41, %v999_v19  ;;  %v1061_v22 = vmax.f32 %v1059_v29, %v1060_v18  ;;  %v1043_v53 = vrot.slane %v1042_v47, 1 }
 0x1d4   : > { %v1005_v51 = vmax.f32 %v1003_v45, %v1004_v24  ;;  %v1066_v17 = vsel %vm720_vm0, %v960_v60, -inf  ;;  %v1010_v55 = vsel %vm720_vm0, %v840_v32, -inf  ;;  %v987_v46 = vrot.slane %v986_v38, 1 }
 0x1d5   : > { %v1067_v8 = vrot.slane %v1066_v17, 4  ;;  %v1011_v16 = vrot.slane %v1010_v55, 4  ;;  %v1050_v2 = vrot.slane %v1049_v62, 1  ;;  %v994_v6 = vrot.slane %v993_v35, 1 }
 0x1d6   : > { %v1062_v14 = vrot.slane %v1061_v22, 2  ;;  %v1006_v54 = vrot.slane %v1005_v51, 2  ;;  %v1057_v9 = vrot.slane %v1056_v57, 1  ;;  %v1001_v5 = vrot.slane %v1000_v25, 1 }
 0x1d7   : > { %v1068_v41 = vmax.f32 %v1066_v17, %v1067_v8  ;;  %v1012_v58 = vmax.f32 %v1010_v55, %v1011_v16  ;;  %v1037_v19 = vmax.f32 %v1035_v26, %v1036_v59  ;;  %v981_v29 = vmax.f32 %v979_v34, %v980_v43 }
 0x1d8   : > { %v1063_v45 = vmax.f32 %v1061_v22, %v1062_v14  ;;  %v1007_v33 = vmax.f32 %v1005_v51, %v1006_v54  ;;  %v1044_v18 = vmax.f32 %v1042_v47, %v1043_v53  ;;  %v988_v24 = vmax.f32 %v986_v38, %v987_v46  ;;  %v14340_v53 = vld [vmem:[%s25054_s6] ss:$0 sm:$0xff] }
 0x1d9   : > { %v1069_v60 = vrot.slane %v1068_v41, 2  ;;  %v1013_v32 = vrot.slane %v1012_v58, 2  ;;  %v1051_v13 = vmax.f32 %v1049_v62, %v1050_v2  ;;  %v995_v1 = vmax.f32 %v993_v35, %v994_v6  ;;  %v14343_v6 = vld [vmem:[%s25056_s8] ss:$0 sm:$0xff] }
 0x1da   : > { %v1064_v50 = vrot.slane %v1063_v45, 1  ;;  %v1008_v21 = vrot.slane %v1007_v33, 1  ;;  %v1058_v11 = vmax.f32 %v1056_v57, %v1057_v9  ;;  %v1002_v28 = vmax.f32 %v1000_v25, %v1001_v5 }
 0x1db   : > { %v1070_v48 = vmax.f32 %v1068_v41, %v1069_v60  ;;  %v1014_v52 = vmax.f32 %v1012_v58, %v1013_v32  ;;  %v1101_v17 = vsel %vm1100_vm2, %v981_v29, %v21012_v3  ;;  %v1113_v34 = vsel %vm1100_vm2, %v1037_v19, %v21009_v37  ;;  %v1283_v3 = vld [vmem:[%s25055_s7 + $0x8] sm:$0xff] }
 0x1dc   : > { %v1009_v61 = vmax.f32 %v1007_v33, %v1008_v21  ;;  %v1065_v26 = vmax.f32 %v1063_v45, %v1064_v50  ;;  %v1103_v38 = vsel %vm1102_vm3, %v988_v24, %v1101_v17  ;;  %v1114_v62 = vsel %vm1102_vm3, %v1044_v18, %v1113_v34  ;;  %v1282_v21 = vld [vmem:[%s25055_s7] sm:$0xff] }
 0x1dd   : > { %v1015_v47 = vrot.slane %v1014_v52, 1  ;;  %v1071_v59 = vrot.slane %v1070_v48, 1  ;;  %v1105_v35 = vsel %vm1104_vm4, %v995_v1, %v1103_v38  ;;  %v1115_v43 = vsel %vm1104_vm4, %v1051_v13, %v1114_v62 }
 0x1de   : > { %v1107_v50 = vsel %vm1106_vm5, %v1002_v28, %v1105_v35  ;;  %v1116_v25 = vsel %vm1106_vm5, %v1058_v11, %v1115_v43  ;;  %v18053_v55 = vpack.c.bf16 %v1283_v3, %v1282_v21  ;;  %v14337_v11 = vld [vmem:[%s25052_s4] ss:$0 sm:$0xff] }
 0x1df   : > { %v1016_v37 = vmax.f32 %v1014_v52, %v1015_v47  ;;  %v1072_v57 = vmax.f32 %v1070_v48, %v1071_v59  ;;  %v1109_v22 = vsel %vm1108_vm6, %v1009_v61, %v1107_v50  ;;  %v1117_v1 = vsel %vm1108_vm6, %v1065_v26, %v1116_v25  ;;  %v25477_v52 = vld [vmem:[#allocation91_spill] sm:$0xff]  ;;  %v20055_v25 = vld [vmem:[%s20397_s28 + $0x28] sm:$0xff] }
 0x1e1   : > { %v21134_v51 = vsel %vm1110_vm7, %v1016_v37, %v1109_v22  ;;  %v21136_v13 = vsel %vm1110_vm7, %v1072_v57, %v1117_v1  ;;  %v1564_v57 = vld [vmem:[%s25049_s1] sm:$0xff]  ;;  %v20056_v22 = vld [vmem:[%s20397_s28 + $0x68] sm:$0xff] }
 0x1e2   : > { %17534 = vmatprep.mubr.msk.f32.mxu0 %vm720_vm0, %v21134_v51  ;;  %v18079_v1 = vpack.c.bf16 %v20056_v22, %v20055_v25  ;;  %v20070_v25 = vld [vmem:[%s20397_s28 + $0x50] sm:$0xff] }
 0x1e3   : > { %17535 = vmatmul.mubr.msk.f32.vlgmr.msra.gmra.mrb[0].mxu0 %vm720_vm0, %v21136_v13 }
 0x1e4   : > { %18052 = vmatpush3.bf16.msra.mxu0 %v25477_v52  ;;  %17541 = vmatprep.mubr.msk.f32.mxu0 %vm720_vm0, %v21134_v51  ;;  %v20058_v52 = vld [vmem:[%s20397_s28 + $0x60] sm:$0xff] }
 0x1e5   : > { %18054 = vmatprep.subr.bf16.mxu0 %v18053_v55  ;;  %18080 = vmatprep.subr.bf16.mxu1 %v18079_v1  ;;  %v25478_v1 = vld [vmem:[#allocation18_spill] sm:$0xff] }
 0x1e7   : > { %17542 = vmatmul.mubr.msk.f32.vlgmr.msra.gmra.mrb[2].mxu0 %vm720_vm0, %v21136_v13 }
 0x1e8   : > { %18056 = vmatpush3.bf16.msra.mxu0 %v18053_v55  ;;  %17548 = vmatprep.mubr.msk.f32.mxu0 %vm720_vm0, %v21134_v51  ;;  %v20057_v55 = vld [vmem:[%s20397_s28 + $0x20] sm:$0xff] }
 0x1eb   : > { %17549 = vmatmul.mubr.msk.f32.vlgmr.msra.gmra.mrb[4].mxu0 %vm720_vm0, %v21136_v13 }
 0x2b6   : > { %v17536_v28 = vpop.f32.mrb[0].mxu0 }
 0x2b7   : > { %v1189_v61 = vpop.f32.mrb[1].mxu0  ;;  %v1195_v19 = vadd.f32 %v17536_v28, %v14337_v11  ;;  %v20059_v28 = vld [vmem:[%s20397_s28 + $0x30] sm:$0xff] }
 0x2b8   : > { %v1190_v48 = vadd.f32 %v14337_v11, %v1189_v61  ;;  %v18081_v11 = vpack.c.bf16 %v20058_v52, %v20057_v55  ;;  %v20060_v61 = vld [vmem:[%s20397_s28 + $0x70] sm:$0xff] }
 0x2ba   : > { %v17543_v46 = vpop.f32.mrb[2].mxu0  ;;  %17555 = vmatprep.mubr.msk.f32.mxu0 %vm1366_vm8, %v1190_v48  ;;  %18082 = vmatpush1.bf16.xpose.msra.mxu1 %v18081_v11  ;;  %v18085_v48 = vpack.c.bf16 %v20060_v61, %v20059_v28 }
 0x2bb   : > { %v1279_v8 = vadd.f32 %v17543_v46, %v14340_v53  ;;  %v1273_v16 = vpop.f32.mrb[3].mxu0  ;;  %v20062_v46 = vld [vmem:[%s20397_s28 + $0x78] sm:$0xff] }
 0x2bc   : > { %v1274_v2 = vadd.f32 %v14340_v53, %v1273_v16  ;;  %v20061_v53 = vld [vmem:[%s20397_s28 + $0x38] sm:$0xff]  ;;  %v1557_v16 = vstv %s446_s11 }
 0x2be   : > { %v18057_v14 = vpack.c.bf16 %v1279_v8, %v1274_v2  ;;  %v17550_v54 = vpop.f32.mrb[4].mxu0  ;;  %v18083_v8 = vpack.c.bf16 %v20062_v46, %v20061_v53 }
 0x2bf   : > { %v1363_v9 = vadd.f32 %v17550_v54, %v14343_v6  ;;  %v1357_v5 = vpop.f32.mrb[5].mxu0 }
 0x2c0   : > { %v1358_v41 = vadd.f32 %v14343_v6, %v1357_v5  ;;  %18059 = vmatprep.subr.msk.bf16.mxu0 %vm18058_vm9, %v18057_v14  ;;  %18084 = vmatprep.subr.bf16.mxu1 %v18083_v8 }
 0x2c1   : > { %18062 = vmatpush3.bf16.xpose.msk.msra.mxu0 %vm18058_vm9, %v18057_v14  ;;  %2024 = vmatmul.mubr.f32.vlgmr.msra.gmra.mrb[0].mxu1 %v20057_v55  ;;  %v21257_v55 = vld [vmem:[%s25050_s2] sm:$0xff] }
 0x2c2   : > { %v18063_v58 = vpack.c.bf16 %v1363_v9, %v1358_v41  ;;  %18086 = vmatpush1.bf16.xpose.msra.mxu1 %v18085_v48  ;;  %2028 = vmatprep.mubr.f32.mxu1 %v20056_v22 }
 0x2c4   : > { %18064 = vmatprep.subr.bf16.mxu0 %v18063_v58 }
 0x2c5   : > { %2029 = vmatmul.mubr.f32.gmra.mrb[2].mxu1 %v20058_v52 }
 0x2c6   : > { %2098 = vmatprep.mubr.f32.mxu1 %v20061_v53 }
 0x2c8   : > { %17556 = vmatmul.mubr.msk.f32.vlgmr.msra.gmra.mrb[6].mxu0 %vm1366_vm8, %v1195_v19  ;;  %v20064_v19 = vld [vmem:[%s20397_s28 + $0x48] sm:$0xff] }
 0x2c9   : > { %18066 = vmatpush3.bf16.msra.mxu0 %v18063_v58  ;;  %2099 = vmatmul.mubr.f32.vlgmr.msra.gmra.mrb[0].mxu1 %v20059_v28  ;;  %v20063_v58 = vld [vmem:[%s20397_s28 + $0x8] sm:$0xff] }
 0x2ca   : > { %2103 = vmatprep.mubr.f32.mxu1 %v20062_v46  ;;  %v21266_v46 = vld [vmem:[%s25050_s2 + $0x8] sm:$0xff] }
 0x2cd   : > { %2104 = vmatmul.mubr.f32.gmra.mrb[2].mxu1 %v20060_v61 }
 0x2ce   : > { %17791 = vmatprep.mubr.msk.f32.mxu1 %vm3491_vm10, %v21257_v55 }
 0x39b   : > { %v17557_v29 = vpop.f32.mrb[6].mxu0 }
 0x39c   : > { %v1445_v45 = vpop.f32.mrb[7].mxu0  ;;  %v1457_v33 = vsel %vm720_vm0, %v17557_v29, -inf  ;;  %v2100_v52 = vpop.f32.mrb[0].mxu1 }
 0x39d   : > { %1458 = vmax.xlane.f32.xlu1 %v1457_v33  ;;  %v1454_v18 = vsel %vm720_vm0, %v1445_v45, -inf  ;;  %v1566_v33 = vld [vmem:[%s25049_s1 + $0x10] sm:$0xff]  ;;  %v2102_v11 = vpop.f32.mrb[1].mxu1 }
 0x39e   : > { %1455 = vmax.xlane.f32.xlu0 %v1454_v18  ;;  %v20066_v18 = vld [vmem:[%s20397_s28 + $0x40] sm:$0xff] }
 0x3a0   : > { %v21261_v28 = vpop.f32.mrb[2].mxu1 }
 0x3a1   : > { %v2107_v61 = vpop.f32.mrb[3].mxu1 }
 0x42a   : > { %v1459_v24 = vpop.xlane.xlu1 %1458 }
 0x42b   : > { %v1461_v60 = vsub.f32 %v17557_v29, %v1459_v24  ;;  %v1456_v32 = vpop.xlane.xlu0 %1455  ;;  %v18071_v29 = vpack.c.bf16 %v20064_v19, %v20063_v58 }
 0x42c   : > { %v1460_v17 = vsub.f32 %v1445_v45, %v1456_v32  ;;  %v1565_v45 = vld [vmem:[%s25049_s1 + $0x8] sm:$0xff] }
 0x42d   : > { %v1464_v26 = vmul.f32 1.442695, %v1461_v60  ;;  %v1568_v60 = vld [vmem:[%s25049_s1 + $0x20] sm:$0xff]  ;;  %v20067_v32 = vld [vmem:[%s20397_s28 + $0x18] sm:$0xff] }
 0x42e   : > { %v1462_v34 = vmul.f32 1.442695, %v1460_v17  ;;  %v20068_v17 = vld [vmem:[%s20397_s28 + $0x58] sm:$0xff] }
 0x430   : > { %20039 = vpow2.f32 %v1462_v34  ;;  %v1569_v34 = vld [vmem:[%s25049_s1 + $0x28] sm:$0xff] }
 0x431   : > { %20041 = vpow2.f32 %v1464_v26  ;;  %v18075_v26 = vpack.c.bf16 %v20068_v17, %v20067_v32 }
 0x43a   : > { %v20040_v47 = vpop.eup %20039 }
 0x43b   : > { %v1466_v38 = vsel %vm720_vm0, %v20040_v47, 0.0  ;;  %v20042_v59 = vpop.eup %20041 }
 0x43c   : > { %1467 = vadd.xlane.f32.xlu1 %v1466_v38  ;;  %v1469_v62 = vsel %vm720_vm0, %v20042_v59, 0.0  ;;  %v1571_v38 = vld [vmem:[%s25049_s1 + $0x38] sm:$0xff] }
 0x440   : > { %1470 = vadd.xlane.f32.xlu1 %v1469_v62  ;;  %v1573_v62 = vld [vmem:[%s25049_s1 + $0x48] sm:$0xff] }
 0x4c9   : > { %v1468_v35 = vpop.xlane.xlu1 %1467 }
 0x4ca   : > { %20043 = vrcp.f32 %v1468_v35  ;;  %v1574_v35 = vld [vmem:[%s25049_s1 + $0x50] sm:$0xff] }
 0x4cd   : > { %v1471_v43 = vpop.xlane.xlu1 %1470 }
 0x4ce   : > { %20045 = vrcp.f32 %v1471_v43  ;;  %v1575_v43 = vld [vmem:[%s25049_s1 + $0x58] sm:$0xff] }
 0x4d4   : > { %v20044_v21 = vpop.eup %20043 }
 0x4d5   : > { %v1474_v3 = vmul.f32 %v20044_v21, %v20040_v47  ;;  %v1570_v47 = vld [vmem:[%s25049_s1 + $0x30] sm:$0xff]  ;;  %v1576_v21 = vld [vmem:[%s25049_s1 + $0x60] sm:$0xff] }
 0x4d7   : > { %17562 = vmatprep.mubr.msk.f32.mxu0 %vm720_vm0, %v1474_v3  ;;  %v1577_v3 = vld [vmem:[%s25049_s1 + $0x68] sm:$0xff] }
 0x4d8   : > { %v20046_v37 = vpop.eup %20045 }
 0x4d9   : > { %v1475_v50 = vmul.f32 %v20046_v37, %v20042_v59  ;;  %v1572_v59 = vld [vmem:[%s25049_s1 + $0x40] sm:$0xff]  ;;  %v1578_v37 = vld [vmem:[%s25049_s1 + $0x70] sm:$0xff] }
 0x4db   : > { %17563 = vmatmul.mubr.msk.f32.vlgmr.msra.gmra.mrb[8].mxu0 %vm720_vm0, %v1475_v50  ;;  %v1579_v50 = vld [vmem:[%s25049_s1 + $0x78] sm:$0xff] }
 0x4dc   : > { %17569 = vmatprep.mubr.msk.f32.mxu0 %vm720_vm0, %v1564_v57  ;;  %v20069_v57 = vld [vmem:[%s20397_s28 + $0x10] sm:$0xff] }
 0x4dd   : > { %v18077_v22 = vpack.c.bf16 %v20070_v25, %v20069_v57 }
 0x5ae   : > { %v17564_v2 = vpop.f32.mrb[8].mxu0 }
 0x5af   : > { %v1559_v6 = vmul.f32 %v17564_v2, %v1557_v16  ;;  %v1548_v14 = vpop.f32.mrb[9].mxu0 }
 0x5b0   : > { %v1558_v54 = vmul.f32 %v1557_v16, %v1548_v14  ;;  %v21272_v16 = vld [vmem:[%s25050_s2 + $0x10] sm:$0xff] }
 0x5b1   : > { %v1563_v9 = vadd.f32 %v1559_v6, %v21136_v13  ;;  %v20065_v13 = vld [vmem:[%s20397_s28] sm:$0xff]  ;;  %v21284_v6 = vld [vmem:[%s25050_s2 + $0x18] sm:$0xff] }
 0x5b2   : > { %v1562_v5 = vadd.f32 %v1558_v54, %v21134_v51  ;;  %v1567_v51 = vld [vmem:[%s25049_s1 + $0x18] sm:$0xff]  ;;  %v18073_v24 = vpack.c.bf16 %v20066_v18, %v20065_v13 }
 0x5b4   : > { %v18067_v41 = vpack.c.bf16 %v1563_v9, %v1562_v5 }
 0x5b6   : > { %18068 = vmatprep.subr.bf16.mxu0 %v18067_v41 }
 0x5b7   : > { %18070 = vmatpush3.bf16.msra.mxu0 %v18067_v41 }
 0x5b8   : > { %18072 = vmatprep.subr.bf16.mxu0 %v18071_v29 }
 0x5ba   : > { %17570 = vmatmul.mubr.msk.f32.vlgmr.msra.gmra.mrb[10].mxu0 %vm720_vm0, %v1565_v45 }
 0x5bb   : > { %17572 = vmatprep.mubr.msk.f32.mxu0 %vm720_vm0, %v1566_v33 }
 0x5be   : > { %17573 = vmatmul.mubr.msk.f32.gmra.mrb[12].mxu0 %vm720_vm0, %v1567_v51 }
 0x5bf   : > { %17575 = vmatprep.mubr.msk.f32.mxu0 %vm720_vm0, %v1568_v60 }
 0x5c0   : > { %18074 = vmatpush1.bf16.xpose.msra.mxu0 %v18073_v24 }
 0x5c1   : > { %18076 = vmatprep.subr.bf16.mxu0 %v18075_v26 }
 0x5c2   : > { %17576 = vmatmul.mubr.msk.f32.gmra.mrb[14].mxu0 %vm720_vm0, %v1569_v34 }
 0x5c3   : > { %17578 = vmatprep.mubr.msk.f32.mxu0 %vm720_vm0, %v1570_v47 }
 0x5c6   : > { %17579 = vmatmul.mubr.msk.f32.gmra.mrb[16].mxu0 %vm720_vm0, %v1571_v38 }
 0x5c7   : > { %17581 = vmatprep.mubr.msk.f32.mxu0 %vm720_vm0, %v1572_v59 }
 0x5ca   : > { %17582 = vmatmul.mubr.msk.f32.gmra.mrb[18].mxu0 %vm720_vm0, %v1573_v62 }
 0x5cb   : > { %17584 = vmatprep.mubr.msk.f32.mxu0 %vm720_vm0, %v1574_v35 }
 0x5ce   : > { %17585 = vmatmul.mubr.msk.f32.gmra.mrb[20].mxu0 %vm720_vm0, %v1575_v43 }
 0x5cf   : > { %17587 = vmatprep.mubr.msk.f32.mxu0 %vm720_vm0, %v1576_v21 }
 0x5d2   : > { %17588 = vmatmul.mubr.msk.f32.gmra.mrb[22].mxu0 %vm720_vm0, %v1577_v3 }
 0x5d3   : > { %17590 = vmatprep.mubr.msk.f32.mxu0 %vm720_vm0, %v1578_v37 }
 0x5d6   : > { %17591 = vmatmul.mubr.msk.f32.gmra.mrb[24].mxu0 %vm720_vm0, %v1579_v50 }
 0x5d7   : > { %1873 = vmatprep.mubr.f32.mxu0 %v20063_v58 }
 0x5da   : > { %1874 = vmatmul.mubr.f32.vlgmr.msra.gmra.mrb[26].mxu0 %v20065_v13 }
 0x5db   : > { %18078 = vmatpush1.bf16.xpose.msra.mxu0 %v18077_v22  ;;  %1878 = vmatprep.mubr.f32.mxu0 %v20064_v19 }
 0x5de   : > { %1879 = vmatmul.mubr.f32.gmra.mrb[28].mxu0 %v20066_v18 }
 0x5df   : > { %1948 = vmatprep.mubr.f32.mxu0 %v20067_v32 }
 0x5e2   : > { %1949 = vmatmul.mubr.f32.vlgmr.msra.gmra.mrb[26].mxu0 %v20069_v57 }
 0x5e3   : > { %1953 = vmatprep.mubr.f32.mxu0 %v20068_v17 }
 0x5e6   : > { %1954 = vmatmul.mubr.f32.gmra.mrb[28].mxu0 %v20070_v25 }
 0x5e7   : > { %17597 = vmatprep.mubr.msk.f32.mxu0 %vm720_vm0, %v25478_v1 }
 0x68d   : > { %v17571_v48 = vpop.f32.mrb[10].mxu0 }
 0x68e   : > { %v1694_v53 = vpop.f32.mrb[11].mxu0  ;;  %v1790_v5 = vcombine.high %v17571_v48, %v17571_v48 }
 0x68f   : > { %v1789_v8 = vcombine.high %v1694_v53, %v1694_v53  ;;  %17789 = vmatprep.subr.msk.mxu1 %vm3504_vm11, %v1694_v53 }
 0x690   : > { %17790 = vmatpush3.msk.msra.mxu1 %vm3504_vm11, %v1694_v53 }
 0x691   : > { %17792 = vmatmul.mubr.msk.f32.vlgmr.msra.gmra.mrb[4].mxu1 %vm3491_vm10, %v21266_v46  ;;  %17797 = vmatprep.subr.msk.mxu1 %vm3504_vm11, %v1789_v8  ;;  %v17574_v2 = vpop.f32.mrb[12].mxu0 }
 0x692   : > { %17798 = vmatpush3.msk.msra.mxu1 %vm3504_vm11, %v1789_v8  ;;  %17794 = vmatprep.mubr.msk.f32.mxu1 %vm3491_vm10, %v21272_v16  ;;  %v1704_v14 = vpop.f32.mrb[13].mxu0  ;;  %v1792_v47 = vcombine.high %v17574_v2, %v17574_v2 }
 0x693   : > { %17805 = vmatprep.subr.msk.mxu1 %vm3504_vm11, %v17571_v48  ;;  %v1791_v18 = vcombine.high %v1704_v14, %v1704_v14 }
 0x695   : > { %17795 = vmatmul.mubr.msk.f32.gmra.mrb[6].mxu1 %vm3491_vm10, %v21284_v6  ;;  %v21289_v54 = vpop.f32.mrb[14].mxu0 }
 0x696   : > { %17799 = vmatprep.mubr.msk.f32.mxu1 %vm3491_vm10, %v21257_v55  ;;  %v1714_v9 = vpop.f32.mrb[15].mxu0  ;;  %v1794_v21 = vcombine.high %v21289_v54, %v21289_v54 }
 0x697   : > { %v1793_v43 = vcombine.high %v1714_v9, %v1714_v9 }
 0x699   : > { %17800 = vmatmul.mubr.msk.f32.vlgmr.msra.gmra.mrb[8].mxu1 %vm3491_vm10, %v21266_v46  ;;  %v21295_v41 = vpop.f32.mrb[16].mxu0 }
 0x69a   : > { %17806 = vmatpush3.msk.msra.mxu1 %vm3504_vm11, %v17571_v48  ;;  %17802 = vmatprep.mubr.msk.f32.mxu1 %vm3491_vm10, %v21272_v16  ;;  %v21300_v58 = vpop.f32.mrb[17].mxu0  ;;  %v1796_v37 = vcombine.high %v21295_v41, %v21295_v41 }
 0x69b   : > { %17813 = vmatprep.subr.msk.mxu1 %vm3504_vm11, %v1790_v5  ;;  %v1795_v3 = vcombine.high %v21300_v58, %v21300_v58 }
 0x69d   : > { %17803 = vmatmul.mubr.msk.f32.gmra.mrb[10].mxu1 %vm3491_vm10, %v21284_v6  ;;  %v21305_v19 = vpop.f32.mrb[18].mxu0 }
 0x69e   : > { %17807 = vmatprep.mubr.msk.f32.mxu1 %vm3491_vm10, %v21257_v55  ;;  %v21309_v29 = vpop.f32.mrb[19].mxu0  ;;  %v1798_v57 = vcombine.high %v21305_v19, %v21305_v19 }
 0x69f   : > { %v1797_v50 = vcombine.high %v21309_v29, %v21309_v29 }
 0x6a1   : > { %17808 = vmatmul.mubr.msk.f32.vlgmr.msra.gmra.mrb[12].mxu1 %vm3491_vm10, %v21266_v46  ;;  %v21313_v45 = vpop.f32.mrb[20].mxu0 }
 0x6a2   : > { %17814 = vmatpush3.msk.msra.mxu1 %vm3504_vm11, %v1790_v5  ;;  %17810 = vmatprep.mubr.msk.f32.mxu1 %vm3491_vm10, %v21272_v16  ;;  %v21318_v33 = vpop.f32.mrb[21].mxu0  ;;  %v1800_v22 = vcombine.high %v21313_v45, %v21313_v45 }
 0x6a3   : > { %17821 = vmatprep.subr.msk.mxu1 %vm3504_vm11, %v1704_v14  ;;  %v1799_v25 = vcombine.high %v21318_v33, %v21318_v33 }
 0x6a5   : > { %17811 = vmatmul.mubr.msk.f32.gmra.mrb[14].mxu1 %vm3491_vm10, %v21284_v6  ;;  %v21323_v51 = vpop.f32.mrb[22].mxu0 }
 0x6a6   : > { %17815 = vmatprep.mubr.msk.f32.mxu1 %vm3491_vm10, %v21257_v55  ;;  %v21327_v13 = vpop.f32.mrb[23].mxu0 }
 0x6a9   : > { %17816 = vmatmul.mubr.msk.f32.vlgmr.msra.gmra.mrb[16].mxu1 %vm3491_vm10, %v21266_v46  ;;  %v21331_v24 = vpop.f32.mrb[24].mxu0 }
 0x6aa   : > { %17822 = vmatpush3.msk.msra.mxu1 %vm3504_vm11, %v1704_v14  ;;  %17818 = vmatprep.mubr.msk.f32.mxu1 %vm3491_vm10, %v21272_v16  ;;  %v21336_v60 = vpop.f32.mrb[25].mxu0 }
 0x6ab   : > { %17829 = vmatprep.subr.msk.mxu1 %vm3504_vm11, %v1791_v18  ;;  %v1803_v14 = vcombine.high %v21336_v60, %v21336_v60 }
 0x6ad   : > { %17819 = vmatmul.mubr.msk.f32.gmra.mrb[18].mxu1 %vm3491_vm10, %v21284_v6 }
 0x6ae   : > { %17823 = vmatprep.mubr.msk.f32.mxu1 %vm3491_vm10, %v21257_v55 }
 0x6b1   : > { %17824 = vmatmul.mubr.msk.f32.vlgmr.msra.gmra.mrb[20].mxu1 %vm3491_vm10, %v21266_v46 }
 0x6b2   : > { %17830 = vmatpush3.msk.msra.mxu1 %vm3504_vm11, %v1791_v18  ;;  %17826 = vmatprep.mubr.msk.f32.mxu1 %vm3491_vm10, %v21272_v16 }
 0x6b3   : > { %17837 = vmatprep.subr.msk.mxu1 %vm3504_vm11, %v17574_v2 }
 0x6b5   : > { %v1950_v32 = vpop.f32.mrb[26].mxu0  ;;  %17827 = vmatmul.mubr.msk.f32.gmra.mrb[22].mxu1 %vm3491_vm10, %v21284_v6 }
 0x6b6   : > { %v21351_v17 = vadd.f32 %v2100_v52, %v1950_v32  ;;  %v1952_v26 = vpop.f32.mrb[27].mxu0  ;;  %17831 = vmatprep.mubr.msk.f32.mxu1 %vm3491_vm10, %v21257_v55 }
 0x6b7   : > { %v25483_v26 = vld [vmem:[#allocation22_spill] sm:$0xff] }
 0x6b8   : > { %v2109_v34 = vsel %vm720_vm0, %v21351_v17, -inf }
 0x6b9   : > { %17832 = vmatmul.mubr.msk.f32.vlgmr.msra.gmra.mrb[24].mxu1 %vm3491_vm10, %v21266_v46  ;;  %2110 = vmax.xlane.f32.xlu0 %v2109_v34  ;;  %v1955_v38 = vpop.f32.mrb[28].mxu0  ;;  %v25484_v34 = vld [vmem:[#allocation24_spill] sm:$0xff] }
 0x6ba   : > { %17838 = vmatpush3.msk.msra.mxu1 %vm3504_vm11, %v17574_v2  ;;  %v21361_v59 = vadd.f32 %v21261_v28, %v1955_v38  ;;  %v1957_v62 = vpop.f32.mrb[29].mxu0  ;;  %17834 = vmatprep.mubr.msk.f32.mxu1 %vm3491_vm10, %v21272_v16  ;;  %v1801_v28 = vcombine.high %v21327_v13, %v21327_v13  ;;  %v1802_v2 = vcombine.high %v21323_v51, %v21323_v51  ;;  %v25486_v38 = vld [vmem:[#allocation28_spill] sm:$0xff] }
 0x6bb   : > { %17845 = vmatprep.subr.msk.mxu1 %vm3504_vm11, %v1792_v47  ;;  %v25488_v62 = vld [vmem:[#allocation32_spill] sm:$0xff] }
 0x6bc   : > { %v2112_v35 = vsel %vm720_vm0, %v21361_v59, -inf }
 0x6bd   : > { %17835 = vmatmul.mubr.msk.f32.gmra.mrb[26].mxu1 %vm3491_vm10, %v21284_v6  ;;  %2113 = vmax.xlane.f32.xlu1 %v2112_v35  ;;  %v25489_v35 = vld [vmem:[#allocation34_spill] sm:$0xff] }
 0x6be   : > { %17839 = vmatprep.mubr.msk.f32.mxu1 %vm3491_vm10, %v21257_v55 }
 0x6c1   : > { %17840 = vmatmul.mubr.msk.f32.vlgmr.msra.gmra.mrb[28].mxu1 %vm3491_vm10, %v21266_v46 }
 0x6c2   : > { %17846 = vmatpush3.msk.msra.mxu1 %vm3504_vm11, %v1792_v47  ;;  %17842 = vmatprep.mubr.msk.f32.mxu1 %vm3491_vm10, %v21272_v16  ;;  %v25485_v47 = vld [vmem:[#allocation26_spill] sm:$0xff] }
 0x6c3   : > { %17853 = vmatprep.subr.msk.mxu1 %vm3504_vm11, %v1714_v9 }
 0x6c5   : > { %17843 = vmatmul.mubr.msk.f32.gmra.mrb[30].mxu1 %vm3491_vm10, %v21284_v6 }
 0x6c6   : > { %17847 = vmatprep.mubr.msk.f32.mxu1 %vm3491_vm10, %v21257_v55 }
 0x6c9   : > { %17848 = vmatmul.mubr.msk.f32.vlgmr.msra.gmra.mrb[32].mxu1 %vm3491_vm10, %v21266_v46 }
 0x6ca   : > { %17854 = vmatpush3.msk.msra.mxu1 %vm3504_vm11, %v1714_v9  ;;  %17850 = vmatprep.mubr.msk.f32.mxu1 %vm3491_vm10, %v21272_v16 }
 0x6cb   : > { %17861 = vmatprep.subr.msk.mxu1 %vm3504_vm11, %v1793_v43 }
 0x6cd   : > { %17851 = vmatmul.mubr.msk.f32.gmra.mrb[34].mxu1 %vm3491_vm10, %v21284_v6 }
 0x6ce   : > { %17855 = vmatprep.mubr.msk.f32.mxu1 %vm3491_vm10, %v21257_v55 }
 0x6d1   : > { %17856 = vmatmul.mubr.msk.f32.vlgmr.msra.gmra.mrb[36].mxu1 %vm3491_vm10, %v21266_v46 }
 0x6d2   : > { %17862 = vmatpush3.msk.msra.mxu1 %vm3504_vm11, %v1793_v43  ;;  %17858 = vmatprep.mubr.msk.f32.mxu1 %vm3491_vm10, %v21272_v16  ;;  %v25490_v43 = vld [vmem:[#allocation36_spill] sm:$0xff] }
 0x6d3   : > { %17869 = vmatprep.subr.msk.mxu1 %vm3504_vm11, %v21289_v54 }
 0x6d5   : > { %17859 = vmatmul.mubr.msk.f32.gmra.mrb[38].mxu1 %vm3491_vm10, %v21284_v6 }
 0x6d6   : > { %17863 = vmatprep.mubr.msk.f32.mxu1 %vm3491_vm10, %v21257_v55 }
 0x6d9   : > { %17864 = vmatmul.mubr.msk.f32.vlgmr.msra.gmra.mrb[40].mxu1 %vm3491_vm10, %v21266_v46 }
 0x6da   : > { %17870 = vmatpush3.msk.msra.mxu1 %vm3504_vm11, %v21289_v54  ;;  %17866 = vmatprep.mubr.msk.f32.mxu1 %vm3491_vm10, %v21272_v16  ;;  %v1804_v54 = vcombine.high %v21331_v24, %v21331_v24 }
 0x6db   : > { %17877 = vmatprep.subr.msk.mxu1 %vm3504_vm11, %v1794_v21 }
 0x6dd   : > { %17867 = vmatmul.mubr.msk.f32.gmra.mrb[42].mxu1 %vm3491_vm10, %v21284_v6 }
 0x6de   : > { %17871 = vmatprep.mubr.msk.f32.mxu1 %vm3491_vm10, %v21257_v55 }
 0x6e1   : > { %17872 = vmatmul.mubr.msk.f32.vlgmr.msra.gmra.mrb[44].mxu1 %vm3491_vm10, %v21266_v46 }
 0x6e2   : > { %17878 = vmatpush3.msk.msra.mxu1 %vm3504_vm11, %v1794_v21  ;;  %17874 = vmatprep.mubr.msk.f32.mxu1 %vm3491_vm10, %v21272_v16  ;;  %v25491_v21 = vld [vmem:[#allocation38_spill] sm:$0xff] }
 0x6e3   : > { %17885 = vmatprep.subr.msk.mxu1 %vm3504_vm11, %v21300_v58 }
 0x6e5   : > { %17875 = vmatmul.mubr.msk.f32.gmra.mrb[46].mxu1 %vm3491_vm10, %v21284_v6 }
 0x6e6   : > { %17879 = vmatprep.mubr.msk.f32.mxu1 %vm3491_vm10, %v21257_v55 }
 0x6e9   : > { %17880 = vmatmul.mubr.msk.f32.vlgmr.msra.gmra.mrb[48].mxu1 %vm3491_vm10, %v21266_v46 }
 0x6ea   : > { %17886 = vmatpush3.msk.msra.mxu1 %vm3504_vm11, %v21300_v58  ;;  %17882 = vmatprep.mubr.msk.f32.mxu1 %vm3491_vm10, %v21272_v16 }
 0x6eb   : > { %17893 = vmatprep.subr.msk.mxu1 %vm3504_vm11, %v1795_v3 }
 0x6ed   : > { %17883 = vmatmul.mubr.msk.f32.gmra.mrb[50].mxu1 %vm3491_vm10, %v21284_v6 }
 0x6ee   : > { %17887 = vmatprep.mubr.msk.f32.mxu1 %vm3491_vm10, %v21257_v55 }
 0x6f1   : > { %17888 = vmatmul.mubr.msk.f32.vlgmr.msra.gmra.mrb[52].mxu1 %vm3491_vm10, %v21266_v46 }
 0x6f2   : > { %17894 = vmatpush3.msk.msra.mxu1 %vm3504_vm11, %v1795_v3  ;;  %17890 = vmatprep.mubr.msk.f32.mxu1 %vm3491_vm10, %v21272_v16  ;;  %v25492_v3 = vld [vmem:[#allocation40_spill] sm:$0xff] }
 0x6f3   : > { %17901 = vmatprep.subr.msk.mxu1 %vm3504_vm11, %v21295_v41 }
 0x6f5   : > { %17891 = vmatmul.mubr.msk.f32.gmra.mrb[54].mxu1 %vm3491_vm10, %v21284_v6 }
 0x6f6   : > { %17895 = vmatprep.mubr.msk.f32.mxu1 %vm3491_vm10, %v21257_v55 }
 0x6f9   : > { %17896 = vmatmul.mubr.msk.f32.vlgmr.msra.gmra.mrb[56].mxu1 %vm3491_vm10, %v21266_v46 }
 0x6fa   : > { %17902 = vmatpush3.msk.msra.mxu1 %vm3504_vm11, %v21295_v41  ;;  %17898 = vmatprep.mubr.msk.f32.mxu1 %vm3491_vm10, %v21272_v16 }
 0x6fb   : > { %17909 = vmatprep.subr.msk.mxu1 %vm3504_vm11, %v1796_v37 }
 0x6fd   : > { %17899 = vmatmul.mubr.msk.f32.gmra.mrb[58].mxu1 %vm3491_vm10, %v21284_v6 }
 0x6fe   : > { %17903 = vmatprep.mubr.msk.f32.mxu1 %vm3491_vm10, %v21257_v55 }
 0x701   : > { %17904 = vmatmul.mubr.msk.f32.vlgmr.msra.gmra.mrb[60].mxu1 %vm3491_vm10, %v21266_v46 }
 0x702   : > { %17910 = vmatpush3.msk.msra.mxu1 %vm3504_vm11, %v1796_v37  ;;  %17906 = vmatprep.mubr.msk.f32.mxu1 %vm3491_vm10, %v21272_v16  ;;  %v25493_v37 = vld [vmem:[#allocation42_spill] sm:$0xff] }
 0x703   : > { %17917 = vmatprep.subr.msk.mxu1 %vm3504_vm11, %v21309_v29 }
 0x705   : > { %17907 = vmatmul.mubr.msk.f32.gmra.mrb[62].mxu1 %vm3491_vm10, %v21284_v6 }
 0x706   : > { %17911 = vmatprep.mubr.msk.f32.mxu1 %vm3491_vm10, %v21257_v55 }
 0x709   : > { %17912 = vmatmul.mubr.msk.f32.vlgmr.msra.gmra.mrb[64].mxu1 %vm3491_vm10, %v21266_v46 }
 0x70a   : > { %17918 = vmatpush3.msk.msra.mxu1 %vm3504_vm11, %v21309_v29  ;;  %17914 = vmatprep.mubr.msk.f32.mxu1 %vm3491_vm10, %v21272_v16 }
 0x70b   : > { %17925 = vmatprep.subr.msk.mxu1 %vm3504_vm11, %v1797_v50 }
 0x70d   : > { %17915 = vmatmul.mubr.msk.f32.gmra.mrb[66].mxu1 %vm3491_vm10, %v21284_v6 }
 0x70e   : > { %17919 = vmatprep.mubr.msk.f32.mxu1 %vm3491_vm10, %v21257_v55 }
 0x711   : > { %17920 = vmatmul.mubr.msk.f32.vlgmr.msra.gmra.mrb[68].mxu1 %vm3491_vm10, %v21266_v46 }
 0x712   : > { %17926 = vmatpush3.msk.msra.mxu1 %vm3504_vm11, %v1797_v50  ;;  %17922 = vmatprep.mubr.msk.f32.mxu1 %vm3491_vm10, %v21272_v16  ;;  %v25494_v50 = vld [vmem:[#allocation44_spill] sm:$0xff] }
 0x713   : > { %17933 = vmatprep.subr.msk.mxu1 %vm3504_vm11, %v21305_v19 }
 0x715   : > { %17923 = vmatmul.mubr.msk.f32.gmra.mrb[70].mxu1 %vm3491_vm10, %v21284_v6 }
 0x716   : > { %17927 = vmatprep.mubr.msk.f32.mxu1 %vm3491_vm10, %v21257_v55 }
 0x719   : > { %17928 = vmatmul.mubr.msk.f32.vlgmr.msra.gmra.mrb[72].mxu1 %vm3491_vm10, %v21266_v46 }
 0x71a   : > { %17934 = vmatpush3.msk.msra.mxu1 %vm3504_vm11, %v21305_v19  ;;  %17930 = vmatprep.mubr.msk.f32.mxu1 %vm3491_vm10, %v21272_v16 }
 0x71b   : > { %17941 = vmatprep.subr.msk.mxu1 %vm3504_vm11, %v1798_v57 }
 0x71d   : > { %17931 = vmatmul.mubr.msk.f32.gmra.mrb[74].mxu1 %vm3491_vm10, %v21284_v6 }
 0x71e   : > { %17935 = vmatprep.mubr.msk.f32.mxu1 %vm3491_vm10, %v21257_v55 }
 0x721   : > { %17936 = vmatmul.mubr.msk.f32.vlgmr.msra.gmra.mrb[76].mxu1 %vm3491_vm10, %v21266_v46 }
 0x722   : > { %17942 = vmatpush3.msk.msra.mxu1 %vm3504_vm11, %v1798_v57  ;;  %17938 = vmatprep.mubr.msk.f32.mxu1 %vm3491_vm10, %v21272_v16  ;;  %v25495_v57 = vld [vmem:[#allocation46_spill] sm:$0xff] }
 0x723   : > { %17949 = vmatprep.subr.msk.mxu1 %vm3504_vm11, %v21318_v33 }
 0x725   : > { %17939 = vmatmul.mubr.msk.f32.gmra.mrb[78].mxu1 %vm3491_vm10, %v21284_v6 }
 0x726   : > { %17943 = vmatprep.mubr.msk.f32.mxu1 %vm3491_vm10, %v21257_v55 }
 0x729   : > { %17944 = vmatmul.mubr.msk.f32.vlgmr.msra.gmra.mrb[80].mxu1 %vm3491_vm10, %v21266_v46 }
 0x72a   : > { %17950 = vmatpush3.msk.msra.mxu1 %vm3504_vm11, %v21318_v33  ;;  %17946 = vmatprep.mubr.msk.f32.mxu1 %vm3491_vm10, %v21272_v16 }
 0x72b   : > { %17957 = vmatprep.subr.msk.mxu1 %vm3504_vm11, %v1799_v25 }
 0x72d   : > { %17947 = vmatmul.mubr.msk.f32.gmra.mrb[82].mxu1 %vm3491_vm10, %v21284_v6 }
 0x72e   : > { %17951 = vmatprep.mubr.msk.f32.mxu1 %vm3491_vm10, %v21257_v55 }
 0x731   : > { %17952 = vmatmul.mubr.msk.f32.vlgmr.msra.gmra.mrb[84].mxu1 %vm3491_vm10, %v21266_v46 }
 0x732   : > { %17958 = vmatpush3.msk.msra.mxu1 %vm3504_vm11, %v1799_v25  ;;  %17954 = vmatprep.mubr.msk.f32.mxu1 %vm3491_vm10, %v21272_v16  ;;  %v25496_v25 = vld [vmem:[#allocation48_spill] sm:$0xff] }
 0x733   : > { %17965 = vmatprep.subr.msk.mxu1 %vm3504_vm11, %v21313_v45 }
 0x735   : > { %17955 = vmatmul.mubr.msk.f32.gmra.mrb[86].mxu1 %vm3491_vm10, %v21284_v6 }
 0x736   : > { %17959 = vmatprep.mubr.msk.f32.mxu1 %vm3491_vm10, %v21257_v55 }
 0x739   : > { %17960 = vmatmul.mubr.msk.f32.vlgmr.msra.gmra.mrb[88].mxu1 %vm3491_vm10, %v21266_v46 }
 0x73a   : > { %17966 = vmatpush3.msk.msra.mxu1 %vm3504_vm11, %v21313_v45  ;;  %17962 = vmatprep.mubr.msk.f32.mxu1 %vm3491_vm10, %v21272_v16 }
 0x73b   : > { %17973 = vmatprep.subr.msk.mxu1 %vm3504_vm11, %v1800_v22 }
 0x73d   : > { %17963 = vmatmul.mubr.msk.f32.gmra.mrb[90].mxu1 %vm3491_vm10, %v21284_v6 }
 0x73e   : > { %17967 = vmatprep.mubr.msk.f32.mxu1 %vm3491_vm10, %v21257_v55 }
 0x741   : > { %17968 = vmatmul.mubr.msk.f32.vlgmr.msra.gmra.mrb[92].mxu1 %vm3491_vm10, %v21266_v46 }
 0x742   : > { %17974 = vmatpush3.msk.msra.mxu1 %vm3504_vm11, %v1800_v22  ;;  %17970 = vmatprep.mubr.msk.f32.mxu1 %vm3491_vm10, %v21272_v16  ;;  %v25497_v22 = vld [vmem:[#allocation82_spill] sm:$0xff] }
 0x743   : > { %17981 = vmatprep.subr.msk.mxu1 %vm3504_vm11, %v21327_v13 }
 0x745   : > { %17971 = vmatmul.mubr.msk.f32.gmra.mrb[94].mxu1 %vm3491_vm10, %v21284_v6 }
 0x746   : > { %v2111_v52 = vpop.xlane.xlu0 %2110  ;;  %17975 = vmatprep.mubr.msk.f32.mxu1 %vm3491_vm10, %v21257_v55 }
 0x747   : > { %v21572_v11 = vsub.f32 %v2111_v52, %v21351_v17  ;;  %v25482_v17 = vld [vmem:[#allocation20_spill] sm:$0xff] }
 0x748   : > { %v25498_v52 = vld [vmem:[#allocation84_spill] sm:$0xff] }
 0x749   : > { %17976 = vmatmul.mubr.msk.f32.vlgmr.msra.gmra.mrb[96].mxu1 %vm3491_vm10, %v21266_v46  ;;  %v2117_v61 = vsel %vm720_vm0, %v21572_v11, -inf }
 0x74a   : > { %17982 = vmatpush3.msk.msra.mxu1 %vm3504_vm11, %v21327_v13  ;;  %2118 = vmax.xlane.f32.xlu0 %v2117_v61  ;;  %v2114_v48 = vpop.xlane.xlu1 %2113  ;;  %v25501_v61 = vld [vmem:[#allocation90_spill] sm:$0xff] }
 0x74b   : > { %17989 = vmatprep.subr.msk.mxu1 %vm3504_vm11, %v1801_v28  ;;  %v2116_v53 = vsub.f32 %v2114_v48, %v21361_v59  ;;  %17978 = vmatprep.mubr.msk.f32.mxu1 %vm3491_vm10, %v21272_v16  ;;  %v25487_v59 = vld [vmem:[#allocation30_spill] sm:$0xff]  ;;  %v25502_v48 = vld [vmem:[#allocation93_spill] sm:$0xff] }
 0x74d   : > { %17979 = vmatmul.mubr.msk.f32.gmra.mrb[98].mxu1 %vm3491_vm10, %v21284_v6  ;;  %v2120_v8 = vsel %vm720_vm0, %v2116_v53, -inf }
 0x74e   : > { %2121 = vmax.xlane.f32.xlu1 %v2120_v8  ;;  %17983 = vmatprep.mubr.msk.f32.mxu1 %vm3491_vm10, %v21257_v55  ;;  %v25504_v8 = vld [vmem:[#allocation97_spill] sm:$0xff] }
 0x751   : > { %17984 = vmatmul.mubr.msk.f32.vlgmr.msra.gmra.mrb[100].mxu1 %vm3491_vm10, %v21266_v46 }
 0x752   : > { %17990 = vmatpush3.msk.msra.mxu1 %vm3504_vm11, %v1801_v28  ;;  %17986 = vmatprep.mubr.msk.f32.mxu1 %vm3491_vm10, %v21272_v16  ;;  %v25500_v28 = vld [vmem:[#allocation88_spill] sm:$0xff] }
 0x753   : > { %17997 = vmatprep.subr.msk.mxu1 %vm3504_vm11, %v21323_v51 }
 0x755   : > { %17987 = vmatmul.mubr.msk.f32.gmra.mrb[102].mxu1 %vm3491_vm10, %v21284_v6 }
 0x756   : > { %17991 = vmatprep.mubr.msk.f32.mxu1 %vm3491_vm10, %v21257_v55 }
 0x759   : > { %17992 = vmatmul.mubr.msk.f32.vlgmr.msra.gmra.mrb[104].mxu1 %vm3491_vm10, %v21266_v46 }
 0x75a   : > { %17998 = vmatpush3.msk.msra.mxu1 %vm3504_vm11, %v21323_v51  ;;  %17994 = vmatprep.mubr.msk.f32.mxu1 %vm3491_vm10, %v21272_v16 }
 0x75b   : > { %18005 = vmatprep.subr.msk.mxu1 %vm3504_vm11, %v1802_v2 }
 0x75d   : > { %17995 = vmatmul.mubr.msk.f32.gmra.mrb[106].mxu1 %vm3491_vm10, %v21284_v6 }
 0x75e   : > { %17999 = vmatprep.mubr.msk.f32.mxu1 %vm3491_vm10, %v21257_v55 }
 0x761   : > { %18000 = vmatmul.mubr.msk.f32.vlgmr.msra.gmra.mrb[108].mxu1 %vm3491_vm10, %v21266_v46 }
 0x762   : > { %18006 = vmatpush3.msk.msra.mxu1 %vm3504_vm11, %v1802_v2  ;;  %18002 = vmatprep.mubr.msk.f32.mxu1 %vm3491_vm10, %v21272_v16  ;;  %v25505_v2 = vld [vmem:[#allocation99_spill] sm:$0xff] }
 0x763   : > { %18013 = vmatprep.subr.msk.mxu1 %vm3504_vm11, %v21336_v60 }
 0x765   : > { %18003 = vmatmul.mubr.msk.f32.gmra.mrb[110].mxu1 %vm3491_vm10, %v21284_v6 }
 0x766   : > { %18007 = vmatprep.mubr.msk.f32.mxu1 %vm3491_vm10, %v21257_v55 }
 0x769   : > { %18008 = vmatmul.mubr.msk.f32.vlgmr.msra.gmra.mrb[112].mxu1 %vm3491_vm10, %v21266_v46 }
 0x76a   : > { %18014 = vmatpush3.msk.msra.mxu1 %vm3504_vm11, %v21336_v60  ;;  %18010 = vmatprep.mubr.msk.f32.mxu1 %vm3491_vm10, %v21272_v16  ;;  %v25479_v60 = vmov 0 }
 0x76b   : > { %18021 = vmatprep.subr.msk.mxu1 %vm3504_vm11, %v1803_v14  ;;  %v25480_v60 = vsel %vm21683_vm12, 4294967295, %v25479_v60 }
 0x76c   : > { %25481 = vst [vmem:[#allocation91_spill] sm:$0xff] %v25480_v60  ;;  %v25523_v60 = vld [vmem:[#allocation78_spill] sm:$0xff] }
 0x76d   : > { %18011 = vmatmul.mubr.msk.f32.gmra.mrb[114].mxu1 %vm3491_vm10, %v21284_v6 }
 0x76e   : > { %18015 = vmatprep.mubr.msk.f32.mxu1 %vm3491_vm10, %v21257_v55 }
 0x771   : > { %18016 = vmatmul.mubr.msk.f32.vlgmr.msra.gmra.mrb[116].mxu1 %vm3491_vm10, %v21266_v46 }
 0x772   : > { %18022 = vmatpush3.msk.msra.mxu1 %vm3504_vm11, %v1803_v14  ;;  %18018 = vmatprep.mubr.msk.f32.mxu1 %vm3491_vm10, %v21272_v16  ;;  %v25506_v14 = vld [vmem:[#allocation101_spill] sm:$0xff] }
 0x773   : > { %18029 = vmatprep.subr.msk.mxu1 %vm3504_vm11, %v21331_v24 }
 0x775   : > { %18019 = vmatmul.mubr.msk.f32.gmra.mrb[118].mxu1 %vm3491_vm10, %v21284_v6 }
 0x776   : > { %18023 = vmatprep.mubr.msk.f32.mxu1 %vm3491_vm10, %v21257_v55 }
 0x779   : > { %18024 = vmatmul.mubr.msk.f32.vlgmr.msra.gmra.mrb[120].mxu1 %vm3491_vm10, %v21266_v46 }
 0x77a   : > { %18030 = vmatpush3.msk.msra.mxu1 %vm3504_vm11, %v21331_v24  ;;  %18026 = vmatprep.mubr.msk.f32.mxu1 %vm3491_vm10, %v21272_v16 }
 0x77b   : > { %18037 = vmatprep.subr.msk.mxu1 %vm3504_vm11, %v1804_v54 }
 0x77d   : > { %18027 = vmatmul.mubr.msk.f32.gmra.mrb[122].mxu1 %vm3491_vm10, %v21284_v6 }
 0x77e   : > { %18031 = vmatprep.mubr.msk.f32.mxu1 %vm3491_vm10, %v21257_v55 }
 0x781   : > { %18032 = vmatmul.mubr.msk.f32.vlgmr.msra.gmra.mrb[124].mxu1 %vm3491_vm10, %v21266_v46 }
 0x782   : > { %18038 = vmatpush3.msk.msra.mxu1 %vm3504_vm11, %v1804_v54  ;;  %18034 = vmatprep.mubr.msk.f32.mxu1 %vm3491_vm10, %v21272_v16  ;;  %v25507_v54 = vld [vmem:[#allocation103_spill] sm:$0xff] }
 0x785   : > { %18035 = vmatmul.mubr.msk.f32.gmra.mrb[126].mxu1 %vm3491_vm10, %v21284_v6 }
 0x786   : > { %18039 = vmatprep.mubr.msk.f32.mxu1 %vm3491_vm10, %v21257_v55 }
 0x789   : > { %18040 = vmatmul.mubr.msk.f32.vlgmr.msra.gmra.mrb[128].mxu1 %vm3491_vm10, %v21266_v46 }
 0x78a   : > { %18042 = vmatprep.mubr.msk.f32.mxu1 %vm3491_vm10, %v21272_v16 }
 0x78d   : > { %18043 = vmatmul.mubr.msk.f32.gmra.mrb[130].mxu1 %vm3491_vm10, %v21284_v6 }
 0x7d7   : > { %v2119_v9 = vpop.xlane.xlu0 %2118 }
 0x7d8   : > { %v2123_v5 = vsub.f32 %v21572_v11, %v2119_v9  ;;  %v25499_v11 = vld [vmem:[#allocation86_spill] sm:$0xff]  ;;  %v25508_v9 = vld [vmem:[#allocation107_spill] sm:$0xff] }
 0x7da   : > { %v2125_v41 = vmul.f32 1.442695, %v2123_v5  ;;  %v25509_v5 = vld [vmem:[#allocation109_spill] sm:$0xff] }
 0x7db   : > { %v2122_v58 = vpop.xlane.xlu1 %2121 }
 0x7dc   : > { %20047 = vpow2.f32 %v2125_v41  ;;  %v2124_v19 = vsub.f32 %v2116_v53, %v2122_v58  ;;  %v25503_v53 = vld [vmem:[#allocation95_spill] sm:$0xff]  ;;  %v25511_v58 = vld [vmem:[#allocation50_spill] sm:$0xff] }
 0x7dd   : > { %v25510_v41 = vld [vmem:[#allocation111_spill] sm:$0xff] }
 0x7de   : > { %v2127_v29 = vmul.f32 1.442695, %v2124_v19  ;;  %v25512_v19 = vld [vmem:[#allocation52_spill] sm:$0xff] }
 0x7e0   : > { %20049 = vpow2.f32 %v2127_v29  ;;  %v25513_v29 = vld [vmem:[#allocation54_spill] sm:$0xff] }
 0x7e6   : > { %v20048_v45 = vpop.eup %20047 }
 0x7e7   : > { %v2129_v55 = vsel %vm720_vm0, %v20048_v45, 0.0 }
 0x7e8   : > { %2130 = vadd.xlane.f32.xlu0 %v2129_v55  ;;  %v25515_v55 = vld [vmem:[#allocation58_spill] sm:$0xff] }
 0x7ea   : > { %v20050_v46 = vpop.eup %20049 }
 0x7eb   : > { %v2132_v33 = vsel %vm720_vm0, %v20050_v46, 0.0 }
 0x7ec   : > { %2133 = vadd.xlane.f32.xlu1 %v2132_v33  ;;  %v25517_v33 = vld [vmem:[#allocation62_spill] sm:$0xff] }
 0x875   : > { %v2131_v16 = vpop.xlane.xlu0 %2130 }
 0x876   : > { %20051 = vrcp.f32 %v2131_v16  ;;  %v25518_v16 = vld [vmem:[#allocation64_spill] sm:$0xff] }
 0x879   : > { %v2134_v6 = vpop.xlane.xlu1 %2133 }
 0x87a   : > { %20053 = vrcp.f32 %v2134_v6  ;;  %v25519_v6 = vld [vmem:[#allocation66_spill] sm:$0xff] }
 0x880   : > { %v20052_v51 = vpop.eup %20051 }
 0x881   : > { %v2137_v18 = vmul.f32 %v20052_v51, %v20048_v45  ;;  %v25514_v45 = vld [vmem:[#allocation56_spill] sm:$0xff] }
 0x882   : > { %v25520_v51 = vld [vmem:[#allocation68_spill] sm:$0xff] }
 0x884   : > { %v20054_v13 = vpop.eup %20053 }
 0x885   : > { %v2138_v24 = vmul.f32 %v20054_v13, %v20050_v46  ;;  %v25516_v46 = vld [vmem:[#allocation60_spill] sm:$0xff]  ;;  %v25521_v13 = vld [vmem:[#allocation70_spill] sm:$0xff] }
 0x887   : > { %v18087_v32 = vpack.c.bf16 %v2138_v24, %v2137_v18  ;;  %v25522_v18 = vld [vmem:[#allocation72_spill] sm:$0xff]  ;;  %v21779_v24 = vpop.f32.mrb[4].mxu1 }
 0x889   : > { %18089 = vmatprep.subr.msk.bf16.mxu0 %vm21683_vm12, %v18087_v32 }
 0x88a   : > { %18092 = vmatpush3.bf16.xpose.msk.msra.mxu0 %vm21683_vm12, %v18087_v32  ;;  %v21783_v32 = vpop.f32.mrb[5].mxu1 }
 0x891   : > { %17598 = vmatmul.mubr.msk.f32.vlgmr.msra.gmra.mrb[30].mxu0 %vm720_vm0, %v25482_v17 }
 0x892   : > { %17600 = vmatprep.mubr.msk.f32.mxu0 %vm720_vm0, %v25483_v26 }
 0x895   : > { %17601 = vmatmul.mubr.msk.f32.gmra.mrb[32].mxu0 %vm720_vm0, %v25484_v34 }
 0x896   : > { %17603 = vmatprep.mubr.msk.f32.mxu0 %vm720_vm0, %v25485_v47 }
 0x899   : > { %17604 = vmatmul.mubr.msk.f32.gmra.mrb[34].mxu0 %vm720_vm0, %v25486_v38 }
 0x89a   : > { %17606 = vmatprep.mubr.msk.f32.mxu0 %vm720_vm0, %v25487_v59 }
 0x89d   : > { %17607 = vmatmul.mubr.msk.f32.gmra.mrb[36].mxu0 %vm720_vm0, %v25488_v62 }
 0x89e   : > { %17609 = vmatprep.mubr.msk.f32.mxu0 %vm720_vm0, %v25489_v35 }
 0x8a1   : > { %17610 = vmatmul.mubr.msk.f32.gmra.mrb[38].mxu0 %vm720_vm0, %v25490_v43 }
 0x8a2   : > { %17612 = vmatprep.mubr.msk.f32.mxu0 %vm720_vm0, %v25491_v21 }
 0x8a5   : > { %17613 = vmatmul.mubr.msk.f32.gmra.mrb[40].mxu0 %vm720_vm0, %v25492_v3 }
 0x8a6   : > { %17615 = vmatprep.mubr.msk.f32.mxu0 %vm720_vm0, %v25493_v37 }
 0x8a9   : > { %17616 = vmatmul.mubr.msk.f32.gmra.mrb[42].mxu0 %vm720_vm0, %v25494_v50 }
 0x8aa   : > { %17618 = vmatprep.mubr.msk.f32.mxu0 %vm720_vm0, %v25495_v57 }
 0x8ad   : > { %17619 = vmatmul.mubr.msk.f32.gmra.mrb[44].mxu0 %vm720_vm0, %v25496_v25 }
 0x8ae   : > { %17621 = vmatprep.mubr.msk.f32.mxu0 %vm720_vm0, %v25497_v22 }
 0x8b1   : > { %17622 = vmatmul.mubr.msk.f32.gmra.mrb[46].mxu0 %vm720_vm0, %v25498_v52 }
 0x8b2   : > { %17624 = vmatprep.mubr.msk.f32.mxu0 %vm720_vm0, %v25499_v11 }
 0x8b5   : > { %17625 = vmatmul.mubr.msk.f32.gmra.mrb[48].mxu0 %vm720_vm0, %v25500_v28 }
 0x8b6   : > { %17627 = vmatprep.mubr.msk.f32.mxu0 %vm720_vm0, %v25501_v61 }
 0x8b9   : > { %17628 = vmatmul.mubr.msk.f32.gmra.mrb[50].mxu0 %vm720_vm0, %v25502_v48 }
 0x8ba   : > { %17630 = vmatprep.mubr.msk.f32.mxu0 %vm720_vm0, %v25503_v53 }
 0x8bd   : > { %17631 = vmatmul.mubr.msk.f32.gmra.mrb[52].mxu0 %vm720_vm0, %v25504_v8 }
 0x8be   : > { %17633 = vmatprep.mubr.msk.f32.mxu0 %vm720_vm0, %v25505_v2 }
 0x8c1   : > { %17634 = vmatmul.mubr.msk.f32.gmra.mrb[54].mxu0 %vm720_vm0, %v25506_v14 }
 0x8c2   : > { %17636 = vmatprep.mubr.msk.f32.mxu0 %vm720_vm0, %v25507_v54  ;;  %v25608_v54 = vld [vmem:[#allocation71_spill] sm:$0xff] }
 0x8c5   : > { %17637 = vmatmul.mubr.msk.f32.gmra.mrb[56].mxu0 %vm720_vm0, %v25434_v30 }
 0x8c6   : > { %17639 = vmatprep.mubr.msk.f32.mxu0 %vm720_vm0, %v25508_v9  ;;  %v25542_v9 = vld [vmem:[#allocation37_spill] sm:$0xff] }
 0x8c9   : > { %17640 = vmatmul.mubr.msk.f32.gmra.mrb[58].mxu0 %vm720_vm0, %v25509_v5  ;;  %v25544_v5 = vld [vmem:[#allocation39_spill] sm:$0xff] }
 0x8ca   : > { %17642 = vmatprep.mubr.msk.f32.mxu0 %vm720_vm0, %v25510_v41  ;;  %v25538_v41 = vld [vmem:[#allocation33_spill] sm:$0xff] }
 0x8cd   : > { %17643 = vmatmul.mubr.msk.f32.gmra.mrb[60].mxu0 %vm720_vm0, %v20684_v20  ;;  %v25540_v20 = vld [vmem:[#allocation35_spill] sm:$0xff] }
 0x8ce   : > { %17645 = vmatprep.mubr.msk.f32.mxu0 %vm720_vm0, %v25511_v58  ;;  %v25534_v58 = vld [vmem:[#allocation29_spill] sm:$0xff] }
 0x8d1   : > { %17646 = vmatmul.mubr.msk.f32.gmra.mrb[62].mxu0 %vm720_vm0, %v25512_v19  ;;  %v25536_v19 = vld [vmem:[#allocation31_spill] sm:$0xff] }
 0x8d2   : > { %17648 = vmatprep.mubr.msk.f32.mxu0 %vm720_vm0, %v25513_v29  ;;  %v25530_v29 = vld [vmem:[#allocation25_spill] sm:$0xff] }
 0x8d5   : > { %17649 = vmatmul.mubr.msk.f32.gmra.mrb[64].mxu0 %vm720_vm0, %v25514_v45  ;;  %v25532_v45 = vld [vmem:[#allocation27_spill] sm:$0xff] }
 0x8d6   : > { %17651 = vmatprep.mubr.msk.f32.mxu0 %vm720_vm0, %v25515_v55  ;;  %v25528_v55 = vld [vmem:[#allocation21_spill] sm:$0xff] }
 0x8d9   : > { %17652 = vmatmul.mubr.msk.f32.gmra.mrb[66].mxu0 %vm720_vm0, %v25516_v46  ;;  %v25529_v46 = vld [vmem:[#allocation23_spill] sm:$0xff] }
 0x8da   : > { %17654 = vmatprep.mubr.msk.f32.mxu0 %vm720_vm0, %v25517_v33  ;;  %v25526_v33 = vld [vmem:[#allocation17_spill] sm:$0xff] }
 0x8dd   : > { %17655 = vmatmul.mubr.msk.f32.gmra.mrb[68].mxu0 %vm720_vm0, %v25518_v16  ;;  %v25527_v16 = vld [vmem:[#allocation19_spill] sm:$0xff] }
 0x8de   : > { %17657 = vmatprep.mubr.msk.f32.mxu0 %vm720_vm0, %v25519_v6  ;;  %v21787_v6 = vpop.f32.mrb[6].mxu1 }
 0x8e1   : > { %17658 = vmatmul.mubr.msk.f32.gmra.mrb[70].mxu0 %vm720_vm0, %v25520_v51  ;;  %v25525_v51 = vld [vmem:[#allocation145_spill] sm:$0xff] }
 0x8e2   : > { %17660 = vmatprep.mubr.msk.f32.mxu0 %vm720_vm0, %v25521_v13  ;;  %v21791_v13 = vpop.f32.mrb[7].mxu1 }
 0x8e5   : > { %17661 = vmatmul.mubr.msk.f32.gmra.mrb[72].mxu0 %vm720_vm0, %v25522_v18  ;;  %v25524_v18 = vld [vmem:[#allocation143_spill] sm:$0xff] }
 0x8e6   : > { %17663 = vmatprep.mubr.msk.f32.mxu0 %vm720_vm0, %v25450_v27  ;;  %v21795_v27 = vpop.f32.mrb[8].mxu1 }
 0x8e9   : > { %17664 = vmatmul.mubr.msk.f32.gmra.mrb[74].mxu0 %vm720_vm0, %v25454_v39  ;;  %v21799_v39 = vpop.f32.mrb[9].mxu1 }
 0x8ea   : > { %17666 = vmatprep.mubr.msk.f32.mxu0 %vm720_vm0, %v25523_v60  ;;  %v21803_v60 = vpop.f32.mrb[10].mxu1 }
 0x8ed   : > { %17667 = vmatmul.mubr.msk.f32.gmra.mrb[76].mxu0 %vm720_vm0, %v25460_v44  ;;  %v21807_v44 = vpop.f32.mrb[11].mxu1 }
 0x8ee   : > { %17669 = vmatprep.mubr.msk.f32.mxu0 %vm720_vm0, %v20720_v10  ;;  %v21811_v10 = vpop.f32.mrb[12].mxu1 }
 0x8f1   : > { %17670 = vmatmul.mubr.msk.f32.gmra.mrb[78].mxu0 %vm720_vm0, %v20772_v56  ;;  %v21815_v56 = vpop.f32.mrb[13].mxu1 }
 0x8f2   : > { %17672 = vmatprep.mubr.msk.f32.mxu0 %vm720_vm0, %v20800_v42  ;;  %v21819_v42 = vpop.f32.mrb[14].mxu1 }
 0x8f5   : > { %17673 = vmatmul.mubr.msk.f32.gmra.mrb[80].mxu0 %vm720_vm0, %v20826_v15  ;;  %v21823_v15 = vpop.f32.mrb[15].mxu1 }
 0x8f6   : > { %17675 = vmatprep.mubr.msk.f32.mxu0 %vm720_vm0, %v20856_v7  ;;  %v21827_v7 = vpop.f32.mrb[16].mxu1 }
 0x8f9   : > { %17676 = vmatmul.mubr.msk.f32.gmra.mrb[82].mxu0 %vm720_vm0, %v20884_v49  ;;  %v21831_v49 = vpop.f32.mrb[17].mxu1 }
 0x8fa   : > { %17678 = vmatprep.mubr.msk.f32.mxu0 %vm720_vm0, %v20906_v4  ;;  %v21835_v4 = vpop.f32.mrb[18].mxu1 }
 0x8fd   : > { %17679 = vmatmul.mubr.msk.f32.gmra.mrb[84].mxu0 %vm720_vm0, %v20922_v63  ;;  %v21839_v63 = vpop.f32.mrb[19].mxu1 }
 0x8fe   : > { %17681 = vmatprep.mubr.msk.f32.mxu0 %vm720_vm0, %v20962_v12  ;;  %v21843_v12 = vpop.f32.mrb[20].mxu1 }
 0x901   : > { %17682 = vmatmul.mubr.msk.f32.gmra.mrb[86].mxu0 %vm720_vm0, %v20978_v23  ;;  %v21847_v23 = vpop.f32.mrb[21].mxu1 }
 0x902   : > { %17684 = vmatprep.mubr.msk.f32.mxu0 %vm720_vm0, %v21002_v31  ;;  %v21851_v31 = vpop.f32.mrb[22].mxu1 }
 0x905   : > { %17685 = vmatmul.mubr.msk.f32.gmra.mrb[88].mxu0 %vm720_vm0, %v21030_v0  ;;  %v21855_v0 = vpop.f32.mrb[23].mxu1 }
 0x906   : > { %17687 = vmatprep.mubr.msk.f32.mxu0 %vm720_vm0, %v21046_v36  ;;  %v21859_v36 = vpop.f32.mrb[24].mxu1 }
 0x909   : > { %17688 = vmatmul.mubr.msk.f32.gmra.mrb[90].mxu0 %vm720_vm0, %v21068_v40  ;;  %v21863_v40 = vpop.f32.mrb[25].mxu1 }
 0x90a   : > { %17690 = vmatprep.mubr.msk.f32.mxu0 %vm720_vm0, %v25524_v18  ;;  %v21867_v18 = vpop.f32.mrb[26].mxu1 }
 0x90d   : > { %17691 = vmatmul.mubr.msk.f32.gmra.mrb[92].mxu0 %vm720_vm0, %v25525_v51  ;;  %v21871_v51 = vpop.f32.mrb[27].mxu1 }
 0x90e   : > { %17693 = vmatprep.mubr.msk.f32.mxu0 %vm720_vm0, %v25526_v33  ;;  %v21875_v33 = vpop.f32.mrb[28].mxu1 }
 0x90f   : > { %25531 = vst [vmem:[#allocation18_spill] sm:$0xff] %v21875_v33  ;;  %v25611_v33 = vld [vmem:[#allocation75_spill] sm:$0xff] }
 0x911   : > { %17694 = vmatmul.mubr.msk.f32.gmra.mrb[94].mxu0 %vm720_vm0, %v25527_v16  ;;  %v21879_v16 = vpop.f32.mrb[29].mxu1 }
 0x912   : > { %17696 = vmatprep.mubr.msk.f32.mxu0 %vm720_vm0, %v25528_v55  ;;  %25533 = vst [vmem:[#allocation20_spill] sm:$0xff] %v21879_v16  ;;  %v21883_v55 = vpop.f32.mrb[30].mxu1 }
 0x913   : > { %25535 = vst [vmem:[#allocation22_spill] sm:$0xff] %v21883_v55 }
 0x915   : > { %17697 = vmatmul.mubr.msk.f32.gmra.mrb[96].mxu0 %vm720_vm0, %v25529_v46  ;;  %v21887_v46 = vpop.f32.mrb[31].mxu1 }
 0x916   : > { %17699 = vmatprep.mubr.msk.f32.mxu0 %vm720_vm0, %v25530_v29  ;;  %25537 = vst [vmem:[#allocation24_spill] sm:$0xff] %v21887_v46  ;;  %v21891_v29 = vpop.f32.mrb[32].mxu1  ;;  %v25546_v46 = vld [vmem:[#allocation41_spill] sm:$0xff] }
 0x917   : > { %25539 = vst [vmem:[#allocation26_spill] sm:$0xff] %v21891_v29  ;;  %v25548_v29 = vld [vmem:[#allocation43_spill] sm:$0xff] }
 0x919   : > { %17700 = vmatmul.mubr.msk.f32.gmra.mrb[98].mxu0 %vm720_vm0, %v25532_v45  ;;  %v21895_v45 = vpop.f32.mrb[33].mxu1 }
 0x91a   : > { %17702 = vmatprep.mubr.msk.f32.mxu0 %vm720_vm0, %v25534_v58  ;;  %25541 = vst [vmem:[#allocation28_spill] sm:$0xff] %v21895_v45  ;;  %v21899_v58 = vpop.f32.mrb[34].mxu1  ;;  %v25550_v45 = vld [vmem:[#allocation45_spill] sm:$0xff] }
 0x91b   : > { %25543 = vst [vmem:[#allocation30_spill] sm:$0xff] %v21899_v58  ;;  %v25552_v58 = vld [vmem:[#allocation47_spill] sm:$0xff] }
 0x91d   : > { %17703 = vmatmul.mubr.msk.f32.gmra.mrb[100].mxu0 %vm720_vm0, %v25536_v19  ;;  %v21903_v19 = vpop.f32.mrb[35].mxu1 }
 0x91e   : > { %17705 = vmatprep.mubr.msk.f32.mxu0 %vm720_vm0, %v25538_v41  ;;  %25545 = vst [vmem:[#allocation32_spill] sm:$0xff] %v21903_v19  ;;  %v21907_v41 = vpop.f32.mrb[36].mxu1  ;;  %v25554_v19 = vld [vmem:[#allocation81_spill] sm:$0xff] }
 0x91f   : > { %25547 = vst [vmem:[#allocation34_spill] sm:$0xff] %v21907_v41  ;;  %v25556_v41 = vld [vmem:[#allocation83_spill] sm:$0xff] }
 0x921   : > { %17706 = vmatmul.mubr.msk.f32.gmra.mrb[102].mxu0 %vm720_vm0, %v25540_v20  ;;  %v21911_v20 = vpop.f32.mrb[37].mxu1 }
 0x922   : > { %17708 = vmatprep.mubr.msk.f32.mxu0 %vm720_vm0, %v25542_v9  ;;  %25549 = vst [vmem:[#allocation36_spill] sm:$0xff] %v21911_v20  ;;  %v21915_v9 = vpop.f32.mrb[38].mxu1  ;;  %v25558_v20 = vld [vmem:[#allocation85_spill] sm:$0xff] }
 0x923   : > { %25551 = vst [vmem:[#allocation38_spill] sm:$0xff] %v21915_v9  ;;  %v25560_v9 = vld [vmem:[#allocation87_spill] sm:$0xff] }
 0x925   : > { %17709 = vmatmul.mubr.msk.f32.gmra.mrb[104].mxu0 %vm720_vm0, %v25544_v5  ;;  %v21919_v5 = vpop.f32.mrb[39].mxu1 }
 0x926   : > { %17711 = vmatprep.mubr.msk.f32.mxu0 %vm720_vm0, %v25546_v46  ;;  %25553 = vst [vmem:[#allocation40_spill] sm:$0xff] %v21919_v5  ;;  %v21923_v46 = vpop.f32.mrb[40].mxu1  ;;  %v25562_v5 = vld [vmem:[#allocation89_spill] sm:$0xff] }
 0x927   : > { %25555 = vst [vmem:[#allocation42_spill] sm:$0xff] %v21923_v46  ;;  %v25564_v46 = vld [vmem:[#allocation92_spill] sm:$0xff] }
 0x929   : > { %17712 = vmatmul.mubr.msk.f32.gmra.mrb[106].mxu0 %vm720_vm0, %v25548_v29  ;;  %v21927_v29 = vpop.f32.mrb[41].mxu1 }
 0x92a   : > { %17714 = vmatprep.mubr.msk.f32.mxu0 %vm720_vm0, %v25550_v45  ;;  %25557 = vst [vmem:[#allocation44_spill] sm:$0xff] %v21927_v29  ;;  %v21931_v45 = vpop.f32.mrb[42].mxu1  ;;  %v25566_v29 = vld [vmem:[#allocation94_spill] sm:$0xff] }
 0x92b   : > { %25559 = vst [vmem:[#allocation46_spill] sm:$0xff] %v21931_v45  ;;  %v25568_v45 = vld [vmem:[#allocation96_spill] sm:$0xff] }
 0x92d   : > { %17715 = vmatmul.mubr.msk.f32.gmra.mrb[108].mxu0 %vm720_vm0, %v25552_v58  ;;  %v21935_v58 = vpop.f32.mrb[43].mxu1 }
 0x92e   : > { %17717 = vmatprep.mubr.msk.f32.mxu0 %vm720_vm0, %v25554_v19  ;;  %25561 = vst [vmem:[#allocation48_spill] sm:$0xff] %v21935_v58  ;;  %v21939_v19 = vpop.f32.mrb[44].mxu1  ;;  %v25570_v58 = vld [vmem:[#allocation98_spill] sm:$0xff] }
 0x92f   : > { %25563 = vst [vmem:[#allocation82_spill] sm:$0xff] %v21939_v19  ;;  %v25572_v19 = vld [vmem:[#allocation100_spill] sm:$0xff] }
 0x931   : > { %17718 = vmatmul.mubr.msk.f32.gmra.mrb[110].mxu0 %vm720_vm0, %v25556_v41  ;;  %v21943_v41 = vpop.f32.mrb[45].mxu1 }
 0x932   : > { %17720 = vmatprep.mubr.msk.f32.mxu0 %vm720_vm0, %v25558_v20  ;;  %25565 = vst [vmem:[#allocation84_spill] sm:$0xff] %v21943_v41  ;;  %v21947_v20 = vpop.f32.mrb[46].mxu1  ;;  %v25574_v41 = vld [vmem:[#allocation102_spill] sm:$0xff] }
 0x933   : > { %25567 = vst [vmem:[#allocation86_spill] sm:$0xff] %v21947_v20  ;;  %v25576_v20 = vld [vmem:[#allocation104_spill] sm:$0xff] }
 0x935   : > { %17721 = vmatmul.mubr.msk.f32.gmra.mrb[112].mxu0 %vm720_vm0, %v25560_v9  ;;  %v21951_v9 = vpop.f32.mrb[47].mxu1 }
 0x936   : > { %17723 = vmatprep.mubr.msk.f32.mxu0 %vm720_vm0, %v25562_v5  ;;  %25569 = vst [vmem:[#allocation88_spill] sm:$0xff] %v21951_v9  ;;  %v21955_v5 = vpop.f32.mrb[48].mxu1  ;;  %v25578_v9 = vld [vmem:[#allocation106_spill] sm:$0xff] }
 0x937   : > { %25571 = vst [vmem:[#allocation90_spill] sm:$0xff] %v21955_v5  ;;  %v25580_v5 = vld [vmem:[#allocation108_spill] sm:$0xff] }
 0x939   : > { %17724 = vmatmul.mubr.msk.f32.gmra.mrb[114].mxu0 %vm720_vm0, %v25564_v46  ;;  %v21959_v46 = vpop.f32.mrb[49].mxu1 }
 0x93a   : > { %17726 = vmatprep.mubr.msk.f32.mxu0 %vm720_vm0, %v25566_v29  ;;  %25573 = vst [vmem:[#allocation93_spill] sm:$0xff] %v21959_v46  ;;  %v21963_v29 = vpop.f32.mrb[50].mxu1  ;;  %v25582_v46 = vld [vmem:[#allocation110_spill] sm:$0xff] }
 0x93b   : > { %25575 = vst [vmem:[#allocation95_spill] sm:$0xff] %v21963_v29  ;;  %v25584_v29 = vld [vmem:[#allocation112_spill] sm:$0xff] }
 0x93d   : > { %17727 = vmatmul.mubr.msk.f32.gmra.mrb[116].mxu0 %vm720_vm0, %v25568_v45  ;;  %v21967_v45 = vpop.f32.mrb[51].mxu1 }
 0x93e   : > { %17729 = vmatprep.mubr.msk.f32.mxu0 %vm720_vm0, %v25570_v58  ;;  %25577 = vst [vmem:[#allocation97_spill] sm:$0xff] %v21967_v45  ;;  %v21971_v58 = vpop.f32.mrb[52].mxu1  ;;  %v25586_v45 = vld [vmem:[#allocation49_spill] sm:$0xff] }
 0x93f   : > { %25579 = vst [vmem:[#allocation99_spill] sm:$0xff] %v21971_v58  ;;  %v25588_v58 = vld [vmem:[#allocation51_spill] sm:$0xff] }
 0x941   : > { %17730 = vmatmul.mubr.msk.f32.gmra.mrb[118].mxu0 %vm720_vm0, %v25572_v19  ;;  %v21975_v19 = vpop.f32.mrb[53].mxu1 }
 0x942   : > { %17732 = vmatprep.mubr.msk.f32.mxu0 %vm720_vm0, %v25574_v41  ;;  %25581 = vst [vmem:[#allocation101_spill] sm:$0xff] %v21975_v19  ;;  %v21979_v41 = vpop.f32.mrb[54].mxu1  ;;  %v25590_v19 = vld [vmem:[#allocation53_spill] sm:$0xff] }
 0x943   : > { %25583 = vst [vmem:[#allocation146_spill] sm:$0xff] %v21979_v41  ;;  %v25592_v41 = vld [vmem:[#allocation55_spill] sm:$0xff] }
 0x945   : > { %17733 = vmatmul.mubr.msk.f32.gmra.mrb[120].mxu0 %vm720_vm0, %v25576_v20  ;;  %v21983_v20 = vpop.f32.mrb[55].mxu1 }
 0x946   : > { %17735 = vmatprep.mubr.msk.f32.mxu0 %vm720_vm0, %v25578_v9  ;;  %25585 = vst [vmem:[#allocation147_spill] sm:$0xff] %v21983_v20  ;;  %v21987_v9 = vpop.f32.mrb[56].mxu1  ;;  %v25594_v20 = vld [vmem:[#allocation57_spill] sm:$0xff] }
 0x947   : > { %25587 = vst [vmem:[#allocation148_spill] sm:$0xff] %v21987_v9  ;;  %v25596_v9 = vld [vmem:[#allocation59_spill] sm:$0xff] }
 0x949   : > { %17736 = vmatmul.mubr.msk.f32.gmra.mrb[122].mxu0 %vm720_vm0, %v25580_v5  ;;  %v21991_v5 = vpop.f32.mrb[57].mxu1 }
 0x94a   : > { %17738 = vmatprep.mubr.msk.f32.mxu0 %vm720_vm0, %v25582_v46  ;;  %25589 = vst [vmem:[#allocation149_spill] sm:$0xff] %v21991_v5  ;;  %v21995_v46 = vpop.f32.mrb[58].mxu1  ;;  %v25598_v5 = vld [vmem:[#allocation61_spill] sm:$0xff] }
 0x94b   : > { %25591 = vst [vmem:[#allocation150_spill] sm:$0xff] %v21995_v46  ;;  %v25600_v46 = vld [vmem:[#allocation63_spill] sm:$0xff] }
 0x94d   : > { %17739 = vmatmul.mubr.msk.f32.gmra.mrb[124].mxu0 %vm720_vm0, %v25584_v29  ;;  %v21999_v29 = vpop.f32.mrb[59].mxu1 }
 0x94e   : > { %17741 = vmatprep.mubr.msk.f32.mxu0 %vm720_vm0, %v25586_v45  ;;  %25593 = vst [vmem:[#allocation151_spill] sm:$0xff] %v21999_v29  ;;  %v22003_v45 = vpop.f32.mrb[60].mxu1  ;;  %v25602_v29 = vld [vmem:[#allocation65_spill] sm:$0xff] }
 0x94f   : > { %25595 = vst [vmem:[#allocation152_spill] sm:$0xff] %v22003_v45  ;;  %v25604_v45 = vld [vmem:[#allocation67_spill] sm:$0xff] }
 0x951   : > { %17742 = vmatmul.mubr.msk.f32.gmra.mrb[126].mxu0 %vm720_vm0, %v25588_v58  ;;  %v22007_v58 = vpop.f32.mrb[61].mxu1 }
 0x952   : > { %17744 = vmatprep.mubr.msk.f32.mxu0 %vm720_vm0, %v25590_v19  ;;  %25597 = vst [vmem:[#allocation153_spill] sm:$0xff] %v22007_v58  ;;  %v22011_v19 = vpop.f32.mrb[62].mxu1  ;;  %v25606_v58 = vld [vmem:[#allocation69_spill] sm:$0xff] }
 0x953   : > { %25599 = vst [vmem:[#allocation154_spill] sm:$0xff] %v22011_v19 }
 0x955   : > { %17745 = vmatmul.mubr.msk.f32.gmra.mrb[128].mxu0 %vm720_vm0, %v25592_v41  ;;  %v22015_v41 = vpop.f32.mrb[63].mxu1 }
 0x956   : > { %17747 = vmatprep.mubr.msk.f32.mxu0 %vm720_vm0, %v25594_v20  ;;  %25601 = vst [vmem:[#allocation155_spill] sm:$0xff] %v22015_v41  ;;  %v22019_v20 = vpop.f32.mrb[64].mxu1 }
 0x957   : > { %25603 = vst [vmem:[#allocation156_spill] sm:$0xff] %v22019_v20  ;;  %v25609_v20 = vld [vmem:[#allocation73_spill] sm:$0xff] }
 0x959   : > { %17748 = vmatmul.mubr.msk.f32.gmra.mrb[130].mxu0 %vm720_vm0, %v25596_v9  ;;  %v22023_v9 = vpop.f32.mrb[65].mxu1 }
 0x95a   : > { %17750 = vmatprep.mubr.msk.f32.mxu0 %vm720_vm0, %v25598_v5  ;;  %25605 = vst [vmem:[#allocation157_spill] sm:$0xff] %v22023_v9  ;;  %v22027_v5 = vstv %s14336_s27  ;;  %v22029_v55 = vpop.f32.mrb[66].mxu1 }
 0x95b   : > { %25607 = vst [vmem:[#allocation158_spill] sm:$0xff] %v22029_v55 }
 0x95d   : > { %17751 = vmatmul.mubr.msk.f32.gmra.mrb[132].mxu0 %vm720_vm0, %v25600_v46 }
 0x95e   : > { %17753 = vmatprep.mubr.msk.f32.mxu0 %vm720_vm0, %v25602_v29  ;;  %v22034_v29 = vpop.f32.mrb[67].mxu1 }
 0x95f   : > { %v22041_v16 = vpop.f32.mrb[68].mxu1 }
 0x961   : > { %17754 = vmatmul.mubr.msk.f32.gmra.mrb[134].mxu0 %vm720_vm0, %v25604_v45 }
 0x962   : > { %17756 = vmatprep.mubr.msk.f32.mxu0 %vm720_vm0, %v25606_v58 }
 0x964   : > { %v17599_v19 = vpop.f32.mrb[30].mxu0 }
 0x965   : > { %v3236_v46 = vmul.f32 %v17599_v19, %v22027_v5  ;;  %v2595_v41 = vpop.f32.mrb[31].mxu0  ;;  %17757 = vmatmul.mubr.msk.f32.gmra.mrb[136].mxu0 %vm720_vm0, %v25608_v54 }
 0x966   : > { %v3235_v45 = vmul.f32 %v22027_v5, %v2595_v41  ;;  %17759 = vmatprep.mubr.msk.f32.mxu0 %vm720_vm0, %v25609_v20  ;;  %v22049_v41 = vpop.f32.mrb[69].mxu1 }
 0x967   : > { %v3364_v58 = vadd.f32 %v3236_v46, %v25482_v17  ;;  %v25613_v46 = vld [vmem:[#allocation77_spill] sm:$0xff] }
 0x968   : > { %v17602_v9 = vpop.f32.mrb[32].mxu0  ;;  %v3363_v30 = vadd.f32 %v3235_v45, %v25478_v1  ;;  %v22059_v45 = vpop.f32.mrb[70].mxu1 }
 0x969   : > { %v3238_v19 = vmul.f32 %v17602_v9, %v22027_v5  ;;  %v22045_v55 = vadd.f32 %v21779_v24, %v3364_v58  ;;  %v2605_v54 = vpop.f32.mrb[33].mxu0  ;;  %17760 = vmatmul.mubr.msk.f32.gmra.mrb[138].mxu0 %vm720_vm0, %v25611_v33 }
 0x96a   : > { %v3237_v20 = vmul.f32 %v22027_v5, %v2605_v54  ;;  %v22053_v17 = vadd.f32 %v21783_v32, %v3363_v30  ;;  %17762 = vmatprep.mubr.msk.f32.mxu0 %vm720_vm0, %v25613_v46  ;;  %v25615_v54 = vld [vmem:[#allocation79_spill] sm:$0xff]  ;;  %v22067_v30 = vpop.f32.mrb[71].mxu1  ;;  %v25714_v46 = vld [vmem:[#allocation90_spill] sm:$0xff] }
 0x96b   : > { %25610 = vst [vmem:[#allocation159_spill] sm:$0xff] %v22045_v55  ;;  %v3366_v1 = vadd.f32 %v3238_v19, %v25484_v34  ;;  %v25617_v19 = vld [vmem:[#allocation114_spill] sm:$0xff] }
 0x96c   : > { %25612 = vst [vmem:[#allocation160_spill] sm:$0xff] %v22053_v17  ;;  %v17605_v9 = vpop.f32.mrb[34].mxu0  ;;  %v3365_v58 = vadd.f32 %v3237_v20, %v25483_v26 }
 0x96d   : > { %v3240_v24 = vmul.f32 %v17605_v9, %v22027_v5  ;;  %v22063_v55 = vadd.f32 %v21787_v6, %v3366_v1  ;;  %v2615_v33 = vpop.f32.mrb[35].mxu0  ;;  %17763 = vmatmul.mubr.msk.f32.gmra.mrb[140].mxu0 %vm720_vm0, %v25615_v54  ;;  %v22077_v1 = vpop.f32.mrb[72].mxu1  ;;  %v25717_v54 = vld [vmem:[#allocation93_spill] sm:$0xff] }
 0x96e   : > { %v3239_v32 = vmul.f32 %v22027_v5, %v2615_v33  ;;  %v22071_v34 = vadd.f32 %v21791_v13, %v3365_v58  ;;  %17765 = vmatprep.mubr.msk.f32.mxu0 %vm720_vm0, %v25617_v19  ;;  %v25619_v33 = vld [vmem:[#allocation116_spill] sm:$0xff]  ;;  %v22085_v13 = vpop.f32.mrb[73].mxu1  ;;  %v25707_v19 = vld [vmem:[#allocation86_spill] sm:$0xff] }
 0x96f   : > { %25614 = vst [vmem:[#allocation161_spill] sm:$0xff] %v22063_v55  ;;  %v3368_v20 = vadd.f32 %v3240_v24, %v25486_v38  ;;  %v25621_v24 = vld [vmem:[#allocation118_spill] sm:$0xff] }
 0x970   : > { %25616 = vst [vmem:[#allocation162_spill] sm:$0xff] %v22071_v34  ;;  %v17608_v26 = vpop.f32.mrb[36].mxu0  ;;  %v3367_v6 = vadd.f32 %v3239_v32, %v25485_v47 }
 0x971   : > { %v3242_v9 = vmul.f32 %v17608_v26, %v22027_v5  ;;  %v22081_v55 = vadd.f32 %v21795_v27, %v3368_v20  ;;  %v2625_v17 = vpop.f32.mrb[37].mxu0  ;;  %17766 = vmatmul.mubr.msk.f32.gmra.mrb[142].mxu0 %vm720_vm0, %v25619_v33  ;;  %v22095_v20 = vpop.f32.mrb[74].mxu1  ;;  %v25709_v33 = vld [vmem:[#allocation88_spill] sm:$0xff] }
 0x972   : > { %v3241_v58 = vmul.f32 %v22027_v5, %v2625_v17  ;;  %v22089_v38 = vadd.f32 %v21799_v39, %v3367_v6  ;;  %17768 = vmatprep.mubr.msk.f32.mxu0 %vm720_vm0, %v25621_v24  ;;  %v25623_v17 = vld [vmem:[#allocation120_spill] sm:$0xff]  ;;  %v22103_v39 = vpop.f32.mrb[75].mxu1  ;;  %v25701_v24 = vld [vmem:[#allocation82_spill] sm:$0xff] }
 0x973   : > { %25618 = vst [vmem:[#allocation163_spill] sm:$0xff] %v22081_v55  ;;  %v3370_v47 = vadd.f32 %v3242_v9, %v25488_v62  ;;  %v25625_v9 = vld [vmem:[#allocation122_spill] sm:$0xff] }
 0x974   : > { %25620 = vst [vmem:[#allocation164_spill] sm:$0xff] %v22089_v38  ;;  %v17611_v32 = vpop.f32.mrb[38].mxu0  ;;  %v3369_v27 = vadd.f32 %v3241_v58, %v25487_v59 }
 0x975   : > { %v3244_v26 = vmul.f32 %v17611_v32, %v22027_v5  ;;  %v22099_v55 = vadd.f32 %v21803_v60, %v3370_v47  ;;  %v2635_v34 = vpop.f32.mrb[39].mxu0  ;;  %17769 = vmatmul.mubr.msk.f32.gmra.mrb[144].mxu0 %vm720_vm0, %v25623_v17  ;;  %v22113_v47 = vpop.f32.mrb[76].mxu1  ;;  %v25703_v17 = vld [vmem:[#allocation84_spill] sm:$0xff] }
 0x976   : > { %v3243_v6 = vmul.f32 %v22027_v5, %v2635_v34  ;;  %v22107_v62 = vadd.f32 %v21807_v44, %v3369_v27  ;;  %17771 = vmatprep.mubr.msk.f32.mxu0 %vm720_vm0, %v25625_v9  ;;  %v25627_v34 = vld [vmem:[#allocation124_spill] sm:$0xff]  ;;  %v22121_v44 = vpop.f32.mrb[77].mxu1  ;;  %v25695_v9 = vld [vmem:[#allocation46_spill] sm:$0xff] }
 0x977   : > { %25622 = vst [vmem:[#allocation165_spill] sm:$0xff] %v22099_v55  ;;  %v3372_v59 = vadd.f32 %v3244_v26, %v25490_v43  ;;  %v25629_v26 = vld [vmem:[#allocation126_spill] sm:$0xff] }
 0x978   : > { %25624 = vst [vmem:[#allocation166_spill] sm:$0xff] %v22107_v62  ;;  %v17614_v58 = vpop.f32.mrb[40].mxu0  ;;  %v3371_v60 = vadd.f32 %v3243_v6, %v25489_v35 }
 0x979   : > { %v3246_v32 = vmul.f32 %v17614_v58, %v22027_v5  ;;  %v22117_v55 = vadd.f32 %v21811_v10, %v3372_v59  ;;  %v2645_v38 = vpop.f32.mrb[41].mxu0  ;;  %17772 = vmatmul.mubr.msk.f32.gmra.mrb[146].mxu0 %vm720_vm0, %v25627_v34  ;;  %v22131_v59 = vpop.f32.mrb[78].mxu1  ;;  %v25697_v34 = vld [vmem:[#allocation48_spill] sm:$0xff] }
 0x97a   : > { %v3245_v27 = vmul.f32 %v22027_v5, %v2645_v38  ;;  %v22125_v43 = vadd.f32 %v21815_v56, %v3371_v60  ;;  %17774 = vmatprep.mubr.msk.f32.mxu0 %vm720_vm0, %v25629_v26  ;;  %v25631_v38 = vld [vmem:[#allocation128_spill] sm:$0xff]  ;;  %v22139_v56 = vpop.f32.mrb[79].mxu1  ;;  %v25689_v26 = vld [vmem:[#allocation42_spill] sm:$0xff] }
 0x97b   : > { %25626 = vst [vmem:[#allocation167_spill] sm:$0xff] %v22117_v55  ;;  %v3374_v35 = vadd.f32 %v3246_v32, %v25492_v3  ;;  %v25633_v32 = vld [vmem:[#allocation130_spill] sm:$0xff] }
 0x97c   : > { %25628 = vst [vmem:[#allocation168_spill] sm:$0xff] %v22125_v43  ;;  %v17617_v6 = vpop.f32.mrb[42].mxu0  ;;  %v3373_v10 = vadd.f32 %v3245_v27, %v25491_v21 }
 0x97d   : > { %v3248_v58 = vmul.f32 %v17617_v6, %v22027_v5  ;;  %v22135_v55 = vadd.f32 %v21819_v42, %v3374_v35  ;;  %v2655_v62 = vpop.f32.mrb[43].mxu0  ;;  %17775 = vmatmul.mubr.msk.f32.gmra.mrb[148].mxu0 %vm720_vm0, %v25631_v38  ;;  %v22149_v35 = vpop.f32.mrb[80].mxu1  ;;  %v25691_v38 = vld [vmem:[#allocation44_spill] sm:$0xff] }
 0x97e   : > { %v3247_v60 = vmul.f32 %v22027_v5, %v2655_v62  ;;  %v22143_v3 = vadd.f32 %v21823_v15, %v3373_v10  ;;  %17777 = vmatprep.mubr.msk.f32.mxu0 %vm720_vm0, %v25633_v32  ;;  %v25635_v62 = vld [vmem:[#allocation132_spill] sm:$0xff]  ;;  %v22157_v15 = vpop.f32.mrb[81].mxu1  ;;  %v25683_v32 = vld [vmem:[#allocation38_spill] sm:$0xff] }
 0x97f   : > { %25630 = vst [vmem:[#allocation169_spill] sm:$0xff] %v22135_v55  ;;  %v3376_v21 = vadd.f32 %v3248_v58, %v25494_v50  ;;  %v25637_v58 = vld [vmem:[#allocation134_spill] sm:$0xff] }
 0x980   : > { %25632 = vst [vmem:[#allocation170_spill] sm:$0xff] %v22143_v3  ;;  %v17620_v27 = vpop.f32.mrb[44].mxu0  ;;  %v3375_v42 = vadd.f32 %v3247_v60, %v25493_v37 }
 0x981   : > { %v3250_v6 = vmul.f32 %v17620_v27, %v22027_v5  ;;  %v22153_v55 = vadd.f32 %v21827_v7, %v3376_v21  ;;  %v2665_v43 = vpop.f32.mrb[45].mxu0  ;;  %17778 = vmatmul.mubr.msk.f32.gmra.mrb[150].mxu0 %vm720_vm0, %v25635_v62  ;;  %v22167_v21 = vpop.f32.mrb[82].mxu1  ;;  %v25685_v62 = vld [vmem:[#allocation40_spill] sm:$0xff] }
 0x982   : > { %v3249_v10 = vmul.f32 %v22027_v5, %v2665_v43  ;;  %v22161_v50 = vadd.f32 %v21831_v49, %v3375_v42  ;;  %17780 = vmatprep.mubr.msk.f32.mxu0 %vm720_vm0, %v25637_v58  ;;  %v25639_v43 = vld [vmem:[#allocation136_spill] sm:$0xff]  ;;  %v22175_v49 = vpop.f32.mrb[83].mxu1  ;;  %v25677_v58 = vld [vmem:[#allocation34_spill] sm:$0xff] }
 0x983   : > { %25634 = vst [vmem:[#allocation171_spill] sm:$0xff] %v22153_v55  ;;  %v3378_v37 = vadd.f32 %v3250_v6, %v25496_v25  ;;  %v25641_v6 = vld [vmem:[#allocation138_spill] sm:$0xff] }
 0x984   : > { %25636 = vst [vmem:[#allocation172_spill] sm:$0xff] %v22161_v50  ;;  %v17623_v60 = vpop.f32.mrb[46].mxu0  ;;  %v3377_v7 = vadd.f32 %v3249_v10, %v25495_v57 }
 0x985   : > { %v3252_v27 = vmul.f32 %v17623_v60, %v22027_v5  ;;  %v22171_v3 = vadd.f32 %v21835_v4, %v3378_v37  ;;  %v2675_v55 = vpop.f32.mrb[47].mxu0  ;;  %17781 = vmatmul.mubr.msk.f32.gmra.mrb[152].mxu0 %vm720_vm0, %v25639_v43  ;;  %v22185_v37 = vpop.f32.mrb[84].mxu1  ;;  %v25679_v43 = vld [vmem:[#allocation36_spill] sm:$0xff] }
 0x986   : > { %v3251_v42 = vmul.f32 %v22027_v5, %v2675_v55  ;;  %v22179_v25 = vadd.f32 %v21839_v63, %v3377_v7  ;;  %17783 = vmatprep.mubr.msk.f32.mxu0 %vm720_vm0, %v25641_v6  ;;  %v25643_v55 = vld [vmem:[#allocation140_spill] sm:$0xff]  ;;  %v22193_v63 = vpop.f32.mrb[85].mxu1  ;;  %v25671_v6 = vld [vmem:[#allocation30_spill] sm:$0xff] }
 0x987   : > { %25638 = vst [vmem:[#allocation173_spill] sm:$0xff] %v22171_v3  ;;  %v3380_v57 = vadd.f32 %v3252_v27, %v25498_v52  ;;  %v25645_v27 = vld [vmem:[#allocation142_spill] sm:$0xff] }
 0x988   : > { %25640 = vst [vmem:[#allocation174_spill] sm:$0xff] %v22179_v25  ;;  %v17626_v10 = vpop.f32.mrb[48].mxu0  ;;  %v3379_v4 = vadd.f32 %v3251_v42, %v25497_v22 }
 0x989   : > { %v3254_v60 = vmul.f32 %v17626_v10, %v22027_v5  ;;  %v22189_v3 = vadd.f32 %v21843_v12, %v3380_v57  ;;  %v2685_v50 = vpop.f32.mrb[49].mxu0  ;;  %17784 = vmatmul.mubr.msk.f32.gmra.mrb[154].mxu0 %vm720_vm0, %v25643_v55  ;;  %v22203_v57 = vpop.f32.mrb[86].mxu1  ;;  %v25673_v55 = vld [vmem:[#allocation32_spill] sm:$0xff] }
 0x98a   : > { %v3253_v7 = vmul.f32 %v22027_v5, %v2685_v50  ;;  %v22197_v52 = vadd.f32 %v21847_v23, %v3379_v4  ;;  %17786 = vmatprep.mubr.msk.f32.mxu0 %vm720_vm0, %v25645_v27  ;;  %v25647_v50 = vld [vmem:[#allocation144_spill] sm:$0xff]  ;;  %v22211_v23 = vpop.f32.mrb[87].mxu1  ;;  %v25665_v27 = vld [vmem:[#allocation26_spill] sm:$0xff] }
 0x98b   : > { %25642 = vst [vmem:[#allocation175_spill] sm:$0xff] %v22189_v3  ;;  %v3382_v22 = vadd.f32 %v3254_v60, %v25500_v28 }
 0x98c   : > { %25644 = vst [vmem:[#allocation176_spill] sm:$0xff] %v22197_v52  ;;  %v17629_v42 = vpop.f32.mrb[50].mxu0  ;;  %v3381_v12 = vadd.f32 %v3253_v7, %v25499_v11 }
 0x98d   : > { %v3256_v10 = vmul.f32 %v17629_v42, %v22027_v5  ;;  %v22207_v3 = vadd.f32 %v21851_v31, %v3382_v22  ;;  %v2695_v25 = vpop.f32.mrb[51].mxu0  ;;  %17787 = vmatmul.mubr.msk.f32.gmra.mrb[156].mxu0 %vm720_vm0, %v25647_v50  ;;  %v22219_v42 = vpop.f32.mrb[88].mxu1  ;;  %v25667_v50 = vld [vmem:[#allocation28_spill] sm:$0xff] }
 0x98e   : > { %v3255_v4 = vmul.f32 %v22027_v5, %v2695_v25  ;;  %v22215_v28 = vadd.f32 %v21855_v0, %v3381_v12  ;;  %v22225_v52 = vpop.f32.mrb[89].mxu1 }
 0x98f   : > { %25646 = vst [vmem:[#allocation177_spill] sm:$0xff] %v22207_v3  ;;  %v3384_v11 = vadd.f32 %v3256_v10, %v25502_v48  ;;  %v22233_v10 = vpop.f32.mrb[90].mxu1 }
 0x990   : > { %25648 = vst [vmem:[#allocation178_spill] sm:$0xff] %v22215_v28  ;;  %v17632_v60 = vpop.f32.mrb[52].mxu0  ;;  %v3383_v7 = vadd.f32 %v3255_v4, %v25501_v61  ;;  %v25661_v28 = vld [vmem:[#allocation24_spill] sm:$0xff] }
 0x991   : > { %v3258_v31 = vmul.f32 %v17632_v60, %v22027_v5  ;;  %v22223_v22 = vadd.f32 %v21859_v36, %v3384_v11  ;;  %v2705_v3 = vpop.f32.mrb[53].mxu0  ;;  %v22239_v60 = vpop.f32.mrb[91].mxu1 }
 0x992   : > { %v3257_v25 = vmul.f32 %v22027_v5, %v2705_v3  ;;  %v22229_v0 = vadd.f32 %v21863_v40, %v3383_v7 }
 0x993   : > { %25649 = vst [vmem:[#allocation179_spill] sm:$0xff] %v22223_v22  ;;  %v3386_v48 = vadd.f32 %v3258_v31, %v25504_v8  ;;  %v22247_v31 = vpop.f32.mrb[92].mxu1  ;;  %v25655_v22 = vld [vmem:[#allocation20_spill] sm:$0xff] }
 0x994   : > { %25650 = vst [vmem:[#allocation180_spill] sm:$0xff] %v22229_v0  ;;  %v17635_v12 = vpop.f32.mrb[54].mxu0  ;;  %v3385_v61 = vadd.f32 %v3257_v25, %v25503_v53  ;;  %v25659_v0 = vld [vmem:[#allocation22_spill] sm:$0xff] }
 0x995   : > { %v3260_v4 = vmul.f32 %v17635_v12, %v22027_v5  ;;  %v22237_v36 = vadd.f32 %v21867_v18, %v3386_v48  ;;  %v2715_v11 = vpop.f32.mrb[55].mxu0  ;;  %v25653_v12 = vld [vmem:[#allocation18_spill] sm:$0xff] }
 0x996   : > { %v3259_v3 = vmul.f32 %v22027_v5, %v2715_v11  ;;  %v22243_v40 = vadd.f32 %v21871_v51, %v3385_v61  ;;  %v25657_v61 = vld [vmem:[#allocation105_spill] sm:$0xff] }
 0x997   : > { %25651 = vst [vmem:[#allocation181_spill] sm:$0xff] %v22237_v36  ;;  %v3388_v8 = vadd.f32 %v3260_v4, %v25506_v14  ;;  %v22253_v36 = vpop.f32.mrb[93].mxu1 }
 0x998   : > { %25652 = vst [vmem:[#allocation182_spill] sm:$0xff] %v22243_v40  ;;  %v17638_v7 = vpop.f32.mrb[56].mxu0  ;;  %v3387_v53 = vadd.f32 %v3259_v3, %v25505_v2  ;;  %v25658_v40 = vld [vmem:[#allocation103_spill] sm:$0xff]  ;;  %v22261_v3 = vpop.f32.mrb[94].mxu1 }
 0x999   : > { %v3262_v25 = vmul.f32 %v17638_v7, %v22027_v5  ;;  %v22251_v18 = vadd.f32 %v25653_v12, %v3388_v8  ;;  %v2725_v48 = vpop.f32.mrb[57].mxu0 }
 0x99a   : > { %v3261_v11 = vmul.f32 %v22027_v5, %v2725_v48  ;;  %v22257_v51 = vadd.f32 %v25655_v22, %v3387_v53  ;;  %v25663_v53 = vld [vmem:[#allocation109_spill] sm:$0xff] }
 0x99b   : > { %25654 = vst [vmem:[#allocation18_spill] sm:$0xff] %v22251_v18  ;;  %v3390_v14 = vadd.f32 %v3262_v25, %v25657_v61  ;;  %v22267_v18 = vpop.f32.mrb[95].mxu1 }
 0x99c   : > { %25656 = vst [vmem:[#allocation20_spill] sm:$0xff] %v22257_v51  ;;  %v17641_v4 = vpop.f32.mrb[58].mxu0  ;;  %v3389_v2 = vadd.f32 %v3261_v11, %v25658_v40  ;;  %v25664_v51 = vld [vmem:[#allocation107_spill] sm:$0xff]  ;;  %v22275_v11 = vpop.f32.mrb[96].mxu1 }
 0x99d   : > { %v3264_v7 = vmul.f32 %v17641_v4, %v22027_v5  ;;  %v22265_v8 = vadd.f32 %v25659_v0, %v3390_v14  ;;  %v2735_v12 = vpop.f32.mrb[59].mxu0 }
 0x99e   : > { %v3263_v48 = vmul.f32 %v22027_v5, %v2735_v12  ;;  %v22271_v22 = vadd.f32 %v25661_v28, %v3389_v2  ;;  %v25669_v2 = vld [vmem:[#allocation113_spill] sm:$0xff] }
 0x99f   : > { %25660 = vst [vmem:[#allocation105_spill] sm:$0xff] %v22265_v8  ;;  %v3392_v25 = vadd.f32 %v3264_v7, %v25663_v53  ;;  %v22281_v8 = vpop.f32.mrb[97].mxu1 }
 0x9a0   : > { %25662 = vst [vmem:[#allocation103_spill] sm:$0xff] %v22271_v22  ;;  %v17644_v61 = vpop.f32.mrb[60].mxu0  ;;  %v3391_v40 = vadd.f32 %v3263_v48, %v25664_v51  ;;  %v25670_v22 = vld [vmem:[#allocation111_spill] sm:$0xff]  ;;  %v22289_v48 = vpop.f32.mrb[98].mxu1 }
 0x9a1   : > { %v3266_v4 = vmul.f32 %v17644_v61, %v22027_v5  ;;  %v22279_v0 = vadd.f32 %v25665_v27, %v3392_v25  ;;  %v2745_v14 = vpop.f32.mrb[61].mxu0 }
 0x9a2   : > { %v3265_v12 = vmul.f32 %v22027_v5, %v2745_v14  ;;  %v22285_v28 = vadd.f32 %v25667_v50, %v3391_v40  ;;  %v25675_v40 = vld [vmem:[#allocation52_spill] sm:$0xff] }
 0x9a3   : > { %25666 = vst [vmem:[#allocation22_spill] sm:$0xff] %v22279_v0  ;;  %v3394_v7 = vadd.f32 %v3266_v4, %v25669_v2  ;;  %v22295_v0 = vpop.f32.mrb[99].mxu1 }
 0x9a4   : > { %25668 = vst [vmem:[#allocation24_spill] sm:$0xff] %v22285_v28  ;;  %v17647_v53 = vpop.f32.mrb[62].mxu0  ;;  %v3393_v51 = vadd.f32 %v3265_v12, %v25670_v22  ;;  %v25676_v28 = vld [vmem:[#allocation50_spill] sm:$0xff]  ;;  %v22303_v12 = vpop.f32.mrb[100].mxu1 }
 0x9a5   : > { %v3268_v61 = vmul.f32 %v17647_v53, %v22027_v5  ;;  %v22293_v27 = vadd.f32 %v25671_v6, %v3394_v7  ;;  %v2755_v25 = vpop.f32.mrb[63].mxu0 }
 0x9a6   : > { %v3267_v14 = vmul.f32 %v22027_v5, %v2755_v25  ;;  %v22299_v50 = vadd.f32 %v25673_v55, %v3393_v51  ;;  %v25681_v51 = vld [vmem:[#allocation56_spill] sm:$0xff] }
 0x9a7   : > { %25672 = vst [vmem:[#allocation109_spill] sm:$0xff] %v22293_v27  ;;  %v3396_v4 = vadd.f32 %v3268_v61, %v25675_v40  ;;  %v22309_v27 = vpop.f32.mrb[101].mxu1 }
 0x9a8   : > { %25674 = vst [vmem:[#allocation107_spill] sm:$0xff] %v22299_v50  ;;  %v17650_v2 = vpop.f32.mrb[64].mxu0  ;;  %v3395_v22 = vadd.f32 %v3267_v14, %v25676_v28  ;;  %v25682_v50 = vld [vmem:[#allocation54_spill] sm:$0xff]  ;;  %v22317_v14 = vpop.f32.mrb[102].mxu1 }
 0x9a9   : > { %v3270_v53 = vmul.f32 %v17650_v2, %v22027_v5  ;;  %v22307_v6 = vadd.f32 %v25677_v58, %v3396_v4  ;;  %v2765_v7 = vpop.f32.mrb[65].mxu0 }
 0x9aa   : > { %v3269_v25 = vmul.f32 %v22027_v5, %v2765_v7  ;;  %v22313_v55 = vadd.f32 %v25679_v43, %v3395_v22  ;;  %v25687_v22 = vld [vmem:[#allocation60_spill] sm:$0xff] }
 0x9ab   : > { %25678 = vst [vmem:[#allocation26_spill] sm:$0xff] %v22307_v6  ;;  %v3398_v61 = vadd.f32 %v3270_v53, %v25681_v51  ;;  %v22323_v6 = vpop.f32.mrb[103].mxu1 }
 0x9ac   : > { %25680 = vst [vmem:[#allocation28_spill] sm:$0xff] %v22313_v55  ;;  %v17653_v40 = vpop.f32.mrb[66].mxu0  ;;  %v3397_v28 = vadd.f32 %v3269_v25, %v25682_v50  ;;  %v25688_v55 = vld [vmem:[#allocation58_spill] sm:$0xff]  ;;  %v22331_v25 = vpop.f32.mrb[104].mxu1 }
 0x9ad   : > { %v3272_v2 = vmul.f32 %v17653_v40, %v22027_v5  ;;  %v22321_v58 = vadd.f32 %v25683_v32, %v3398_v61  ;;  %v2775_v4 = vpop.f32.mrb[67].mxu0 }
 0x9ae   : > { %v3271_v7 = vmul.f32 %v22027_v5, %v2775_v4  ;;  %v22327_v43 = vadd.f32 %v25685_v62, %v3397_v28  ;;  %v25693_v28 = vld [vmem:[#allocation64_spill] sm:$0xff] }
 0x9af   : > { %25684 = vst [vmem:[#allocation113_spill] sm:$0xff] %v22321_v58  ;;  %v3400_v53 = vadd.f32 %v3272_v2, %v25687_v22  ;;  %v22337_v58 = vpop.f32.mrb[105].mxu1 }
 0x9b0   : > { %25686 = vst [vmem:[#allocation111_spill] sm:$0xff] %v22327_v43  ;;  %v17656_v51 = vpop.f32.mrb[68].mxu0  ;;  %v3399_v50 = vadd.f32 %v3271_v7, %v25688_v55  ;;  %v25694_v43 = vld [vmem:[#allocation62_spill] sm:$0xff]  ;;  %v22345_v7 = vpop.f32.mrb[106].mxu1 }
 0x9b1   : > { %v3274_v40 = vmul.f32 %v17656_v51, %v22027_v5  ;;  %v22335_v32 = vadd.f32 %v25689_v26, %v3400_v53  ;;  %v2785_v61 = vpop.f32.mrb[69].mxu0 }
 0x9b2   : > { %v3273_v4 = vmul.f32 %v22027_v5, %v2785_v61  ;;  %v22341_v62 = vadd.f32 %v25691_v38, %v3399_v50  ;;  %v25699_v50 = vld [vmem:[#allocation68_spill] sm:$0xff] }
 0x9b3   : > { %25690 = vst [vmem:[#allocation30_spill] sm:$0xff] %v22335_v32  ;;  %v3402_v2 = vadd.f32 %v3274_v40, %v25693_v28  ;;  %v22351_v32 = vpop.f32.mrb[107].mxu1 }
 0x9b4   : > { %25692 = vst [vmem:[#allocation32_spill] sm:$0xff] %v22341_v62  ;;  %v17659_v22 = vpop.f32.mrb[70].mxu0  ;;  %v3401_v55 = vadd.f32 %v3273_v4, %v25694_v43  ;;  %v25700_v62 = vld [vmem:[#allocation66_spill] sm:$0xff]  ;;  %v22359_v4 = vpop.f32.mrb[108].mxu1 }
 0x9b5   : > { %v3276_v51 = vmul.f32 %v17659_v22, %v22027_v5  ;;  %v22349_v26 = vadd.f32 %v25695_v9, %v3402_v2  ;;  %v2795_v53 = vpop.f32.mrb[71].mxu0 }
 0x9b6   : > { %v3275_v61 = vmul.f32 %v22027_v5, %v2795_v53  ;;  %v22355_v38 = vadd.f32 %v25697_v34, %v3401_v55  ;;  %v25705_v55 = vld [vmem:[#allocation72_spill] sm:$0xff] }
 0x9b7   : > { %25696 = vst [vmem:[#allocation52_spill] sm:$0xff] %v22349_v26  ;;  %v3404_v40 = vadd.f32 %v3276_v51, %v25699_v50  ;;  %v22365_v26 = vpop.f32.mrb[109].mxu1 }
 0x9b8   : > { %25698 = vst [vmem:[#allocation50_spill] sm:$0xff] %v22355_v38  ;;  %v17662_v28 = vpop.f32.mrb[72].mxu0  ;;  %v3403_v43 = vadd.f32 %v3275_v61, %v25700_v62  ;;  %v25706_v38 = vld [vmem:[#allocation70_spill] sm:$0xff]  ;;  %v22373_v61 = vpop.f32.mrb[110].mxu1 }
 0x9b9   : > { %v3278_v22 = vmul.f32 %v17662_v28, %v22027_v5  ;;  %v22363_v9 = vadd.f32 %v25701_v24, %v3404_v40  ;;  %v2805_v2 = vpop.f32.mrb[73].mxu0 }
 0x9ba   : > { %v3277_v53 = vmul.f32 %v22027_v5, %v2805_v2  ;;  %v22369_v34 = vadd.f32 %v25703_v17, %v3403_v43  ;;  %v25711_v43 = vld [vmem:[#allocation76_spill] sm:$0xff] }
 0x9bb   : > { %25702 = vst [vmem:[#allocation34_spill] sm:$0xff] %v22363_v9  ;;  %v3406_v51 = vadd.f32 %v3278_v22, %v25705_v55  ;;  %v22379_v9 = vpop.f32.mrb[111].mxu1 }
 0x9bc   : > { %25704 = vst [vmem:[#allocation36_spill] sm:$0xff] %v22369_v34  ;;  %v17665_v50 = vpop.f32.mrb[74].mxu0  ;;  %v3405_v62 = vadd.f32 %v3277_v53, %v25706_v38  ;;  %v25712_v34 = vld [vmem:[#allocation74_spill] sm:$0xff]  ;;  %v22387_v53 = vpop.f32.mrb[112].mxu1 }
 0x9bd   : > { %v3280_v28 = vmul.f32 %v17665_v50, %v22027_v5  ;;  %v22377_v24 = vadd.f32 %v25707_v19, %v3406_v51  ;;  %v2815_v40 = vpop.f32.mrb[75].mxu0  ;;  %25713 = vst [vmem:[#allocation38_spill] sm:$0xff] %v22387_v53  ;;  %v25722_v53 = vld [vmem:[#allocation95_spill] sm:$0xff] }
 0x9be   : > { %v3279_v2 = vmul.f32 %v22027_v5, %v2815_v40  ;;  %v22383_v17 = vadd.f32 %v25709_v33, %v3405_v62  ;;  %v25719_v62 = vld [vmem:[#allocation80_spill] sm:$0xff] }
 0x9bf   : > { %25708 = vst [vmem:[#allocation56_spill] sm:$0xff] %v22377_v24  ;;  %v3408_v22 = vadd.f32 %v3280_v28, %v25711_v43  ;;  %v22393_v24 = vpop.f32.mrb[113].mxu1 }
 0x9c0   : > { %25710 = vst [vmem:[#allocation54_spill] sm:$0xff] %v22383_v17  ;;  %v17668_v55 = vpop.f32.mrb[76].mxu0  ;;  %v3407_v38 = vadd.f32 %v3279_v2, %v25712_v34  ;;  %25716 = vst [vmem:[#allocation60_spill] sm:$0xff] %v22393_v24  ;;  %v25720_v17 = vld [vmem:[#allocation78_spill] sm:$0xff]  ;;  %v22401_v2 = vpop.f32.mrb[114].mxu1  ;;  %v25725_v24 = vld [vmem:[#allocation97_spill] sm:$0xff] }
 0x9c1   : > { %v3282_v50 = vmul.f32 %v17668_v55, %v22027_v5  ;;  %v22391_v19 = vadd.f32 %v25714_v46, %v3408_v22  ;;  %v2825_v51 = vpop.f32.mrb[77].mxu0  ;;  %25721 = vst [vmem:[#allocation42_spill] sm:$0xff] %v22401_v2  ;;  %v25730_v2 = vld [vmem:[#allocation99_spill] sm:$0xff] }
 0x9c2   : > { %v3281_v40 = vmul.f32 %v22027_v5, %v2825_v51  ;;  %v22397_v33 = vadd.f32 %v25717_v54, %v3407_v38  ;;  %v25727_v38 = vld [vmem:[#allocation117_spill] sm:$0xff] }
 0x9c3   : > { %25715 = vst [vmem:[#allocation40_spill] sm:$0xff] %v22391_v19  ;;  %v3410_v28 = vadd.f32 %v3282_v50, %v25719_v62  ;;  %v22407_v19 = vpop.f32.mrb[115].mxu1 }
 0x9c4   : > { %25718 = vst [vmem:[#allocation58_spill] sm:$0xff] %v22397_v33  ;;  %v17671_v43 = vpop.f32.mrb[78].mxu0  ;;  %v3409_v34 = vadd.f32 %v3281_v40, %v25720_v17  ;;  %25724 = vst [vmem:[#allocation64_spill] sm:$0xff] %v22407_v19  ;;  %v25728_v33 = vld [vmem:[#allocation115_spill] sm:$0xff]  ;;  %v22415_v40 = vpop.f32.mrb[116].mxu1  ;;  %v25733_v19 = vld [vmem:[#allocation101_spill] sm:$0xff] }
 0x9c5   : > { %v3284_v55 = vmul.f32 %v17671_v43, %v22027_v5  ;;  %v22405_v46 = vadd.f32 %v25722_v53, %v3410_v28  ;;  %v2835_v22 = vpop.f32.mrb[79].mxu0  ;;  %25729 = vst [vmem:[#allocation46_spill] sm:$0xff] %v22415_v40  ;;  %v25738_v40 = vld [vmem:[#allocation146_spill] sm:$0xff] }
 0x9c6   : > { %v3283_v51 = vmul.f32 %v22027_v5, %v2835_v22  ;;  %v22411_v54 = vadd.f32 %v25725_v24, %v3409_v34  ;;  %v25735_v34 = vld [vmem:[#allocation121_spill] sm:$0xff] }
 0x9c7   : > { %25723 = vst [vmem:[#allocation44_spill] sm:$0xff] %v22405_v46  ;;  %v3412_v50 = vadd.f32 %v3284_v55, %v25727_v38  ;;  %v22421_v46 = vpop.f32.mrb[117].mxu1 }
 0x9c8   : > { %25726 = vst [vmem:[#allocation62_spill] sm:$0xff] %v22411_v54  ;;  %v17674_v62 = vpop.f32.mrb[80].mxu0  ;;  %v3411_v17 = vadd.f32 %v3283_v51, %v25728_v33  ;;  %25732 = vst [vmem:[#allocation68_spill] sm:$0xff] %v22421_v46  ;;  %v25736_v54 = vld [vmem:[#allocation119_spill] sm:$0xff]  ;;  %v22429_v51 = vpop.f32.mrb[118].mxu1 }
 0x9c9   : > { %v3286_v43 = vmul.f32 %v17674_v62, %v22027_v5  ;;  %v22419_v53 = vadd.f32 %v25730_v2, %v3412_v50  ;;  %v2845_v28 = vpop.f32.mrb[81].mxu0  ;;  %25737 = vst [vmem:[#allocation82_spill] sm:$0xff] %v22429_v51  ;;  %v25741_v46 = vld [vmem:[#allocation147_spill] sm:$0xff]  ;;  %v25746_v51 = vld [vmem:[#allocation148_spill] sm:$0xff] }
 0x9ca   : > { %v3285_v22 = vmul.f32 %v22027_v5, %v2845_v28  ;;  %v22425_v24 = vadd.f32 %v25733_v19, %v3411_v17  ;;  %v25743_v17 = vld [vmem:[#allocation125_spill] sm:$0xff] }
 0x9cb   : > { %25731 = vst [vmem:[#allocation48_spill] sm:$0xff] %v22419_v53  ;;  %v3414_v55 = vadd.f32 %v3286_v43, %v25735_v34  ;;  %v22435_v53 = vpop.f32.mrb[119].mxu1 }
 0x9cc   : > { %25734 = vst [vmem:[#allocation66_spill] sm:$0xff] %v22425_v24  ;;  %v17677_v38 = vpop.f32.mrb[82].mxu0  ;;  %v3413_v33 = vadd.f32 %v3285_v22, %v25736_v54  ;;  %25740 = vst [vmem:[#allocation72_spill] sm:$0xff] %v22435_v53  ;;  %v25744_v24 = vld [vmem:[#allocation123_spill] sm:$0xff]  ;;  %v22443_v22 = vpop.f32.mrb[120].mxu1  ;;  %v25749_v53 = vld [vmem:[#allocation149_spill] sm:$0xff] }
 0x9cd   : > { %v3288_v62 = vmul.f32 %v17677_v38, %v22027_v5  ;;  %v22433_v2 = vadd.f32 %v25738_v40, %v3414_v55  ;;  %v2855_v50 = vpop.f32.mrb[83].mxu0  ;;  %25745 = vst [vmem:[#allocation86_spill] sm:$0xff] %v22443_v22  ;;  %v25754_v22 = vld [vmem:[#allocation150_spill] sm:$0xff] }
 0x9ce   : > { %v3287_v28 = vmul.f32 %v22027_v5, %v2855_v50  ;;  %v22439_v19 = vadd.f32 %v25741_v46, %v3413_v33  ;;  %v25751_v33 = vld [vmem:[#allocation129_spill] sm:$0xff] }
 0x9cf   : > { %25739 = vst [vmem:[#allocation84_spill] sm:$0xff] %v22433_v2  ;;  %v3416_v43 = vadd.f32 %v3288_v62, %v25743_v17  ;;  %v22449_v2 = vpop.f32.mrb[121].mxu1 }
 0x9d0   : > { %25742 = vst [vmem:[#allocation70_spill] sm:$0xff] %v22439_v19  ;;  %v17680_v34 = vpop.f32.mrb[84].mxu0  ;;  %v3415_v54 = vadd.f32 %v3287_v28, %v25744_v24  ;;  %25748 = vst [vmem:[#allocation76_spill] sm:$0xff] %v22449_v2  ;;  %v25752_v19 = vld [vmem:[#allocation127_spill] sm:$0xff]  ;;  %v22457_v28 = vpop.f32.mrb[122].mxu1 }
 0x9d1   : > { %v3290_v38 = vmul.f32 %v17680_v34, %v22027_v5  ;;  %v22447_v40 = vadd.f32 %v25746_v51, %v3416_v43  ;;  %v2865_v55 = vpop.f32.mrb[85].mxu0  ;;  %25753 = vst [vmem:[#allocation90_spill] sm:$0xff] %v22457_v28  ;;  %v25757_v2 = vld [vmem:[#allocation151_spill] sm:$0xff]  ;;  %v25762_v28 = vld [vmem:[#allocation152_spill] sm:$0xff] }
 0x9d2   : > { %v3289_v50 = vmul.f32 %v22027_v5, %v2865_v55  ;;  %v22453_v46 = vadd.f32 %v25749_v53, %v3415_v54  ;;  %v25759_v54 = vld [vmem:[#allocation133_spill] sm:$0xff] }
 0x9d3   : > { %25747 = vst [vmem:[#allocation88_spill] sm:$0xff] %v22447_v40  ;;  %v3418_v62 = vadd.f32 %v3290_v38, %v25751_v33  ;;  %v22463_v40 = vpop.f32.mrb[123].mxu1 }
 0x9d4   : > { %25750 = vst [vmem:[#allocation74_spill] sm:$0xff] %v22453_v46  ;;  %v17683_v17 = vpop.f32.mrb[86].mxu0  ;;  %v3417_v24 = vadd.f32 %v3289_v50, %v25752_v19  ;;  %25756 = vst [vmem:[#allocation80_spill] sm:$0xff] %v22463_v40  ;;  %v25760_v46 = vld [vmem:[#allocation131_spill] sm:$0xff]  ;;  %v22471_v50 = vpop.f32.mrb[124].mxu1  ;;  %v25765_v40 = vld [vmem:[#allocation153_spill] sm:$0xff] }
 0x9d5   : > { %v3292_v34 = vmul.f32 %v17683_v17, %v22027_v5  ;;  %v22461_v51 = vadd.f32 %v25754_v22, %v3418_v62  ;;  %v2875_v43 = vpop.f32.mrb[87].mxu0  ;;  %25761 = vst [vmem:[#allocation95_spill] sm:$0xff] %v22471_v50  ;;  %v25770_v50 = vld [vmem:[#allocation154_spill] sm:$0xff] }
 0x9d6   : > { %v3291_v55 = vmul.f32 %v22027_v5, %v2875_v43  ;;  %v22467_v53 = vadd.f32 %v25757_v2, %v3417_v24  ;;  %v25767_v24 = vld [vmem:[#allocation137_spill] sm:$0xff] }
 0x9d7   : > { %25755 = vst [vmem:[#allocation93_spill] sm:$0xff] %v22461_v51  ;;  %v3420_v38 = vadd.f32 %v3292_v34, %v25759_v54  ;;  %v22477_v51 = vpop.f32.mrb[125].mxu1 }
 0x9d8   : > { %25758 = vst [vmem:[#allocation78_spill] sm:$0xff] %v22467_v53  ;;  %v17686_v33 = vpop.f32.mrb[88].mxu0  ;;  %v3419_v19 = vadd.f32 %v3291_v55, %v25760_v46  ;;  %25764 = vst [vmem:[#allocation117_spill] sm:$0xff] %v22477_v51  ;;  %v25768_v53 = vld [vmem:[#allocation135_spill] sm:$0xff]  ;;  %v22485_v55 = vpop.f32.mrb[126].mxu1 }
 0x9d9   : > { %v3294_v17 = vmul.f32 %v17686_v33, %v22027_v5  ;;  %v22475_v22 = vadd.f32 %v25762_v28, %v3420_v38  ;;  %v2885_v62 = vpop.f32.mrb[89].mxu0  ;;  %25769 = vst [vmem:[#allocation99_spill] sm:$0xff] %v22485_v55  ;;  %v25773_v51 = vld [vmem:[#allocation155_spill] sm:$0xff]  ;;  %v25778_v55 = vld [vmem:[#allocation156_spill] sm:$0xff] }
 0x9da   : > { %v3293_v43 = vmul.f32 %v22027_v5, %v2885_v62  ;;  %v22481_v2 = vadd.f32 %v25765_v40, %v3419_v19  ;;  %v25775_v19 = vld [vmem:[#allocation141_spill] sm:$0xff] }
 0x9db   : > { %25763 = vst [vmem:[#allocation97_spill] sm:$0xff] %v22475_v22  ;;  %v3422_v34 = vadd.f32 %v3294_v17, %v25767_v24  ;;  %v22491_v22 = vpop.f32.mrb[127].mxu1 }
 0x9dc   : > { %25766 = vst [vmem:[#allocation115_spill] sm:$0xff] %v22481_v2  ;;  %v17689_v54 = vpop.f32.mrb[90].mxu0  ;;  %v3421_v46 = vadd.f32 %v3293_v43, %v25768_v53  ;;  %25772 = vst [vmem:[#allocation121_spill] sm:$0xff] %v22491_v22  ;;  %v25776_v2 = vld [vmem:[#allocation139_spill] sm:$0xff]  ;;  %v22499_v43 = vpop.f32.mrb[128].mxu1  ;;  %v25780_v22 = vld [vmem:[#allocation157_spill] sm:$0xff] }
 0x9dd   : > { %v3296_v33 = vmul.f32 %v17689_v54, %v22027_v5  ;;  %v22489_v28 = vadd.f32 %v25770_v50, %v3422_v34  ;;  %v2895_v38 = vpop.f32.mrb[91].mxu0  ;;  %25777 = vst [vmem:[#allocation146_spill] sm:$0xff] %v22499_v43  ;;  %v25785_v43 = vld [vmem:[#allocation158_spill] sm:$0xff] }
 0x9de   : > { %v3295_v62 = vmul.f32 %v22027_v5, %v2895_v38  ;;  %v22495_v40 = vadd.f32 %v25773_v51, %v3421_v46  ;;  %v25782_v46 = vld [vmem:[#allocation145_spill] sm:$0xff] }
 0x9df   : > { %25771 = vst [vmem:[#allocation101_spill] sm:$0xff] %v22489_v28  ;;  %v3424_v17 = vadd.f32 %v3296_v33, %v25775_v19  ;;  %v22505_v28 = vpop.f32.mrb[129].mxu1 }
 0x9e0   : > { %25774 = vst [vmem:[#allocation119_spill] sm:$0xff] %v22495_v40  ;;  %v17692_v24 = vpop.f32.mrb[92].mxu0  ;;  %v3423_v53 = vadd.f32 %v3295_v62, %v25776_v2  ;;  %v22512_v19 = vpop.f32.mrb[130].mxu1  ;;  %v25784_v62 = vld [vmem:[#allocation143_spill] sm:$0xff] }
 0x9e1   : > { %v3298_v54 = vmul.f32 %v17692_v24, %v22027_v5  ;;  %v22503_v50 = vadd.f32 %v25778_v55, %v3424_v17  ;;  %v2905_v34 = vpop.f32.mrb[93].mxu0  ;;  %25783 = vst [vmem:[#allocation123_spill] sm:$0xff] %v22512_v19 }
 0x9e2   : > { %v3297_v38 = vmul.f32 %v22027_v5, %v2905_v34  ;;  %v22509_v51 = vadd.f32 %v25780_v22, %v3423_v53  ;;  %v25788_v53 = vld [vmem:[#allocation19_spill] sm:$0xff] }
 0x9e3   : > { %25779 = vst [vmem:[#allocation147_spill] sm:$0xff] %v22503_v50  ;;  %v3426_v33 = vadd.f32 %v3298_v54, %v25782_v46  ;;  %v22519_v50 = vpop.f32.mrb[131].mxu1 }
 0x9e4   : > { %25781 = vst [vmem:[#allocation125_spill] sm:$0xff] %v22509_v51  ;;  %v17695_v2 = vpop.f32.mrb[94].mxu0  ;;  %v3425_v40 = vadd.f32 %v3297_v38, %v25784_v62  ;;  %v25789_v51 = vld [vmem:[#allocation17_spill] sm:$0xff] }
 0x9e5   : > { %v3300_v24 = vmul.f32 %v17695_v2, %v22027_v5  ;;  %v22517_v55 = vadd.f32 %v25785_v43, %v3426_v33  ;;  %v2915_v17 = vpop.f32.mrb[95].mxu0 }
 0x9e6   : > { %v3299_v34 = vmul.f32 %v22027_v5, %v2915_v17  ;;  %v22523_v22 = vadd.f32 %v22034_v29, %v3425_v40  ;;  %v25790_v17 = vld [vmem:[#allocation23_spill] sm:$0xff]  ;;  %v25791_v40 = vld [vmem:[#allocation21_spill] sm:$0xff] }
 0x9e7   : > { %25786 = vst [vmem:[#allocation148_spill] sm:$0xff] %v22517_v55  ;;  %v3428_v54 = vadd.f32 %v3300_v24, %v25788_v53 }
 0x9e8   : > { %25787 = vst [vmem:[#allocation149_spill] sm:$0xff] %v22523_v22  ;;  %v17698_v46 = vpop.f32.mrb[96].mxu0  ;;  %v3427_v19 = vadd.f32 %v3299_v34, %v25789_v51 }
 0x9e9   : > { %v3302_v38 = vmul.f32 %v17698_v46, %v22027_v5  ;;  %v22529_v2 = vadd.f32 %v22041_v16, %v3428_v54  ;;  %v2925_v43 = vpop.f32.mrb[97].mxu0  ;;  %v25792_v54 = vld [vmem:[#allocation27_spill] sm:$0xff] }
 0x9ea   : > { %v3301_v33 = vmul.f32 %v22027_v5, %v2925_v43  ;;  %v22533_v62 = vadd.f32 %v22049_v41, %v3427_v19  ;;  %v25793_v19 = vld [vmem:[#allocation25_spill] sm:$0xff] }
 0x9eb   : > { %v3430_v55 = vadd.f32 %v3302_v38, %v25790_v17 }
 0x9ec   : > { %v17701_v29 = vpop.f32.mrb[98].mxu0  ;;  %v3429_v22 = vadd.f32 %v3301_v33, %v25791_v40 }
 0x9ed   : > { %v3304_v24 = vmul.f32 %v17701_v29, %v22027_v5  ;;  %v22539_v51 = vadd.f32 %v22059_v45, %v3430_v55  ;;  %v2935_v34 = vpop.f32.mrb[99].mxu0  ;;  %v25794_v29 = vld [vmem:[#allocation31_spill] sm:$0xff] }
 0x9ee   : > { %v3303_v16 = vmul.f32 %v22027_v5, %v2935_v34  ;;  %v22543_v53 = vadd.f32 %v22067_v30, %v3429_v22  ;;  %v25795_v22 = vld [vmem:[#allocation29_spill] sm:$0xff] }
 0x9ef   : > { %v3432_v46 = vadd.f32 %v3304_v24, %v25792_v54 }
 0x9f0   : > { %v17704_v41 = vpop.f32.mrb[100].mxu0  ;;  %v3431_v43 = vadd.f32 %v3303_v16, %v25793_v19 }
 0x9f1   : > { %v3306_v38 = vmul.f32 %v17704_v41, %v22027_v5  ;;  %v22549_v33 = vadd.f32 %v22077_v1, %v3432_v46  ;;  %v2945_v17 = vpop.f32.mrb[101].mxu0  ;;  %v25796_v41 = vld [vmem:[#allocation35_spill] sm:$0xff] }
 0x9f2   : > { %v3305_v45 = vmul.f32 %v22027_v5, %v2945_v17  ;;  %v22553_v55 = vadd.f32 %v22085_v13, %v3431_v43  ;;  %v25797_v43 = vld [vmem:[#allocation33_spill] sm:$0xff] }
 0x9f3   : > { %v3434_v40 = vadd.f32 %v3306_v38, %v25794_v29 }
 0x9f4   : > { %v17707_v30 = vpop.f32.mrb[102].mxu0  ;;  %v3433_v34 = vadd.f32 %v3305_v45, %v25795_v22 }
 0x9f5   : > { %v3308_v24 = vmul.f32 %v17707_v30, %v22027_v5  ;;  %v22559_v16 = vadd.f32 %v22095_v20, %v3434_v40  ;;  %v2955_v54 = vpop.f32.mrb[103].mxu0  ;;  %v25800_v30 = vld [vmem:[#allocation39_spill] sm:$0xff] }
 0x9f6   : > { %v3307_v1 = vmul.f32 %v22027_v5, %v2955_v54  ;;  %v22563_v46 = vadd.f32 %v22103_v39, %v3433_v34  ;;  %v25801_v34 = vld [vmem:[#allocation37_spill] sm:$0xff] }
 0x9f7   : > { %v3436_v19 = vadd.f32 %v3308_v24, %v25796_v41 }
 0x9f8   : > { %v17710_v13 = vpop.f32.mrb[104].mxu0  ;;  %v3435_v17 = vadd.f32 %v3307_v1, %v25797_v43 }
 0x9f9   : > { %v3310_v38 = vmul.f32 %v17710_v13, %v22027_v5  ;;  %v22569_v45 = vadd.f32 %v22113_v47, %v3436_v19  ;;  %v2965_v29 = vpop.f32.mrb[105].mxu0  ;;  %v25804_v13 = vld [vmem:[#allocation43_spill] sm:$0xff] }
 0x9fa   : > { %v3309_v20 = vmul.f32 %v22027_v5, %v2965_v29  ;;  %v22573_v40 = vadd.f32 %v22121_v44, %v3435_v17  ;;  %v25805_v17 = vld [vmem:[#allocation41_spill] sm:$0xff] }
 0x9fb   : > { %25798 = vst [vmem:[#allocation129_spill] sm:$0xff] %v22569_v45  ;;  %v3438_v22 = vadd.f32 %v3310_v38, %v25800_v30 }
 0x9fc   : > { %25799 = vst [vmem:[#allocation127_spill] sm:$0xff] %v22573_v40  ;;  %v17713_v39 = vpop.f32.mrb[106].mxu0  ;;  %v3437_v54 = vadd.f32 %v3309_v20, %v25801_v34 }
 0x9fd   : > { %v3312_v24 = vmul.f32 %v17713_v39, %v22027_v5  ;;  %v22579_v1 = vadd.f32 %v22131_v59, %v3438_v22  ;;  %v2975_v41 = vpop.f32.mrb[107].mxu0  ;;  %v25806_v39 = vld [vmem:[#allocation47_spill] sm:$0xff] }
 0x9fe   : > { %v3311_v47 = vmul.f32 %v22027_v5, %v2975_v41  ;;  %v22583_v19 = vadd.f32 %v22139_v56, %v3437_v54  ;;  %v25807_v54 = vld [vmem:[#allocation45_spill] sm:$0xff] }
 0x9ff   : > { %25802 = vst [vmem:[#allocation150_spill] sm:$0xff] %v22579_v1  ;;  %v3440_v43 = vadd.f32 %v3312_v24, %v25804_v13 }
 0xa00   : > { %25803 = vst [vmem:[#allocation151_spill] sm:$0xff] %v22583_v19  ;;  %v17716_v44 = vpop.f32.mrb[108].mxu0  ;;  %v3439_v29 = vadd.f32 %v3311_v47, %v25805_v17 }
 0xa01   : > { %v3314_v38 = vmul.f32 %v17716_v44, %v22027_v5  ;;  %v22589_v20 = vadd.f32 %v22149_v35, %v3440_v43  ;;  %v2985_v30 = vpop.f32.mrb[109].mxu0  ;;  %v25808_v44 = vld [vmem:[#allocation83_spill] sm:$0xff] }
 0xa02   : > { %v3313_v59 = vmul.f32 %v22027_v5, %v2985_v30  ;;  %v22593_v22 = vadd.f32 %v22157_v15, %v3439_v29  ;;  %v25809_v29 = vld [vmem:[#allocation81_spill] sm:$0xff] }
 0xa03   : > { %v3442_v34 = vadd.f32 %v3314_v38, %v25806_v39 }
 0xa04   : > { %v17719_v56 = vpop.f32.mrb[110].mxu0  ;;  %v3441_v41 = vadd.f32 %v3313_v59, %v25807_v54 }
 0xa05   : > { %v3316_v24 = vmul.f32 %v17719_v56, %v22027_v5  ;;  %v22599_v47 = vadd.f32 %v22167_v21, %v3442_v34  ;;  %v2995_v13 = vpop.f32.mrb[111].mxu0  ;;  %v25810_v56 = vld [vmem:[#allocation87_spill] sm:$0xff] }
 0xa06   : > { %v3315_v35 = vmul.f32 %v22027_v5, %v2995_v13  ;;  %v22603_v43 = vadd.f32 %v22175_v49, %v3441_v41  ;;  %v25811_v41 = vld [vmem:[#allocation85_spill] sm:$0xff] }
 0xa07   : > { %v3444_v17 = vadd.f32 %v3316_v24, %v25808_v44 }
 0xa08   : > { %v17722_v15 = vpop.f32.mrb[112].mxu0  ;;  %v3443_v30 = vadd.f32 %v3315_v35, %v25809_v29 }
 0xa09   : > { %v3318_v38 = vmul.f32 %v17722_v15, %v22027_v5  ;;  %v22609_v59 = vadd.f32 %v22185_v37, %v3444_v17  ;;  %v3005_v39 = vpop.f32.mrb[113].mxu0  ;;  %v25812_v15 = vld [vmem:[#allocation92_spill] sm:$0xff] }
 0xa0a   : > { %v3317_v21 = vmul.f32 %v22027_v5, %v3005_v39  ;;  %v22613_v34 = vadd.f32 %v22193_v63, %v3443_v30  ;;  %v25813_v30 = vld [vmem:[#allocation89_spill] sm:$0xff] }
 0xa0b   : > { %v3446_v54 = vadd.f32 %v3318_v38, %v25810_v56 }
 0xa0c   : > { %v17725_v49 = vpop.f32.mrb[114].mxu0  ;;  %v3445_v13 = vadd.f32 %v3317_v21, %v25811_v41 }
 0xa0d   : > { %v3320_v24 = vmul.f32 %v17725_v49, %v22027_v5  ;;  %v22619_v35 = vadd.f32 %v22203_v57, %v3446_v54  ;;  %v3015_v44 = vpop.f32.mrb[115].mxu0  ;;  %v25814_v49 = vld [vmem:[#allocation96_spill] sm:$0xff] }
 0xa0e   : > { %v3319_v37 = vmul.f32 %v22027_v5, %v3015_v44  ;;  %v22623_v17 = vadd.f32 %v22211_v23, %v3445_v13  ;;  %v25815_v13 = vld [vmem:[#allocation94_spill] sm:$0xff] }
 0xa0f   : > { %v3448_v29 = vadd.f32 %v3320_v24, %v25812_v15 }
 0xa10   : > { %v17728_v63 = vpop.f32.mrb[116].mxu0  ;;  %v3447_v39 = vadd.f32 %v3319_v37, %v25813_v30 }
 0xa11   : > { %v3322_v38 = vmul.f32 %v17728_v63, %v22027_v5  ;;  %v22629_v21 = vadd.f32 %v22219_v42, %v3448_v29  ;;  %v3025_v56 = vpop.f32.mrb[117].mxu0  ;;  %v25816_v63 = vld [vmem:[#allocation100_spill] sm:$0xff] }
 0xa12   : > { %v3321_v57 = vmul.f32 %v22027_v5, %v3025_v56  ;;  %v22633_v54 = vadd.f32 %v22225_v52, %v3447_v39  ;;  %v25817_v39 = vld [vmem:[#allocation98_spill] sm:$0xff] }
 0xa13   : > { %v3450_v41 = vadd.f32 %v3322_v38, %v25814_v49 }
 0xa14   : > { %v17731_v23 = vpop.f32.mrb[118].mxu0  ;;  %v3449_v44 = vadd.f32 %v3321_v57, %v25815_v13 }
 0xa15   : > { %v3324_v24 = vmul.f32 %v17731_v23, %v22027_v5  ;;  %v22639_v37 = vadd.f32 %v22233_v10, %v3450_v41  ;;  %v3035_v15 = vpop.f32.mrb[119].mxu0  ;;  %v25820_v23 = vld [vmem:[#allocation104_spill] sm:$0xff] }
 0xa16   : > { %v3323_v42 = vmul.f32 %v22027_v5, %v3035_v15  ;;  %v22643_v29 = vadd.f32 %v22239_v60, %v3449_v44  ;;  %v25821_v44 = vld [vmem:[#allocation102_spill] sm:$0xff] }
 0xa17   : > { %v3452_v30 = vadd.f32 %v3324_v24, %v25816_v63 }
 0xa18   : > { %v17734_v52 = vpop.f32.mrb[120].mxu0  ;;  %v3451_v56 = vadd.f32 %v3323_v42, %v25817_v39 }
 0xa19   : > { %v3326_v38 = vmul.f32 %v17734_v52, %v22027_v5  ;;  %v22649_v57 = vadd.f32 %v22247_v31, %v3452_v30  ;;  %v3045_v49 = vpop.f32.mrb[121].mxu0  ;;  %v25824_v52 = vld [vmem:[#allocation108_spill] sm:$0xff] }
 0xa1a   : > { %v3325_v10 = vmul.f32 %v22027_v5, %v3045_v49  ;;  %v22653_v41 = vadd.f32 %v22253_v36, %v3451_v56  ;;  %v25825_v56 = vld [vmem:[#allocation106_spill] sm:$0xff] }
 0xa1b   : > { %25818 = vst [vmem:[#allocation133_spill] sm:$0xff] %v22649_v57  ;;  %v3454_v13 = vadd.f32 %v3326_v38, %v25820_v23 }
 0xa1c   : > { %25819 = vst [vmem:[#allocation131_spill] sm:$0xff] %v22653_v41  ;;  %v17737_v60 = vpop.f32.mrb[122].mxu0  ;;  %v3453_v15 = vadd.f32 %v3325_v10, %v25821_v44 }
 0xa1d   : > { %v3328_v24 = vmul.f32 %v17737_v60, %v22027_v5  ;;  %v22659_v42 = vadd.f32 %v22261_v3, %v3454_v13  ;;  %v3055_v63 = vpop.f32.mrb[123].mxu0  ;;  %v25826_v60 = vld [vmem:[#allocation112_spill] sm:$0xff] }
 0xa1e   : > { %v3327_v31 = vmul.f32 %v22027_v5, %v3055_v63  ;;  %v22663_v30 = vadd.f32 %v22267_v18, %v3453_v15  ;;  %v25827_v15 = vld [vmem:[#allocation110_spill] sm:$0xff] }
 0xa1f   : > { %25822 = vst [vmem:[#allocation152_spill] sm:$0xff] %v22659_v42  ;;  %v3456_v39 = vadd.f32 %v3328_v24, %v25824_v52 }
 0xa20   : > { %25823 = vst [vmem:[#allocation153_spill] sm:$0xff] %v22663_v30  ;;  %v17740_v36 = vpop.f32.mrb[124].mxu0  ;;  %v3455_v49 = vadd.f32 %v3327_v31, %v25825_v56 }
 0xa21   : > { %v3330_v38 = vmul.f32 %v17740_v36, %v22027_v5  ;;  %v22669_v10 = vadd.f32 %v22275_v11, %v3456_v39  ;;  %v3065_v23 = vpop.f32.mrb[125].mxu0  ;;  %v25828_v36 = vld [vmem:[#allocation51_spill] sm:$0xff] }
 0xa22   : > { %v3329_v3 = vmul.f32 %v22027_v5, %v3065_v23  ;;  %v22673_v13 = vadd.f32 %v22281_v8, %v3455_v49  ;;  %v25829_v49 = vld [vmem:[#allocation49_spill] sm:$0xff] }
 0xa23   : > { %v3458_v44 = vadd.f32 %v3330_v38, %v25826_v60 }
 0xa24   : > { %v17743_v18 = vpop.f32.mrb[126].mxu0  ;;  %v3457_v63 = vadd.f32 %v3329_v3, %v25827_v15 }
 0xa25   : > { %v3332_v24 = vmul.f32 %v17743_v18, %v22027_v5  ;;  %v22679_v31 = vadd.f32 %v22289_v48, %v3458_v44  ;;  %v3075_v52 = vpop.f32.mrb[127].mxu0  ;;  %v25830_v18 = vld [vmem:[#allocation55_spill] sm:$0xff] }
 0xa26   : > { %v3331_v11 = vmul.f32 %v22027_v5, %v3075_v52  ;;  %v22683_v39 = vadd.f32 %v22295_v0, %v3457_v63  ;;  %v25831_v63 = vld [vmem:[#allocation53_spill] sm:$0xff] }
 0xa27   : > { %v3460_v56 = vadd.f32 %v3332_v24, %v25828_v36 }
 0xa28   : > { %v17746_v8 = vpop.f32.mrb[128].mxu0  ;;  %v3459_v23 = vadd.f32 %v3331_v11, %v25829_v49 }
 0xa29   : > { %v3334_v38 = vmul.f32 %v17746_v8, %v22027_v5  ;;  %v22689_v3 = vadd.f32 %v22303_v12, %v3460_v56  ;;  %v3085_v60 = vpop.f32.mrb[129].mxu0  ;;  %v25832_v8 = vld [vmem:[#allocation59_spill] sm:$0xff] }
 0xa2a   : > { %v3333_v48 = vmul.f32 %v22027_v5, %v3085_v60  ;;  %v22693_v44 = vadd.f32 %v22309_v27, %v3459_v23  ;;  %v25833_v23 = vld [vmem:[#allocation57_spill] sm:$0xff] }
 0xa2b   : > { %v3462_v15 = vadd.f32 %v3334_v38, %v25830_v18 }
 0xa2c   : > { %v17749_v0 = vpop.f32.mrb[130].mxu0  ;;  %v3461_v52 = vadd.f32 %v3333_v48, %v25831_v63 }
 0xa2d   : > { %v3336_v24 = vmul.f32 %v17749_v0, %v22027_v5  ;;  %v22699_v11 = vadd.f32 %v22317_v14, %v3462_v15  ;;  %v3095_v36 = vpop.f32.mrb[131].mxu0  ;;  %v25834_v0 = vld [vmem:[#allocation63_spill] sm:$0xff] }
 0xa2e   : > { %v3335_v12 = vmul.f32 %v22027_v5, %v3095_v36  ;;  %v22703_v56 = vadd.f32 %v22323_v6, %v3461_v52  ;;  %v25835_v52 = vld [vmem:[#allocation61_spill] sm:$0xff] }
 0xa2f   : > { %v3464_v49 = vadd.f32 %v3336_v24, %v25832_v8 }
 0xa30   : > { %v17752_v27 = vpop.f32.mrb[132].mxu0  ;;  %v3463_v60 = vadd.f32 %v3335_v12, %v25833_v23 }
 0xa31   : > { %v3338_v38 = vmul.f32 %v17752_v27, %v22027_v5  ;;  %v22709_v48 = vadd.f32 %v22331_v25, %v3464_v49  ;;  %v3105_v18 = vpop.f32.mrb[133].mxu0  ;;  %v25838_v27 = vld [vmem:[#allocation67_spill] sm:$0xff] }
 0xa32   : > { %v3337_v14 = vmul.f32 %v22027_v5, %v3105_v18  ;;  %v22713_v15 = vadd.f32 %v22337_v58, %v3463_v60  ;;  %v25839_v60 = vld [vmem:[#allocation65_spill] sm:$0xff] }
 0xa33   : > { %v3466_v63 = vadd.f32 %v3338_v38, %v25834_v0 }
 0xa34   : > { %v17755_v6 = vpop.f32.mrb[134].mxu0  ;;  %v3465_v36 = vadd.f32 %v3337_v14, %v25835_v52 }
 0xa35   : > { %v3340_v24 = vmul.f32 %v17755_v6, %v22027_v5  ;;  %v22719_v12 = vadd.f32 %v22345_v7, %v3466_v63  ;;  %v3115_v8 = vpop.f32.mrb[135].mxu0  ;;  %v25842_v6 = vld [vmem:[#allocation71_spill] sm:$0xff] }
 0xa36   : > { %v3339_v25 = vmul.f32 %v22027_v5, %v3115_v8  ;;  %v22723_v49 = vadd.f32 %v22351_v32, %v3465_v36  ;;  %v25843_v36 = vld [vmem:[#allocation69_spill] sm:$0xff] }
 0xa37   : > { %25836 = vst [vmem:[#allocation137_spill] sm:$0xff] %v22719_v12  ;;  %v3468_v23 = vadd.f32 %v3340_v24, %v25838_v27 }
 0xa38   : > { %25837 = vst [vmem:[#allocation135_spill] sm:$0xff] %v22723_v49  ;;  %v17758_v58 = vpop.f32.mrb[136].mxu0  ;;  %v3467_v18 = vadd.f32 %v3339_v25, %v25839_v60 }
 0xa39   : > { %v3342_v38 = vmul.f32 %v17758_v58, %v22027_v5  ;;  %v22729_v14 = vadd.f32 %v22359_v4, %v3468_v23  ;;  %v3125_v0 = vpop.f32.mrb[137].mxu0  ;;  %v25846_v58 = vld [vmem:[#allocation75_spill] sm:$0xff] }
 0xa3a   : > { %v3341_v7 = vmul.f32 %v22027_v5, %v3125_v0  ;;  %v22733_v63 = vadd.f32 %v22365_v26, %v3467_v18  ;;  %v25847_v18 = vld [vmem:[#allocation73_spill] sm:$0xff] }
 0xa3b   : > { %25840 = vst [vmem:[#allocation154_spill] sm:$0xff] %v22729_v14  ;;  %v3470_v52 = vadd.f32 %v3342_v38, %v25842_v6  ;;  %v25848_v6 = vld [vmem:[#allocation38_spill] sm:$0xff] }
 0xa3c   : > { %25841 = vst [vmem:[#allocation155_spill] sm:$0xff] %v22733_v63  ;;  %v17761_v32 = vpop.f32.mrb[138].mxu0  ;;  %v3469_v8 = vadd.f32 %v3341_v7, %v25843_v36 }
 0xa3d   : > { %v3344_v24 = vmul.f32 %v17761_v32, %v22027_v5  ;;  %v22739_v25 = vadd.f32 %v22373_v61, %v3470_v52  ;;  %v3135_v27 = vpop.f32.mrb[139].mxu0  ;;  %v25849_v52 = vld [vmem:[#allocation60_spill] sm:$0xff] }
 0xa3e   : > { %v3343_v4 = vmul.f32 %v22027_v5, %v3135_v27  ;;  %v22743_v23 = vadd.f32 %v22379_v9, %v3469_v8  ;;  %v25850_v27 = vld [vmem:[#allocation79_spill] sm:$0xff]  ;;  %v25851_v8 = vld [vmem:[#allocation77_spill] sm:$0xff] }
 0xa3f   : > { %25844 = vst [vmem:[#allocation141_spill] sm:$0xff] %v22739_v25  ;;  %v3472_v60 = vadd.f32 %v3344_v24, %v25846_v58  ;;  %v25852_v58 = vld [vmem:[#allocation42_spill] sm:$0xff] }
 0xa40   : > { %25845 = vst [vmem:[#allocation139_spill] sm:$0xff] %v22743_v23  ;;  %v17764_v26 = vpop.f32.mrb[140].mxu0  ;;  %v3471_v0 = vadd.f32 %v3343_v4, %v25847_v18  ;;  %v25853_v18 = vld [vmem:[#allocation64_spill] sm:$0xff] }
 0xa41   : > { %v3346_v38 = vmul.f32 %v17764_v26, %v22027_v5  ;;  %v22749_v7 = vadd.f32 %v25848_v6, %v3472_v60  ;;  %v3145_v32 = vpop.f32.mrb[141].mxu0 }
 0xa42   : > { %v3345_v61 = vmul.f32 %v22027_v5, %v3145_v32  ;;  %v22753_v36 = vadd.f32 %v25849_v52, %v3471_v0  ;;  %v25854_v32 = vld [vmem:[#allocation116_spill] sm:$0xff]  ;;  %v25855_v52 = vld [vmem:[#allocation114_spill] sm:$0xff] }
 0xa43   : > { %v3474_v25 = vadd.f32 %v3346_v38, %v25850_v27  ;;  %v25856_v27 = vld [vmem:[#allocation46_spill] sm:$0xff] }
 0xa44   : > { %v17767_v9 = vpop.f32.mrb[142].mxu0  ;;  %v3473_v23 = vadd.f32 %v3345_v61, %v25851_v8  ;;  %v25857_v8 = vld [vmem:[#allocation68_spill] sm:$0xff] }
 0xa45   : > { %v3348_v24 = vmul.f32 %v17767_v9, %v22027_v5  ;;  %v22759_v4 = vadd.f32 %v25852_v58, %v3474_v25  ;;  %v3155_v26 = vpop.f32.mrb[143].mxu0 }
 0xa46   : > { %v3347_v60 = vmul.f32 %v22027_v5, %v3155_v26  ;;  %v22763_v6 = vadd.f32 %v25853_v18, %v3473_v23  ;;  %v25858_v26 = vld [vmem:[#allocation120_spill] sm:$0xff]  ;;  %v25859_v18 = vld [vmem:[#allocation118_spill] sm:$0xff] }
 0xa47   : > { %v3476_v1 = vadd.f32 %v3348_v24, %v25854_v32  ;;  %v25860_v32 = vld [vmem:[#allocation82_spill] sm:$0xff] }
 0xa48   : > { %v17770_v0 = vpop.f32.mrb[144].mxu0  ;;  %v3475_v19 = vadd.f32 %v3347_v60, %v25855_v52  ;;  %v25861_v52 = vld [vmem:[#allocation72_spill] sm:$0xff] }
 0xa49   : > { %v3350_v38 = vmul.f32 %v17770_v0, %v22027_v5  ;;  %v22769_v61 = vadd.f32 %v25856_v27, %v3476_v1  ;;  %v3165_v9 = vpop.f32.mrb[145].mxu0 }
 0xa4a   : > { %v3349_v25 = vmul.f32 %v22027_v5, %v3165_v9  ;;  %v22773_v58 = vadd.f32 %v25857_v8, %v3475_v19  ;;  %v25862_v9 = vld [vmem:[#allocation124_spill] sm:$0xff]  ;;  %v25863_v8 = vld [vmem:[#allocation122_spill] sm:$0xff] }
 0xa4b   : > { %v3478_v42 = vadd.f32 %v3350_v38, %v25858_v26  ;;  %v25864_v26 = vld [vmem:[#allocation86_spill] sm:$0xff] }
 0xa4c   : > { %v17773_v23 = vpop.f32.mrb[146].mxu0  ;;  %v3477_v30 = vadd.f32 %v3349_v25, %v25859_v18  ;;  %v25865_v18 = vld [vmem:[#allocation76_spill] sm:$0xff] }
 0xa4d   : > { %v3352_v24 = vmul.f32 %v17773_v23, %v22027_v5  ;;  %v22779_v60 = vadd.f32 %v25860_v32, %v3478_v42  ;;  %v3175_v0 = vpop.f32.mrb[147].mxu0 }
 0xa4e   : > { %v3351_v1 = vmul.f32 %v22027_v5, %v3175_v0  ;;  %v22783_v27 = vadd.f32 %v25861_v52, %v3477_v30  ;;  %v25866_v0 = vld [vmem:[#allocation128_spill] sm:$0xff]  ;;  %v25867_v52 = vld [vmem:[#allocation126_spill] sm:$0xff] }
 0xa4f   : > { %v3480_v14 = vadd.f32 %v3352_v24, %v25862_v9  ;;  %v25868_v9 = vld [vmem:[#allocation90_spill] sm:$0xff] }
 0xa50   : > { %v17776_v19 = vpop.f32.mrb[148].mxu0  ;;  %v3479_v63 = vadd.f32 %v3351_v1, %v25863_v8  ;;  %v25869_v8 = vld [vmem:[#allocation80_spill] sm:$0xff] }
 0xa51   : > { %v3354_v38 = vmul.f32 %v17776_v19, %v22027_v5  ;;  %v22789_v25 = vadd.f32 %v25864_v26, %v3480_v14  ;;  %v3185_v23 = vpop.f32.mrb[149].mxu0 }
 0xa52   : > { %v3353_v42 = vmul.f32 %v22027_v5, %v3185_v23  ;;  %v22793_v32 = vadd.f32 %v25865_v18, %v3479_v63  ;;  %v25870_v23 = vld [vmem:[#allocation132_spill] sm:$0xff]  ;;  %v25871_v18 = vld [vmem:[#allocation130_spill] sm:$0xff] }
 0xa53   : > { %v3482_v45 = vadd.f32 %v3354_v38, %v25866_v0  ;;  %v25872_v0 = vld [vmem:[#allocation95_spill] sm:$0xff] }
 0xa54   : > { %v17779_v30 = vpop.f32.mrb[150].mxu0  ;;  %v3481_v40 = vadd.f32 %v3353_v42, %v25867_v52  ;;  %v25874_v52 = vld [vmem:[#allocation117_spill] sm:$0xff] }
 0xa55   : > { %v3356_v24 = vmul.f32 %v17779_v30, %v22027_v5  ;;  %v22799_v1 = vadd.f32 %v25868_v9, %v3482_v45  ;;  %v3195_v19 = vpop.f32.mrb[151].mxu0 }
 0xa56   : > { %v3355_v14 = vmul.f32 %v22027_v5, %v3195_v19  ;;  %v22803_v26 = vadd.f32 %v25869_v8, %v3481_v40  ;;  %v25875_v19 = vld [vmem:[#allocation136_spill] sm:$0xff]  ;;  %v25876_v8 = vld [vmem:[#allocation134_spill] sm:$0xff] }
 0xa57   : > { %v3484_v57 = vadd.f32 %v3356_v24, %v25870_v23  ;;  %v25877_v23 = vld [vmem:[#allocation99_spill] sm:$0xff] }
 0xa58   : > { %v17782_v63 = vpop.f32.mrb[152].mxu0  ;;  %v3483_v41 = vadd.f32 %v3355_v14, %v25871_v18  ;;  %v25879_v18 = vld [vmem:[#allocation121_spill] sm:$0xff] }
 0xa59   : > { %v3358_v38 = vmul.f32 %v17782_v63, %v22027_v5  ;;  %v22809_v42 = vadd.f32 %v25872_v0, %v3484_v57  ;;  %v3205_v30 = vpop.f32.mrb[153].mxu0 }
 0xa5a   : > { %v3357_v45 = vmul.f32 %v22027_v5, %v3205_v30  ;;  %v22813_v9 = vadd.f32 %v25874_v52, %v3483_v41  ;;  %v25881_v30 = vld [vmem:[#allocation140_spill] sm:$0xff] }
 0xa5b   : > { %25873 = vst [vmem:[#allocation156_spill] sm:$0xff] %v22809_v42  ;;  %v3486_v12 = vadd.f32 %v3358_v38, %v25875_v19  ;;  %v25882_v42 = vld [vmem:[#allocation138_spill] sm:$0xff] }
 0xa5c   : > { %v17785_v40 = vpop.f32.mrb[154].mxu0  ;;  %v3485_v49 = vadd.f32 %v3357_v45, %v25876_v8  ;;  %v25883_v45 = vld [vmem:[#allocation146_spill] sm:$0xff] }
 0xa5d   : > { %v3360_v24 = vmul.f32 %v17785_v40, %v22027_v5  ;;  %v22819_v14 = vadd.f32 %v25877_v23, %v3486_v12  ;;  %v3215_v63 = vpop.f32.mrb[155].mxu0 }
 0xa5e   : > { %v3359_v57 = vmul.f32 %v22027_v5, %v3215_v63  ;;  %v22823_v0 = vadd.f32 %v25879_v18, %v3485_v49  ;;  %v25884_v63 = vld [vmem:[#allocation144_spill] sm:$0xff]  ;;  %v25885_v49 = vld [vmem:[#allocation142_spill] sm:$0xff] }
 0xa5f   : > { %25878 = vst [vmem:[#allocation157_spill] sm:$0xff] %v22819_v14  ;;  %v3488_v41 = vadd.f32 %v3360_v24, %v25881_v30 }
 0xa60   : > { %25880 = vst [vmem:[#allocation145_spill] sm:$0xff] %v22823_v0  ;;  %v17788_v52 = vpop.f32.mrb[156].mxu0  ;;  %v3487_v38 = vadd.f32 %v3359_v57, %v25882_v42  ;;  %v25886_v0 = vld [vmem:[#allocation123_spill] sm:$0xff]  ;;  %6292 = sbr.rel (%p25887_p5) target bundleno = 2744 (0xab8), region = 80 }
 0xa61   : > { %v3362_v19 = vmul.f32 %v17788_v52, %v22027_v5  ;;  %v22829_v8 = vadd.f32 %v25883_v45, %v3488_v41  ;;  %v3225_v40 = vpop.f32.mrb[157].mxu0 }
 0xa62   : > { %v3361_v12 = vmul.f32 %v22027_v5, %v3225_v40  ;;  %v22833_v23 = vadd.f32 %v22505_v28, %v3487_v38  ;;  %v20193_v5 = vmov (!%p25887_p5), 0.0  }
 0xa63   : > { %v3490_v14 = vadd.f32 %v3362_v19, %v25884_v63  ;;  %6293 = vst.msk [vmem:[#allocation2] sm:$0xff] (!%p25887_p5), %vm720_vm0, %v20193_v5  ;;  %6294 = vst.msk [vmem:[#allocation2 + $0x8] sm:$0xff] (!%p25887_p5), %vm720_vm0, %v20193_v5 }
 0xa64   : > { %v3489_v18 = vadd.f32 %v3361_v12, %v25885_v49  ;;  %6295 = vst.msk [vmem:[#allocation2 + $0x10] sm:$0xff] (!%p25887_p5), %vm720_vm0, %v20193_v5  ;;  %6296 = vst.msk [vmem:[#allocation2 + $0x18] sm:$0xff] (!%p25887_p5), %vm720_vm0, %v20193_v5 }
 0xa65   : > { %v22838_v24 = vadd.f32 %v25886_v0, %v3490_v14  ;;  %6299 = vst.msk [vmem:[#allocation2 + $0x28] sm:$0xff] (!%p25887_p5), %vm720_vm0, %v20193_v5  ;;  %6300 = vst.msk [vmem:[#allocation2 + $0x30] sm:$0xff] (!%p25887_p5), %vm720_vm0, %v20193_v5 }
 0xa66   : > { %v22841_v42 = vadd.f32 %v22519_v50, %v3489_v18  ;;  %6301 = vst.msk [vmem:[#allocation2 + $0x38] sm:$0xff] (!%p25887_p5), %vm720_vm0, %v20193_v5  ;;  %6302 = vst.msk [vmem:[#allocation2 + $0x40] sm:$0xff] (!%p25887_p5), %vm720_vm0, %v20193_v5 }
 0xa67   : > { %6304 = vst.msk [vmem:[#allocation2 + $0x50] sm:$0xff] %vm720_vm0, %v20193_v5  ;;  %6305 = vst.msk [vmem:[#allocation2 + $0x58] sm:$0xff] %vm720_vm0, %v20193_v5 }
 0xa68   : > { %6306 = vst.msk [vmem:[#allocation2 + $0x60] sm:$0xff] %vm720_vm0, %v20193_v5  ;;  %6307 = vst.msk [vmem:[#allocation2 + $0x68] sm:$0xff] %vm720_vm0, %v20193_v5 }
 0xa69   : > { %6309 = vst.msk [vmem:[#allocation2 + $0x78] sm:$0xff] %vm720_vm0, %v20193_v5  ;;  %6310 = vst.msk [vmem:[#allocation2 + $0x80] sm:$0xff] %vm720_vm0, %v20193_v5 }
 0xa6a   : > { %6311 = vst.msk [vmem:[#allocation2 + $0x88] sm:$0xff] %vm720_vm0, %v20193_v5  ;;  %6312 = vst.msk [vmem:[#allocation2 + $0x90] sm:$0xff] %vm720_vm0, %v20193_v5 }
 0xa6b   : > { %6314 = vst.msk [vmem:[#allocation2 + $0xa0] sm:$0xff] %vm720_vm0, %v20193_v5  ;;  %6315 = vst.msk [vmem:[#allocation2 + $0xa8] sm:$0xff] %vm720_vm0, %v20193_v5 }
 0xa6c   : > { %6316 = vst.msk [vmem:[#allocation2 + $0xb0] sm:$0xff] %vm720_vm0, %v20193_v5  ;;  %6317 = vst.msk [vmem:[#allocation2 + $0xb8] sm:$0xff] %vm720_vm0, %v20193_v5 }
 0xa6d   : > { %6319 = vst.msk [vmem:[#allocation2 + $0xc8] sm:$0xff] %vm720_vm0, %v20193_v5  ;;  %6320 = vst.msk [vmem:[#allocation2 + $0xd0] sm:$0xff] %vm720_vm0, %v20193_v5 }
 0xa6e   : > { %6321 = vst.msk [vmem:[#allocation2 + $0xd8] sm:$0xff] %vm720_vm0, %v20193_v5  ;;  %6322 = vst.msk [vmem:[#allocation2 + $0xe0] sm:$0xff] %vm720_vm0, %v20193_v5 }
 0xa6f   : > { %6324 = vst.msk [vmem:[#allocation2 + $0xf0] sm:$0xff] %vm720_vm0, %v20193_v5  ;;  %6325 = vst.msk [vmem:[#allocation2 + $0xf8] sm:$0xff] %vm720_vm0, %v20193_v5 }
 0xa70   : > { %6326 = vst.msk [vmem:[#allocation2 + $0x100] sm:$0xff] %vm720_vm0, %v20193_v5  ;;  %6327 = vst.msk [vmem:[#allocation2 + $0x108] sm:$0xff] %vm720_vm0, %v20193_v5 }
 0xa71   : > { %6329 = vst.msk [vmem:[#allocation2 + $0x118] sm:$0xff] %vm720_vm0, %v20193_v5  ;;  %6330 = vst.msk [vmem:[#allocation2 + $0x120] sm:$0xff] %vm720_vm0, %v20193_v5 }
 0xa72   : > { %6331 = vst.msk [vmem:[#allocation2 + $0x128] sm:$0xff] %vm720_vm0, %v20193_v5  ;;  %6332 = vst.msk [vmem:[#allocation2 + $0x130] sm:$0xff] %vm720_vm0, %v20193_v5 }
 0xa73   : > { %6334 = vst.msk [vmem:[#allocation2 + $0x140] sm:$0xff] %vm720_vm0, %v20193_v5  ;;  %6335 = vst.msk [vmem:[#allocation2 + $0x148] sm:$0xff] %vm720_vm0, %v20193_v5 }
 0xa74   : > { %6336 = vst.msk [vmem:[#allocation2 + $0x150] sm:$0xff] %vm720_vm0, %v20193_v5  ;;  %6337 = vst.msk [vmem:[#allocation2 + $0x158] sm:$0xff] %vm720_vm0, %v20193_v5 }
 0xa75   : > { %6339 = vst.msk [vmem:[#allocation2 + $0x168] sm:$0xff] %vm720_vm0, %v20193_v5  ;;  %6340 = vst.msk [vmem:[#allocation2 + $0x170] sm:$0xff] %vm720_vm0, %v20193_v5 }
 0xa76   : > { %6341 = vst.msk [vmem:[#allocation2 + $0x178] sm:$0xff] %vm720_vm0, %v20193_v5  ;;  %6342 = vst.msk [vmem:[#allocation2 + $0x180] sm:$0xff] %vm720_vm0, %v20193_v5 }
 0xa77   : > { %6344 = vst.msk [vmem:[#allocation2 + $0x190] sm:$0xff] %vm720_vm0, %v20193_v5  ;;  %6345 = vst.msk [vmem:[#allocation2 + $0x198] sm:$0xff] %vm720_vm0, %v20193_v5 }
 0xa78   : > { %6346 = vst.msk [vmem:[#allocation2 + $0x1a0] sm:$0xff] %vm720_vm0, %v20193_v5  ;;  %6347 = vst.msk [vmem:[#allocation2 + $0x1a8] sm:$0xff] %vm720_vm0, %v20193_v5 }
 0xa79   : > { %6349 = vst.msk [vmem:[#allocation2 + $0x1b8] sm:$0xff] %vm720_vm0, %v20193_v5  ;;  %6350 = vst.msk [vmem:[#allocation2 + $0x1c0] sm:$0xff] %vm720_vm0, %v20193_v5 }
 0xa7a   : > { %6351 = vst.msk [vmem:[#allocation2 + $0x1c8] sm:$0xff] %vm720_vm0, %v20193_v5  ;;  %6352 = vst.msk [vmem:[#allocation2 + $0x1d0] sm:$0xff] %vm720_vm0, %v20193_v5 }
 0xa7b   : > { %6354 = vst.msk [vmem:[#allocation2 + $0x1e0] sm:$0xff] %vm720_vm0, %v20193_v5  ;;  %6355 = vst.msk [vmem:[#allocation2 + $0x1e8] sm:$0xff] %vm720_vm0, %v20193_v5 }
 0xa7c   : > { %6356 = vst.msk [vmem:[#allocation2 + $0x1f0] sm:$0xff] %vm720_vm0, %v20193_v5  ;;  %6357 = vst.msk [vmem:[#allocation2 + $0x1f8] sm:$0xff] %vm720_vm0, %v20193_v5 }
 0xa7d   : > { %6359 = vst.msk [vmem:[#allocation2 + $0x208] sm:$0xff] %vm720_vm0, %v20193_v5  ;;  %6360 = vst.msk [vmem:[#allocation2 + $0x210] sm:$0xff] %vm720_vm0, %v20193_v5 }
 0xa7e   : > { %6361 = vst.msk [vmem:[#allocation2 + $0x218] sm:$0xff] %vm720_vm0, %v20193_v5  ;;  %6362 = vst.msk [vmem:[#allocation2 + $0x220] sm:$0xff] %vm720_vm0, %v20193_v5 }
 0xa7f   : > { %6364 = vst.msk [vmem:[#allocation2 + $0x230] sm:$0xff] %vm720_vm0, %v20193_v5  ;;  %6365 = vst.msk [vmem:[#allocation2 + $0x238] sm:$0xff] %vm720_vm0, %v20193_v5 }
 0xa80   : > { %6366 = vst.msk [vmem:[#allocation2 + $0x240] sm:$0xff] %vm720_vm0, %v20193_v5  ;;  %6367 = vst.msk [vmem:[#allocation2 + $0x248] sm:$0xff] %vm720_vm0, %v20193_v5 }
 0xa81   : > { %6369 = vst.msk [vmem:[#allocation2 + $0x258] sm:$0xff] %vm720_vm0, %v20193_v5  ;;  %6370 = vst.msk [vmem:[#allocation2 + $0x260] sm:$0xff] %vm720_vm0, %v20193_v5 }
 0xa82   : > { %6371 = vst.msk [vmem:[#allocation2 + $0x268] sm:$0xff] %vm720_vm0, %v20193_v5  ;;  %6372 = vst.msk [vmem:[#allocation2 + $0x270] sm:$0xff] %vm720_vm0, %v20193_v5 }
 0xa83   : > { %6374 = vst.msk [vmem:[#allocation2 + $0x280] sm:$0xff] %vm720_vm0, %v20193_v5  ;;  %6375 = vst.msk [vmem:[#allocation2 + $0x288] sm:$0xff] %vm720_vm0, %v20193_v5 }
 0xa84   : > { %6376 = vst.msk [vmem:[#allocation2 + $0x290] sm:$0xff] %vm720_vm0, %v20193_v5  ;;  %6377 = vst.msk [vmem:[#allocation2 + $0x298] sm:$0xff] %vm720_vm0, %v20193_v5 }
 0xa85   : > { %6379 = vst.msk [vmem:[#allocation2 + $0x2a8] sm:$0xff] %vm720_vm0, %v20193_v5  ;;  %6380 = vst.msk [vmem:[#allocation2 + $0x2b0] sm:$0xff] %vm720_vm0, %v20193_v5 }
 0xa86   : > { %6381 = vst.msk [vmem:[#allocation2 + $0x2b8] sm:$0xff] %vm720_vm0, %v20193_v5  ;;  %6382 = vst.msk [vmem:[#allocation2 + $0x2c0] sm:$0xff] %vm720_vm0, %v20193_v5 }
 0xa87   : > { %6384 = vst.msk [vmem:[#allocation2 + $0x2d0] sm:$0xff] %vm720_vm0, %v20193_v5  ;;  %6385 = vst.msk [vmem:[#allocation2 + $0x2d8] sm:$0xff] %vm720_vm0, %v20193_v5 }
 0xa88   : > { %6386 = vst.msk [vmem:[#allocation2 + $0x2e0] sm:$0xff] %vm720_vm0, %v20193_v5  ;;  %6387 = vst.msk [vmem:[#allocation2 + $0x2e8] sm:$0xff] %vm720_vm0, %v20193_v5 }
 0xa89   : > { %6389 = vst.msk [vmem:[#allocation2 + $0x2f8] sm:$0xff] %vm720_vm0, %v20193_v5  ;;  %6390 = vst.msk [vmem:[#allocation2 + $0x300] sm:$0xff] %vm720_vm0, %v20193_v5 }
 0xa8a   : > { %6391 = vst.msk [vmem:[#allocation2 + $0x308] sm:$0xff] %vm720_vm0, %v20193_v5  ;;  %6392 = vst.msk [vmem:[#allocation2 + $0x310] sm:$0xff] %vm720_vm0, %v20193_v5 }
 0xa8b   : > { %6394 = vst.msk [vmem:[#allocation2 + $0x320] sm:$0xff] %vm720_vm0, %v20193_v5  ;;  %6395 = vst.msk [vmem:[#allocation2 + $0x328] sm:$0xff] %vm720_vm0, %v20193_v5 }
 0xa8c   : > { %6396 = vst.msk [vmem:[#allocation2 + $0x330] sm:$0xff] %vm720_vm0, %v20193_v5  ;;  %6397 = vst.msk [vmem:[#allocation2 + $0x338] sm:$0xff] %vm720_vm0, %v20193_v5 }
 0xa8d   : > { %6399 = vst.msk [vmem:[#allocation2 + $0x348] sm:$0xff] %vm720_vm0, %v20193_v5  ;;  %6400 = vst.msk [vmem:[#allocation2 + $0x350] sm:$0xff] %vm720_vm0, %v20193_v5 }
 0xa8e   : > { %6401 = vst.msk [vmem:[#allocation2 + $0x358] sm:$0xff] %vm720_vm0, %v20193_v5  ;;  %6402 = vst.msk [vmem:[#allocation2 + $0x360] sm:$0xff] %vm720_vm0, %v20193_v5 }
 0xa8f   : > { %6404 = vst.msk [vmem:[#allocation2 + $0x370] sm:$0xff] %vm720_vm0, %v20193_v5  ;;  %6405 = vst.msk [vmem:[#allocation2 + $0x378] sm:$0xff] %vm720_vm0, %v20193_v5 }
 0xa90   : > { %6406 = vst.msk [vmem:[#allocation2 + $0x380] sm:$0xff] %vm720_vm0, %v20193_v5  ;;  %6407 = vst.msk [vmem:[#allocation2 + $0x388] sm:$0xff] %vm720_vm0, %v20193_v5 }
 0xa91   : > { %6409 = vst.msk [vmem:[#allocation2 + $0x398] sm:$0xff] %vm720_vm0, %v20193_v5  ;;  %6410 = vst.msk [vmem:[#allocation2 + $0x3a0] sm:$0xff] %vm720_vm0, %v20193_v5 }
 0xa92   : > { %6411 = vst.msk [vmem:[#allocation2 + $0x3a8] sm:$0xff] %vm720_vm0, %v20193_v5  ;;  %6412 = vst.msk [vmem:[#allocation2 + $0x3b0] sm:$0xff] %vm720_vm0, %v20193_v5 }
 0xa93   : > { %6414 = vst.msk [vmem:[#allocation2 + $0x3c0] sm:$0xff] %vm720_vm0, %v20193_v5  ;;  %6415 = vst.msk [vmem:[#allocation2 + $0x3c8] sm:$0xff] %vm720_vm0, %v20193_v5 }
 0xa94   : > { %6416 = vst.msk [vmem:[#allocation2 + $0x3d0] sm:$0xff] %vm720_vm0, %v20193_v5  ;;  %6417 = vst.msk [vmem:[#allocation2 + $0x3d8] sm:$0xff] %vm720_vm0, %v20193_v5 }
 0xa95   : > { %6419 = vst.msk [vmem:[#allocation2 + $0x3e8] sm:$0xff] %vm720_vm0, %v20193_v5  ;;  %6420 = vst.msk [vmem:[#allocation2 + $0x3f0] sm:$0xff] %vm720_vm0, %v20193_v5 }
 0xa96   : > { %6421 = vst.msk [vmem:[#allocation2 + $0x3f8] sm:$0xff] %vm720_vm0, %v20193_v5  ;;  %6422 = vst.msk [vmem:[#allocation2 + $0x400] sm:$0xff] %vm720_vm0, %v20193_v5 }
 0xa97   : > { %6424 = vst.msk [vmem:[#allocation2 + $0x410] sm:$0xff] %vm720_vm0, %v20193_v5  ;;  %6425 = vst.msk [vmem:[#allocation2 + $0x418] sm:$0xff] %vm720_vm0, %v20193_v5 }
 0xa98   : > { %6426 = vst.msk [vmem:[#allocation2 + $0x420] sm:$0xff] %vm720_vm0, %v20193_v5  ;;  %6427 = vst.msk [vmem:[#allocation2 + $0x428] sm:$0xff] %vm720_vm0, %v20193_v5 }
 0xa99   : > { %6429 = vst.msk [vmem:[#allocation2 + $0x438] sm:$0xff] %vm720_vm0, %v20193_v5  ;;  %6430 = vst.msk [vmem:[#allocation2 + $0x440] sm:$0xff] %vm720_vm0, %v20193_v5 }
 0xa9a   : > { %6431 = vst.msk [vmem:[#allocation2 + $0x448] sm:$0xff] %vm720_vm0, %v20193_v5  ;;  %6432 = vst.msk [vmem:[#allocation2 + $0x450] sm:$0xff] %vm720_vm0, %v20193_v5 }
 0xa9b   : > { %6434 = vst.msk [vmem:[#allocation2 + $0x460] sm:$0xff] %vm720_vm0, %v20193_v5  ;;  %6435 = vst.msk [vmem:[#allocation2 + $0x468] sm:$0xff] %vm720_vm0, %v20193_v5 }
 0xa9c   : > { %6436 = vst.msk [vmem:[#allocation2 + $0x470] sm:$0xff] %vm720_vm0, %v20193_v5  ;;  %6437 = vst.msk [vmem:[#allocation2 + $0x478] sm:$0xff] %vm720_vm0, %v20193_v5 }
 0xa9d   : > { %6439 = vst.msk [vmem:[#allocation2 + $0x488] sm:$0xff] %vm720_vm0, %v20193_v5  ;;  %6440 = vst.msk [vmem:[#allocation2 + $0x490] sm:$0xff] %vm720_vm0, %v20193_v5 }
 0xa9e   : > { %6441 = vst.msk [vmem:[#allocation2 + $0x498] sm:$0xff] %vm720_vm0, %v20193_v5  ;;  %6442 = vst.msk [vmem:[#allocation2 + $0x4a0] sm:$0xff] %vm720_vm0, %v20193_v5 }
 0xa9f   : > { %6444 = vst.msk [vmem:[#allocation2 + $0x4b0] sm:$0xff] %vm720_vm0, %v20193_v5  ;;  %6445 = vst.msk [vmem:[#allocation2 + $0x4b8] sm:$0xff] %vm720_vm0, %v20193_v5 }
 0xaa0   : > { %6446 = vst.msk [vmem:[#allocation2 + $0x4c0] sm:$0xff] %vm720_vm0, %v20193_v5  ;;  %6447 = vst.msk [vmem:[#allocation2 + $0x4c8] sm:$0xff] %vm720_vm0, %v20193_v5 }
 0xaa1   : > { %6449 = vst.msk [vmem:[#allocation2 + $0x4d8] sm:$0xff] %vm720_vm0, %v20193_v5  ;;  %6450 = vst.msk [vmem:[#allocation2 + $0x4e0] sm:$0xff] %vm720_vm0, %v20193_v5 }
 0xaa2   : > { %6451 = vst.msk [vmem:[#allocation2 + $0x4e8] sm:$0xff] %vm720_vm0, %v20193_v5  ;;  %6452 = vst.msk [vmem:[#allocation2 + $0x4f0] sm:$0xff] %vm720_vm0, %v20193_v5 }
 0xaa3   : > { %6454 = vst.msk [vmem:[#allocation2 + $0x500] sm:$0xff] %vm720_vm0, %v20193_v5  ;;  %6455 = vst.msk [vmem:[#allocation2 + $0x508] sm:$0xff] %vm720_vm0, %v20193_v5 }
 0xaa4   : > { %6456 = vst.msk [vmem:[#allocation2 + $0x510] sm:$0xff] %vm720_vm0, %v20193_v5  ;;  %6457 = vst.msk [vmem:[#allocation2 + $0x518] sm:$0xff] %vm720_vm0, %v20193_v5 }
 0xaa5   : > { %6459 = vst.msk [vmem:[#allocation2 + $0x528] sm:$0xff] %vm720_vm0, %v20193_v5  ;;  %6460 = vst.msk [vmem:[#allocation2 + $0x530] sm:$0xff] %vm720_vm0, %v20193_v5 }
 0xaa6   : > { %6461 = vst.msk [vmem:[#allocation2 + $0x538] sm:$0xff] %vm720_vm0, %v20193_v5  ;;  %6462 = vst.msk [vmem:[#allocation2 + $0x540] sm:$0xff] %vm720_vm0, %v20193_v5 }
 0xaa7   : > { %6298 = vst.msk [vmem:[#allocation2 + $0x20] sm:$0x3] %vm6297_vm13, %v20193_v5  ;;  %6303 = vst.msk [vmem:[#allocation2 + $0x48] sm:$0x3] %vm6297_vm13, %v20193_v5 }
 0xaa8   : > { %6308 = vst.msk [vmem:[#allocation2 + $0x70] sm:$0x3] %vm6297_vm13, %v20193_v5  ;;  %6313 = vst.msk [vmem:[#allocation2 + $0x98] sm:$0x3] %vm6297_vm13, %v20193_v5 }
 0xaa9   : > { %6318 = vst.msk [vmem:[#allocation2 + $0xc0] sm:$0x3] %vm6297_vm13, %v20193_v5  ;;  %6323 = vst.msk [vmem:[#allocation2 + $0xe8] sm:$0x3] %vm6297_vm13, %v20193_v5 }
 0xaaa   : > { %6328 = vst.msk [vmem:[#allocation2 + $0x110] sm:$0x3] %vm6297_vm13, %v20193_v5  ;;  %6333 = vst.msk [vmem:[#allocation2 + $0x138] sm:$0x3] %vm6297_vm13, %v20193_v5 }
 0xaab   : > { %6338 = vst.msk [vmem:[#allocation2 + $0x160] sm:$0x3] %vm6297_vm13, %v20193_v5  ;;  %6343 = vst.msk [vmem:[#allocation2 + $0x188] sm:$0x3] %vm6297_vm13, %v20193_v5 }
 0xaac   : > { %6348 = vst.msk [vmem:[#allocation2 + $0x1b0] sm:$0x3] %vm6297_vm13, %v20193_v5  ;;  %6353 = vst.msk [vmem:[#allocation2 + $0x1d8] sm:$0x3] %vm6297_vm13, %v20193_v5 }
 0xaad   : > { %6358 = vst.msk [vmem:[#allocation2 + $0x200] sm:$0x3] %vm6297_vm13, %v20193_v5  ;;  %6363 = vst.msk [vmem:[#allocation2 + $0x228] sm:$0x3] %vm6297_vm13, %v20193_v5 }
 0xaae   : > { %6368 = vst.msk [vmem:[#allocation2 + $0x250] sm:$0x3] %vm6297_vm13, %v20193_v5  ;;  %6373 = vst.msk [vmem:[#allocation2 + $0x278] sm:$0x3] %vm6297_vm13, %v20193_v5 }
 0xaaf   : > { %6378 = vst.msk [vmem:[#allocation2 + $0x2a0] sm:$0x3] %vm6297_vm13, %v20193_v5  ;;  %6383 = vst.msk [vmem:[#allocation2 + $0x2c8] sm:$0x3] %vm6297_vm13, %v20193_v5 }
 0xab0   : > { %6388 = vst.msk [vmem:[#allocation2 + $0x2f0] sm:$0x3] %vm6297_vm13, %v20193_v5  ;;  %6393 = vst.msk [vmem:[#allocation2 + $0x318] sm:$0x3] %vm6297_vm13, %v20193_v5 }
 0xab1   : > { %6398 = vst.msk [vmem:[#allocation2 + $0x340] sm:$0x3] %vm6297_vm13, %v20193_v5  ;;  %6403 = vst.msk [vmem:[#allocation2 + $0x368] sm:$0x3] %vm6297_vm13, %v20193_v5 }
 0xab2   : > { %6408 = vst.msk [vmem:[#allocation2 + $0x390] sm:$0x3] %vm6297_vm13, %v20193_v5  ;;  %6413 = vst.msk [vmem:[#allocation2 + $0x3b8] sm:$0x3] %vm6297_vm13, %v20193_v5 }
 0xab3   : > { %6418 = vst.msk [vmem:[#allocation2 + $0x3e0] sm:$0x3] %vm6297_vm13, %v20193_v5  ;;  %6423 = vst.msk [vmem:[#allocation2 + $0x408] sm:$0x3] %vm6297_vm13, %v20193_v5 }
 0xab4   : > { %6428 = vst.msk [vmem:[#allocation2 + $0x430] sm:$0x3] %vm6297_vm13, %v20193_v5  ;;  %6433 = vst.msk [vmem:[#allocation2 + $0x458] sm:$0x3] %vm6297_vm13, %v20193_v5 }
 0xab5   : > { %6438 = vst.msk [vmem:[#allocation2 + $0x480] sm:$0x3] %vm6297_vm13, %v20193_v5  ;;  %6443 = vst.msk [vmem:[#allocation2 + $0x4a8] sm:$0x3] %vm6297_vm13, %v20193_v5 }
 0xab6   : > { %6448 = vst.msk [vmem:[#allocation2 + $0x4d0] sm:$0x3] %vm6297_vm13, %v20193_v5  ;;  %6453 = vst.msk [vmem:[#allocation2 + $0x4f8] sm:$0x3] %vm6297_vm13, %v20193_v5 }
 0xab7   : > { %6458 = vst.msk [vmem:[#allocation2 + $0x520] sm:$0x3] %vm6297_vm13, %v20193_v5  ;;  %6463 = vst.msk [vmem:[#allocation2 + $0x548] sm:$0x3] %vm6297_vm13, %v20193_v5 }
 0xab8 PF: > { %v25888_v28 = vld [vmem:[#allocation172_spill] sm:$0xff]  ;;  %v25889_v50 = vld [vmem:[#allocation171_spill] sm:$0xff]  ;;  %v25890_v14 = vld [vmem:[#allocation58_spill] sm:$0xff]  ;;  %6541 = vst.msk [vmem:[#allocation2 + $0x321] sm:$0xff] %vm720_vm0, %v22593_v22  ;;  %s15905_s21 = sshll.u32 %s20284_s25, 11  ;;  %s14240_s23 = sshll.u32 %s22845_s20, 4  ;;  %s25000_s23 = int_to_ptr.vmem [resolvable:$true] %s14240_s23 }
 0xab9   : > { %6477 = vst.msk [vmem:[#allocation2 + $0xa1] sm:$0xff] %vm720_vm0, %v25888_v28  ;;  %6478 = vst.msk [vmem:[#allocation2 + $0xa9] sm:$0xff] %vm720_vm0, %v25889_v50  ;;  %v25891_v57 = vld [vmem:[#allocation40_spill] sm:$0xff]  ;;  %v25893_v30 = vld [vmem:[#allocation22_spill] sm:$0xff]  ;;  %s24998_s25 = scalar_lea.hbm %s25060_s12, %s15905_s21  ;;  %s14227_s29 = scalar_lea.sflag [#allocation5], %s20391_s30 }
 0xaba   : > { %6509 = vst.msk [vmem:[#allocation2 + $0x1e1] sm:$0xff] %vm720_vm0, %v25890_v14  ;;  %6510 = vst.msk [vmem:[#allocation2 + $0x1e9] sm:$0xff] %vm720_vm0, %v25891_v57  ;;  %v25892_v0 = vld [vmem:[#allocation24_spill] sm:$0xff]  ;;  %v25894_v41 = vld [vmem:[#allocation174_spill] sm:$0xff]  ;;  %s20117_s28 = scalar_lea.vmem %s25000_s23, 2048  ;;  %p25970_p3 = scmp.ne.s32.totalorder %s25280_s15, 0 }
 0xabb   : > { %6493 = vst.msk [vmem:[#allocation2 + $0x141] sm:$0xff] %vm720_vm0, %v25892_v0  ;;  %6494 = vst.msk [vmem:[#allocation2 + $0x149] sm:$0xff] %vm720_vm0, %v25893_v30  ;;  %v25895_v52 = vld [vmem:[#allocation173_spill] sm:$0xff]  ;;  %v25896_v38 = vld [vmem:[#allocation62_spill] sm:$0xff]  ;;  %p20118_p12 = scmp.ne.s32.totalorder %s25000_s23, %s20117_s28  ;;  %s20195_s18 = smov [#allocation8]  }
 0xabc   : > { %6479 = vst.msk [vmem:[#allocation2 + $0xb1] sm:$0xff] %vm720_vm0, %v25894_v41  ;;  %6480 = vst.msk [vmem:[#allocation2 + $0xb9] sm:$0xff] %vm720_vm0, %v25895_v52  ;;  %v25897_v19 = vld [vmem:[#allocation44_spill] sm:$0xff]  ;;  %v25898_v45 = vld [vmem:[#allocation107_spill] sm:$0xff]  ;;  %s20121_s19 = sshll.u32 %s20195_s18, 4  ;;  %s20122_s19 = int_to_ptr.vmem [resolvable:$false] %s20121_s19 }
 0xabd   : > { %6511 = vst.msk [vmem:[#allocation2 + $0x1f1] sm:$0xff] %vm720_vm0, %v25896_v38  ;;  %6512 = vst.msk [vmem:[#allocation2 + $0x1f9] sm:$0xff] %vm720_vm0, %v25897_v19  ;;  %v25899_v40 = vld [vmem:[#allocation109_spill] sm:$0xff]  ;;  %v25900_v12 = vld [vmem:[#allocation176_spill] sm:$0xff]  ;;  %p20119_p9 = pnand %p20118_p12, %p25970_p3  ;;  %s20123_s13 = scalar_lea.vmem %s20122_s19, 4096 }
 0xabe   : > { %6495 = vst.msk [vmem:[#allocation2 + $0x151] sm:$0xff] %vm720_vm0, %v25898_v45  ;;  %6496 = vst.msk [vmem:[#allocation2 + $0x159] sm:$0xff] %vm720_vm0, %v25899_v40  ;;  %v25901_v63 = vld [vmem:[#allocation175_spill] sm:$0xff]  ;;  %v25902_v49 = vld [vmem:[#allocation66_spill] sm:$0xff]  ;;  %p20124_p2 = scmp.lt.s32.totalorder %s25000_s23, %s20122_s19  ;;  %p20125_p4 = scmp.lt.s32.totalorder %s20123_s13, %s20117_s28 }
 0xabf   : > { %6481 = vst.msk [vmem:[#allocation2 + $0xc9] sm:$0xff] %vm720_vm0, %v25900_v12  ;;  %6482 = vst.msk [vmem:[#allocation2 + $0xd1] sm:$0xff] %vm720_vm0, %v25901_v63  ;;  %v25903_v18 = vld [vmem:[#allocation48_spill] sm:$0xff]  ;;  %v25905_v28 = vld [vmem:[#allocation159_spill] sm:$0xff]  ;;  %p20120_p10 = pneg %p20119_p9 }
 0xac0   : > { %6513 = vst.msk [vmem:[#allocation2 + $0x209] sm:$0xff] %vm720_vm0, %v25902_v49  ;;  %6514 = vst.msk [vmem:[#allocation2 + $0x211] sm:$0xff] %vm720_vm0, %v25903_v18  ;;  %v25904_v5 = vld [vmem:[#allocation160_spill] sm:$0xff]  ;;  %v25907_v14 = vld [vmem:[#allocation26_spill] sm:$0xff]  ;;  %p20126_p11 = por %p20125_p4, %p20124_p2 }
 0xac1   : > { %6465 = vst.msk [vmem:[#allocation2 + $0x29] sm:$0xff] %vm720_vm0, %v25904_v5  ;;  %6466 = vst.msk [vmem:[#allocation2 + $0x31] sm:$0xff] %vm720_vm0, %v25905_v28  ;;  %v25906_v50 = vld [vmem:[#allocation28_spill] sm:$0xff]  ;;  %v25908_v57 = vld [vmem:[#allocation178_spill] sm:$0xff] }
 0xac2   : > { %6497 = vst.msk [vmem:[#allocation2 + $0x169] sm:$0xff] %vm720_vm0, %v25906_v50  ;;  %6498 = vst.msk [vmem:[#allocation2 + $0x171] sm:$0xff] %vm720_vm0, %v25907_v14  ;;  %v25909_v0 = vld [vmem:[#allocation177_spill] sm:$0xff]  ;;  %v25910_v30 = vld [vmem:[#allocation70_spill] sm:$0xff]  ;;  %p20127_p1 = pnand %p20126_p11, %p20120_p10 }
 0xac3   : > { %6483 = vst.msk [vmem:[#allocation2 + $0xd9] sm:$0xff] %vm720_vm0, %v25908_v57  ;;  %6484 = vst.msk [vmem:[#allocation2 + $0xe1] sm:$0xff] %vm720_vm0, %v25909_v0  ;;  %v25911_v41 = vld [vmem:[#allocation84_spill] sm:$0xff]  ;;  %v25912_v52 = vld [vmem:[#allocation162_spill] sm:$0xff] }
 0xac4   : > { %6515 = vst.msk [vmem:[#allocation2 + $0x219] sm:$0xff] %vm720_vm0, %v25910_v30  ;;  %6516 = vst.msk [vmem:[#allocation2 + $0x221] sm:$0xff] %vm720_vm0, %v25911_v41  ;;  %v25913_v38 = vld [vmem:[#allocation161_spill] sm:$0xff]  ;;  %v25914_v19 = vld [vmem:[#allocation111_spill] sm:$0xff] }
 0xac5   : > { %6467 = vst.msk [vmem:[#allocation2 + $0x39] sm:$0xff] %vm720_vm0, %v25912_v52  ;;  %6468 = vst.msk [vmem:[#allocation2 + $0x41] sm:$0xff] %vm720_vm0, %v25913_v38  ;;  %v25915_v45 = vld [vmem:[#allocation113_spill] sm:$0xff]  ;;  %v25916_v40 = vld [vmem:[#allocation180_spill] sm:$0xff] }
 0xac6   : > { %6499 = vst.msk [vmem:[#allocation2 + $0x179] sm:$0xff] %vm720_vm0, %v25914_v19  ;;  %6500 = vst.msk [vmem:[#allocation2 + $0x181] sm:$0xff] %vm720_vm0, %v25915_v45  ;;  %v25917_v12 = vld [vmem:[#allocation179_spill] sm:$0xff]  ;;  %v25918_v63 = vld [vmem:[#allocation74_spill] sm:$0xff] }
 0xac7   : > { %6485 = vst.msk [vmem:[#allocation2 + $0xf1] sm:$0xff] %vm720_vm0, %v25916_v40  ;;  %6486 = vst.msk [vmem:[#allocation2 + $0xf9] sm:$0xff] %vm720_vm0, %v25917_v12  ;;  %v25919_v49 = vld [vmem:[#allocation88_spill] sm:$0xff]  ;;  %v25921_v5 = vld [vmem:[#allocation163_spill] sm:$0xff] }
 0xac8   : > { %6517 = vst.msk [vmem:[#allocation2 + $0x231] sm:$0xff] %vm720_vm0, %v25918_v63  ;;  %6518 = vst.msk [vmem:[#allocation2 + $0x239] sm:$0xff] %vm720_vm0, %v25919_v49  ;;  %v25920_v18 = vld [vmem:[#allocation164_spill] sm:$0xff]  ;;  %v25923_v50 = vld [vmem:[#allocation30_spill] sm:$0xff] }
 0xac9   : > { %6469 = vst.msk [vmem:[#allocation2 + $0x51] sm:$0xff] %vm720_vm0, %v25920_v18  ;;  %6470 = vst.msk [vmem:[#allocation2 + $0x59] sm:$0xff] %vm720_vm0, %v25921_v5  ;;  %v25922_v28 = vld [vmem:[#allocation32_spill] sm:$0xff]  ;;  %v25924_v14 = vld [vmem:[#allocation182_spill] sm:$0xff] }
 0xaca   : > { %6501 = vst.msk [vmem:[#allocation2 + $0x191] sm:$0xff] %vm720_vm0, %v25922_v28  ;;  %6502 = vst.msk [vmem:[#allocation2 + $0x199] sm:$0xff] %vm720_vm0, %v25923_v50  ;;  %v25925_v57 = vld [vmem:[#allocation181_spill] sm:$0xff]  ;;  %v25926_v0 = vld [vmem:[#allocation78_spill] sm:$0xff] }
 0xacb   : > { %6487 = vst.msk [vmem:[#allocation2 + $0x101] sm:$0xff] %vm720_vm0, %v25924_v14  ;;  %6488 = vst.msk [vmem:[#allocation2 + $0x109] sm:$0xff] %vm720_vm0, %v25925_v57  ;;  %v25927_v30 = vld [vmem:[#allocation93_spill] sm:$0xff]  ;;  %v25928_v41 = vld [vmem:[#allocation166_spill] sm:$0xff] }
 0xacc   : > { %6519 = vst.msk [vmem:[#allocation2 + $0x241] sm:$0xff] %vm720_vm0, %v25926_v0  ;;  %6520 = vst.msk [vmem:[#allocation2 + $0x249] sm:$0xff] %vm720_vm0, %v25927_v30  ;;  %v25929_v52 = vld [vmem:[#allocation165_spill] sm:$0xff]  ;;  %v25930_v38 = vld [vmem:[#allocation50_spill] sm:$0xff] }
 0xacd   : > { %6471 = vst.msk [vmem:[#allocation2 + $0x61] sm:$0xff] %vm720_vm0, %v25928_v41  ;;  %6472 = vst.msk [vmem:[#allocation2 + $0x69] sm:$0xff] %vm720_vm0, %v25929_v52  ;;  %v25931_v19 = vld [vmem:[#allocation52_spill] sm:$0xff]  ;;  %v25933_v40 = vld [vmem:[#allocation18_spill] sm:$0xff] }
 0xace   : > { %6503 = vst.msk [vmem:[#allocation2 + $0x1a1] sm:$0xff] %vm720_vm0, %v25930_v38  ;;  %6504 = vst.msk [vmem:[#allocation2 + $0x1a9] sm:$0xff] %vm720_vm0, %v25931_v19  ;;  %v25932_v45 = vld [vmem:[#allocation20_spill] sm:$0xff]  ;;  %v25934_v12 = vld [vmem:[#allocation115_spill] sm:$0xff] }
 0xacf   : > { %6489 = vst.msk [vmem:[#allocation2 + $0x119] sm:$0xff] %vm720_vm0, %v25932_v45  ;;  %6490 = vst.msk [vmem:[#allocation2 + $0x121] sm:$0xff] %vm720_vm0, %v25933_v40  ;;  %v25935_v63 = vld [vmem:[#allocation97_spill] sm:$0xff]  ;;  %v25936_v49 = vld [vmem:[#allocation168_spill] sm:$0xff] }
 0xad0   : > { %6521 = vst.msk [vmem:[#allocation2 + $0x259] sm:$0xff] %vm720_vm0, %v25934_v12  ;;  %6522 = vst.msk [vmem:[#allocation2 + $0x261] sm:$0xff] %vm720_vm0, %v25935_v63  ;;  %v25937_v18 = vld [vmem:[#allocation167_spill] sm:$0xff]  ;;  %v25938_v5 = vld [vmem:[#allocation36_spill] sm:$0xff] }
 0xad1   : > { %6473 = vst.msk [vmem:[#allocation2 + $0x79] sm:$0xff] %vm720_vm0, %v25936_v49  ;;  %6474 = vst.msk [vmem:[#allocation2 + $0x81] sm:$0xff] %vm720_vm0, %v25937_v18  ;;  %v25939_v28 = vld [vmem:[#allocation34_spill] sm:$0xff]  ;;  %v25940_v50 = vld [vmem:[#allocation103_spill] sm:$0xff] }
 0xad2   : > { %6505 = vst.msk [vmem:[#allocation2 + $0x1b9] sm:$0xff] %vm720_vm0, %v25938_v5  ;;  %6506 = vst.msk [vmem:[#allocation2 + $0x1c1] sm:$0xff] %vm720_vm0, %v25939_v28  ;;  %v25941_v14 = vld [vmem:[#allocation105_spill] sm:$0xff]  ;;  %v25942_v57 = vld [vmem:[#allocation119_spill] sm:$0xff] }
 0xad3   : > { %6491 = vst.msk [vmem:[#allocation2 + $0x129] sm:$0xff] %vm720_vm0, %v25940_v50  ;;  %6492 = vst.msk [vmem:[#allocation2 + $0x131] sm:$0xff] %vm720_vm0, %v25941_v14  ;;  %v25943_v0 = vld [vmem:[#allocation101_spill] sm:$0xff]  ;;  %v25944_v30 = vld [vmem:[#allocation170_spill] sm:$0xff] }
 0xad4   : > { %6523 = vst.msk [vmem:[#allocation2 + $0x269] sm:$0xff] %vm720_vm0, %v25942_v57  ;;  %6524 = vst.msk [vmem:[#allocation2 + $0x271] sm:$0xff] %vm720_vm0, %v25943_v0  ;;  %v25945_v41 = vld [vmem:[#allocation169_spill] sm:$0xff]  ;;  %v25946_v52 = vld [vmem:[#allocation54_spill] sm:$0xff] }
 0xad5   : > { %6475 = vst.msk [vmem:[#allocation2 + $0x89] sm:$0xff] %vm720_vm0, %v25944_v30  ;;  %6476 = vst.msk [vmem:[#allocation2 + $0x91] sm:$0xff] %vm720_vm0, %v25945_v41  ;;  %v25947_v38 = vld [vmem:[#allocation56_spill] sm:$0xff]  ;;  %v25948_v19 = vld [vmem:[#allocation125_spill] sm:$0xff] }
 0xad6   : > { %6507 = vst.msk [vmem:[#allocation2 + $0x1c9] sm:$0xff] %vm720_vm0, %v25946_v52  ;;  %6508 = vst.msk [vmem:[#allocation2 + $0x1d1] sm:$0xff] %vm720_vm0, %v25947_v38  ;;  %v25949_v45 = vld [vmem:[#allocation147_spill] sm:$0xff]  ;;  %v25951_v22 = vld [vmem:[#allocation148_spill] sm:$0xff] }
 0xad7   : > { %6542 = vst.msk [vmem:[#allocation2 + $0x329] sm:$0xff] %vm720_vm0, %v22589_v20  ;;  %6573 = vst.msk [vmem:[#allocation2 + $0x461] sm:$0xff] %vm720_vm0, %v22753_v36  ;;  %v25950_v20 = vld [vmem:[#allocation149_spill] sm:$0xff]  ;;  %v6609_v18 = vld [vmem:[#allocation2 + $0x28] sm:$0xff] }
 0xad8   : > { %6574 = vst.msk [vmem:[#allocation2 + $0x469] sm:$0xff] %vm720_vm0, %v22749_v7  ;;  %6525 = vst.msk [vmem:[#allocation2 + $0x281] sm:$0xff] %vm720_vm0, %v25948_v19  ;;  %v6610_v5 = vld [vmem:[#allocation2 + $0x30] sm:$0xff]  ;;  %v6641_v28 = vld [vmem:[#allocation2 + $0x168] sm:$0xff] }
 0xad9   : > { %6526 = vst.msk [vmem:[#allocation2 + $0x289] sm:$0xff] %vm720_vm0, %v25949_v45  ;;  %6557 = vst.msk [vmem:[#allocation2 + $0x3c1] sm:$0xff] %vm720_vm0, %v22673_v13  ;;  %v6606_v13 = vld [vmem:[#allocation2 + $0x8] sm:$0xff]  ;;  %v6642_v50 = vld [vmem:[#allocation2 + $0x170] sm:$0xff]  ;;  %v18108_v41 = vpack.c.bf16 %v6610_v5, %v6609_v18 }
 0xada   : > { %6558 = vst.msk [vmem:[#allocation2 + $0x3c9] sm:$0xff] %vm720_vm0, %v22669_v10  ;;  %6543 = vst.msk [vmem:[#allocation2 + $0x331] sm:$0xff] %vm720_vm0, %v22603_v43  ;;  %v25961_v43 = vld [vmem:[#allocation153_spill] sm:$0xff]  ;;  %v6605_v10 = vld [vmem:[#allocation2] sm:$0xff]  ;;  %v18156_v52 = vpack.c.bf16 %v6642_v50, %v6641_v28 }
 0xadb   : > { %6544 = vst.msk [vmem:[#allocation2 + $0x339] sm:$0xff] %vm720_vm0, %v22599_v47  ;;  %6575 = vst.msk [vmem:[#allocation2 + $0x471] sm:$0xff] %vm720_vm0, %v22763_v6  ;;  %v25960_v47 = vld [vmem:[#allocation154_spill] sm:$0xff]  ;;  %v6628_v57 = vld [vmem:[#allocation2 + $0xe0] sm:$0xff] }
 0xadc   : > { %6576 = vst.msk [vmem:[#allocation2 + $0x479] sm:$0xff] %vm720_vm0, %v22759_v4  ;;  %6527 = vst.msk [vmem:[#allocation2 + $0x291] sm:$0xff] %vm720_vm0, %v25950_v20  ;;  %v6623_v4 = vld [vmem:[#allocation2 + $0xb0] sm:$0xff]  ;;  %v6624_v6 = vld [vmem:[#allocation2 + $0xb8] sm:$0xff] }
 0xadd   : > { %6528 = vst.msk [vmem:[#allocation2 + $0x299] sm:$0xff] %vm720_vm0, %v25951_v22  ;;  %6559 = vst.msk [vmem:[#allocation2 + $0x3d1] sm:$0xff] %vm720_vm0, %v22683_v39  ;;  %v6622_v39 = vld [vmem:[#allocation2 + $0xa8] sm:$0xff]  ;;  %v6627_v14 = vld [vmem:[#allocation2 + $0xd8] sm:$0xff] }
 0xade   : > { %6560 = vst.msk [vmem:[#allocation2 + $0x3d9] sm:$0xff] %vm720_vm0, %v22679_v31  ;;  %6545 = vst.msk [vmem:[#allocation2 + $0x349] sm:$0xff] %vm720_vm0, %v22613_v34  ;;  %v25963_v34 = vld [vmem:[#allocation145_spill] sm:$0xff]  ;;  %v6621_v31 = vld [vmem:[#allocation2 + $0xa0] sm:$0xff]  ;;  %v18111_v38 = vpack.c.bf16 %v6628_v57, %v6627_v14 }
 0xadf   : > { %6546 = vst.msk [vmem:[#allocation2 + $0x351] sm:$0xff] %vm720_vm0, %v22609_v59  ;;  %6577 = vst.msk [vmem:[#allocation2 + $0x489] sm:$0xff] %vm720_vm0, %v22773_v58  ;;  %v25962_v59 = vld [vmem:[#allocation152_spill] sm:$0xff]  ;;  %v6659_v0 = vld [vmem:[#allocation2 + $0x218] sm:$0xff] }
 0xae0   : > { %6578 = vst.msk [vmem:[#allocation2 + $0x491] sm:$0xff] %vm720_vm0, %v22769_v61  ;;  %6529 = vst.msk [vmem:[#allocation2 + $0x2a9] sm:$0xff] %vm720_vm0, %v22533_v62  ;;  %v25953_v62 = vld [vmem:[#allocation137_spill] sm:$0xff]  ;;  %v6660_v30 = vld [vmem:[#allocation2 + $0x220] sm:$0xff] }
 0xae1   : > { %6530 = vst.msk [vmem:[#allocation2 + $0x2b1] sm:$0xff] %vm720_vm0, %v22529_v2  ;;  %6561 = vst.msk [vmem:[#allocation2 + $0x3e9] sm:$0xff] %vm720_vm0, %v22693_v44  ;;  %v25952_v2 = vld [vmem:[#allocation135_spill] sm:$0xff]  ;;  %v18096_v44 = vpack.c.bf16 %v6606_v13, %v6605_v10  ;;  %v6655_v61 = vld [vmem:[#allocation2 + $0x1f0] sm:$0xff]  ;;  %v18159_v19 = vpack.c.bf16 %v6660_v30, %v6659_v0 }
 0xae2   : > { %6562 = vst.msk [vmem:[#allocation2 + $0x3f1] sm:$0xff] %vm720_vm0, %v22689_v3  ;;  %6547 = vst.msk [vmem:[#allocation2 + $0x359] sm:$0xff] %vm720_vm0, %v22623_v17  ;;  %v25965_v17 = vld [vmem:[#allocation151_spill] sm:$0xff]  ;;  %v6611_v45 = vld [vmem:[#allocation2 + $0x38] sm:$0xff] }
 0xae3   : > { %6548 = vst.msk [vmem:[#allocation2 + $0x361] sm:$0xff] %vm720_vm0, %v22619_v35  ;;  %6579 = vst.msk [vmem:[#allocation2 + $0x499] sm:$0xff] %vm720_vm0, %v22783_v27  ;;  %v25964_v35 = vld [vmem:[#allocation157_spill] sm:$0xff]  ;;  %v6653_v3 = vld [vmem:[#allocation2 + $0x1e0] sm:$0xff] }
 0xae4   : > { %6580 = vst.msk [vmem:[#allocation2 + $0x4a1] sm:$0xff] %vm720_vm0, %v22779_v60  ;;  %6531 = vst.msk [vmem:[#allocation2 + $0x2b9] sm:$0xff] %vm720_vm0, %v22543_v53  ;;  %v25955_v53 = vld [vmem:[#allocation133_spill] sm:$0xff]  ;;  %v18099_v60 = vpack.c.bf16 %v6624_v6, %v6623_v4  ;;  %v6656_v27 = vld [vmem:[#allocation2 + $0x1f8] sm:$0xff] }
 0xae5   : > { %6532 = vst.msk [vmem:[#allocation2 + $0x2c1] sm:$0xff] %vm720_vm0, %v22539_v51  ;;  %6563 = vst.msk [vmem:[#allocation2 + $0x3f9] sm:$0xff] %vm720_vm0, %v22703_v56  ;;  %v25954_v51 = vld [vmem:[#allocation131_spill] sm:$0xff]  ;;  %v6654_v56 = vld [vmem:[#allocation2 + $0x1e8] sm:$0xff] }
 0xae6   : > { %6564 = vst.msk [vmem:[#allocation2 + $0x401] sm:$0xff] %vm720_vm0, %v22699_v11  ;;  %6549 = vst.msk [vmem:[#allocation2 + $0x371] sm:$0xff] %vm720_vm0, %v22633_v54  ;;  %v25967_v54 = vld [vmem:[#allocation139_spill] sm:$0xff]  ;;  %v18093_v11 = vpack.c.bf16 %v6622_v39, %v6621_v31  ;;  %v18141_v7 = vpack.c.bf16 %v6654_v56, %v6653_v3  ;;  %v6643_v22 = vld [vmem:[#allocation2 + $0x178] sm:$0xff] }
 0xae7   : > { %6550 = vst.msk [vmem:[#allocation2 + $0x379] sm:$0xff] %vm720_vm0, %v22629_v21  ;;  %6581 = vst.msk [vmem:[#allocation2 + $0x4b1] sm:$0xff] %vm720_vm0, %v22793_v32  ;;  %v25966_v21 = vld [vmem:[#allocation150_spill] sm:$0xff]  ;;  %v6607_v32 = vld [vmem:[#allocation2 + $0x10] sm:$0xff] }
 0xae8   : > { %6582 = vst.msk [vmem:[#allocation2 + $0x4b9] sm:$0xff] %vm720_vm0, %v22789_v25  ;;  %6533 = vst.msk [vmem:[#allocation2 + $0x2d1] sm:$0xff] %vm720_vm0, %v22553_v55  ;;  %v25957_v55 = vld [vmem:[#allocation127_spill] sm:$0xff]  ;;  %18095 = vmatprep.subr.msk.bf16.mxu0 %vm21683_vm12, %v18093_v11  ;;  %18143 = vmatprep.subr.msk.bf16.mxu1 %vm21683_vm12, %v18141_v7  ;;  %v18147_v25 = vpack.c.bf16 %v6656_v27, %v6655_v61  ;;  %v6648_v56 = vld [vmem:[#allocation2 + $0x1a8] sm:$0xff] }
 0xae9   : > { %6534 = vst.msk [vmem:[#allocation2 + $0x2d9] sm:$0xff] %vm720_vm0, %v22549_v33  ;;  %6565 = vst.msk [vmem:[#allocation2 + $0x411] sm:$0xff] %vm720_vm0, %v22713_v15  ;;  %v25956_v33 = vld [vmem:[#allocation156_spill] sm:$0xff]  ;;  %18098 = vmatpush3.bf16.xpose.msk.msra.mxu0 %vm21683_vm12, %v18096_v44  ;;  %v6612_v20 = vld [vmem:[#allocation2 + $0x40] sm:$0xff] }
 0xaea   : > { %6566 = vst.msk [vmem:[#allocation2 + $0x419] sm:$0xff] %vm720_vm0, %v22709_v48  ;;  %6551 = vst.msk [vmem:[#allocation2 + $0x381] sm:$0xff] %vm720_vm0, %v22643_v29  ;;  %v23448_v29 = vld [vmem:[%s25057_s9] sm:$0xff]  ;;  %v6638_v15 = vld [vmem:[#allocation2 + $0x148] sm:$0xff]  ;;  %18101 = vmatprep.subr.msk.bf16.mxu0 %vm21683_vm12, %v18099_v60 }
 0xaeb   : > { %6552 = vst.msk [vmem:[#allocation2 + $0x389] sm:$0xff] %vm720_vm0, %v22639_v37  ;;  %6583 = vst.msk [vmem:[#allocation2 + $0x4c1] sm:$0xff] %vm720_vm0, %v22803_v26  ;;  %v25968_v37 = vld [vmem:[#allocation141_spill] sm:$0xff]  ;;  %16266 = vmatprep.mubr.msk.f32.mxu0 %vm720_vm0, %v23448_v29  ;;  %16302 = vmatprep.mubr.msk.f32.mxu1 %vm720_vm0, %v23448_v29  ;;  %v6637_v48 = vld [vmem:[#allocation2 + $0x140] sm:$0xff] }
 0xaec   : > { %6584 = vst.msk [vmem:[#allocation2 + $0x4c9] sm:$0xff] %vm720_vm0, %v22799_v1  ;;  %6535 = vst.msk [vmem:[#allocation2 + $0x2e1] sm:$0xff] %vm720_vm0, %v22563_v46  ;;  %v25959_v46 = vld [vmem:[#allocation155_spill] sm:$0xff]  ;;  %v18144_v36 = vpack.c.bf16 %v6638_v15, %v6637_v48  ;;  %v6608_v1 = vld [vmem:[#allocation2 + $0x18] sm:$0xff] }
 0xaed   : > { %6536 = vst.msk [vmem:[#allocation2 + $0x2e9] sm:$0xff] %vm720_vm0, %v22559_v16  ;;  %6567 = vst.msk [vmem:[#allocation2 + $0x421] sm:$0xff] %vm720_vm0, %v25952_v2  ;;  %v25958_v16 = vld [vmem:[#allocation129_spill] sm:$0xff]  ;;  %v18102_v40 = vpack.c.bf16 %v6608_v1, %v6607_v32  ;;  %v6644_v2 = vld [vmem:[#allocation2 + $0x180] sm:$0xff] }
 0xaee   : > { %6568 = vst.msk [vmem:[#allocation2 + $0x429] sm:$0xff] %vm720_vm0, %v25953_v62  ;;  %6553 = vst.msk [vmem:[#allocation2 + $0x399] sm:$0xff] %vm720_vm0, %v25954_v51  ;;  %18146 = vmatpush3.bf16.xpose.msk.msra.mxu1 %vm21683_vm12, %v18144_v36  ;;  %v6639_v26 = vld [vmem:[#allocation2 + $0x150] sm:$0xff]  ;;  %v6630_v51 = vld [vmem:[#allocation2 + $0xf8] sm:$0xff] }
 0xaef   : > { %6554 = vst.msk [vmem:[#allocation2 + $0x3a1] sm:$0xff] %vm720_vm0, %v25955_v53  ;;  %6585 = vst.msk [vmem:[#allocation2 + $0x4d9] sm:$0xff] %vm720_vm0, %v22813_v9  ;;  %18149 = vmatprep.subr.msk.bf16.mxu1 %vm21683_vm12, %v18147_v25  ;;  %v6640_v9 = vld [vmem:[#allocation2 + $0x158] sm:$0xff]  ;;  %v6629_v62 = vld [vmem:[#allocation2 + $0xf0] sm:$0xff] }
 0xaf0   : > { %6586 = vst.msk [vmem:[#allocation2 + $0x4e1] sm:$0xff] %vm720_vm0, %v25956_v33  ;;  %6537 = vst.msk [vmem:[#allocation2 + $0x2f9] sm:$0xff] %vm720_vm0, %v25957_v55  ;;  %v18150_v12 = vpack.c.bf16 %v6640_v9, %v6639_v26  ;;  %v6661_v53 = vld [vmem:[#allocation2 + $0x230] sm:$0xff]  ;;  %v6662_v33 = vld [vmem:[#allocation2 + $0x238] sm:$0xff]  ;;  %v18114_v55 = vpack.c.bf16 %v6612_v20, %v6611_v45 }
 0xaf1   : > { %6538 = vst.msk [vmem:[#allocation2 + $0x301] sm:$0xff] %vm720_vm0, %v25958_v16  ;;  %6569 = vst.msk [vmem:[#allocation2 + $0x439] sm:$0xff] %vm720_vm0, %v25959_v46  ;;  %18104 = vmatpush3.bf16.xpose.msk.msra.mxu0 %vm21683_vm12, %v18102_v40  ;;  %v18162_v16 = vpack.c.bf16 %v6644_v2, %v6643_v22  ;;  %v18117_v46 = vpack.c.bf16 %v6630_v51, %v6629_v62  ;;  %v6615_v3 = vld [vmem:[#allocation2 + $0x60] sm:$0xff]  ;;  %v6616_v44 = vld [vmem:[#allocation2 + $0x68] sm:$0xff] }
 0xaf2   : > { %6570 = vst.msk [vmem:[#allocation2 + $0x441] sm:$0xff] %vm720_vm0, %v25960_v47  ;;  %6555 = vst.msk [vmem:[#allocation2 + $0x3a9] sm:$0xff] %vm720_vm0, %v25961_v43  ;;  %v18165_v47 = vpack.c.bf16 %v6662_v33, %v6661_v53  ;;  %v6613_v43 = vld [vmem:[#allocation2 + $0x50] sm:$0xff]  ;;  %v6647_v11 = vld [vmem:[#allocation2 + $0x1a0] sm:$0xff]  ;;  %v18126_v4 = vpack.c.bf16 %v6616_v44, %v6615_v3 }
 0xaf3   : > { %6556 = vst.msk [vmem:[#allocation2 + $0x3b1] sm:$0xff] %vm720_vm0, %v25962_v59  ;;  %6587 = vst.msk [vmem:[#allocation2 + $0x4e9] sm:$0xff] %vm720_vm0, %v25963_v34  ;;  %v6614_v59 = vld [vmem:[#allocation2 + $0x58] sm:$0xff]  ;;  %v6645_v34 = vld [vmem:[#allocation2 + $0x190] sm:$0xff]  ;;  %v18174_v6 = vpack.c.bf16 %v6648_v56, %v6647_v11 }
 0xaf4   : > { %6588 = vst.msk [vmem:[#allocation2 + $0x4f1] sm:$0xff] %vm720_vm0, %v25964_v35  ;;  %6539 = vst.msk [vmem:[#allocation2 + $0x309] sm:$0xff] %vm720_vm0, %v25965_v17  ;;  %v6646_v35 = vld [vmem:[#allocation2 + $0x198] sm:$0xff]  ;;  %v6631_v17 = vld [vmem:[#allocation2 + $0x100] sm:$0xff]  ;;  %v18120_v10 = vpack.c.bf16 %v6614_v59, %v6613_v43 }
 0xaf5   : > { %6540 = vst.msk [vmem:[#allocation2 + $0x311] sm:$0xff] %vm720_vm0, %v25966_v21  ;;  %6571 = vst.msk [vmem:[#allocation2 + $0x449] sm:$0xff] %vm720_vm0, %v25967_v54  ;;  %v6632_v21 = vld [vmem:[#allocation2 + $0x108] sm:$0xff]  ;;  %v6663_v54 = vld [vmem:[#allocation2 + $0x240] sm:$0xff]  ;;  %v18168_v13 = vpack.c.bf16 %v6646_v35, %v6645_v34 }
 0xaf6   : > { %6572 = vst.msk [vmem:[#allocation2 + $0x451] sm:$0xff] %vm720_vm0, %v25968_v37  ;;  %6589 = vst.msk [vmem:[#allocation2 + $0x501] sm:$0xff] %vm720_vm0, %v22833_v23  ;;  %v6626_v23 = vld [vmem:[#allocation2 + $0xd0] sm:$0xff]  ;;  %18152 = vmatpush3.bf16.xpose.msk.msra.mxu1 %vm21683_vm12, %v18150_v12  ;;  %v6664_v37 = vld [vmem:[#allocation2 + $0x248] sm:$0xff]  ;;  %v18123_v31 = vpack.c.bf16 %v6632_v21, %v6631_v17 }
 0xaf7   : > { %6590 = vst.msk [vmem:[#allocation2 + $0x509] sm:$0xff] %vm720_vm0, %v22829_v8  ;;  %6591 = vst.msk [vmem:[#allocation2 + $0x511] sm:$0xff] %vm720_vm0, %v22841_v42  ;;  %v6625_v8 = vld [vmem:[#allocation2 + $0xc8] sm:$0xff]  ;;  %v6658_v42 = vld [vmem:[#allocation2 + $0x210] sm:$0xff]  ;;  %v18171_v39 = vpack.c.bf16 %v6664_v37, %v6663_v54 }
 0xaf8   : > { %6592 = vst.msk [vmem:[#allocation2 + $0x519] sm:$0xff] %vm720_vm0, %v22838_v24  ;;  %v6657_v24 = vld [vmem:[#allocation2 + $0x208] sm:$0xff]  ;;  %v18105_v63 = vpack.c.bf16 %v6626_v23, %v6625_v8  ;;  %v6633_v48 = vld [vmem:[#allocation2 + $0x118] sm:$0xff]  ;;  %v6634_v15 = vld [vmem:[#allocation2 + $0x120] sm:$0xff] }
 0xaf9   : > { %v18153_v49 = vpack.c.bf16 %v6658_v42, %v6657_v24  ;;  %v6665_v7 = vld [vmem:[#allocation2 + $0x258] sm:$0xff]  ;;  %v6666_v36 = vld [vmem:[#allocation2 + $0x260] sm:$0xff]  ;;  %v18129_v61 = vpack.c.bf16 %v6634_v15, %v6633_v48  ;;  %v6635_v26 = vld [vmem:[#allocation2 + $0x128] sm:$0xff] }
 0xafa   : > { %18107 = vmatprep.subr.msk.bf16.mxu0 %vm21683_vm12, %v18105_v63  ;;  %v18177_v60 = vpack.c.bf16 %v6666_v36, %v6665_v7  ;;  %v6617_v27 = vld [vmem:[#allocation2 + $0x78] sm:$0xff]  ;;  %v6618_v25 = vld [vmem:[#allocation2 + $0x80] sm:$0xff]  ;;  %v6636_v9 = vld [vmem:[#allocation2 + $0x130] sm:$0xff] }
 0xafb   : > { %18155 = vmatprep.subr.msk.bf16.mxu1 %vm21683_vm12, %v18153_v49  ;;  %18110 = vmatpush3.bf16.xpose.msk.msra.mxu0 %vm21683_vm12, %v18108_v41  ;;  %v6649_v32 = vld [vmem:[#allocation2 + $0x1b8] sm:$0xff]  ;;  %v6650_v1 = vld [vmem:[#allocation2 + $0x1c0] sm:$0xff]  ;;  %v6667_v8 = vld [vmem:[#allocation2 + $0x268] sm:$0xff]  ;;  %v18132_v24 = vpack.c.bf16 %v6618_v25, %v6617_v27  ;;  %v18135_v40 = vpack.c.bf16 %v6636_v9, %v6635_v26 }
 0xafc   : > { %18113 = vmatprep.subr.msk.bf16.mxu0 %vm21683_vm12, %v18111_v38  ;;  %v6668_v23 = vld [vmem:[#allocation2 + $0x270] sm:$0xff]  ;;  %v18180_v42 = vpack.c.bf16 %v6650_v1, %v6649_v32  ;;  %v6619_v63 = vld [vmem:[#allocation2 + $0x88] sm:$0xff]  ;;  %v6685_v28 = vld [vmem:[#allocation2 + $0x320] sm:$0xff] }
 0xafd   : > { %v18183_v12 = vpack.c.bf16 %v6668_v23, %v6667_v8  ;;  %v6620_v49 = vld [vmem:[#allocation2 + $0x90] sm:$0xff]  ;;  %v6651_v18 = vld [vmem:[#allocation2 + $0x1c8] sm:$0xff]  ;;  %v6717_v14 = vld [vmem:[#allocation2 + $0x460] sm:$0xff] }
 0xafe   : > { %18158 = vmatpush3.bf16.xpose.msk.msra.mxu1 %vm21683_vm12, %v18156_v52  ;;  %v6652_v5 = vld [vmem:[#allocation2 + $0x1d0] sm:$0xff]  ;;  %v6686_v50 = vld [vmem:[#allocation2 + $0x328] sm:$0xff]  ;;  %v18138_v0 = vpack.c.bf16 %v6620_v49, %v6619_v63  ;;  %v6669_v38 = vld [vmem:[#allocation2 + $0x280] sm:$0xff] }
 0xaff   : > { %18161 = vmatprep.subr.msk.bf16.mxu1 %vm21683_vm12, %v18159_v19  ;;  %v6718_v57 = vld [vmem:[#allocation2 + $0x468] sm:$0xff]  ;;  %v18186_v30 = vpack.c.bf16 %v6652_v5, %v6651_v18  ;;  %v18189_v41 = vpack.c.bf16 %v6686_v50, %v6685_v28  ;;  %v6701_v45 = vld [vmem:[#allocation2 + $0x3c0] sm:$0xff]  ;;  %v6687_v22 = vld [vmem:[#allocation2 + $0x330] sm:$0xff] }
 0xb00   : > { %v18237_v52 = vpack.c.bf16 %v6718_v57, %v6717_v14  ;;  %v6670_v19 = vld [vmem:[#allocation2 + $0x288] sm:$0xff]  ;;  %v6688_v2 = vld [vmem:[#allocation2 + $0x338] sm:$0xff]  ;;  %v6719_v62 = vld [vmem:[#allocation2 + $0x470] sm:$0xff] }
 0xb01   : > { %v6702_v20 = vld [vmem:[#allocation2 + $0x3c8] sm:$0xff]  ;;  %v6720_v51 = vld [vmem:[#allocation2 + $0x478] sm:$0xff]  ;;  %v18192_v53 = vpack.c.bf16 %v6670_v19, %v6669_v38  ;;  %v6703_v59 = vld [vmem:[#allocation2 + $0x3d0] sm:$0xff] }
 0xb02   : > { %v18240_v33 = vpack.c.bf16 %v6702_v20, %v6701_v45  ;;  %v6672_v43 = vld [vmem:[#allocation2 + $0x298] sm:$0xff]  ;;  %v6689_v35 = vld [vmem:[#allocation2 + $0x348] sm:$0xff]  ;;  %v6690_v17 = vld [vmem:[#allocation2 + $0x350] sm:$0xff] }
 0xb03   : > { %18116 = vmatpush3.bf16.xpose.msk.msra.mxu0 %vm21683_vm12, %v18114_v55  ;;  %v18195_v55 = vpack.c.bf16 %v6688_v2, %v6687_v22  ;;  %v6704_v34 = vld [vmem:[#allocation2 + $0x3d8] sm:$0xff]  ;;  %v6721_v21 = vld [vmem:[#allocation2 + $0x488] sm:$0xff]  ;;  %v6722_v54 = vld [vmem:[#allocation2 + $0x490] sm:$0xff] }
 0xb04   : > { %18119 = vmatprep.subr.msk.bf16.mxu0 %vm21683_vm12, %v18117_v46  ;;  %v23527_v46 = vld [vmem:[%s25057_s9 + $0x8] sm:$0xff]  ;;  %v6674_v3 = vld [vmem:[#allocation2 + $0x2b0] sm:$0xff]  ;;  %v6691_v56 = vld [vmem:[#allocation2 + $0x358] sm:$0xff] }
 0xb05   : > { %v6705_v44 = vld [vmem:[#allocation2 + $0x3e8] sm:$0xff]  ;;  %v6706_v11 = vld [vmem:[#allocation2 + $0x3f0] sm:$0xff]  ;;  %v6692_v48 = vld [vmem:[#allocation2 + $0x360] sm:$0xff] }
 0xb06   : > { %18164 = vmatpush3.bf16.xpose.msk.msra.mxu1 %vm21683_vm12, %v18162_v16  ;;  %v18243_v16 = vpack.c.bf16 %v6720_v51, %v6719_v62  ;;  %v6723_v15 = vld [vmem:[#allocation2 + $0x498] sm:$0xff]  ;;  %v6724_v7 = vld [vmem:[#allocation2 + $0x4a0] sm:$0xff]  ;;  %v6693_v1 = vld [vmem:[#allocation2 + $0x370] sm:$0xff] }
 0xb07   : > { %18167 = vmatprep.subr.msk.bf16.mxu1 %vm21683_vm12, %v18165_v47  ;;  %v6671_v47 = vld [vmem:[#allocation2 + $0x290] sm:$0xff]  ;;  %v6676_v27 = vld [vmem:[#allocation2 + $0x2c0] sm:$0xff]  ;;  %v6707_v25 = vld [vmem:[#allocation2 + $0x3f8] sm:$0xff] }
 0xb08   : > { %v18198_v37 = vpack.c.bf16 %v6672_v43, %v6671_v47  ;;  %v6708_v32 = vld [vmem:[#allocation2 + $0x400] sm:$0xff]  ;;  %v6694_v26 = vld [vmem:[#allocation2 + $0x378] sm:$0xff]  ;;  %v6725_v9 = vld [vmem:[#allocation2 + $0x4b0] sm:$0xff] }
 0xb09   : > { %v6726_v8 = vld [vmem:[#allocation2 + $0x4b8] sm:$0xff]  ;;  %v6709_v49 = vld [vmem:[#allocation2 + $0x410] sm:$0xff]  ;;  %v6695_v5 = vld [vmem:[#allocation2 + $0x380] sm:$0xff] }
 0xb0a   : > { %v6678_v63 = vld [vmem:[#allocation2 + $0x2d8] sm:$0xff]  ;;  %v6696_v28 = vld [vmem:[#allocation2 + $0x388] sm:$0xff]  ;;  %v6727_v50 = vld [vmem:[#allocation2 + $0x4c0] sm:$0xff] }
 0xb0b   : > { %18122 = vmatpush3.bf16.xpose.msk.msra.mxu0 %vm21683_vm12, %v18120_v10  ;;  %v18246_v10 = vpack.c.bf16 %v6704_v34, %v6703_v59  ;;  %v6710_v18 = vld [vmem:[#allocation2 + $0x418] sm:$0xff]  ;;  %v6728_v14 = vld [vmem:[#allocation2 + $0x4c8] sm:$0xff]  ;;  %v6711_v19 = vld [vmem:[#allocation2 + $0x420] sm:$0xff] }
 0xb0c   : > { %18125 = vmatprep.subr.msk.bf16.mxu0 %vm21683_vm12, %v18123_v31  ;;  %v18249_v31 = vpack.c.bf16 %v6722_v54, %v6721_v21  ;;  %v6680_v38 = vld [vmem:[#allocation2 + $0x2e8] sm:$0xff]  ;;  %v6697_v20 = vld [vmem:[#allocation2 + $0x398] sm:$0xff]  ;;  %v6698_v22 = vld [vmem:[#allocation2 + $0x3a0] sm:$0xff] }
 0xb0d   : > { %v6712_v45 = vld [vmem:[#allocation2 + $0x428] sm:$0xff]  ;;  %v6729_v2 = vld [vmem:[#allocation2 + $0x4d8] sm:$0xff]  ;;  %v6730_v62 = vld [vmem:[#allocation2 + $0x4e0] sm:$0xff] }
 0xb0e   : > { %18170 = vmatpush3.bf16.xpose.msk.msra.mxu1 %vm21683_vm12, %v18168_v13  ;;  %v18201_v13 = vpack.c.bf16 %v6690_v17, %v6689_v35  ;;  %v6682_v47 = vld [vmem:[#allocation2 + $0x300] sm:$0xff]  ;;  %v6713_v43 = vld [vmem:[#allocation2 + $0x438] sm:$0xff]  ;;  %v6699_v34 = vld [vmem:[#allocation2 + $0x3a8] sm:$0xff] }
 0xb0f   : > { %18173 = vmatprep.subr.msk.bf16.mxu1 %vm21683_vm12, %v18171_v39  ;;  %v6673_v39 = vld [vmem:[#allocation2 + $0x2a8] sm:$0xff]  ;;  %v6714_v59 = vld [vmem:[#allocation2 + $0x440] sm:$0xff]  ;;  %v6700_v35 = vld [vmem:[#allocation2 + $0x3b0] sm:$0xff] }
 0xb10   : > { %v18204_v36 = vpack.c.bf16 %v6674_v3, %v6673_v39  ;;  %v6731_v17 = vld [vmem:[#allocation2 + $0x4e8] sm:$0xff]  ;;  %v6732_v21 = vld [vmem:[#allocation2 + $0x4f0] sm:$0xff] }
 0xb11   : > { %v6684_v39 = vld [vmem:[#allocation2 + $0x310] sm:$0xff]  ;;  %v6715_v3 = vld [vmem:[#allocation2 + $0x448] sm:$0xff] }
 0xb13   : > { %18128 = vmatpush3.bf16.xpose.msk.msra.mxu0 %vm21683_vm12, %v18126_v4  ;;  %v18252_v4 = vpack.c.bf16 %v6706_v11, %v6705_v44  ;;  %v6716_v44 = vld [vmem:[#allocation2 + $0x450] sm:$0xff]  ;;  %v7465_v11 = vld [vmem:[#allocation2 + $0xa1] sm:$0xff] }
 0xb14   : > { %18131 = vmatprep.subr.msk.bf16.mxu0 %vm21683_vm12, %v18129_v61  ;;  %v18255_v61 = vpack.c.bf16 %v6724_v7, %v6723_v15  ;;  %v7498_v15 = vld [vmem:[#allocation2 + $0x1e9] sm:$0xff] }
 0xb16   : > { %18176 = vmatpush3.bf16.xpose.msk.msra.mxu1 %vm21683_vm12, %v18174_v6  ;;  %v18207_v6 = vpack.c.bf16 %v6692_v48, %v6691_v56  ;;  %v7466_v56 = vld [vmem:[#allocation2 + $0xa9] sm:$0xff]  ;;  %v7497_v48 = vld [vmem:[#allocation2 + $0x1e1] sm:$0xff] }
 0xb17   : > { %18179 = vmatprep.subr.msk.bf16.mxu1 %vm21683_vm12, %v18177_v60  ;;  %v6675_v60 = vld [vmem:[#allocation2 + $0x2b8] sm:$0xff] }
 0xb18   : > { %v18210_v23 = vpack.c.bf16 %v6676_v27, %v6675_v60  ;;  %v7450_v60 = vld [vmem:[#allocation2 + $0x9] sm:$0xff]  ;;  %v7481_v27 = vld [vmem:[#allocation2 + $0x141] sm:$0xff] }
 0xb1b   : > { %18134 = vmatpush3.bf16.xpose.msk.msra.mxu0 %vm21683_vm12, %v18132_v24  ;;  %v18258_v24 = vpack.c.bf16 %v6708_v32, %v6707_v25  ;;  %v7482_v25 = vld [vmem:[#allocation2 + $0x149] sm:$0xff]  ;;  %v7467_v32 = vld [vmem:[#allocation2 + $0xb1] sm:$0xff] }
 0xb1c   : > { %18137 = vmatprep.subr.msk.bf16.mxu0 %vm21683_vm12, %v18135_v40  ;;  %v18261_v40 = vpack.c.bf16 %v6726_v8, %v6725_v9  ;;  %v7500_v9 = vld [vmem:[#allocation2 + $0x1f9] sm:$0xff] }
 0xb1e   : > { %18182 = vmatpush3.bf16.xpose.msk.msra.mxu1 %vm21683_vm12, %v18180_v42  ;;  %v18213_v42 = vpack.c.bf16 %v6694_v26, %v6693_v1  ;;  %v7468_v1 = vld [vmem:[#allocation2 + $0xb9] sm:$0xff]  ;;  %v7499_v26 = vld [vmem:[#allocation2 + $0x1f1] sm:$0xff] }
 0xb1f   : > { %18185 = vmatprep.subr.msk.bf16.mxu1 %vm21683_vm12, %v18183_v12  ;;  %v6677_v12 = vld [vmem:[#allocation2 + $0x2d0] sm:$0xff] }
 0xb20   : > { %v18216_v57 = vpack.c.bf16 %v6678_v63, %v6677_v12  ;;  %v7452_v12 = vld [vmem:[#allocation2 + $0x19] sm:$0xff]  ;;  %v7483_v63 = vld [vmem:[#allocation2 + $0x151] sm:$0xff] }
 0xb23   : > { %18140 = vmatpush3.bf16.xpose.msk.msra.mxu0 %vm21683_vm12, %v18138_v0  ;;  %v18264_v0 = vpack.c.bf16 %v6710_v18, %v6709_v49  ;;  %v23620_v49 = vld [vmem:[%s25057_s9 + $0x10] sm:$0xff] }
 0xb24   : > { %18191 = vmatprep.subr.msk.bf16.mxu0 %vm21683_vm12, %v18189_v41  ;;  %v18267_v41 = vpack.c.bf16 %v6728_v14, %v6727_v50  ;;  %v7469_v18 = vld [vmem:[#allocation2 + $0xc9] sm:$0xff]  ;;  %v7502_v50 = vld [vmem:[#allocation2 + $0x211] sm:$0xff] }
 0xb26   : > { %18188 = vmatpush3.bf16.xpose.msk.msra.mxu1 %vm21683_vm12, %v18186_v30  ;;  %v18219_v30 = vpack.c.bf16 %v6696_v28, %v6695_v5  ;;  %v7470_v5 = vld [vmem:[#allocation2 + $0xd1] sm:$0xff]  ;;  %v7501_v28 = vld [vmem:[#allocation2 + $0x209] sm:$0xff] }
 0xb27   : > { %18239 = vmatprep.subr.msk.bf16.mxu1 %vm21683_vm12, %v18237_v52  ;;  %v6679_v52 = vld [vmem:[#allocation2 + $0x2e0] sm:$0xff] }
 0xb28   : > { %v18222_v51 = vpack.c.bf16 %v6680_v38, %v6679_v52  ;;  %v7485_v52 = vld [vmem:[#allocation2 + $0x169] sm:$0xff]  ;;  %v7486_v38 = vld [vmem:[#allocation2 + $0x171] sm:$0xff] }
 0xb2a   : > { %16267 = vmatmul.mubr.msk.f32.vlgmr.msra.gmra.mrb[158].mxu0 %vm720_vm0, %v23448_v29 }
 0xb2b   : > { %18194 = vmatpush3.bf16.xpose.msk.msra.mxu0 %vm21683_vm12, %v18192_v53  ;;  %16268 = vmatprep.mubr.msk.f32.mxu0 %vm720_vm0, %v23527_v46  ;;  %v18270_v53 = vpack.c.bf16 %v6712_v45, %v6711_v19  ;;  %v7471_v19 = vld [vmem:[#allocation2 + $0xd9] sm:$0xff]  ;;  %v7472_v45 = vld [vmem:[#allocation2 + $0xe1] sm:$0xff] }
 0xb2c   : > { %18197 = vmatprep.subr.msk.bf16.mxu0 %vm21683_vm12, %v18195_v55  ;;  %v18273_v55 = vpack.c.bf16 %v6730_v62, %v6729_v2  ;;  %v18348_v62 = vpack.c.bf16 %v7486_v38, %v7485_v52  ;;  %v7529_v52 = vld [vmem:[#allocation2 + $0x321] sm:$0xff]  ;;  %v7530_v38 = vld [vmem:[#allocation2 + $0x329] sm:$0xff] }
 0xb2d   : > { %16303 = vmatmul.mubr.msk.f32.vlgmr.msra.gmra.mrb[132].mxu1 %vm720_vm0, %v23448_v29 }
 0xb2e   : > { %18242 = vmatpush3.bf16.xpose.msk.msra.mxu1 %vm21683_vm12, %v18240_v33  ;;  %16304 = vmatprep.mubr.msk.f32.mxu1 %vm720_vm0, %v23527_v46  ;;  %v18225_v33 = vpack.c.bf16 %v6698_v22, %v6697_v20  ;;  %v7503_v20 = vld [vmem:[#allocation2 + $0x219] sm:$0xff]  ;;  %v7504_v22 = vld [vmem:[#allocation2 + $0x221] sm:$0xff] }
 0xb2f   : > { %18245 = vmatprep.subr.msk.bf16.mxu1 %vm21683_vm12, %v18243_v16  ;;  %16269 = vmatmul.mubr.msk.f32.gmra.mrb[160].mxu0 %vm720_vm0, %v23527_v46  ;;  %v6681_v16 = vld [vmem:[#allocation2 + $0x2f8] sm:$0xff] }
 0xb30   : > { %16338 = vmatprep.mubr.msk.f32.mxu0 %vm720_vm0, %v23448_v29  ;;  %v18228_v54 = vpack.c.bf16 %v6682_v47, %v6681_v16  ;;  %v7487_v16 = vld [vmem:[#allocation2 + $0x179] sm:$0xff]  ;;  %v7488_v47 = vld [vmem:[#allocation2 + $0x181] sm:$0xff] }
 0xb31   : > { %16305 = vmatmul.mubr.msk.f32.gmra.mrb[134].mxu1 %vm720_vm0, %v23527_v46 }
 0xb32   : > { %16374 = vmatprep.mubr.msk.f32.mxu1 %vm720_vm0, %v23448_v29 }
 0xb33   : > { %18200 = vmatpush3.bf16.xpose.msk.msra.mxu0 %vm21683_vm12, %v18198_v37  ;;  %v18276_v37 = vpack.c.bf16 %v6714_v59, %v6713_v43  ;;  %v7473_v43 = vld [vmem:[#allocation2 + $0xf1] sm:$0xff]  ;;  %v7474_v59 = vld [vmem:[#allocation2 + $0xf9] sm:$0xff] }
 0xb34   : > { %18203 = vmatprep.subr.msk.bf16.mxu0 %vm21683_vm12, %v18201_v13  ;;  %v18279_v13 = vpack.c.bf16 %v6732_v21, %v6731_v17  ;;  %v18354_v21 = vpack.c.bf16 %v7488_v47, %v7487_v16  ;;  %v7531_v16 = vld [vmem:[#allocation2 + $0x331] sm:$0xff]  ;;  %v7532_v47 = vld [vmem:[#allocation2 + $0x339] sm:$0xff] }
 0xb36   : > { %18248 = vmatpush3.bf16.xpose.msk.msra.mxu1 %vm21683_vm12, %v18246_v10  ;;  %v18231_v10 = vpack.c.bf16 %v6700_v35, %v6699_v34  ;;  %v7505_v34 = vld [vmem:[#allocation2 + $0x231] sm:$0xff]  ;;  %v7506_v35 = vld [vmem:[#allocation2 + $0x239] sm:$0xff] }
 0xb37   : > { %18251 = vmatprep.subr.msk.bf16.mxu1 %vm21683_vm12, %v18249_v31  ;;  %v6683_v31 = vld [vmem:[#allocation2 + $0x308] sm:$0xff] }
 0xb38   : > { %v18234_v7 = vpack.c.bf16 %v6684_v39, %v6683_v31  ;;  %v7489_v31 = vld [vmem:[#allocation2 + $0x191] sm:$0xff]  ;;  %v7490_v39 = vld [vmem:[#allocation2 + $0x199] sm:$0xff] }
 0xb3b   : > { %18206 = vmatpush3.bf16.xpose.msk.msra.mxu0 %vm21683_vm12, %v18204_v36  ;;  %v18282_v36 = vpack.c.bf16 %v6716_v44, %v6715_v3  ;;  %v7475_v3 = vld [vmem:[#allocation2 + $0x101] sm:$0xff]  ;;  %v7476_v44 = vld [vmem:[#allocation2 + $0x109] sm:$0xff] }
 0xb3c   : > { %18209 = vmatprep.subr.msk.bf16.mxu0 %vm21683_vm12, %v18207_v6  ;;  %v18333_v6 = vpack.c.bf16 %v7498_v15, %v7497_v48  ;;  %v18360_v15 = vpack.c.bf16 %v7490_v39, %v7489_v31  ;;  %v7548_v31 = vld [vmem:[#allocation2 + $0x3d9] sm:$0xff]  ;;  %v7533_v39 = vld [vmem:[#allocation2 + $0x349] sm:$0xff] }
 0xb3e   : > { %18254 = vmatpush3.bf16.xpose.msk.msra.mxu1 %vm21683_vm12, %v18252_v4  ;;  %v18285_v4 = vpack.c.bf16 %v7466_v56, %v7465_v11  ;;  %v7507_v11 = vld [vmem:[#allocation2 + $0x241] sm:$0xff]  ;;  %v7508_v56 = vld [vmem:[#allocation2 + $0x249] sm:$0xff] }
 0xb3f   : > { %18257 = vmatprep.subr.msk.bf16.mxu1 %vm21683_vm12, %v18255_v61  ;;  %v7449_v61 = vld [vmem:[#allocation2 + $0x1] sm:$0xff] }
 0xb40   : > { %v18288_v8 = vpack.c.bf16 %v7450_v60, %v7449_v61  ;;  %v7491_v61 = vld [vmem:[#allocation2 + $0x1a1] sm:$0xff]  ;;  %v7492_v60 = vld [vmem:[#allocation2 + $0x1a9] sm:$0xff] }
 0xb43   : > { %18212 = vmatpush3.bf16.xpose.msk.msra.mxu0 %vm21683_vm12, %v18210_v23  ;;  %v18336_v23 = vpack.c.bf16 %v7482_v25, %v7481_v27  ;;  %v7477_v27 = vld [vmem:[#allocation2 + $0x119] sm:$0xff]  ;;  %v7478_v25 = vld [vmem:[#allocation2 + $0x121] sm:$0xff] }
 0xb44   : > { %18215 = vmatprep.subr.msk.bf16.mxu0 %vm21683_vm12, %v18213_v42  ;;  %v18339_v42 = vpack.c.bf16 %v7500_v9, %v7499_v26  ;;  %v18366_v9 = vpack.c.bf16 %v7492_v60, %v7491_v61  ;;  %v7550_v61 = vld [vmem:[#allocation2 + $0x3f1] sm:$0xff]  ;;  %v7535_v60 = vld [vmem:[#allocation2 + $0x359] sm:$0xff] }
 0xb46   : > { %18260 = vmatpush3.bf16.xpose.msk.msra.mxu1 %vm21683_vm12, %v18258_v24  ;;  %v18291_v24 = vpack.c.bf16 %v7468_v1, %v7467_v32  ;;  %v7509_v32 = vld [vmem:[#allocation2 + $0x259] sm:$0xff]  ;;  %v7510_v1 = vld [vmem:[#allocation2 + $0x261] sm:$0xff] }
 0xb47   : > { %18263 = vmatprep.subr.msk.bf16.mxu1 %vm21683_vm12, %v18261_v40  ;;  %v7451_v40 = vld [vmem:[#allocation2 + $0x11] sm:$0xff] }
 0xb48   : > { %v18294_v14 = vpack.c.bf16 %v7452_v12, %v7451_v40  ;;  %v7493_v40 = vld [vmem:[#allocation2 + $0x1b9] sm:$0xff]  ;;  %v7494_v12 = vld [vmem:[#allocation2 + $0x1c1] sm:$0xff] }
 0xb4b   : > { %18218 = vmatpush3.bf16.xpose.msk.msra.mxu0 %vm21683_vm12, %v18216_v57 }
 0xb4c   : > { %18221 = vmatprep.subr.msk.bf16.mxu0 %vm21683_vm12, %v18219_v30  ;;  %v18345_v30 = vpack.c.bf16 %v7502_v50, %v7501_v28  ;;  %v18372_v50 = vpack.c.bf16 %v7494_v12, %v7493_v40  ;;  %v7552_v40 = vld [vmem:[#allocation2 + $0x401] sm:$0xff]  ;;  %v7537_v12 = vld [vmem:[#allocation2 + $0x371] sm:$0xff] }
 0xb4e   : > { %18266 = vmatpush3.bf16.xpose.msk.msra.mxu1 %vm21683_vm12, %v18264_v0  ;;  %v18297_v0 = vpack.c.bf16 %v7470_v5, %v7469_v18  ;;  %v7511_v18 = vld [vmem:[#allocation2 + $0x269] sm:$0xff]  ;;  %v7512_v5 = vld [vmem:[#allocation2 + $0x271] sm:$0xff] }
 0xb4f   : > { %18269 = vmatprep.subr.msk.bf16.mxu1 %vm21683_vm12, %v18267_v41  ;;  %v7453_v41 = vld [vmem:[#allocation2 + $0x29] sm:$0xff] }
 0xb53   : > { %18224 = vmatpush3.bf16.xpose.msk.msra.mxu0 %vm21683_vm12, %v18222_v51  ;;  %v18303_v51 = vpack.c.bf16 %v7472_v45, %v7471_v19  ;;  %v7561_v19 = vld [vmem:[#allocation2 + $0x461] sm:$0xff]  ;;  %v7562_v45 = vld [vmem:[#allocation2 + $0x469] sm:$0xff] }
 0xb54   : > { %18227 = vmatprep.subr.msk.bf16.mxu0 %vm21683_vm12, %v18225_v33  ;;  %v7455_v33 = vld [vmem:[#allocation2 + $0x39] sm:$0xff] }
 0xb56   : > { %18272 = vmatpush3.bf16.xpose.msk.msra.mxu1 %vm21683_vm12, %v18270_v53  ;;  %v18351_v53 = vpack.c.bf16 %v7504_v22, %v7503_v20 }
 0xb57   : > { %18275 = vmatprep.subr.msk.bf16.mxu1 %vm21683_vm12, %v18273_v55  ;;  %v7456_v55 = vld [vmem:[#allocation2 + $0x41] sm:$0xff] }
 0xb58   : > { %v18306_v17 = vpack.c.bf16 %v7456_v55, %v7455_v33  ;;  %v7545_v33 = vld [vmem:[#allocation2 + $0x3c1] sm:$0xff]  ;;  %v7546_v55 = vld [vmem:[#allocation2 + $0x3c9] sm:$0xff] }
 0xb5b   : > { %18230 = vmatpush3.bf16.xpose.msk.msra.mxu0 %vm21683_vm12, %v18228_v54  ;;  %v18309_v54 = vpack.c.bf16 %v7474_v59, %v7473_v43  ;;  %v7563_v43 = vld [vmem:[#allocation2 + $0x471] sm:$0xff]  ;;  %v7564_v59 = vld [vmem:[#allocation2 + $0x479] sm:$0xff] }
 0xb5c   : > { %18233 = vmatprep.subr.msk.bf16.mxu0 %vm21683_vm12, %v18231_v10  ;;  %v7457_v10 = vld [vmem:[#allocation2 + $0x51] sm:$0xff] }
 0xb5e   : > { %18278 = vmatpush3.bf16.xpose.msk.msra.mxu1 %vm21683_vm12, %v18276_v37  ;;  %v18357_v37 = vpack.c.bf16 %v7506_v35, %v7505_v34  ;;  %v18432_v35 = vpack.c.bf16 %v7546_v55, %v7545_v33  ;;  %v7556_v33 = vld [vmem:[#allocation2 + $0x429] sm:$0xff]  ;;  %v7541_v55 = vld [vmem:[#allocation2 + $0x399] sm:$0xff] }
 0xb5f   : > { %18281 = vmatprep.subr.msk.bf16.mxu1 %vm21683_vm12, %v18279_v13  ;;  %v7458_v13 = vld [vmem:[#allocation2 + $0x59] sm:$0xff] }
 0xb60   : > { %v18312_v48 = vpack.c.bf16 %v7458_v13, %v7457_v10  ;;  %v7516_v10 = vld [vmem:[#allocation2 + $0x299] sm:$0xff]  ;;  %v7547_v13 = vld [vmem:[#allocation2 + $0x3d1] sm:$0xff] }
 0xb63   : > { %18236 = vmatpush3.bf16.xpose.msk.msra.mxu0 %vm21683_vm12, %v18234_v7  ;;  %v18315_v7 = vpack.c.bf16 %v7476_v44, %v7475_v3  ;;  %v7534_v3 = vld [vmem:[#allocation2 + $0x351] sm:$0xff]  ;;  %v7565_v44 = vld [vmem:[#allocation2 + $0x489] sm:$0xff] }
 0xb64   : > { %18287 = vmatprep.subr.msk.bf16.mxu0 %vm21683_vm12, %v18285_v4  ;;  %v7459_v4 = vld [vmem:[#allocation2 + $0x61] sm:$0xff] }
 0xb66   : > { %18284 = vmatpush3.bf16.xpose.msk.msra.mxu1 %vm21683_vm12, %v18282_v36  ;;  %v18363_v36 = vpack.c.bf16 %v7508_v56, %v7507_v11  ;;  %v7566_v11 = vld [vmem:[#allocation2 + $0x491] sm:$0xff] }
 0xb67   : > { %18335 = vmatprep.subr.msk.bf16.mxu1 %vm21683_vm12, %v18333_v6  ;;  %v7460_v6 = vld [vmem:[#allocation2 + $0x69] sm:$0xff] }
 0xb68   : > { %v18318_v26 = vpack.c.bf16 %v7460_v6, %v7459_v4  ;;  %v7518_v4 = vld [vmem:[#allocation2 + $0x2b1] sm:$0xff]  ;;  %v7549_v6 = vld [vmem:[#allocation2 + $0x3e9] sm:$0xff] }
 0xb6a   : > { %16339 = vmatmul.mubr.msk.f32.vlgmr.msra.gmra.mrb[162].mxu0 %vm720_vm0, %v23448_v29 }
 0xb6b   : > { %18290 = vmatpush3.bf16.xpose.msk.msra.mxu0 %vm21683_vm12, %v18288_v8  ;;  %16340 = vmatprep.mubr.msk.f32.mxu0 %vm720_vm0, %v23527_v46  ;;  %v18321_v8 = vpack.c.bf16 %v7478_v25, %v7477_v27  ;;  %v7536_v27 = vld [vmem:[#allocation2 + $0x361] sm:$0xff]  ;;  %v7567_v25 = vld [vmem:[#allocation2 + $0x499] sm:$0xff] }
 0xb6c   : > { %18293 = vmatprep.subr.msk.bf16.mxu0 %vm21683_vm12, %v18291_v24  ;;  %v7461_v24 = vld [vmem:[#allocation2 + $0x79] sm:$0xff] }
 0xb6d   : > { %16375 = vmatmul.mubr.msk.f32.vlgmr.msra.gmra.mrb[136].mxu1 %vm720_vm0, %v23448_v29  ;;  %v7484_v29 = vld [vmem:[#allocation2 + $0x159] sm:$0xff] }
 0xb6e   : > { %18338 = vmatpush3.bf16.xpose.msk.msra.mxu1 %vm21683_vm12, %v18336_v23  ;;  %16376 = vmatprep.mubr.msk.f32.mxu1 %vm720_vm0, %v23527_v46  ;;  %v18342_v57 = vpack.c.bf16 %v7484_v29, %v7483_v63  ;;  %v18369_v23 = vpack.c.bf16 %v7510_v1, %v7509_v32  ;;  %v7479_v63 = vld [vmem:[#allocation2 + $0x129] sm:$0xff]  ;;  %v7480_v29 = vld [vmem:[#allocation2 + $0x131] sm:$0xff]  ;;  %v7568_v32 = vld [vmem:[#allocation2 + $0x4a1] sm:$0xff] }
 0xb6f   : > { %18341 = vmatprep.subr.msk.bf16.mxu1 %vm21683_vm12, %v18339_v42  ;;  %16341 = vmatmul.mubr.msk.f32.gmra.mrb[164].mxu0 %vm720_vm0, %v23527_v46  ;;  %v7462_v42 = vld [vmem:[#allocation2 + $0x81] sm:$0xff] }
 0xb70   : > { %16410 = vmatprep.mubr.msk.f32.mxu0 %vm720_vm0, %v23620_v49  ;;  %v18324_v28 = vpack.c.bf16 %v7462_v42, %v7461_v24  ;;  %v7520_v24 = vld [vmem:[#allocation2 + $0x2c1] sm:$0xff]  ;;  %v7551_v42 = vld [vmem:[#allocation2 + $0x3f9] sm:$0xff] }
 0xb71   : > { %16377 = vmatmul.mubr.msk.f32.gmra.mrb[138].mxu1 %vm720_vm0, %v23527_v46  ;;  %v7454_v46 = vld [vmem:[#allocation2 + $0x31] sm:$0xff] }
 0xb72   : > { %16446 = vmatprep.mubr.msk.f32.mxu1 %vm720_vm0, %v23620_v49  ;;  %v18300_v2 = vpack.c.bf16 %v7454_v46, %v7453_v41  ;;  %v7495_v41 = vld [vmem:[#allocation2 + $0x1c9] sm:$0xff]  ;;  %v7496_v46 = vld [vmem:[#allocation2 + $0x1d1] sm:$0xff] }
 0xb73   : > { %18296 = vmatpush3.bf16.xpose.msk.msra.mxu0 %vm21683_vm12, %v18294_v14  ;;  %v18327_v14 = vpack.c.bf16 %v7480_v29, %v7479_v63  ;;  %v18378_v22 = vpack.c.bf16 %v7496_v46, %v7495_v41  ;;  %v7538_v63 = vld [vmem:[#allocation2 + $0x379] sm:$0xff]  ;;  %v7569_v29 = vld [vmem:[#allocation2 + $0x4b1] sm:$0xff]  ;;  %v7539_v46 = vld [vmem:[#allocation2 + $0x381] sm:$0xff] }
 0xb74   : > { %18299 = vmatprep.subr.msk.bf16.mxu0 %vm21683_vm12, %v18297_v0  ;;  %v7463_v0 = vld [vmem:[#allocation2 + $0x89] sm:$0xff]  ;;  %v7554_v41 = vld [vmem:[#allocation2 + $0x419] sm:$0xff] }
 0xb76   : > { %18344 = vmatpush3.bf16.xpose.msk.msra.mxu1 %vm21683_vm12, %v18342_v57  ;;  %v18375_v57 = vpack.c.bf16 %v7512_v5, %v7511_v18  ;;  %v7570_v18 = vld [vmem:[#allocation2 + $0x4b9] sm:$0xff] }
 0xb77   : > { %18347 = vmatprep.subr.msk.bf16.mxu1 %vm21683_vm12, %v18345_v30  ;;  %v7464_v30 = vld [vmem:[#allocation2 + $0x91] sm:$0xff] }
 0xb78   : > { %v18330_v20 = vpack.c.bf16 %v7464_v30, %v7463_v0  ;;  %v7522_v0 = vld [vmem:[#allocation2 + $0x2d9] sm:$0xff]  ;;  %v7553_v30 = vld [vmem:[#allocation2 + $0x411] sm:$0xff] }
 0xb7b   : > { %18302 = vmatpush3.bf16.xpose.msk.msra.mxu0 %vm21683_vm12, %v18300_v2  ;;  %v18381_v2 = vpack.c.bf16 %v7530_v38, %v7529_v52  ;;  %v7540_v52 = vld [vmem:[#allocation2 + $0x389] sm:$0xff]  ;;  %v7571_v38 = vld [vmem:[#allocation2 + $0x4c1] sm:$0xff] }
 0xb7c   : > { %18305 = vmatprep.subr.msk.bf16.mxu0 %vm21683_vm12, %v18303_v51  ;;  %v7513_v51 = vld [vmem:[#allocation2 + $0x281] sm:$0xff] }
 0xb7e   : > { %18350 = vmatpush3.bf16.xpose.msk.msra.mxu1 %vm21683_vm12, %v18348_v62  ;;  %v18429_v62 = vpack.c.bf16 %v7562_v45, %v7561_v19  ;;  %v7572_v19 = vld [vmem:[#allocation2 + $0x4c9] sm:$0xff] }
 0xb7f   : > { %18353 = vmatprep.subr.msk.bf16.mxu1 %vm21683_vm12, %v18351_v53  ;;  %v7514_v53 = vld [vmem:[#allocation2 + $0x289] sm:$0xff] }
 0xb80   : > { %v18384_v34 = vpack.c.bf16 %v7514_v53, %v7513_v51  ;;  %v7524_v51 = vld [vmem:[#allocation2 + $0x2e9] sm:$0xff]  ;;  %v7555_v53 = vld [vmem:[#allocation2 + $0x421] sm:$0xff] }
 0xb83   : > { %18308 = vmatpush3.bf16.xpose.msk.msra.mxu0 %vm21683_vm12, %v18306_v17  ;;  %v18387_v17 = vpack.c.bf16 %v7532_v47, %v7531_v16  ;;  %v7542_v16 = vld [vmem:[#allocation2 + $0x3a1] sm:$0xff]  ;;  %v7573_v47 = vld [vmem:[#allocation2 + $0x4d9] sm:$0xff] }
 0xb84   : > { %18311 = vmatprep.subr.msk.bf16.mxu0 %vm21683_vm12, %v18309_v54  ;;  %v23697_v54 = vld [vmem:[%s25057_s9 + $0x18] sm:$0xff] }
 0xb86   : > { %18356 = vmatpush3.bf16.xpose.msk.msra.mxu1 %vm21683_vm12, %v18354_v21  ;;  %v18435_v21 = vpack.c.bf16 %v7564_v59, %v7563_v43  ;;  %v7574_v43 = vld [vmem:[#allocation2 + $0x4e1] sm:$0xff] }
 0xb87   : > { %18359 = vmatprep.subr.msk.bf16.mxu1 %vm21683_vm12, %v18357_v37  ;;  %v7515_v37 = vld [vmem:[#allocation2 + $0x291] sm:$0xff] }
 0xb88   : > { %v18390_v56 = vpack.c.bf16 %v7516_v10, %v7515_v37  ;;  %v7526_v37 = vld [vmem:[#allocation2 + $0x301] sm:$0xff]  ;;  %v7557_v10 = vld [vmem:[#allocation2 + $0x439] sm:$0xff] }
 0xb8b   : > { %18314 = vmatpush3.bf16.xpose.msk.msra.mxu0 %vm21683_vm12, %v18312_v48  ;;  %v18438_v48 = vpack.c.bf16 %v7548_v31, %v7547_v13  ;;  %v7558_v13 = vld [vmem:[#allocation2 + $0x441] sm:$0xff]  ;;  %v7543_v31 = vld [vmem:[#allocation2 + $0x3a9] sm:$0xff] }
 0xb8c   : > { %18317 = vmatprep.subr.msk.bf16.mxu0 %vm21683_vm12, %v18315_v7  ;;  %v18441_v7 = vpack.c.bf16 %v7566_v11, %v7565_v44  ;;  %v7576_v44 = vld [vmem:[#allocation2 + $0x4f1] sm:$0xff] }
 0xb8e   : > { %18362 = vmatpush3.bf16.xpose.msk.msra.mxu1 %vm21683_vm12, %v18360_v15  ;;  %v18393_v15 = vpack.c.bf16 %v7534_v3, %v7533_v39  ;;  %v7544_v39 = vld [vmem:[#allocation2 + $0x3b1] sm:$0xff]  ;;  %v7575_v3 = vld [vmem:[#allocation2 + $0x4e9] sm:$0xff] }
 0xb8f   : > { %18365 = vmatprep.subr.msk.bf16.mxu1 %vm21683_vm12, %v18363_v36  ;;  %v7517_v36 = vld [vmem:[#allocation2 + $0x2a9] sm:$0xff] }
 0xb90   : > { %v18396_v1 = vpack.c.bf16 %v7518_v4, %v7517_v36  ;;  %v7528_v36 = vld [vmem:[#allocation2 + $0x311] sm:$0xff]  ;;  %v7559_v4 = vld [vmem:[#allocation2 + $0x449] sm:$0xff] }
 0xb93   : > { %18320 = vmatpush3.bf16.xpose.msk.msra.mxu0 %vm21683_vm12, %v18318_v26  ;;  %v18444_v26 = vpack.c.bf16 %v7550_v61, %v7549_v6  ;;  %v7560_v6 = vld [vmem:[#allocation2 + $0x451] sm:$0xff]  ;;  %v8310_v61 = vld [vmem:[#allocation2 + $0xa2] sm:$0xff] }
 0xb94   : > { %18323 = vmatprep.subr.msk.bf16.mxu0 %vm21683_vm12, %v18321_v8  ;;  %v18447_v8 = vpack.c.bf16 %v7568_v32, %v7567_v25  ;;  %v8343_v25 = vld [vmem:[#allocation2 + $0x1ea] sm:$0xff] }
 0xb96   : > { %18368 = vmatpush3.bf16.xpose.msk.msra.mxu1 %vm21683_vm12, %v18366_v9  ;;  %v18399_v9 = vpack.c.bf16 %v7536_v27, %v7535_v60  ;;  %v8311_v60 = vld [vmem:[#allocation2 + $0xaa] sm:$0xff]  ;;  %v8342_v27 = vld [vmem:[#allocation2 + $0x1e2] sm:$0xff] }
 0xb97   : > { %18371 = vmatprep.subr.msk.bf16.mxu1 %vm21683_vm12, %v18369_v23  ;;  %v7519_v23 = vld [vmem:[#allocation2 + $0x2b9] sm:$0xff] }
 0xb98   : > { %v18402_v5 = vpack.c.bf16 %v7520_v24, %v7519_v23  ;;  %v8295_v23 = vld [vmem:[#allocation2 + $0xa] sm:$0xff]  ;;  %v8326_v24 = vld [vmem:[#allocation2 + $0x142] sm:$0xff] }
 0xb9b   : > { %18326 = vmatpush3.bf16.xpose.msk.msra.mxu0 %vm21683_vm12, %v18324_v28  ;;  %v18450_v28 = vpack.c.bf16 %v7552_v40, %v7551_v42  ;;  %v8327_v42 = vld [vmem:[#allocation2 + $0x14a] sm:$0xff]  ;;  %v8312_v40 = vld [vmem:[#allocation2 + $0xb2] sm:$0xff] }
 0xb9c   : > { %18329 = vmatprep.subr.msk.bf16.mxu0 %vm21683_vm12, %v18327_v14  ;;  %v18453_v14 = vpack.c.bf16 %v7570_v18, %v7569_v29  ;;  %v8345_v29 = vld [vmem:[#allocation2 + $0x1fa] sm:$0xff] }
 0xb9e   : > { %18374 = vmatpush3.bf16.xpose.msk.msra.mxu1 %vm21683_vm12, %v18372_v50  ;;  %v18405_v50 = vpack.c.bf16 %v7538_v63, %v7537_v12  ;;  %v8313_v12 = vld [vmem:[#allocation2 + $0xba] sm:$0xff]  ;;  %v8344_v63 = vld [vmem:[#allocation2 + $0x1f2] sm:$0xff] }
 0xb9f   : > { %18377 = vmatprep.subr.msk.bf16.mxu1 %vm21683_vm12, %v18375_v57  ;;  %v7521_v57 = vld [vmem:[#allocation2 + $0x2d1] sm:$0xff] }
 0xba0   : > { %v18408_v45 = vpack.c.bf16 %v7522_v0, %v7521_v57  ;;  %v8297_v57 = vld [vmem:[#allocation2 + $0x1a] sm:$0xff]  ;;  %v8328_v0 = vld [vmem:[#allocation2 + $0x152] sm:$0xff] }
 0xba3   : > { %18332 = vmatpush3.bf16.xpose.msk.msra.mxu0 %vm21683_vm12, %v18330_v20  ;;  %v18456_v20 = vpack.c.bf16 %v7554_v41, %v7553_v30  ;;  %v23790_v30 = vld [vmem:[%s25057_s9 + $0x20] sm:$0xff]  ;;  %v8314_v41 = vld [vmem:[#allocation2 + $0xca] sm:$0xff] }
 0xba4   : > { %18383 = vmatprep.subr.msk.bf16.mxu0 %vm21683_vm12, %v18381_v2  ;;  %v18459_v2 = vpack.c.bf16 %v7572_v19, %v7571_v38  ;;  %v8347_v38 = vld [vmem:[#allocation2 + $0x212] sm:$0xff] }
 0xba6   : > { %18380 = vmatpush3.bf16.xpose.msk.msra.mxu1 %vm21683_vm12, %v18378_v22  ;;  %v18411_v22 = vpack.c.bf16 %v7540_v52, %v7539_v46  ;;  %v8315_v46 = vld [vmem:[#allocation2 + $0xd2] sm:$0xff]  ;;  %v8346_v52 = vld [vmem:[#allocation2 + $0x20a] sm:$0xff] }
 0xba7   : > { %18431 = vmatprep.subr.msk.bf16.mxu1 %vm21683_vm12, %v18429_v62  ;;  %v7523_v62 = vld [vmem:[#allocation2 + $0x2e1] sm:$0xff] }
 0xba8   : > { %v18414_v59 = vpack.c.bf16 %v7524_v51, %v7523_v62  ;;  %v8330_v62 = vld [vmem:[#allocation2 + $0x16a] sm:$0xff]  ;;  %v8331_v51 = vld [vmem:[#allocation2 + $0x172] sm:$0xff] }
 0xbaa   : > { %16411 = vmatmul.mubr.msk.f32.vlgmr.msra.gmra.mrb[158].mxu0 %vm720_vm0, %v23620_v49 }
 0xbab   : > { %18386 = vmatpush3.bf16.xpose.msk.msra.mxu0 %vm21683_vm12, %v18384_v34  ;;  %16412 = vmatprep.mubr.msk.f32.mxu0 %vm720_vm0, %v23697_v54  ;;  %v18462_v34 = vpack.c.bf16 %v7556_v33, %v7555_v53  ;;  %v8316_v53 = vld [vmem:[#allocation2 + $0xda] sm:$0xff]  ;;  %v8317_v33 = vld [vmem:[#allocation2 + $0xe2] sm:$0xff] }
 0xbac   : > { %18389 = vmatprep.subr.msk.bf16.mxu0 %vm21683_vm12, %v18387_v17  ;;  %v18465_v17 = vpack.c.bf16 %v7574_v43, %v7573_v47  ;;  %v18540_v43 = vpack.c.bf16 %v8331_v51, %v8330_v62  ;;  %v8374_v62 = vld [vmem:[#allocation2 + $0x322] sm:$0xff]  ;;  %v8375_v51 = vld [vmem:[#allocation2 + $0x32a] sm:$0xff] }
 0xbad   : > { %16447 = vmatmul.mubr.msk.f32.vlgmr.msra.gmra.mrb[132].mxu1 %vm720_vm0, %v23620_v49 }
 0xbae   : > { %18434 = vmatpush3.bf16.xpose.msk.msra.mxu1 %vm21683_vm12, %v18432_v35  ;;  %16448 = vmatprep.mubr.msk.f32.mxu1 %vm720_vm0, %v23697_v54  ;;  %v18417_v35 = vpack.c.bf16 %v7542_v16, %v7541_v55  ;;  %v8348_v55 = vld [vmem:[#allocation2 + $0x21a] sm:$0xff]  ;;  %v8349_v16 = vld [vmem:[#allocation2 + $0x222] sm:$0xff] }
 0xbaf   : > { %18437 = vmatprep.subr.msk.bf16.mxu1 %vm21683_vm12, %v18435_v21  ;;  %16413 = vmatmul.mubr.msk.f32.gmra.mrb[160].mxu0 %vm720_vm0, %v23697_v54  ;;  %v7525_v21 = vld [vmem:[#allocation2 + $0x2f9] sm:$0xff] }
 0xbb0   : > { %16482 = vmatprep.mubr.msk.f32.mxu0 %vm720_vm0, %v23620_v49  ;;  %v18420_v11 = vpack.c.bf16 %v7526_v37, %v7525_v21  ;;  %v8332_v21 = vld [vmem:[#allocation2 + $0x17a] sm:$0xff]  ;;  %v8333_v37 = vld [vmem:[#allocation2 + $0x182] sm:$0xff] }
 0xbb1   : > { %16449 = vmatmul.mubr.msk.f32.gmra.mrb[134].mxu1 %vm720_vm0, %v23697_v54 }
 0xbb2   : > { %16518 = vmatprep.mubr.msk.f32.mxu1 %vm720_vm0, %v23620_v49 }
 0xbb3   : > { %18392 = vmatpush3.bf16.xpose.msk.msra.mxu0 %vm21683_vm12, %v18390_v56  ;;  %v18468_v56 = vpack.c.bf16 %v7558_v13, %v7557_v10  ;;  %v8318_v10 = vld [vmem:[#allocation2 + $0xf2] sm:$0xff]  ;;  %v8319_v13 = vld [vmem:[#allocation2 + $0xfa] sm:$0xff] }
 0xbb4   : > { %18395 = vmatprep.subr.msk.bf16.mxu0 %vm21683_vm12, %v18393_v15  ;;  %v18471_v15 = vpack.c.bf16 %v7576_v44, %v7575_v3  ;;  %v18546_v44 = vpack.c.bf16 %v8333_v37, %v8332_v21  ;;  %v8376_v21 = vld [vmem:[#allocation2 + $0x332] sm:$0xff]  ;;  %v8377_v37 = vld [vmem:[#allocation2 + $0x33a] sm:$0xff] }
 0xbb6   : > { %18440 = vmatpush3.bf16.xpose.msk.msra.mxu1 %vm21683_vm12, %v18438_v48  ;;  %v18423_v48 = vpack.c.bf16 %v7544_v39, %v7543_v31  ;;  %v8350_v31 = vld [vmem:[#allocation2 + $0x232] sm:$0xff]  ;;  %v8351_v39 = vld [vmem:[#allocation2 + $0x23a] sm:$0xff] }
 0xbb7   : > { %18443 = vmatprep.subr.msk.bf16.mxu1 %vm21683_vm12, %v18441_v7  ;;  %v7527_v7 = vld [vmem:[#allocation2 + $0x309] sm:$0xff] }
 0xbb8   : > { %v18426_v32 = vpack.c.bf16 %v7528_v36, %v7527_v7  ;;  %v8334_v7 = vld [vmem:[#allocation2 + $0x192] sm:$0xff]  ;;  %v8335_v36 = vld [vmem:[#allocation2 + $0x19a] sm:$0xff] }
 0xbbb   : > { %18398 = vmatpush3.bf16.xpose.msk.msra.mxu0 %vm21683_vm12, %v18396_v1  ;;  %v18474_v1 = vpack.c.bf16 %v7560_v6, %v7559_v4  ;;  %v8320_v4 = vld [vmem:[#allocation2 + $0x102] sm:$0xff]  ;;  %v8321_v6 = vld [vmem:[#allocation2 + $0x10a] sm:$0xff] }
 0xbbc   : > { %18401 = vmatprep.subr.msk.bf16.mxu0 %vm21683_vm12, %v18399_v9  ;;  %v18525_v9 = vpack.c.bf16 %v8343_v25, %v8342_v27  ;;  %v18552_v25 = vpack.c.bf16 %v8335_v36, %v8334_v7  ;;  %v8393_v7 = vld [vmem:[#allocation2 + $0x3da] sm:$0xff]  ;;  %v8378_v36 = vld [vmem:[#allocation2 + $0x34a] sm:$0xff] }
 0xbbe   : > { %18446 = vmatpush3.bf16.xpose.msk.msra.mxu1 %vm21683_vm12, %v18444_v26  ;;  %v18477_v26 = vpack.c.bf16 %v8311_v60, %v8310_v61  ;;  %v8352_v61 = vld [vmem:[#allocation2 + $0x242] sm:$0xff]  ;;  %v8353_v60 = vld [vmem:[#allocation2 + $0x24a] sm:$0xff] }
 0xbbf   : > { %18449 = vmatprep.subr.msk.bf16.mxu1 %vm21683_vm12, %v18447_v8  ;;  %v8294_v8 = vld [vmem:[#allocation2 + $0x2] sm:$0xff] }
 0xbc0   : > { %v18480_v18 = vpack.c.bf16 %v8295_v23, %v8294_v8  ;;  %v8336_v8 = vld [vmem:[#allocation2 + $0x1a2] sm:$0xff]  ;;  %v8337_v23 = vld [vmem:[#allocation2 + $0x1aa] sm:$0xff] }
 0xbc3   : > { %18404 = vmatpush3.bf16.xpose.msk.msra.mxu0 %vm21683_vm12, %v18402_v5  ;;  %v18528_v5 = vpack.c.bf16 %v8327_v42, %v8326_v24  ;;  %v8322_v24 = vld [vmem:[#allocation2 + $0x11a] sm:$0xff]  ;;  %v8323_v42 = vld [vmem:[#allocation2 + $0x122] sm:$0xff] }
 0xbc4   : > { %18407 = vmatprep.subr.msk.bf16.mxu0 %vm21683_vm12, %v18405_v50  ;;  %v18531_v50 = vpack.c.bf16 %v8345_v29, %v8344_v63  ;;  %v18558_v29 = vpack.c.bf16 %v8337_v23, %v8336_v8  ;;  %v8395_v8 = vld [vmem:[#allocation2 + $0x3f2] sm:$0xff]  ;;  %v8380_v23 = vld [vmem:[#allocation2 + $0x35a] sm:$0xff] }
 0xbc6   : > { %18452 = vmatpush3.bf16.xpose.msk.msra.mxu1 %vm21683_vm12, %v18450_v28  ;;  %v18483_v28 = vpack.c.bf16 %v8313_v12, %v8312_v40  ;;  %v8354_v40 = vld [vmem:[#allocation2 + $0x25a] sm:$0xff]  ;;  %v8355_v12 = vld [vmem:[#allocation2 + $0x262] sm:$0xff] }
 0xbc7   : > { %18455 = vmatprep.subr.msk.bf16.mxu1 %vm21683_vm12, %v18453_v14  ;;  %v8296_v14 = vld [vmem:[#allocation2 + $0x12] sm:$0xff] }
 0xbc8   : > { %v18486_v19 = vpack.c.bf16 %v8297_v57, %v8296_v14  ;;  %v8338_v14 = vld [vmem:[#allocation2 + $0x1ba] sm:$0xff]  ;;  %v8339_v57 = vld [vmem:[#allocation2 + $0x1c2] sm:$0xff] }
 0xbcb   : > { %18410 = vmatpush3.bf16.xpose.msk.msra.mxu0 %vm21683_vm12, %v18408_v45 }
 0xbcc   : > { %18413 = vmatprep.subr.msk.bf16.mxu0 %vm21683_vm12, %v18411_v22  ;;  %v18537_v22 = vpack.c.bf16 %v8347_v38, %v8346_v52  ;;  %v18564_v38 = vpack.c.bf16 %v8339_v57, %v8338_v14  ;;  %v8397_v14 = vld [vmem:[#allocation2 + $0x402] sm:$0xff]  ;;  %v8382_v57 = vld [vmem:[#allocation2 + $0x372] sm:$0xff] }
 0xbce   : > { %18458 = vmatpush3.bf16.xpose.msk.msra.mxu1 %vm21683_vm12, %v18456_v20  ;;  %v18489_v20 = vpack.c.bf16 %v8315_v46, %v8314_v41  ;;  %v8356_v41 = vld [vmem:[#allocation2 + $0x26a] sm:$0xff]  ;;  %v8357_v46 = vld [vmem:[#allocation2 + $0x272] sm:$0xff] }
 0xbcf   : > { %18461 = vmatprep.subr.msk.bf16.mxu1 %vm21683_vm12, %v18459_v2  ;;  %v8298_v2 = vld [vmem:[#allocation2 + $0x2a] sm:$0xff] }
 0xbd3   : > { %18416 = vmatpush3.bf16.xpose.msk.msra.mxu0 %vm21683_vm12, %v18414_v59  ;;  %v18495_v59 = vpack.c.bf16 %v8317_v33, %v8316_v53  ;;  %v8406_v53 = vld [vmem:[#allocation2 + $0x462] sm:$0xff]  ;;  %v8407_v33 = vld [vmem:[#allocation2 + $0x46a] sm:$0xff] }
 0xbd4   : > { %18419 = vmatprep.subr.msk.bf16.mxu0 %vm21683_vm12, %v18417_v35  ;;  %v8300_v35 = vld [vmem:[#allocation2 + $0x3a] sm:$0xff] }
 0xbd6   : > { %18464 = vmatpush3.bf16.xpose.msk.msra.mxu1 %vm21683_vm12, %v18462_v34  ;;  %v18543_v34 = vpack.c.bf16 %v8349_v16, %v8348_v55 }
 0xbd7   : > { %18467 = vmatprep.subr.msk.bf16.mxu1 %vm21683_vm12, %v18465_v17  ;;  %v8301_v17 = vld [vmem:[#allocation2 + $0x42] sm:$0xff] }
 0xbd8   : > { %v18498_v3 = vpack.c.bf16 %v8301_v17, %v8300_v35  ;;  %v8390_v35 = vld [vmem:[#allocation2 + $0x3c2] sm:$0xff]  ;;  %v8391_v17 = vld [vmem:[#allocation2 + $0x3ca] sm:$0xff] }
 0xbdb   : > { %18422 = vmatpush3.bf16.xpose.msk.msra.mxu0 %vm21683_vm12, %v18420_v11  ;;  %v18501_v11 = vpack.c.bf16 %v8319_v13, %v8318_v10  ;;  %v8408_v10 = vld [vmem:[#allocation2 + $0x472] sm:$0xff]  ;;  %v8409_v13 = vld [vmem:[#allocation2 + $0x47a] sm:$0xff] }
 0xbdc   : > { %18425 = vmatprep.subr.msk.bf16.mxu0 %vm21683_vm12, %v18423_v48  ;;  %v8302_v48 = vld [vmem:[#allocation2 + $0x52] sm:$0xff] }
 0xbde   : > { %18470 = vmatpush3.bf16.xpose.msk.msra.mxu1 %vm21683_vm12, %v18468_v56  ;;  %v18549_v56 = vpack.c.bf16 %v8351_v39, %v8350_v31  ;;  %v18624_v39 = vpack.c.bf16 %v8391_v17, %v8390_v35  ;;  %v8401_v35 = vld [vmem:[#allocation2 + $0x42a] sm:$0xff]  ;;  %v8386_v17 = vld [vmem:[#allocation2 + $0x39a] sm:$0xff] }
 0xbdf   : > { %18473 = vmatprep.subr.msk.bf16.mxu1 %vm21683_vm12, %v18471_v15  ;;  %v8303_v15 = vld [vmem:[#allocation2 + $0x5a] sm:$0xff] }
 0xbe0   : > { %v18504_v27 = vpack.c.bf16 %v8303_v15, %v8302_v48  ;;  %v8361_v48 = vld [vmem:[#allocation2 + $0x29a] sm:$0xff]  ;;  %v8392_v15 = vld [vmem:[#allocation2 + $0x3d2] sm:$0xff] }
 0xbe3   : > { %18428 = vmatpush3.bf16.xpose.msk.msra.mxu0 %vm21683_vm12, %v18426_v32  ;;  %v18507_v32 = vpack.c.bf16 %v8321_v6, %v8320_v4  ;;  %v8379_v4 = vld [vmem:[#allocation2 + $0x352] sm:$0xff]  ;;  %v8410_v6 = vld [vmem:[#allocation2 + $0x48a] sm:$0xff] }
 0xbe4   : > { %18479 = vmatprep.subr.msk.bf16.mxu0 %vm21683_vm12, %v18477_v26  ;;  %v8304_v26 = vld [vmem:[#allocation2 + $0x62] sm:$0xff] }
 0xbe6   : > { %18476 = vmatpush3.bf16.xpose.msk.msra.mxu1 %vm21683_vm12, %v18474_v1  ;;  %v18555_v1 = vpack.c.bf16 %v8353_v60, %v8352_v61  ;;  %v8411_v61 = vld [vmem:[#allocation2 + $0x492] sm:$0xff] }
 0xbe7   : > { %18527 = vmatprep.subr.msk.bf16.mxu1 %vm21683_vm12, %v18525_v9  ;;  %v8305_v9 = vld [vmem:[#allocation2 + $0x6a] sm:$0xff] }
 0xbe8   : > { %v18510_v63 = vpack.c.bf16 %v8305_v9, %v8304_v26  ;;  %v8363_v26 = vld [vmem:[#allocation2 + $0x2b2] sm:$0xff]  ;;  %v8394_v9 = vld [vmem:[#allocation2 + $0x3ea] sm:$0xff] }
 0xbea   : > { %16483 = vmatmul.mubr.msk.f32.vlgmr.msra.gmra.mrb[162].mxu0 %vm720_vm0, %v23620_v49 }
 0xbeb   : > { %18482 = vmatpush3.bf16.xpose.msk.msra.mxu0 %vm21683_vm12, %v18480_v18  ;;  %16484 = vmatprep.mubr.msk.f32.mxu0 %vm720_vm0, %v23697_v54  ;;  %v18513_v18 = vpack.c.bf16 %v8323_v42, %v8322_v24  ;;  %v8381_v24 = vld [vmem:[#allocation2 + $0x362] sm:$0xff]  ;;  %v8412_v42 = vld [vmem:[#allocation2 + $0x49a] sm:$0xff] }
 0xbec   : > { %18485 = vmatprep.subr.msk.bf16.mxu0 %vm21683_vm12, %v18483_v28  ;;  %v8306_v28 = vld [vmem:[#allocation2 + $0x7a] sm:$0xff] }
 0xbed   : > { %16519 = vmatmul.mubr.msk.f32.vlgmr.msra.gmra.mrb[136].mxu1 %vm720_vm0, %v23620_v49  ;;  %v8329_v49 = vld [vmem:[#allocation2 + $0x15a] sm:$0xff] }
 0xbee   : > { %18530 = vmatpush3.bf16.xpose.msk.msra.mxu1 %vm21683_vm12, %v18528_v5  ;;  %16520 = vmatprep.mubr.msk.f32.mxu1 %vm720_vm0, %v23697_v54  ;;  %v18534_v45 = vpack.c.bf16 %v8329_v49, %v8328_v0  ;;  %v18561_v5 = vpack.c.bf16 %v8355_v12, %v8354_v40  ;;  %v8324_v0 = vld [vmem:[#allocation2 + $0x12a] sm:$0xff]  ;;  %v8325_v49 = vld [vmem:[#allocation2 + $0x132] sm:$0xff]  ;;  %v8413_v40 = vld [vmem:[#allocation2 + $0x4a2] sm:$0xff] }
 0xbef   : > { %18533 = vmatprep.subr.msk.bf16.mxu1 %vm21683_vm12, %v18531_v50  ;;  %16485 = vmatmul.mubr.msk.f32.gmra.mrb[164].mxu0 %vm720_vm0, %v23697_v54  ;;  %v8307_v50 = vld [vmem:[#allocation2 + $0x82] sm:$0xff] }
 0xbf0   : > { %16554 = vmatprep.mubr.msk.f32.mxu0 %vm720_vm0, %v23790_v30  ;;  %v18516_v52 = vpack.c.bf16 %v8307_v50, %v8306_v28  ;;  %v8365_v28 = vld [vmem:[#allocation2 + $0x2c2] sm:$0xff]  ;;  %v8396_v50 = vld [vmem:[#allocation2 + $0x3fa] sm:$0xff] }
 0xbf1   : > { %16521 = vmatmul.mubr.msk.f32.gmra.mrb[138].mxu1 %vm720_vm0, %v23697_v54  ;;  %v8299_v54 = vld [vmem:[#allocation2 + $0x32] sm:$0xff] }
 0xbf2   : > { %16590 = vmatprep.mubr.msk.f32.mxu1 %vm720_vm0, %v23790_v30  ;;  %v18492_v47 = vpack.c.bf16 %v8299_v54, %v8298_v2  ;;  %v8340_v2 = vld [vmem:[#allocation2 + $0x1ca] sm:$0xff]  ;;  %v8341_v54 = vld [vmem:[#allocation2 + $0x1d2] sm:$0xff] }
 0xbf3   : > { %18488 = vmatpush3.bf16.xpose.msk.msra.mxu0 %vm21683_vm12, %v18486_v19  ;;  %v18519_v19 = vpack.c.bf16 %v8325_v49, %v8324_v0  ;;  %v18570_v16 = vpack.c.bf16 %v8341_v54, %v8340_v2  ;;  %v8383_v0 = vld [vmem:[#allocation2 + $0x37a] sm:$0xff]  ;;  %v8414_v49 = vld [vmem:[#allocation2 + $0x4b2] sm:$0xff]  ;;  %v8384_v54 = vld [vmem:[#allocation2 + $0x382] sm:$0xff] }
 0xbf4   : > { %18491 = vmatprep.subr.msk.bf16.mxu0 %vm21683_vm12, %v18489_v20  ;;  %v8308_v20 = vld [vmem:[#allocation2 + $0x8a] sm:$0xff]  ;;  %v8399_v2 = vld [vmem:[#allocation2 + $0x41a] sm:$0xff] }
 0xbf6   : > { %18536 = vmatpush3.bf16.xpose.msk.msra.mxu1 %vm21683_vm12, %v18534_v45  ;;  %v18567_v45 = vpack.c.bf16 %v8357_v46, %v8356_v41  ;;  %v8415_v41 = vld [vmem:[#allocation2 + $0x4ba] sm:$0xff] }
 0xbf7   : > { %18539 = vmatprep.subr.msk.bf16.mxu1 %vm21683_vm12, %v18537_v22  ;;  %v8309_v22 = vld [vmem:[#allocation2 + $0x92] sm:$0xff] }
 0xbf8   : > { %v18522_v55 = vpack.c.bf16 %v8309_v22, %v8308_v20  ;;  %v8367_v20 = vld [vmem:[#allocation2 + $0x2da] sm:$0xff]  ;;  %v8398_v22 = vld [vmem:[#allocation2 + $0x412] sm:$0xff] }
 0xbfb   : > { %18494 = vmatpush3.bf16.xpose.msk.msra.mxu0 %vm21683_vm12, %v18492_v47  ;;  %v18573_v47 = vpack.c.bf16 %v8375_v51, %v8374_v62  ;;  %v8385_v62 = vld [vmem:[#allocation2 + $0x38a] sm:$0xff]  ;;  %v8416_v51 = vld [vmem:[#allocation2 + $0x4c2] sm:$0xff] }
 0xbfc   : > { %18497 = vmatprep.subr.msk.bf16.mxu0 %vm21683_vm12, %v18495_v59  ;;  %v8358_v59 = vld [vmem:[#allocation2 + $0x282] sm:$0xff] }
 0xbfe   : > { %18542 = vmatpush3.bf16.xpose.msk.msra.mxu1 %vm21683_vm12, %v18540_v43  ;;  %v18621_v43 = vpack.c.bf16 %v8407_v33, %v8406_v53  ;;  %v8417_v53 = vld [vmem:[#allocation2 + $0x4ca] sm:$0xff] }
 0xbff   : > { %18545 = vmatprep.subr.msk.bf16.mxu1 %vm21683_vm12, %v18543_v34  ;;  %v8359_v34 = vld [vmem:[#allocation2 + $0x28a] sm:$0xff] }
 0xc00   : > { %v18576_v31 = vpack.c.bf16 %v8359_v34, %v8358_v59  ;;  %v8369_v59 = vld [vmem:[#allocation2 + $0x2ea] sm:$0xff]  ;;  %v8400_v34 = vld [vmem:[#allocation2 + $0x422] sm:$0xff] }
 0xc03   : > { %18500 = vmatpush3.bf16.xpose.msk.msra.mxu0 %vm21683_vm12, %v18498_v3  ;;  %v18579_v3 = vpack.c.bf16 %v8377_v37, %v8376_v21  ;;  %v8387_v21 = vld [vmem:[#allocation2 + $0x3a2] sm:$0xff]  ;;  %v8418_v37 = vld [vmem:[#allocation2 + $0x4da] sm:$0xff] }
 0xc04   : > { %18503 = vmatprep.subr.msk.bf16.mxu0 %vm21683_vm12, %v18501_v11  ;;  %v23867_v11 = vld [vmem:[%s25057_s9 + $0x28] sm:$0xff] }
 0xc06   : > { %18548 = vmatpush3.bf16.xpose.msk.msra.mxu1 %vm21683_vm12, %v18546_v44  ;;  %v18627_v44 = vpack.c.bf16 %v8409_v13, %v8408_v10  ;;  %v8419_v10 = vld [vmem:[#allocation2 + $0x4e2] sm:$0xff] }
 0xc07   : > { %18551 = vmatprep.subr.msk.bf16.mxu1 %vm21683_vm12, %v18549_v56  ;;  %v8360_v56 = vld [vmem:[#allocation2 + $0x292] sm:$0xff] }
 0xc08   : > { %v18582_v60 = vpack.c.bf16 %v8361_v48, %v8360_v56  ;;  %v8371_v56 = vld [vmem:[#allocation2 + $0x302] sm:$0xff]  ;;  %v8402_v48 = vld [vmem:[#allocation2 + $0x43a] sm:$0xff] }
 0xc0b   : > { %18506 = vmatpush3.bf16.xpose.msk.msra.mxu0 %vm21683_vm12, %v18504_v27  ;;  %v18630_v27 = vpack.c.bf16 %v8393_v7, %v8392_v15  ;;  %v8403_v15 = vld [vmem:[#allocation2 + $0x442] sm:$0xff]  ;;  %v8388_v7 = vld [vmem:[#allocation2 + $0x3aa] sm:$0xff] }
 0xc0c   : > { %18509 = vmatprep.subr.msk.bf16.mxu0 %vm21683_vm12, %v18507_v32  ;;  %v18633_v32 = vpack.c.bf16 %v8411_v61, %v8410_v6  ;;  %v8421_v6 = vld [vmem:[#allocation2 + $0x4f2] sm:$0xff] }
 0xc0e   : > { %18554 = vmatpush3.bf16.xpose.msk.msra.mxu1 %vm21683_vm12, %v18552_v25  ;;  %v18585_v25 = vpack.c.bf16 %v8379_v4, %v8378_v36  ;;  %v8389_v36 = vld [vmem:[#allocation2 + $0x3b2] sm:$0xff]  ;;  %v8420_v4 = vld [vmem:[#allocation2 + $0x4ea] sm:$0xff] }
 0xc0f   : > { %18557 = vmatprep.subr.msk.bf16.mxu1 %vm21683_vm12, %v18555_v1  ;;  %v8362_v1 = vld [vmem:[#allocation2 + $0x2aa] sm:$0xff] }
 0xc10   : > { %v18588_v12 = vpack.c.bf16 %v8363_v26, %v8362_v1  ;;  %v8373_v1 = vld [vmem:[#allocation2 + $0x312] sm:$0xff]  ;;  %v8404_v26 = vld [vmem:[#allocation2 + $0x44a] sm:$0xff] }
 0xc13   : > { %18512 = vmatpush3.bf16.xpose.msk.msra.mxu0 %vm21683_vm12, %v18510_v63  ;;  %v18636_v63 = vpack.c.bf16 %v8395_v8, %v8394_v9  ;;  %v8405_v9 = vld [vmem:[#allocation2 + $0x452] sm:$0xff]  ;;  %v9155_v8 = vld [vmem:[#allocation2 + $0xc8] sm:$0xff] }
 0xc14   : > { %18515 = vmatprep.subr.msk.bf16.mxu0 %vm21683_vm12, %v18513_v18  ;;  %v18639_v18 = vpack.c.bf16 %v8413_v40, %v8412_v42  ;;  %v9188_v42 = vld [vmem:[#allocation2 + $0x210] sm:$0xff] }
 0xc16   : > { %18560 = vmatpush3.bf16.xpose.msk.msra.mxu1 %vm21683_vm12, %v18558_v29  ;;  %v18591_v29 = vpack.c.bf16 %v8381_v24, %v8380_v23  ;;  %v9156_v23 = vld [vmem:[#allocation2 + $0xd0] sm:$0xff]  ;;  %v9187_v24 = vld [vmem:[#allocation2 + $0x208] sm:$0xff] }
 0xc17   : > { %18563 = vmatprep.subr.msk.bf16.mxu1 %vm21683_vm12, %v18561_v5  ;;  %v8364_v5 = vld [vmem:[#allocation2 + $0x2ba] sm:$0xff] }
 0xc18   : > { %v18594_v46 = vpack.c.bf16 %v8365_v28, %v8364_v5  ;;  %v9140_v5 = vld [vmem:[#allocation2 + $0x30] sm:$0xff]  ;;  %v9171_v28 = vld [vmem:[#allocation2 + $0x168] sm:$0xff] }
 0xc1b   : > { %18518 = vmatpush3.bf16.xpose.msk.msra.mxu0 %vm21683_vm12, %v18516_v52  ;;  %v18642_v52 = vpack.c.bf16 %v8397_v14, %v8396_v50  ;;  %v9172_v50 = vld [vmem:[#allocation2 + $0x170] sm:$0xff]  ;;  %v9157_v14 = vld [vmem:[#allocation2 + $0xd8] sm:$0xff] }
 0xc1c   : > { %18521 = vmatprep.subr.msk.bf16.mxu0 %vm21683_vm12, %v18519_v19  ;;  %v18645_v19 = vpack.c.bf16 %v8415_v41, %v8414_v49  ;;  %v9190_v49 = vld [vmem:[#allocation2 + $0x220] sm:$0xff] }
 0xc1e   : > { %18566 = vmatpush3.bf16.xpose.msk.msra.mxu1 %vm21683_vm12, %v18564_v38  ;;  %v18597_v38 = vpack.c.bf16 %v8383_v0, %v8382_v57  ;;  %v9158_v57 = vld [vmem:[#allocation2 + $0xe0] sm:$0xff]  ;;  %v9189_v0 = vld [vmem:[#allocation2 + $0x218] sm:$0xff] }
 0xc1f   : > { %18569 = vmatprep.subr.msk.bf16.mxu1 %vm21683_vm12, %v18567_v45  ;;  %v8366_v45 = vld [vmem:[#allocation2 + $0x2d2] sm:$0xff] }
 0xc20   : > { %v18600_v33 = vpack.c.bf16 %v8367_v20, %v8366_v45  ;;  %v9142_v45 = vld [vmem:[#allocation2 + $0x40] sm:$0xff]  ;;  %v9173_v20 = vld [vmem:[#allocation2 + $0x178] sm:$0xff] }
 0xc23   : > { %18524 = vmatpush3.bf16.xpose.msk.msra.mxu0 %vm21683_vm12, %v18522_v55  ;;  %v18648_v55 = vpack.c.bf16 %v8399_v2, %v8398_v22  ;;  %v23960_v22 = vld [vmem:[%s25057_s9 + $0x30] sm:$0xff] }
 0xc24   : > { %18575 = vmatprep.subr.msk.bf16.mxu0 %vm21683_vm12, %v18573_v47  ;;  %v18651_v47 = vpack.c.bf16 %v8417_v53, %v8416_v51  ;;  %v9159_v2 = vld [vmem:[#allocation2 + $0xf0] sm:$0xff]  ;;  %v9192_v51 = vld [vmem:[#allocation2 + $0x238] sm:$0xff] }
 0xc26   : > { %18572 = vmatpush3.bf16.xpose.msk.msra.mxu1 %vm21683_vm12, %v18570_v16  ;;  %v18603_v16 = vpack.c.bf16 %v8385_v62, %v8384_v54  ;;  %v9160_v54 = vld [vmem:[#allocation2 + $0xf8] sm:$0xff]  ;;  %v9191_v62 = vld [vmem:[#allocation2 + $0x230] sm:$0xff] }
 0xc27   : > { %18623 = vmatprep.subr.msk.bf16.mxu1 %vm21683_vm12, %v18621_v43  ;;  %v8368_v43 = vld [vmem:[#allocation2 + $0x2e2] sm:$0xff] }
 0xc28   : > { %v18606_v13 = vpack.c.bf16 %v8369_v59, %v8368_v43  ;;  %v9175_v43 = vld [vmem:[#allocation2 + $0x190] sm:$0xff]  ;;  %v9176_v59 = vld [vmem:[#allocation2 + $0x198] sm:$0xff] }
 0xc2a   : > { %16555 = vmatmul.mubr.msk.f32.vlgmr.msra.gmra.mrb[158].mxu0 %vm720_vm0, %v23790_v30 }
 0xc2b   : > { %18578 = vmatpush3.bf16.xpose.msk.msra.mxu0 %vm21683_vm12, %v18576_v31  ;;  %16556 = vmatprep.mubr.msk.f32.mxu0 %vm720_vm0, %v23867_v11  ;;  %v18654_v31 = vpack.c.bf16 %v8401_v35, %v8400_v34  ;;  %v9161_v34 = vld [vmem:[#allocation2 + $0x100] sm:$0xff]  ;;  %v9162_v35 = vld [vmem:[#allocation2 + $0x108] sm:$0xff] }
 0xc2c   : > { %18581 = vmatprep.subr.msk.bf16.mxu0 %vm21683_vm12, %v18579_v3  ;;  %v18657_v3 = vpack.c.bf16 %v8419_v10, %v8418_v37  ;;  %v18732_v10 = vpack.c.bf16 %v9176_v59, %v9175_v43  ;;  %v9219_v43 = vld [vmem:[#allocation2 + $0x348] sm:$0xff]  ;;  %v9220_v59 = vld [vmem:[#allocation2 + $0x350] sm:$0xff] }
 0xc2d   : > { %16591 = vmatmul.mubr.msk.f32.vlgmr.msra.gmra.mrb[132].mxu1 %vm720_vm0, %v23790_v30 }
 0xc2e   : > { %18626 = vmatpush3.bf16.xpose.msk.msra.mxu1 %vm21683_vm12, %v18624_v39  ;;  %16592 = vmatprep.mubr.msk.f32.mxu1 %vm720_vm0, %v23867_v11  ;;  %v18609_v39 = vpack.c.bf16 %v8387_v21, %v8386_v17  ;;  %v9193_v17 = vld [vmem:[#allocation2 + $0x240] sm:$0xff]  ;;  %v9194_v21 = vld [vmem:[#allocation2 + $0x248] sm:$0xff] }
 0xc2f   : > { %18629 = vmatprep.subr.msk.bf16.mxu1 %vm21683_vm12, %v18627_v44  ;;  %16557 = vmatmul.mubr.msk.f32.gmra.mrb[160].mxu0 %vm720_vm0, %v23867_v11  ;;  %v8370_v44 = vld [vmem:[#allocation2 + $0x2fa] sm:$0xff] }
 0xc30   : > { %16626 = vmatprep.mubr.msk.f32.mxu0 %vm720_vm0, %v23790_v30  ;;  %v18612_v61 = vpack.c.bf16 %v8371_v56, %v8370_v44  ;;  %v9177_v44 = vld [vmem:[#allocation2 + $0x1a0] sm:$0xff]  ;;  %v9178_v56 = vld [vmem:[#allocation2 + $0x1a8] sm:$0xff] }
 0xc31   : > { %16593 = vmatmul.mubr.msk.f32.gmra.mrb[134].mxu1 %vm720_vm0, %v23867_v11 }
 0xc32   : > { %16662 = vmatprep.mubr.msk.f32.mxu1 %vm720_vm0, %v23790_v30 }
 0xc33   : > { %18584 = vmatpush3.bf16.xpose.msk.msra.mxu0 %vm21683_vm12, %v18582_v60  ;;  %v18660_v60 = vpack.c.bf16 %v8403_v15, %v8402_v48  ;;  %v9163_v48 = vld [vmem:[#allocation2 + $0x118] sm:$0xff]  ;;  %v9164_v15 = vld [vmem:[#allocation2 + $0x120] sm:$0xff] }
 0xc34   : > { %18587 = vmatprep.subr.msk.bf16.mxu0 %vm21683_vm12, %v18585_v25  ;;  %v18663_v25 = vpack.c.bf16 %v8421_v6, %v8420_v4  ;;  %v18738_v6 = vpack.c.bf16 %v9178_v56, %v9177_v44  ;;  %v9221_v44 = vld [vmem:[#allocation2 + $0x358] sm:$0xff]  ;;  %v9222_v56 = vld [vmem:[#allocation2 + $0x360] sm:$0xff] }
 0xc36   : > { %18632 = vmatpush3.bf16.xpose.msk.msra.mxu1 %vm21683_vm12, %v18630_v27  ;;  %v18615_v27 = vpack.c.bf16 %v8389_v36, %v8388_v7  ;;  %v9195_v7 = vld [vmem:[#allocation2 + $0x258] sm:$0xff]  ;;  %v9196_v36 = vld [vmem:[#allocation2 + $0x260] sm:$0xff] }
 0xc37   : > { %18635 = vmatprep.subr.msk.bf16.mxu1 %vm21683_vm12, %v18633_v32  ;;  %v8372_v32 = vld [vmem:[#allocation2 + $0x30a] sm:$0xff] }
 0xc38   : > { %v18618_v40 = vpack.c.bf16 %v8373_v1, %v8372_v32  ;;  %v9179_v32 = vld [vmem:[#allocation2 + $0x1b8] sm:$0xff]  ;;  %v9180_v1 = vld [vmem:[#allocation2 + $0x1c0] sm:$0xff] }
 0xc3b   : > { %18590 = vmatpush3.bf16.xpose.msk.msra.mxu0 %vm21683_vm12, %v18588_v12  ;;  %v18666_v12 = vpack.c.bf16 %v8405_v9, %v8404_v26  ;;  %v9165_v26 = vld [vmem:[#allocation2 + $0x128] sm:$0xff]  ;;  %v9166_v9 = vld [vmem:[#allocation2 + $0x130] sm:$0xff] }
 0xc3c   : > { %18593 = vmatprep.subr.msk.bf16.mxu0 %vm21683_vm12, %v18591_v29  ;;  %v18717_v29 = vpack.c.bf16 %v9188_v42, %v9187_v24  ;;  %v18744_v42 = vpack.c.bf16 %v9180_v1, %v9179_v32  ;;  %v9238_v32 = vld [vmem:[#allocation2 + $0x400] sm:$0xff]  ;;  %v9223_v1 = vld [vmem:[#allocation2 + $0x370] sm:$0xff] }
 0xc3e   : > { %18638 = vmatpush3.bf16.xpose.msk.msra.mxu1 %vm21683_vm12, %v18636_v63  ;;  %v18669_v63 = vpack.c.bf16 %v9156_v23, %v9155_v8  ;;  %v9197_v8 = vld [vmem:[#allocation2 + $0x268] sm:$0xff]  ;;  %v9198_v23 = vld [vmem:[#allocation2 + $0x270] sm:$0xff] }
 0xc3f   : > { %18641 = vmatprep.subr.msk.bf16.mxu1 %vm21683_vm12, %v18639_v18  ;;  %v9139_v18 = vld [vmem:[#allocation2 + $0x28] sm:$0xff] }
 0xc40   : > { %v18672_v41 = vpack.c.bf16 %v9140_v5, %v9139_v18  ;;  %v9181_v18 = vld [vmem:[#allocation2 + $0x1c8] sm:$0xff]  ;;  %v9182_v5 = vld [vmem:[#allocation2 + $0x1d0] sm:$0xff] }
 0xc43   : > { %18596 = vmatpush3.bf16.xpose.msk.msra.mxu0 %vm21683_vm12, %v18594_v46  ;;  %v18720_v46 = vpack.c.bf16 %v9172_v50, %v9171_v28  ;;  %v9167_v28 = vld [vmem:[#allocation2 + $0x140] sm:$0xff]  ;;  %v9168_v50 = vld [vmem:[#allocation2 + $0x148] sm:$0xff] }
 0xc44   : > { %18599 = vmatprep.subr.msk.bf16.mxu0 %vm21683_vm12, %v18597_v38  ;;  %v18723_v38 = vpack.c.bf16 %v9190_v49, %v9189_v0  ;;  %v18750_v49 = vpack.c.bf16 %v9182_v5, %v9181_v18  ;;  %v9240_v18 = vld [vmem:[#allocation2 + $0x418] sm:$0xff]  ;;  %v9225_v5 = vld [vmem:[#allocation2 + $0x380] sm:$0xff] }
 0xc46   : > { %18644 = vmatpush3.bf16.xpose.msk.msra.mxu1 %vm21683_vm12, %v18642_v52  ;;  %v18675_v52 = vpack.c.bf16 %v9158_v57, %v9157_v14  ;;  %v9199_v14 = vld [vmem:[#allocation2 + $0x280] sm:$0xff]  ;;  %v9200_v57 = vld [vmem:[#allocation2 + $0x288] sm:$0xff] }
 0xc47   : > { %18647 = vmatprep.subr.msk.bf16.mxu1 %vm21683_vm12, %v18645_v19  ;;  %v9141_v19 = vld [vmem:[#allocation2 + $0x38] sm:$0xff] }
 0xc48   : > { %v18678_v53 = vpack.c.bf16 %v9142_v45, %v9141_v19  ;;  %v9183_v19 = vld [vmem:[#allocation2 + $0x1e0] sm:$0xff]  ;;  %v9184_v45 = vld [vmem:[#allocation2 + $0x1e8] sm:$0xff] }
 0xc4b   : > { %18602 = vmatpush3.bf16.xpose.msk.msra.mxu0 %vm21683_vm12, %v18600_v33 }
 0xc4c   : > { %18605 = vmatprep.subr.msk.bf16.mxu0 %vm21683_vm12, %v18603_v16  ;;  %v18729_v16 = vpack.c.bf16 %v9192_v51, %v9191_v62  ;;  %v18756_v51 = vpack.c.bf16 %v9184_v45, %v9183_v19  ;;  %v9242_v19 = vld [vmem:[#allocation2 + $0x428] sm:$0xff]  ;;  %v9227_v45 = vld [vmem:[#allocation2 + $0x398] sm:$0xff] }
 0xc4e   : > { %18650 = vmatpush3.bf16.xpose.msk.msra.mxu1 %vm21683_vm12, %v18648_v55  ;;  %v18681_v55 = vpack.c.bf16 %v9160_v54, %v9159_v2  ;;  %v9201_v2 = vld [vmem:[#allocation2 + $0x290] sm:$0xff]  ;;  %v9202_v54 = vld [vmem:[#allocation2 + $0x298] sm:$0xff] }
 0xc4f   : > { %18653 = vmatprep.subr.msk.bf16.mxu1 %vm21683_vm12, %v18651_v47  ;;  %v9143_v47 = vld [vmem:[#allocation2 + $0x50] sm:$0xff] }
 0xc53   : > { %18608 = vmatpush3.bf16.xpose.msk.msra.mxu0 %vm21683_vm12, %v18606_v13  ;;  %v18687_v13 = vpack.c.bf16 %v9162_v35, %v9161_v34  ;;  %v9251_v34 = vld [vmem:[#allocation2 + $0x488] sm:$0xff]  ;;  %v9252_v35 = vld [vmem:[#allocation2 + $0x490] sm:$0xff] }
 0xc54   : > { %18611 = vmatprep.subr.msk.bf16.mxu0 %vm21683_vm12, %v18609_v39  ;;  %v9145_v39 = vld [vmem:[#allocation2 + $0x60] sm:$0xff] }
 0xc56   : > { %18656 = vmatpush3.bf16.xpose.msk.msra.mxu1 %vm21683_vm12, %v18654_v31  ;;  %v18735_v31 = vpack.c.bf16 %v9194_v21, %v9193_v17 }
 0xc57   : > { %18659 = vmatprep.subr.msk.bf16.mxu1 %vm21683_vm12, %v18657_v3  ;;  %v9146_v3 = vld [vmem:[#allocation2 + $0x68] sm:$0xff] }
 0xc58   : > { %v18690_v4 = vpack.c.bf16 %v9146_v3, %v9145_v39  ;;  %v9235_v39 = vld [vmem:[#allocation2 + $0x3e8] sm:$0xff]  ;;  %v9236_v3 = vld [vmem:[#allocation2 + $0x3f0] sm:$0xff] }
 0xc5b   : > { %18614 = vmatpush3.bf16.xpose.msk.msra.mxu0 %vm21683_vm12, %v18612_v61  ;;  %v18693_v61 = vpack.c.bf16 %v9164_v15, %v9163_v48  ;;  %v9253_v48 = vld [vmem:[#allocation2 + $0x498] sm:$0xff]  ;;  %v9254_v15 = vld [vmem:[#allocation2 + $0x4a0] sm:$0xff] }
 0xc5c   : > { %18617 = vmatprep.subr.msk.bf16.mxu0 %vm21683_vm12, %v18615_v27  ;;  %v9147_v27 = vld [vmem:[#allocation2 + $0x78] sm:$0xff] }
 0xc5e   : > { %18662 = vmatpush3.bf16.xpose.msk.msra.mxu1 %vm21683_vm12, %v18660_v60  ;;  %v18741_v60 = vpack.c.bf16 %v9196_v36, %v9195_v7  ;;  %v18816_v36 = vpack.c.bf16 %v9236_v3, %v9235_v39  ;;  %v9246_v39 = vld [vmem:[#allocation2 + $0x450] sm:$0xff]  ;;  %v9231_v3 = vld [vmem:[#allocation2 + $0x3c0] sm:$0xff] }
 0xc5f   : > { %18665 = vmatprep.subr.msk.bf16.mxu1 %vm21683_vm12, %v18663_v25  ;;  %v9148_v25 = vld [vmem:[#allocation2 + $0x80] sm:$0xff] }
 0xc60   : > { %v18696_v24 = vpack.c.bf16 %v9148_v25, %v9147_v27  ;;  %v9206_v27 = vld [vmem:[#allocation2 + $0x2c0] sm:$0xff]  ;;  %v9237_v25 = vld [vmem:[#allocation2 + $0x3f8] sm:$0xff] }
 0xc63   : > { %18620 = vmatpush3.bf16.xpose.msk.msra.mxu0 %vm21683_vm12, %v18618_v40  ;;  %v18699_v40 = vpack.c.bf16 %v9166_v9, %v9165_v26  ;;  %v9224_v26 = vld [vmem:[#allocation2 + $0x378] sm:$0xff]  ;;  %v9255_v9 = vld [vmem:[#allocation2 + $0x4b0] sm:$0xff] }
 0xc64   : > { %18671 = vmatprep.subr.msk.bf16.mxu0 %vm21683_vm12, %v18669_v63  ;;  %v9149_v63 = vld [vmem:[#allocation2 + $0x88] sm:$0xff] }
 0xc66   : > { %18668 = vmatpush3.bf16.xpose.msk.msra.mxu1 %vm21683_vm12, %v18666_v12  ;;  %v18747_v12 = vpack.c.bf16 %v9198_v23, %v9197_v8  ;;  %v9256_v8 = vld [vmem:[#allocation2 + $0x4b8] sm:$0xff] }
 0xc67   : > { %18719 = vmatprep.subr.msk.bf16.mxu1 %vm21683_vm12, %v18717_v29  ;;  %v9150_v29 = vld [vmem:[#allocation2 + $0x90] sm:$0xff] }
 0xc68   : > { %v18702_v0 = vpack.c.bf16 %v9150_v29, %v9149_v63  ;;  %v9208_v63 = vld [vmem:[#allocation2 + $0x2d8] sm:$0xff]  ;;  %v9239_v29 = vld [vmem:[#allocation2 + $0x410] sm:$0xff] }
 0xc6a   : > { %16627 = vmatmul.mubr.msk.f32.vlgmr.msra.gmra.mrb[162].mxu0 %vm720_vm0, %v23790_v30 }
 0xc6b   : > { %18674 = vmatpush3.bf16.xpose.msk.msra.mxu0 %vm21683_vm12, %v18672_v41  ;;  %16628 = vmatprep.mubr.msk.f32.mxu0 %vm720_vm0, %v23867_v11  ;;  %v18705_v41 = vpack.c.bf16 %v9168_v50, %v9167_v28  ;;  %v9226_v28 = vld [vmem:[#allocation2 + $0x388] sm:$0xff]  ;;  %v9257_v50 = vld [vmem:[#allocation2 + $0x4c0] sm:$0xff] }
 0xc6c   : > { %18677 = vmatprep.subr.msk.bf16.mxu0 %vm21683_vm12, %v18675_v52  ;;  %v9151_v52 = vld [vmem:[#allocation2 + $0xa0] sm:$0xff] }
 0xc6d   : > { %16663 = vmatmul.mubr.msk.f32.vlgmr.msra.gmra.mrb[136].mxu1 %vm720_vm0, %v23790_v30  ;;  %v9174_v30 = vld [vmem:[#allocation2 + $0x180] sm:$0xff] }
 0xc6e   : > { %18722 = vmatpush3.bf16.xpose.msk.msra.mxu1 %vm21683_vm12, %v18720_v46  ;;  %16664 = vmatprep.mubr.msk.f32.mxu1 %vm720_vm0, %v23867_v11  ;;  %v18726_v33 = vpack.c.bf16 %v9174_v30, %v9173_v20  ;;  %v18753_v46 = vpack.c.bf16 %v9200_v57, %v9199_v14  ;;  %v9169_v20 = vld [vmem:[#allocation2 + $0x150] sm:$0xff]  ;;  %v9170_v30 = vld [vmem:[#allocation2 + $0x158] sm:$0xff]  ;;  %v9258_v14 = vld [vmem:[#allocation2 + $0x4c8] sm:$0xff] }
 0xc6f   : > { %18725 = vmatprep.subr.msk.bf16.mxu1 %vm21683_vm12, %v18723_v38  ;;  %16629 = vmatmul.mubr.msk.f32.gmra.mrb[164].mxu0 %vm720_vm0, %v23867_v11  ;;  %v9152_v38 = vld [vmem:[#allocation2 + $0xa8] sm:$0xff] }
 0xc70   : > { %16698 = vmatprep.mubr.msk.f32.mxu0 %vm720_vm0, %v23960_v22  ;;  %v18708_v62 = vpack.c.bf16 %v9152_v38, %v9151_v52  ;;  %v9210_v52 = vld [vmem:[#allocation2 + $0x2e8] sm:$0xff]  ;;  %v9241_v38 = vld [vmem:[#allocation2 + $0x420] sm:$0xff] }
 0xc71   : > { %16665 = vmatmul.mubr.msk.f32.gmra.mrb[138].mxu1 %vm720_vm0, %v23867_v11  ;;  %v9144_v11 = vld [vmem:[#allocation2 + $0x58] sm:$0xff] }
 0xc72   : > { %16734 = vmatprep.mubr.msk.f32.mxu1 %vm720_vm0, %v23960_v22  ;;  %v18684_v37 = vpack.c.bf16 %v9144_v11, %v9143_v47  ;;  %v9185_v47 = vld [vmem:[#allocation2 + $0x1f0] sm:$0xff]  ;;  %v9186_v11 = vld [vmem:[#allocation2 + $0x1f8] sm:$0xff] }
 0xc73   : > { %18680 = vmatpush3.bf16.xpose.msk.msra.mxu0 %vm21683_vm12, %v18678_v53  ;;  %v18711_v53 = vpack.c.bf16 %v9170_v30, %v9169_v20  ;;  %v18762_v21 = vpack.c.bf16 %v9186_v11, %v9185_v47  ;;  %v9228_v20 = vld [vmem:[#allocation2 + $0x3a0] sm:$0xff]  ;;  %v9259_v30 = vld [vmem:[#allocation2 + $0x4d8] sm:$0xff]  ;;  %v9229_v11 = vld [vmem:[#allocation2 + $0x3a8] sm:$0xff] }
 0xc74   : > { %18683 = vmatprep.subr.msk.bf16.mxu0 %vm21683_vm12, %v18681_v55  ;;  %v9153_v55 = vld [vmem:[#allocation2 + $0xb0] sm:$0xff]  ;;  %v9244_v47 = vld [vmem:[#allocation2 + $0x440] sm:$0xff] }
 0xc76   : > { %18728 = vmatpush3.bf16.xpose.msk.msra.mxu1 %vm21683_vm12, %v18726_v33  ;;  %v18759_v33 = vpack.c.bf16 %v9202_v54, %v9201_v2  ;;  %v9260_v2 = vld [vmem:[#allocation2 + $0x4e0] sm:$0xff] }
 0xc77   : > { %18731 = vmatprep.subr.msk.bf16.mxu1 %vm21683_vm12, %v18729_v16  ;;  %v9154_v16 = vld [vmem:[#allocation2 + $0xb8] sm:$0xff] }
 0xc78   : > { %v18714_v17 = vpack.c.bf16 %v9154_v16, %v9153_v55  ;;  %v9212_v55 = vld [vmem:[#allocation2 + $0x300] sm:$0xff]  ;;  %v9243_v16 = vld [vmem:[#allocation2 + $0x438] sm:$0xff] }
 0xc7b   : > { %18686 = vmatpush3.bf16.xpose.msk.msra.mxu0 %vm21683_vm12, %v18684_v37  ;;  %v18765_v37 = vpack.c.bf16 %v9220_v59, %v9219_v43  ;;  %v9230_v43 = vld [vmem:[#allocation2 + $0x3b0] sm:$0xff]  ;;  %v9261_v59 = vld [vmem:[#allocation2 + $0x4e8] sm:$0xff] }
 0xc7c   : > { %18689 = vmatprep.subr.msk.bf16.mxu0 %vm21683_vm12, %v18687_v13  ;;  %v9203_v13 = vld [vmem:[#allocation2 + $0x2a8] sm:$0xff] }
 0xc7e   : > { %18734 = vmatpush3.bf16.xpose.msk.msra.mxu1 %vm21683_vm12, %v18732_v10  ;;  %v18813_v10 = vpack.c.bf16 %v9252_v35, %v9251_v34  ;;  %v9262_v34 = vld [vmem:[#allocation2 + $0x4f0] sm:$0xff] }
 0xc7f   : > { %18737 = vmatprep.subr.msk.bf16.mxu1 %vm21683_vm12, %v18735_v31  ;;  %v9204_v31 = vld [vmem:[#allocation2 + $0x2b0] sm:$0xff] }
 0xc80   : > { %v18768_v7 = vpack.c.bf16 %v9204_v31, %v9203_v13  ;;  %v9214_v13 = vld [vmem:[#allocation2 + $0x310] sm:$0xff]  ;;  %v9245_v31 = vld [vmem:[#allocation2 + $0x448] sm:$0xff] }
 0xc83   : > { %18692 = vmatpush3.bf16.xpose.msk.msra.mxu0 %vm21683_vm12, %v18690_v4  ;;  %v18771_v4 = vpack.c.bf16 %v9222_v56, %v9221_v44  ;;  %v9232_v44 = vld [vmem:[#allocation2 + $0x3c8] sm:$0xff]  ;;  %v9263_v56 = vld [vmem:[#allocation2 + $0x500] sm:$0xff] }
 0xc84   : > { %18695 = vmatprep.subr.msk.bf16.mxu0 %vm21683_vm12, %v18693_v61  ;;  %v24037_v61 = vld [vmem:[%s25057_s9 + $0x38] sm:$0xff] }
 0xc86   : > { %18740 = vmatpush3.bf16.xpose.msk.msra.mxu1 %vm21683_vm12, %v18738_v6  ;;  %v18819_v6 = vpack.c.bf16 %v9254_v15, %v9253_v48  ;;  %v9264_v48 = vld [vmem:[#allocation2 + $0x508] sm:$0xff] }
 0xc87   : > { %18743 = vmatprep.subr.msk.bf16.mxu1 %vm21683_vm12, %v18741_v60  ;;  %v9205_v60 = vld [vmem:[#allocation2 + $0x2b8] sm:$0xff] }
 0xc88   : > { %v18774_v23 = vpack.c.bf16 %v9206_v27, %v9205_v60  ;;  %v9216_v60 = vld [vmem:[#allocation2 + $0x328] sm:$0xff]  ;;  %v9247_v27 = vld [vmem:[#allocation2 + $0x460] sm:$0xff] }
 0xc8b   : > { %18698 = vmatpush3.bf16.xpose.msk.msra.mxu0 %vm21683_vm12, %v18696_v24  ;;  %v18822_v24 = vpack.c.bf16 %v9238_v32, %v9237_v25  ;;  %v9248_v25 = vld [vmem:[#allocation2 + $0x468] sm:$0xff]  ;;  %v9233_v32 = vld [vmem:[#allocation2 + $0x3d0] sm:$0xff] }
 0xc8c   : > { %18701 = vmatprep.subr.msk.bf16.mxu0 %vm21683_vm12, %v18699_v40  ;;  %v18825_v40 = vpack.c.bf16 %v9256_v8, %v9255_v9  ;;  %v9266_v9 = vld [vmem:[#allocation2 + $0x518] sm:$0xff] }
 0xc8e   : > { %18746 = vmatpush3.bf16.xpose.msk.msra.mxu1 %vm21683_vm12, %v18744_v42  ;;  %v18777_v42 = vpack.c.bf16 %v9224_v26, %v9223_v1  ;;  %v9234_v1 = vld [vmem:[#allocation2 + $0x3d8] sm:$0xff]  ;;  %v9265_v26 = vld [vmem:[#allocation2 + $0x510] sm:$0xff] }
 0xc8f   : > { %18749 = vmatprep.subr.msk.bf16.mxu1 %vm21683_vm12, %v18747_v12  ;;  %v9207_v12 = vld [vmem:[#allocation2 + $0x2d0] sm:$0xff] }
 0xc90   : > { %v18780_v57 = vpack.c.bf16 %v9208_v63, %v9207_v12  ;;  %v9218_v12 = vld [vmem:[#allocation2 + $0x338] sm:$0xff]  ;;  %v9249_v63 = vld [vmem:[#allocation2 + $0x470] sm:$0xff] }
 0xc93   : > { %18704 = vmatpush3.bf16.xpose.msk.msra.mxu0 %vm21683_vm12, %v18702_v0  ;;  %v18828_v0 = vpack.c.bf16 %v9240_v18, %v9239_v29  ;;  %v9250_v29 = vld [vmem:[#allocation2 + $0x478] sm:$0xff]  ;;  %v10000_v18 = vld [vmem:[#allocation2 + $0xc9] sm:$0xff] }
 0xc94   : > { %18707 = vmatprep.subr.msk.bf16.mxu0 %vm21683_vm12, %v18705_v41  ;;  %v18831_v41 = vpack.c.bf16 %v9258_v14, %v9257_v50  ;;  %v10033_v50 = vld [vmem:[#allocation2 + $0x211] sm:$0xff] }
 0xc96   : > { %18752 = vmatpush3.bf16.xpose.msk.msra.mxu1 %vm21683_vm12, %v18750_v49  ;;  %v18783_v49 = vpack.c.bf16 %v9226_v28, %v9225_v5  ;;  %v10001_v5 = vld [vmem:[#allocation2 + $0xd1] sm:$0xff]  ;;  %v10032_v28 = vld [vmem:[#allocation2 + $0x209] sm:$0xff] }
 0xc97   : > { %18755 = vmatprep.subr.msk.bf16.mxu1 %vm21683_vm12, %v18753_v46  ;;  %v9209_v46 = vld [vmem:[#allocation2 + $0x2e0] sm:$0xff] }
 0xc98   : > { %v18786_v54 = vpack.c.bf16 %v9210_v52, %v9209_v46  ;;  %v9985_v46 = vld [vmem:[#allocation2 + $0x31] sm:$0xff]  ;;  %v10016_v52 = vld [vmem:[#allocation2 + $0x169] sm:$0xff] }
 0xc9b   : > { %18710 = vmatpush3.bf16.xpose.msk.msra.mxu0 %vm21683_vm12, %v18708_v62  ;;  %v18834_v62 = vpack.c.bf16 %v9242_v19, %v9241_v38  ;;  %v10017_v38 = vld [vmem:[#allocation2 + $0x171] sm:$0xff]  ;;  %v10002_v19 = vld [vmem:[#allocation2 + $0xd9] sm:$0xff] }
 0xc9c   : > { %18713 = vmatprep.subr.msk.bf16.mxu0 %vm21683_vm12, %v18711_v53  ;;  %v18837_v53 = vpack.c.bf16 %v9260_v2, %v9259_v30  ;;  %v10035_v30 = vld [vmem:[#allocation2 + $0x221] sm:$0xff] }
 0xc9e   : > { %18758 = vmatpush3.bf16.xpose.msk.msra.mxu1 %vm21683_vm12, %v18756_v51  ;;  %v18789_v51 = vpack.c.bf16 %v9228_v20, %v9227_v45  ;;  %v10003_v45 = vld [vmem:[#allocation2 + $0xe1] sm:$0xff]  ;;  %v10034_v20 = vld [vmem:[#allocation2 + $0x219] sm:$0xff] }
 0xc9f   : > { %18761 = vmatprep.subr.msk.bf16.mxu1 %vm21683_vm12, %v18759_v33  ;;  %v9211_v33 = vld [vmem:[#allocation2 + $0x2f8] sm:$0xff] }
 0xca0   : > { %v18792_v35 = vpack.c.bf16 %v9212_v55, %v9211_v33  ;;  %v9987_v33 = vld [vmem:[#allocation2 + $0x41] sm:$0xff]  ;;  %v10018_v55 = vld [vmem:[#allocation2 + $0x179] sm:$0xff] }
 0xca3   : > { %18716 = vmatpush3.bf16.xpose.msk.msra.mxu0 %vm21683_vm12, %v18714_v17  ;;  %v18840_v17 = vpack.c.bf16 %v9244_v47, %v9243_v16  ;;  %v24130_v16 = vld [vmem:[%s25057_s9 + $0x40] sm:$0xff]  ;;  %v10004_v47 = vld [vmem:[#allocation2 + $0xf1] sm:$0xff] }
 0xca4   : > { %18767 = vmatprep.subr.msk.bf16.mxu0 %vm21683_vm12, %v18765_v37  ;;  %v18843_v37 = vpack.c.bf16 %v9262_v34, %v9261_v59  ;;  %v10037_v59 = vld [vmem:[#allocation2 + $0x239] sm:$0xff] }
 0xca6   : > { %18764 = vmatpush3.bf16.xpose.msk.msra.mxu1 %vm21683_vm12, %v18762_v21  ;;  %v18795_v21 = vpack.c.bf16 %v9230_v43, %v9229_v11  ;;  %v10005_v11 = vld [vmem:[#allocation2 + $0xf9] sm:$0xff]  ;;  %v10036_v43 = vld [vmem:[#allocation2 + $0x231] sm:$0xff] }
 0xca7   : > { %18815 = vmatprep.subr.msk.bf16.mxu1 %vm21683_vm12, %v18813_v10  ;;  %v9213_v10 = vld [vmem:[#allocation2 + $0x308] sm:$0xff] }
 0xca8   : > { %v18798_v15 = vpack.c.bf16 %v9214_v13, %v9213_v10  ;;  %v10020_v10 = vld [vmem:[#allocation2 + $0x191] sm:$0xff]  ;;  %v10021_v13 = vld [vmem:[#allocation2 + $0x199] sm:$0xff] }
 0xcaa   : > { %16699 = vmatmul.mubr.msk.f32.vlgmr.msra.gmra.mrb[158].mxu0 %vm720_vm0, %v23960_v22 }
 0xcab   : > { %18770 = vmatpush3.bf16.xpose.msk.msra.mxu0 %vm21683_vm12, %v18768_v7  ;;  %16700 = vmatprep.mubr.msk.f32.mxu0 %vm720_vm0, %v24037_v61  ;;  %v18846_v7 = vpack.c.bf16 %v9246_v39, %v9245_v31  ;;  %v10006_v31 = vld [vmem:[#allocation2 + $0x101] sm:$0xff]  ;;  %v10007_v39 = vld [vmem:[#allocation2 + $0x109] sm:$0xff] }
 0xcac   : > { %18773 = vmatprep.subr.msk.bf16.mxu0 %vm21683_vm12, %v18771_v4  ;;  %v18849_v4 = vpack.c.bf16 %v9264_v48, %v9263_v56  ;;  %v18924_v48 = vpack.c.bf16 %v10021_v13, %v10020_v10  ;;  %v10064_v10 = vld [vmem:[#allocation2 + $0x349] sm:$0xff]  ;;  %v10065_v13 = vld [vmem:[#allocation2 + $0x351] sm:$0xff] }
 0xcad   : > { %16735 = vmatmul.mubr.msk.f32.vlgmr.msra.gmra.mrb[132].mxu1 %vm720_vm0, %v23960_v22 }
 0xcae   : > { %18818 = vmatpush3.bf16.xpose.msk.msra.mxu1 %vm21683_vm12, %v18816_v36  ;;  %16736 = vmatprep.mubr.msk.f32.mxu1 %vm720_vm0, %v24037_v61  ;;  %v18801_v36 = vpack.c.bf16 %v9232_v44, %v9231_v3  ;;  %v10038_v3 = vld [vmem:[#allocation2 + $0x241] sm:$0xff]  ;;  %v10039_v44 = vld [vmem:[#allocation2 + $0x249] sm:$0xff] }
 0xcaf   : > { %18821 = vmatprep.subr.msk.bf16.mxu1 %vm21683_vm12, %v18819_v6  ;;  %16701 = vmatmul.mubr.msk.f32.gmra.mrb[160].mxu0 %vm720_vm0, %v24037_v61  ;;  %v9215_v6 = vld [vmem:[#allocation2 + $0x320] sm:$0xff] }
 0xcb0   : > { %16770 = vmatprep.mubr.msk.f32.mxu0 %vm720_vm0, %v23960_v22  ;;  %v18804_v8 = vpack.c.bf16 %v9216_v60, %v9215_v6  ;;  %v10022_v6 = vld [vmem:[#allocation2 + $0x1a1] sm:$0xff]  ;;  %v10023_v60 = vld [vmem:[#allocation2 + $0x1a9] sm:$0xff] }
 0xcb1   : > { %16737 = vmatmul.mubr.msk.f32.gmra.mrb[134].mxu1 %vm720_vm0, %v24037_v61 }
 0xcb2   : > { %16806 = vmatprep.mubr.msk.f32.mxu1 %vm720_vm0, %v23960_v22 }
 0xcb3   : > { %18776 = vmatpush3.bf16.xpose.msk.msra.mxu0 %vm21683_vm12, %v18774_v23  ;;  %v18852_v23 = vpack.c.bf16 %v9248_v25, %v9247_v27  ;;  %v10008_v27 = vld [vmem:[#allocation2 + $0x119] sm:$0xff]  ;;  %v10009_v25 = vld [vmem:[#allocation2 + $0x121] sm:$0xff] }
 0xcb4   : > { %18779 = vmatprep.subr.msk.bf16.mxu0 %vm21683_vm12, %v18777_v42  ;;  %v18855_v42 = vpack.c.bf16 %v9266_v9, %v9265_v26  ;;  %v18930_v9 = vpack.c.bf16 %v10023_v60, %v10022_v6  ;;  %v10066_v6 = vld [vmem:[#allocation2 + $0x359] sm:$0xff]  ;;  %v10067_v60 = vld [vmem:[#allocation2 + $0x361] sm:$0xff] }
 0xcb6   : > { %18824 = vmatpush3.bf16.xpose.msk.msra.mxu1 %vm21683_vm12, %v18822_v24  ;;  %v18807_v24 = vpack.c.bf16 %v9234_v1, %v9233_v32  ;;  %v10040_v32 = vld [vmem:[#allocation2 + $0x259] sm:$0xff]  ;;  %v10041_v1 = vld [vmem:[#allocation2 + $0x261] sm:$0xff] }
 0xcb7   : > { %18827 = vmatprep.subr.msk.bf16.mxu1 %vm21683_vm12, %v18825_v40  ;;  %v9217_v40 = vld [vmem:[#allocation2 + $0x330] sm:$0xff] }
 0xcb8   : > { %v18810_v14 = vpack.c.bf16 %v9218_v12, %v9217_v40  ;;  %v10024_v40 = vld [vmem:[#allocation2 + $0x1b9] sm:$0xff]  ;;  %v10025_v12 = vld [vmem:[#allocation2 + $0x1c1] sm:$0xff] }
 0xcbb   : > { %18782 = vmatpush3.bf16.xpose.msk.msra.mxu0 %vm21683_vm12, %v18780_v57  ;;  %v18858_v57 = vpack.c.bf16 %v9250_v29, %v9249_v63  ;;  %v10010_v63 = vld [vmem:[#allocation2 + $0x129] sm:$0xff]  ;;  %v10011_v29 = vld [vmem:[#allocation2 + $0x131] sm:$0xff] }
 0xcbc   : > { %18785 = vmatprep.subr.msk.bf16.mxu0 %vm21683_vm12, %v18783_v49  ;;  %v18909_v49 = vpack.c.bf16 %v10033_v50, %v10032_v28  ;;  %v18936_v50 = vpack.c.bf16 %v10025_v12, %v10024_v40  ;;  %v10083_v40 = vld [vmem:[#allocation2 + $0x401] sm:$0xff]  ;;  %v10068_v12 = vld [vmem:[#allocation2 + $0x371] sm:$0xff] }
 0xcbe   : > { %18830 = vmatpush3.bf16.xpose.msk.msra.mxu1 %vm21683_vm12, %v18828_v0  ;;  %v18861_v0 = vpack.c.bf16 %v10001_v5, %v10000_v18  ;;  %v10042_v18 = vld [vmem:[#allocation2 + $0x269] sm:$0xff]  ;;  %v10043_v5 = vld [vmem:[#allocation2 + $0x271] sm:$0xff] }
 0xcbf   : > { %18833 = vmatprep.subr.msk.bf16.mxu1 %vm21683_vm12, %v18831_v41  ;;  %v9984_v41 = vld [vmem:[#allocation2 + $0x29] sm:$0xff] }
 0xcc0   : > { %v18864_v2 = vpack.c.bf16 %v9985_v46, %v9984_v41  ;;  %v10026_v41 = vld [vmem:[#allocation2 + $0x1c9] sm:$0xff]  ;;  %v10027_v46 = vld [vmem:[#allocation2 + $0x1d1] sm:$0xff] }
 0xcc3   : > { %18788 = vmatpush3.bf16.xpose.msk.msra.mxu0 %vm21683_vm12, %v18786_v54  ;;  %v18912_v54 = vpack.c.bf16 %v10017_v38, %v10016_v52  ;;  %v10012_v52 = vld [vmem:[#allocation2 + $0x141] sm:$0xff]  ;;  %v10013_v38 = vld [vmem:[#allocation2 + $0x149] sm:$0xff] }
 0xcc4   : > { %18791 = vmatprep.subr.msk.bf16.mxu0 %vm21683_vm12, %v18789_v51  ;;  %v18915_v51 = vpack.c.bf16 %v10035_v30, %v10034_v20  ;;  %v18942_v30 = vpack.c.bf16 %v10027_v46, %v10026_v41  ;;  %v10085_v41 = vld [vmem:[#allocation2 + $0x419] sm:$0xff]  ;;  %v10070_v46 = vld [vmem:[#allocation2 + $0x381] sm:$0xff] }
 0xcc6   : > { %18836 = vmatpush3.bf16.xpose.msk.msra.mxu1 %vm21683_vm12, %v18834_v62  ;;  %v18867_v62 = vpack.c.bf16 %v10003_v45, %v10002_v19  ;;  %v10044_v19 = vld [vmem:[#allocation2 + $0x281] sm:$0xff]  ;;  %v10045_v45 = vld [vmem:[#allocation2 + $0x289] sm:$0xff] }
 0xcc7   : > { %18839 = vmatprep.subr.msk.bf16.mxu1 %vm21683_vm12, %v18837_v53  ;;  %v9986_v53 = vld [vmem:[#allocation2 + $0x39] sm:$0xff] }
 0xcc8   : > { %v18870_v34 = vpack.c.bf16 %v9987_v33, %v9986_v53  ;;  %v10028_v53 = vld [vmem:[#allocation2 + $0x1e1] sm:$0xff]  ;;  %v10029_v33 = vld [vmem:[#allocation2 + $0x1e9] sm:$0xff] }
 0xccb   : > { %18794 = vmatpush3.bf16.xpose.msk.msra.mxu0 %vm21683_vm12, %v18792_v35 }
 0xccc   : > { %18797 = vmatprep.subr.msk.bf16.mxu0 %vm21683_vm12, %v18795_v21  ;;  %v18921_v21 = vpack.c.bf16 %v10037_v59, %v10036_v43  ;;  %v18948_v59 = vpack.c.bf16 %v10029_v33, %v10028_v53  ;;  %v10087_v53 = vld [vmem:[#allocation2 + $0x429] sm:$0xff]  ;;  %v10072_v33 = vld [vmem:[#allocation2 + $0x399] sm:$0xff] }
 0xcce   : > { %18842 = vmatpush3.bf16.xpose.msk.msra.mxu1 %vm21683_vm12, %v18840_v17  ;;  %v18873_v17 = vpack.c.bf16 %v10005_v11, %v10004_v47  ;;  %v10046_v47 = vld [vmem:[#allocation2 + $0x291] sm:$0xff]  ;;  %v10047_v11 = vld [vmem:[#allocation2 + $0x299] sm:$0xff] }
 0xccf   : > { %18845 = vmatprep.subr.msk.bf16.mxu1 %vm21683_vm12, %v18843_v37  ;;  %v9988_v37 = vld [vmem:[#allocation2 + $0x51] sm:$0xff] }
 0xcd3   : > { %18800 = vmatpush3.bf16.xpose.msk.msra.mxu0 %vm21683_vm12, %v18798_v15  ;;  %v18879_v15 = vpack.c.bf16 %v10007_v39, %v10006_v31  ;;  %v10096_v31 = vld [vmem:[#allocation2 + $0x489] sm:$0xff]  ;;  %v10097_v39 = vld [vmem:[#allocation2 + $0x491] sm:$0xff] }
 0xcd4   : > { %18803 = vmatprep.subr.msk.bf16.mxu0 %vm21683_vm12, %v18801_v36  ;;  %v9990_v36 = vld [vmem:[#allocation2 + $0x61] sm:$0xff] }
 0xcd6   : > { %18848 = vmatpush3.bf16.xpose.msk.msra.mxu1 %vm21683_vm12, %v18846_v7  ;;  %v18927_v7 = vpack.c.bf16 %v10039_v44, %v10038_v3 }
 0xcd7   : > { %18851 = vmatprep.subr.msk.bf16.mxu1 %vm21683_vm12, %v18849_v4  ;;  %v9991_v4 = vld [vmem:[#allocation2 + $0x69] sm:$0xff] }
 0xcd8   : > { %v18882_v26 = vpack.c.bf16 %v9991_v4, %v9990_v36  ;;  %v10080_v36 = vld [vmem:[#allocation2 + $0x3e9] sm:$0xff]  ;;  %v10081_v4 = vld [vmem:[#allocation2 + $0x3f1] sm:$0xff] }
 0xcdb   : > { %18806 = vmatpush3.bf16.xpose.msk.msra.mxu0 %vm21683_vm12, %v18804_v8  ;;  %v18885_v8 = vpack.c.bf16 %v10009_v25, %v10008_v27  ;;  %v10098_v27 = vld [vmem:[#allocation2 + $0x499] sm:$0xff]  ;;  %v10099_v25 = vld [vmem:[#allocation2 + $0x4a1] sm:$0xff] }
 0xcdc   : > { %18809 = vmatprep.subr.msk.bf16.mxu0 %vm21683_vm12, %v18807_v24  ;;  %v9992_v24 = vld [vmem:[#allocation2 + $0x79] sm:$0xff] }
 0xcde   : > { %18854 = vmatpush3.bf16.xpose.msk.msra.mxu1 %vm21683_vm12, %v18852_v23  ;;  %v18933_v23 = vpack.c.bf16 %v10041_v1, %v10040_v32  ;;  %v19008_v1 = vpack.c.bf16 %v10081_v4, %v10080_v36  ;;  %v10091_v36 = vld [vmem:[#allocation2 + $0x451] sm:$0xff]  ;;  %v10076_v4 = vld [vmem:[#allocation2 + $0x3c1] sm:$0xff] }
 0xcdf   : > { %18857 = vmatprep.subr.msk.bf16.mxu1 %vm21683_vm12, %v18855_v42  ;;  %v9993_v42 = vld [vmem:[#allocation2 + $0x81] sm:$0xff] }
 0xce0   : > { %v18888_v28 = vpack.c.bf16 %v9993_v42, %v9992_v24  ;;  %v10051_v24 = vld [vmem:[#allocation2 + $0x2c1] sm:$0xff]  ;;  %v10082_v42 = vld [vmem:[#allocation2 + $0x3f9] sm:$0xff] }
 0xce3   : > { %18812 = vmatpush3.bf16.xpose.msk.msra.mxu0 %vm21683_vm12, %v18810_v14  ;;  %v18891_v14 = vpack.c.bf16 %v10011_v29, %v10010_v63  ;;  %v10069_v63 = vld [vmem:[#allocation2 + $0x379] sm:$0xff]  ;;  %v10100_v29 = vld [vmem:[#allocation2 + $0x4b1] sm:$0xff] }
 0xce4   : > { %18863 = vmatprep.subr.msk.bf16.mxu0 %vm21683_vm12, %v18861_v0  ;;  %v9994_v0 = vld [vmem:[#allocation2 + $0x89] sm:$0xff] }
 0xce6   : > { %18860 = vmatpush3.bf16.xpose.msk.msra.mxu1 %vm21683_vm12, %v18858_v57  ;;  %v18939_v57 = vpack.c.bf16 %v10043_v5, %v10042_v18  ;;  %v10101_v18 = vld [vmem:[#allocation2 + $0x4b9] sm:$0xff] }
 0xce7   : > { %18911 = vmatprep.subr.msk.bf16.mxu1 %vm21683_vm12, %v18909_v49  ;;  %v9995_v49 = vld [vmem:[#allocation2 + $0x91] sm:$0xff] }
 0xce8   : > { %v18894_v20 = vpack.c.bf16 %v9995_v49, %v9994_v0  ;;  %v10053_v0 = vld [vmem:[#allocation2 + $0x2d9] sm:$0xff]  ;;  %v10084_v49 = vld [vmem:[#allocation2 + $0x411] sm:$0xff] }
 0xcea   : > { %16771 = vmatmul.mubr.msk.f32.vlgmr.msra.gmra.mrb[162].mxu0 %vm720_vm0, %v23960_v22 }
 0xceb   : > { %18866 = vmatpush3.bf16.xpose.msk.msra.mxu0 %vm21683_vm12, %v18864_v2  ;;  %16772 = vmatprep.mubr.msk.f32.mxu0 %vm720_vm0, %v24037_v61  ;;  %v18897_v2 = vpack.c.bf16 %v10013_v38, %v10012_v52  ;;  %v10071_v52 = vld [vmem:[#allocation2 + $0x389] sm:$0xff]  ;;  %v10102_v38 = vld [vmem:[#allocation2 + $0x4c1] sm:$0xff] }
 0xcec   : > { %18869 = vmatprep.subr.msk.bf16.mxu0 %vm21683_vm12, %v18867_v62  ;;  %v9996_v62 = vld [vmem:[#allocation2 + $0xa1] sm:$0xff] }
 0xced   : > { %16807 = vmatmul.mubr.msk.f32.vlgmr.msra.gmra.mrb[136].mxu1 %vm720_vm0, %v23960_v22  ;;  %v10019_v22 = vld [vmem:[#allocation2 + $0x181] sm:$0xff] }
 0xcee   : > { %18914 = vmatpush3.bf16.xpose.msk.msra.mxu1 %vm21683_vm12, %v18912_v54  ;;  %16808 = vmatprep.mubr.msk.f32.mxu1 %vm720_vm0, %v24037_v61  ;;  %v18918_v35 = vpack.c.bf16 %v10019_v22, %v10018_v55  ;;  %v18945_v54 = vpack.c.bf16 %v10045_v45, %v10044_v19  ;;  %v10014_v55 = vld [vmem:[#allocation2 + $0x151] sm:$0xff]  ;;  %v10015_v22 = vld [vmem:[#allocation2 + $0x159] sm:$0xff]  ;;  %v10103_v19 = vld [vmem:[#allocation2 + $0x4c9] sm:$0xff] }
 0xcef   : > { %18917 = vmatprep.subr.msk.bf16.mxu1 %vm21683_vm12, %v18915_v51  ;;  %16773 = vmatmul.mubr.msk.f32.gmra.mrb[164].mxu0 %vm720_vm0, %v24037_v61  ;;  %v9997_v51 = vld [vmem:[#allocation2 + $0xa9] sm:$0xff] }
 0xcf0   : > { %16842 = vmatprep.mubr.msk.f32.mxu0 %vm720_vm0, %v24130_v16  ;;  %v18900_v43 = vpack.c.bf16 %v9997_v51, %v9996_v62  ;;  %v10055_v62 = vld [vmem:[#allocation2 + $0x2e9] sm:$0xff]  ;;  %v10086_v51 = vld [vmem:[#allocation2 + $0x421] sm:$0xff] }
 0xcf1   : > { %16809 = vmatmul.mubr.msk.f32.gmra.mrb[138].mxu1 %vm720_vm0, %v24037_v61  ;;  %v9989_v61 = vld [vmem:[#allocation2 + $0x59] sm:$0xff] }
 0xcf2   : > { %16878 = vmatprep.mubr.msk.f32.mxu1 %vm720_vm0, %v24130_v16  ;;  %v18876_v56 = vpack.c.bf16 %v9989_v61, %v9988_v37  ;;  %v10030_v37 = vld [vmem:[#allocation2 + $0x1f1] sm:$0xff]  ;;  %v10031_v61 = vld [vmem:[#allocation2 + $0x1f9] sm:$0xff] }
 0xcf3   : > { %18872 = vmatpush3.bf16.xpose.msk.msra.mxu0 %vm21683_vm12, %v18870_v34  ;;  %v18903_v34 = vpack.c.bf16 %v10015_v22, %v10014_v55  ;;  %v18954_v44 = vpack.c.bf16 %v10031_v61, %v10030_v37  ;;  %v10073_v55 = vld [vmem:[#allocation2 + $0x3a1] sm:$0xff]  ;;  %v10104_v22 = vld [vmem:[#allocation2 + $0x4d9] sm:$0xff]  ;;  %v10074_v61 = vld [vmem:[#allocation2 + $0x3a9] sm:$0xff] }
 0xcf4   : > { %18875 = vmatprep.subr.msk.bf16.mxu0 %vm21683_vm12, %v18873_v17  ;;  %v9998_v17 = vld [vmem:[#allocation2 + $0xb1] sm:$0xff]  ;;  %v10089_v37 = vld [vmem:[#allocation2 + $0x441] sm:$0xff] }
 0xcf6   : > { %18920 = vmatpush3.bf16.xpose.msk.msra.mxu1 %vm21683_vm12, %v18918_v35  ;;  %v18951_v35 = vpack.c.bf16 %v10047_v11, %v10046_v47  ;;  %v10105_v47 = vld [vmem:[#allocation2 + $0x4e1] sm:$0xff] }
 0xcf7   : > { %18923 = vmatprep.subr.msk.bf16.mxu1 %vm21683_vm12, %v18921_v21  ;;  %v9999_v21 = vld [vmem:[#allocation2 + $0xb9] sm:$0xff] }
 0xcf8   : > { %v18906_v3 = vpack.c.bf16 %v9999_v21, %v9998_v17  ;;  %v10057_v17 = vld [vmem:[#allocation2 + $0x301] sm:$0xff]  ;;  %v10088_v21 = vld [vmem:[#allocation2 + $0x439] sm:$0xff] }
 0xcfb   : > { %18878 = vmatpush3.bf16.xpose.msk.msra.mxu0 %vm21683_vm12, %v18876_v56  ;;  %v18957_v56 = vpack.c.bf16 %v10065_v13, %v10064_v10  ;;  %v10075_v10 = vld [vmem:[#allocation2 + $0x3b1] sm:$0xff]  ;;  %v10106_v13 = vld [vmem:[#allocation2 + $0x4e9] sm:$0xff] }
 0xcfc   : > { %18881 = vmatprep.subr.msk.bf16.mxu0 %vm21683_vm12, %v18879_v15  ;;  %v10048_v15 = vld [vmem:[#allocation2 + $0x2a9] sm:$0xff] }
 0xcfe   : > { %18926 = vmatpush3.bf16.xpose.msk.msra.mxu1 %vm21683_vm12, %v18924_v48  ;;  %v19005_v48 = vpack.c.bf16 %v10097_v39, %v10096_v31  ;;  %v10107_v31 = vld [vmem:[#allocation2 + $0x4f1] sm:$0xff] }
 0xcff   : > { %18929 = vmatprep.subr.msk.bf16.mxu1 %vm21683_vm12, %v18927_v7  ;;  %v10049_v7 = vld [vmem:[#allocation2 + $0x2b1] sm:$0xff] }
 0xd00   : > { %v18960_v32 = vpack.c.bf16 %v10049_v7, %v10048_v15  ;;  %v10059_v15 = vld [vmem:[#allocation2 + $0x311] sm:$0xff]  ;;  %v10090_v7 = vld [vmem:[#allocation2 + $0x449] sm:$0xff] }
 0xd03   : > { %18884 = vmatpush3.bf16.xpose.msk.msra.mxu0 %vm21683_vm12, %v18882_v26  ;;  %v18963_v26 = vpack.c.bf16 %v10067_v60, %v10066_v6  ;;  %v10077_v6 = vld [vmem:[#allocation2 + $0x3c9] sm:$0xff]  ;;  %v10108_v60 = vld [vmem:[#allocation2 + $0x501] sm:$0xff] }
 0xd04   : > { %18887 = vmatprep.subr.msk.bf16.mxu0 %vm21683_vm12, %v18885_v8  ;;  %v24207_v8 = vld [vmem:[%s25057_s9 + $0x48] sm:$0xff] }
 0xd06   : > { %18932 = vmatpush3.bf16.xpose.msk.msra.mxu1 %vm21683_vm12, %v18930_v9  ;;  %v19011_v9 = vpack.c.bf16 %v10099_v25, %v10098_v27  ;;  %v10109_v27 = vld [vmem:[#allocation2 + $0x509] sm:$0xff] }
 0xd07   : > { %18935 = vmatprep.subr.msk.bf16.mxu1 %vm21683_vm12, %v18933_v23  ;;  %v10050_v23 = vld [vmem:[#allocation2 + $0x2b9] sm:$0xff] }
 0xd08   : > { %v18966_v5 = vpack.c.bf16 %v10051_v24, %v10050_v23  ;;  %v10061_v23 = vld [vmem:[#allocation2 + $0x329] sm:$0xff]  ;;  %v10092_v24 = vld [vmem:[#allocation2 + $0x461] sm:$0xff] }
 0xd0b   : > { %18890 = vmatpush3.bf16.xpose.msk.msra.mxu0 %vm21683_vm12, %v18888_v28  ;;  %v19014_v28 = vpack.c.bf16 %v10083_v40, %v10082_v42  ;;  %v10093_v42 = vld [vmem:[#allocation2 + $0x469] sm:$0xff]  ;;  %v10078_v40 = vld [vmem:[#allocation2 + $0x3d1] sm:$0xff] }
 0xd0c   : > { %18893 = vmatprep.subr.msk.bf16.mxu0 %vm21683_vm12, %v18891_v14  ;;  %v19017_v14 = vpack.c.bf16 %v10101_v18, %v10100_v29  ;;  %v10111_v29 = vld [vmem:[#allocation2 + $0x519] sm:$0xff] }
 0xd0e   : > { %18938 = vmatpush3.bf16.xpose.msk.msra.mxu1 %vm21683_vm12, %v18936_v50  ;;  %v18969_v50 = vpack.c.bf16 %v10069_v63, %v10068_v12  ;;  %v10079_v12 = vld [vmem:[#allocation2 + $0x3d9] sm:$0xff]  ;;  %v10110_v63 = vld [vmem:[#allocation2 + $0x511] sm:$0xff] }
 0xd0f   : > { %18941 = vmatprep.subr.msk.bf16.mxu1 %vm21683_vm12, %v18939_v57  ;;  %v10052_v57 = vld [vmem:[#allocation2 + $0x2d1] sm:$0xff] }
 0xd10   : > { %v18972_v45 = vpack.c.bf16 %v10053_v0, %v10052_v57  ;;  %v10063_v57 = vld [vmem:[#allocation2 + $0x339] sm:$0xff]  ;;  %v10094_v0 = vld [vmem:[#allocation2 + $0x471] sm:$0xff] }
 0xd13   : > { %18896 = vmatpush3.bf16.xpose.msk.msra.mxu0 %vm21683_vm12, %v18894_v20  ;;  %v19020_v20 = vpack.c.bf16 %v10085_v41, %v10084_v49  ;;  %v10095_v49 = vld [vmem:[#allocation2 + $0x479] sm:$0xff]  ;;  %v10845_v41 = vld [vmem:[#allocation2 + $0xca] sm:$0xff] }
 0xd14   : > { %18899 = vmatprep.subr.msk.bf16.mxu0 %vm21683_vm12, %v18897_v2  ;;  %v19023_v2 = vpack.c.bf16 %v10103_v19, %v10102_v38  ;;  %v10878_v38 = vld [vmem:[#allocation2 + $0x212] sm:$0xff] }
 0xd16   : > { %18944 = vmatpush3.bf16.xpose.msk.msra.mxu1 %vm21683_vm12, %v18942_v30  ;;  %v18975_v30 = vpack.c.bf16 %v10071_v52, %v10070_v46  ;;  %v10846_v46 = vld [vmem:[#allocation2 + $0xd2] sm:$0xff]  ;;  %v10877_v52 = vld [vmem:[#allocation2 + $0x20a] sm:$0xff] }
 0xd17   : > { %18947 = vmatprep.subr.msk.bf16.mxu1 %vm21683_vm12, %v18945_v54  ;;  %v10054_v54 = vld [vmem:[#allocation2 + $0x2e1] sm:$0xff] }
 0xd18   : > { %v18978_v11 = vpack.c.bf16 %v10055_v62, %v10054_v54  ;;  %v10830_v54 = vld [vmem:[#allocation2 + $0x32] sm:$0xff]  ;;  %v10861_v62 = vld [vmem:[#allocation2 + $0x16a] sm:$0xff] }
 0xd1b   : > { %18902 = vmatpush3.bf16.xpose.msk.msra.mxu0 %vm21683_vm12, %v18900_v43  ;;  %v19026_v43 = vpack.c.bf16 %v10087_v53, %v10086_v51  ;;  %v10862_v51 = vld [vmem:[#allocation2 + $0x172] sm:$0xff]  ;;  %v10847_v53 = vld [vmem:[#allocation2 + $0xda] sm:$0xff] }
 0xd1c   : > { %18905 = vmatprep.subr.msk.bf16.mxu0 %vm21683_vm12, %v18903_v34  ;;  %v19029_v34 = vpack.c.bf16 %v10105_v47, %v10104_v22  ;;  %v10880_v22 = vld [vmem:[#allocation2 + $0x222] sm:$0xff] }
 0xd1e   : > { %18950 = vmatpush3.bf16.xpose.msk.msra.mxu1 %vm21683_vm12, %v18948_v59  ;;  %v18981_v59 = vpack.c.bf16 %v10073_v55, %v10072_v33  ;;  %v10848_v33 = vld [vmem:[#allocation2 + $0xe2] sm:$0xff]  ;;  %v10879_v55 = vld [vmem:[#allocation2 + $0x21a] sm:$0xff] }
 0xd1f   : > { %18953 = vmatprep.subr.msk.bf16.mxu1 %vm21683_vm12, %v18951_v35  ;;  %v10056_v35 = vld [vmem:[#allocation2 + $0x2f9] sm:$0xff] }
 0xd20   : > { %v18984_v39 = vpack.c.bf16 %v10057_v17, %v10056_v35  ;;  %v10832_v35 = vld [vmem:[#allocation2 + $0x42] sm:$0xff]  ;;  %v10863_v17 = vld [vmem:[#allocation2 + $0x17a] sm:$0xff] }
 0xd23   : > { %18908 = vmatpush3.bf16.xpose.msk.msra.mxu0 %vm21683_vm12, %v18906_v3  ;;  %v19032_v3 = vpack.c.bf16 %v10089_v37, %v10088_v21  ;;  %v24300_v21 = vld [vmem:[%s25057_s9 + $0x50] sm:$0xff] }
 0xd24   : > { %18959 = vmatprep.subr.msk.bf16.mxu0 %vm21683_vm12, %v18957_v56  ;;  %v19035_v56 = vpack.c.bf16 %v10107_v31, %v10106_v13  ;;  %v10849_v37 = vld [vmem:[#allocation2 + $0xf2] sm:$0xff]  ;;  %v10882_v13 = vld [vmem:[#allocation2 + $0x23a] sm:$0xff] }
 0xd26   : > { %18956 = vmatpush3.bf16.xpose.msk.msra.mxu1 %vm21683_vm12, %v18954_v44  ;;  %v18987_v44 = vpack.c.bf16 %v10075_v10, %v10074_v61  ;;  %v10850_v61 = vld [vmem:[#allocation2 + $0xfa] sm:$0xff]  ;;  %v10881_v10 = vld [vmem:[#allocation2 + $0x232] sm:$0xff] }
 0xd27   : > { %19007 = vmatprep.subr.msk.bf16.mxu1 %vm21683_vm12, %v19005_v48  ;;  %v10058_v48 = vld [vmem:[#allocation2 + $0x309] sm:$0xff] }
 0xd28   : > { %v18990_v25 = vpack.c.bf16 %v10059_v15, %v10058_v48  ;;  %v10865_v48 = vld [vmem:[#allocation2 + $0x192] sm:$0xff]  ;;  %v10866_v15 = vld [vmem:[#allocation2 + $0x19a] sm:$0xff] }
 0xd2a   : > { %16843 = vmatmul.mubr.msk.f32.vlgmr.msra.gmra.mrb[158].mxu0 %vm720_vm0, %v24130_v16 }
 0xd2b   : > { %18962 = vmatpush3.bf16.xpose.msk.msra.mxu0 %vm21683_vm12, %v18960_v32  ;;  %16844 = vmatprep.mubr.msk.f32.mxu0 %vm720_vm0, %v24207_v8  ;;  %v19038_v32 = vpack.c.bf16 %v10091_v36, %v10090_v7  ;;  %v10851_v7 = vld [vmem:[#allocation2 + $0x102] sm:$0xff]  ;;  %v10852_v36 = vld [vmem:[#allocation2 + $0x10a] sm:$0xff] }
 0xd2c   : > { %18965 = vmatprep.subr.msk.bf16.mxu0 %vm21683_vm12, %v18963_v26  ;;  %v19041_v26 = vpack.c.bf16 %v10109_v27, %v10108_v60  ;;  %v19116_v27 = vpack.c.bf16 %v10866_v15, %v10865_v48  ;;  %v10909_v48 = vld [vmem:[#allocation2 + $0x34a] sm:$0xff]  ;;  %v10910_v15 = vld [vmem:[#allocation2 + $0x352] sm:$0xff] }
 0xd2d   : > { %16879 = vmatmul.mubr.msk.f32.vlgmr.msra.gmra.mrb[132].mxu1 %vm720_vm0, %v24130_v16 }
 0xd2e   : > { %19010 = vmatpush3.bf16.xpose.msk.msra.mxu1 %vm21683_vm12, %v19008_v1  ;;  %16880 = vmatprep.mubr.msk.f32.mxu1 %vm720_vm0, %v24207_v8  ;;  %v18993_v1 = vpack.c.bf16 %v10077_v6, %v10076_v4  ;;  %v10883_v4 = vld [vmem:[#allocation2 + $0x242] sm:$0xff]  ;;  %v10884_v6 = vld [vmem:[#allocation2 + $0x24a] sm:$0xff] }
 0xd2f   : > { %19013 = vmatprep.subr.msk.bf16.mxu1 %vm21683_vm12, %v19011_v9  ;;  %16845 = vmatmul.mubr.msk.f32.gmra.mrb[160].mxu0 %vm720_vm0, %v24207_v8  ;;  %v10060_v9 = vld [vmem:[#allocation2 + $0x321] sm:$0xff] }
 0xd30   : > { %16914 = vmatprep.mubr.msk.f32.mxu0 %vm720_vm0, %v24130_v16  ;;  %v18996_v18 = vpack.c.bf16 %v10061_v23, %v10060_v9  ;;  %v10867_v9 = vld [vmem:[#allocation2 + $0x1a2] sm:$0xff]  ;;  %v10868_v23 = vld [vmem:[#allocation2 + $0x1aa] sm:$0xff] }
 0xd31   : > { %16881 = vmatmul.mubr.msk.f32.gmra.mrb[134].mxu1 %vm720_vm0, %v24207_v8 }
 0xd32   : > { %16950 = vmatprep.mubr.msk.f32.mxu1 %vm720_vm0, %v24130_v16 }
 0xd33   : > { %18968 = vmatpush3.bf16.xpose.msk.msra.mxu0 %vm21683_vm12, %v18966_v5  ;;  %v19044_v5 = vpack.c.bf16 %v10093_v42, %v10092_v24  ;;  %v10853_v24 = vld [vmem:[#allocation2 + $0x11a] sm:$0xff]  ;;  %v10854_v42 = vld [vmem:[#allocation2 + $0x122] sm:$0xff] }
 0xd34   : > { %18971 = vmatprep.subr.msk.bf16.mxu0 %vm21683_vm12, %v18969_v50  ;;  %v19047_v50 = vpack.c.bf16 %v10111_v29, %v10110_v63  ;;  %v19122_v29 = vpack.c.bf16 %v10868_v23, %v10867_v9  ;;  %v10911_v9 = vld [vmem:[#allocation2 + $0x35a] sm:$0xff]  ;;  %v10912_v23 = vld [vmem:[#allocation2 + $0x362] sm:$0xff] }
 0xd36   : > { %19016 = vmatpush3.bf16.xpose.msk.msra.mxu1 %vm21683_vm12, %v19014_v28  ;;  %v18999_v28 = vpack.c.bf16 %v10079_v12, %v10078_v40  ;;  %v10885_v40 = vld [vmem:[#allocation2 + $0x25a] sm:$0xff]  ;;  %v10886_v12 = vld [vmem:[#allocation2 + $0x262] sm:$0xff] }
 0xd37   : > { %19019 = vmatprep.subr.msk.bf16.mxu1 %vm21683_vm12, %v19017_v14  ;;  %v10062_v14 = vld [vmem:[#allocation2 + $0x331] sm:$0xff] }
 0xd38   : > { %v19002_v19 = vpack.c.bf16 %v10063_v57, %v10062_v14  ;;  %v10869_v14 = vld [vmem:[#allocation2 + $0x1ba] sm:$0xff]  ;;  %v10870_v57 = vld [vmem:[#allocation2 + $0x1c2] sm:$0xff] }
 0xd3b   : > { %18974 = vmatpush3.bf16.xpose.msk.msra.mxu0 %vm21683_vm12, %v18972_v45  ;;  %v19050_v45 = vpack.c.bf16 %v10095_v49, %v10094_v0  ;;  %v10855_v0 = vld [vmem:[#allocation2 + $0x12a] sm:$0xff]  ;;  %v10856_v49 = vld [vmem:[#allocation2 + $0x132] sm:$0xff] }
 0xd3c   : > { %18977 = vmatprep.subr.msk.bf16.mxu0 %vm21683_vm12, %v18975_v30  ;;  %v19101_v30 = vpack.c.bf16 %v10878_v38, %v10877_v52  ;;  %v19128_v38 = vpack.c.bf16 %v10870_v57, %v10869_v14  ;;  %v10928_v14 = vld [vmem:[#allocation2 + $0x402] sm:$0xff]  ;;  %v10913_v57 = vld [vmem:[#allocation2 + $0x372] sm:$0xff] }
 0xd3e   : > { %19022 = vmatpush3.bf16.xpose.msk.msra.mxu1 %vm21683_vm12, %v19020_v20  ;;  %v19053_v20 = vpack.c.bf16 %v10846_v46, %v10845_v41  ;;  %v10887_v41 = vld [vmem:[#allocation2 + $0x26a] sm:$0xff]  ;;  %v10888_v46 = vld [vmem:[#allocation2 + $0x272] sm:$0xff] }
 0xd3f   : > { %19025 = vmatprep.subr.msk.bf16.mxu1 %vm21683_vm12, %v19023_v2  ;;  %v10829_v2 = vld [vmem:[#allocation2 + $0x2a] sm:$0xff] }
 0xd40   : > { %v19056_v47 = vpack.c.bf16 %v10830_v54, %v10829_v2  ;;  %v10871_v2 = vld [vmem:[#allocation2 + $0x1ca] sm:$0xff]  ;;  %v10872_v54 = vld [vmem:[#allocation2 + $0x1d2] sm:$0xff] }
 0xd43   : > { %18980 = vmatpush3.bf16.xpose.msk.msra.mxu0 %vm21683_vm12, %v18978_v11  ;;  %v19104_v11 = vpack.c.bf16 %v10862_v51, %v10861_v62  ;;  %v10857_v62 = vld [vmem:[#allocation2 + $0x142] sm:$0xff]  ;;  %v10858_v51 = vld [vmem:[#allocation2 + $0x14a] sm:$0xff] }
 0xd44   : > { %18983 = vmatprep.subr.msk.bf16.mxu0 %vm21683_vm12, %v18981_v59  ;;  %v19107_v59 = vpack.c.bf16 %v10880_v22, %v10879_v55  ;;  %v19134_v22 = vpack.c.bf16 %v10872_v54, %v10871_v2  ;;  %v10930_v2 = vld [vmem:[#allocation2 + $0x41a] sm:$0xff]  ;;  %v10915_v54 = vld [vmem:[#allocation2 + $0x382] sm:$0xff] }
 0xd46   : > { %19028 = vmatpush3.bf16.xpose.msk.msra.mxu1 %vm21683_vm12, %v19026_v43  ;;  %v19059_v43 = vpack.c.bf16 %v10848_v33, %v10847_v53  ;;  %v10889_v53 = vld [vmem:[#allocation2 + $0x282] sm:$0xff]  ;;  %v10890_v33 = vld [vmem:[#allocation2 + $0x28a] sm:$0xff] }
 0xd47   : > { %19031 = vmatprep.subr.msk.bf16.mxu1 %vm21683_vm12, %v19029_v34  ;;  %v10831_v34 = vld [vmem:[#allocation2 + $0x3a] sm:$0xff] }
 0xd48   : > { %v19062_v31 = vpack.c.bf16 %v10832_v35, %v10831_v34  ;;  %v10873_v34 = vld [vmem:[#allocation2 + $0x1e2] sm:$0xff]  ;;  %v10874_v35 = vld [vmem:[#allocation2 + $0x1ea] sm:$0xff] }
 0xd4b   : > { %18986 = vmatpush3.bf16.xpose.msk.msra.mxu0 %vm21683_vm12, %v18984_v39 }
 0xd4c   : > { %18989 = vmatprep.subr.msk.bf16.mxu0 %vm21683_vm12, %v18987_v44  ;;  %v19113_v44 = vpack.c.bf16 %v10882_v13, %v10881_v10  ;;  %v19140_v13 = vpack.c.bf16 %v10874_v35, %v10873_v34  ;;  %v10932_v34 = vld [vmem:[#allocation2 + $0x42a] sm:$0xff]  ;;  %v10917_v35 = vld [vmem:[#allocation2 + $0x39a] sm:$0xff] }
 0xd4e   : > { %19034 = vmatpush3.bf16.xpose.msk.msra.mxu1 %vm21683_vm12, %v19032_v3  ;;  %v19065_v3 = vpack.c.bf16 %v10850_v61, %v10849_v37  ;;  %v10891_v37 = vld [vmem:[#allocation2 + $0x292] sm:$0xff]  ;;  %v10892_v61 = vld [vmem:[#allocation2 + $0x29a] sm:$0xff] }
 0xd4f   : > { %19037 = vmatprep.subr.msk.bf16.mxu1 %vm21683_vm12, %v19035_v56  ;;  %v10833_v56 = vld [vmem:[#allocation2 + $0x52] sm:$0xff] }
 0xd53   : > { %18992 = vmatpush3.bf16.xpose.msk.msra.mxu0 %vm21683_vm12, %v18990_v25  ;;  %v19071_v25 = vpack.c.bf16 %v10852_v36, %v10851_v7  ;;  %v10941_v7 = vld [vmem:[#allocation2 + $0x48a] sm:$0xff]  ;;  %v10942_v36 = vld [vmem:[#allocation2 + $0x492] sm:$0xff] }
 0xd54   : > { %18995 = vmatprep.subr.msk.bf16.mxu0 %vm21683_vm12, %v18993_v1  ;;  %v10835_v1 = vld [vmem:[#allocation2 + $0x62] sm:$0xff] }
 0xd56   : > { %19040 = vmatpush3.bf16.xpose.msk.msra.mxu1 %vm21683_vm12, %v19038_v32  ;;  %v19119_v32 = vpack.c.bf16 %v10884_v6, %v10883_v4 }
 0xd57   : > { %19043 = vmatprep.subr.msk.bf16.mxu1 %vm21683_vm12, %v19041_v26  ;;  %v10836_v26 = vld [vmem:[#allocation2 + $0x6a] sm:$0xff] }
 0xd58   : > { %v19074_v63 = vpack.c.bf16 %v10836_v26, %v10835_v1  ;;  %v10925_v1 = vld [vmem:[#allocation2 + $0x3ea] sm:$0xff]  ;;  %v10926_v26 = vld [vmem:[#allocation2 + $0x3f2] sm:$0xff] }
 0xd5b   : > { %18998 = vmatpush3.bf16.xpose.msk.msra.mxu0 %vm21683_vm12, %v18996_v18  ;;  %v19077_v18 = vpack.c.bf16 %v10854_v42, %v10853_v24  ;;  %v10943_v24 = vld [vmem:[#allocation2 + $0x49a] sm:$0xff]  ;;  %v10944_v42 = vld [vmem:[#allocation2 + $0x4a2] sm:$0xff] }
 0xd5c   : > { %19001 = vmatprep.subr.msk.bf16.mxu0 %vm21683_vm12, %v18999_v28  ;;  %v10837_v28 = vld [vmem:[#allocation2 + $0x7a] sm:$0xff] }
 0xd5e   : > { %19046 = vmatpush3.bf16.xpose.msk.msra.mxu1 %vm21683_vm12, %v19044_v5  ;;  %v19125_v5 = vpack.c.bf16 %v10886_v12, %v10885_v40  ;;  %v19200_v12 = vpack.c.bf16 %v10926_v26, %v10925_v1  ;;  %v10936_v1 = vld [vmem:[#allocation2 + $0x452] sm:$0xff]  ;;  %v10921_v26 = vld [vmem:[#allocation2 + $0x3c2] sm:$0xff] }
 0xd5f   : > { %19049 = vmatprep.subr.msk.bf16.mxu1 %vm21683_vm12, %v19047_v50  ;;  %v10838_v50 = vld [vmem:[#allocation2 + $0x82] sm:$0xff] }
 0xd60   : > { %v19080_v52 = vpack.c.bf16 %v10838_v50, %v10837_v28  ;;  %v10896_v28 = vld [vmem:[#allocation2 + $0x2c2] sm:$0xff]  ;;  %v10927_v50 = vld [vmem:[#allocation2 + $0x3fa] sm:$0xff] }
 0xd63   : > { %19004 = vmatpush3.bf16.xpose.msk.msra.mxu0 %vm21683_vm12, %v19002_v19  ;;  %v19083_v19 = vpack.c.bf16 %v10856_v49, %v10855_v0  ;;  %v10914_v0 = vld [vmem:[#allocation2 + $0x37a] sm:$0xff]  ;;  %v10945_v49 = vld [vmem:[#allocation2 + $0x4b2] sm:$0xff] }
 0xd64   : > { %19055 = vmatprep.subr.msk.bf16.mxu0 %vm21683_vm12, %v19053_v20  ;;  %v10839_v20 = vld [vmem:[#allocation2 + $0x8a] sm:$0xff] }
 0xd66   : > { %19052 = vmatpush3.bf16.xpose.msk.msra.mxu1 %vm21683_vm12, %v19050_v45  ;;  %v19131_v45 = vpack.c.bf16 %v10888_v46, %v10887_v41  ;;  %v10946_v41 = vld [vmem:[#allocation2 + $0x4ba] sm:$0xff] }
 0xd67   : > { %19103 = vmatprep.subr.msk.bf16.mxu1 %vm21683_vm12, %v19101_v30  ;;  %v10840_v30 = vld [vmem:[#allocation2 + $0x92] sm:$0xff] }
 0xd68   : > { %v19086_v55 = vpack.c.bf16 %v10840_v30, %v10839_v20  ;;  %v10898_v20 = vld [vmem:[#allocation2 + $0x2da] sm:$0xff]  ;;  %v10929_v30 = vld [vmem:[#allocation2 + $0x412] sm:$0xff] }
 0xd6a   : > { %16915 = vmatmul.mubr.msk.f32.vlgmr.msra.gmra.mrb[162].mxu0 %vm720_vm0, %v24130_v16 }
 0xd6b   : > { %19058 = vmatpush3.bf16.xpose.msk.msra.mxu0 %vm21683_vm12, %v19056_v47  ;;  %16916 = vmatprep.mubr.msk.f32.mxu0 %vm720_vm0, %v24207_v8  ;;  %v19089_v47 = vpack.c.bf16 %v10858_v51, %v10857_v62  ;;  %v10916_v62 = vld [vmem:[#allocation2 + $0x38a] sm:$0xff]  ;;  %v10947_v51 = vld [vmem:[#allocation2 + $0x4c2] sm:$0xff] }
 0xd6c   : > { %19061 = vmatprep.subr.msk.bf16.mxu0 %vm21683_vm12, %v19059_v43  ;;  %v10841_v43 = vld [vmem:[#allocation2 + $0xa2] sm:$0xff] }
 0xd6d   : > { %16951 = vmatmul.mubr.msk.f32.vlgmr.msra.gmra.mrb[136].mxu1 %vm720_vm0, %v24130_v16  ;;  %v10864_v16 = vld [vmem:[#allocation2 + $0x182] sm:$0xff] }
 0xd6e   : > { %19106 = vmatpush3.bf16.xpose.msk.msra.mxu1 %vm21683_vm12, %v19104_v11  ;;  %16952 = vmatprep.mubr.msk.f32.mxu1 %vm720_vm0, %v24207_v8  ;;  %v19110_v39 = vpack.c.bf16 %v10864_v16, %v10863_v17  ;;  %v19137_v11 = vpack.c.bf16 %v10890_v33, %v10889_v53  ;;  %v10859_v17 = vld [vmem:[#allocation2 + $0x152] sm:$0xff]  ;;  %v10860_v16 = vld [vmem:[#allocation2 + $0x15a] sm:$0xff]  ;;  %v10948_v53 = vld [vmem:[#allocation2 + $0x4ca] sm:$0xff] }
 0xd6f   : > { %19109 = vmatprep.subr.msk.bf16.mxu1 %vm21683_vm12, %v19107_v59  ;;  %16917 = vmatmul.mubr.msk.f32.gmra.mrb[164].mxu0 %vm720_vm0, %v24207_v8  ;;  %v10842_v59 = vld [vmem:[#allocation2 + $0xaa] sm:$0xff] }
 0xd70   : > { %16986 = vmatprep.mubr.msk.f32.mxu0 %vm720_vm0, %v24300_v21  ;;  %v19092_v10 = vpack.c.bf16 %v10842_v59, %v10841_v43  ;;  %v10900_v43 = vld [vmem:[#allocation2 + $0x2ea] sm:$0xff]  ;;  %v10931_v59 = vld [vmem:[#allocation2 + $0x422] sm:$0xff] }
 0xd71   : > { %16953 = vmatmul.mubr.msk.f32.gmra.mrb[138].mxu1 %vm720_vm0, %v24207_v8  ;;  %v10834_v8 = vld [vmem:[#allocation2 + $0x5a] sm:$0xff] }
 0xd72   : > { %17022 = vmatprep.mubr.msk.f32.mxu1 %vm720_vm0, %v24300_v21  ;;  %v19068_v60 = vpack.c.bf16 %v10834_v8, %v10833_v56  ;;  %v10875_v56 = vld [vmem:[#allocation2 + $0x1f2] sm:$0xff]  ;;  %v10876_v8 = vld [vmem:[#allocation2 + $0x1fa] sm:$0xff] }
 0xd73   : > { %19064 = vmatpush3.bf16.xpose.msk.msra.mxu0 %vm21683_vm12, %v19062_v31  ;;  %v19095_v31 = vpack.c.bf16 %v10860_v16, %v10859_v17  ;;  %v19146_v6 = vpack.c.bf16 %v10876_v8, %v10875_v56  ;;  %v10918_v17 = vld [vmem:[#allocation2 + $0x3a2] sm:$0xff]  ;;  %v10949_v16 = vld [vmem:[#allocation2 + $0x4da] sm:$0xff]  ;;  %v10919_v8 = vld [vmem:[#allocation2 + $0x3aa] sm:$0xff] }
 0xd74   : > { %19067 = vmatprep.subr.msk.bf16.mxu0 %vm21683_vm12, %v19065_v3  ;;  %v10843_v3 = vld [vmem:[#allocation2 + $0xb2] sm:$0xff]  ;;  %v10934_v56 = vld [vmem:[#allocation2 + $0x442] sm:$0xff] }
 0xd76   : > { %19112 = vmatpush3.bf16.xpose.msk.msra.mxu1 %vm21683_vm12, %v19110_v39  ;;  %v19143_v39 = vpack.c.bf16 %v10892_v61, %v10891_v37  ;;  %v10950_v37 = vld [vmem:[#allocation2 + $0x4e2] sm:$0xff] }
 0xd77   : > { %19115 = vmatprep.subr.msk.bf16.mxu1 %vm21683_vm12, %v19113_v44  ;;  %v10844_v44 = vld [vmem:[#allocation2 + $0xba] sm:$0xff] }
 0xd78   : > { %v19098_v4 = vpack.c.bf16 %v10844_v44, %v10843_v3  ;;  %v10902_v3 = vld [vmem:[#allocation2 + $0x302] sm:$0xff]  ;;  %v10933_v44 = vld [vmem:[#allocation2 + $0x43a] sm:$0xff] }
 0xd7b   : > { %19070 = vmatpush3.bf16.xpose.msk.msra.mxu0 %vm21683_vm12, %v19068_v60  ;;  %v19149_v60 = vpack.c.bf16 %v10910_v15, %v10909_v48  ;;  %v10920_v48 = vld [vmem:[#allocation2 + $0x3b2] sm:$0xff]  ;;  %v10951_v15 = vld [vmem:[#allocation2 + $0x4ea] sm:$0xff] }
 0xd7c   : > { %19073 = vmatprep.subr.msk.bf16.mxu0 %vm21683_vm12, %v19071_v25  ;;  %v10893_v25 = vld [vmem:[#allocation2 + $0x2aa] sm:$0xff] }
 0xd7e   : > { %19118 = vmatpush3.bf16.xpose.msk.msra.mxu1 %vm21683_vm12, %v19116_v27  ;;  %v19197_v27 = vpack.c.bf16 %v10942_v36, %v10941_v7  ;;  %v10952_v7 = vld [vmem:[#allocation2 + $0x4f2] sm:$0xff] }
 0xd7f   : > { %19121 = vmatprep.subr.msk.bf16.mxu1 %vm21683_vm12, %v19119_v32  ;;  %v10894_v32 = vld [vmem:[#allocation2 + $0x2b2] sm:$0xff] }
 0xd80   : > { %v19152_v40 = vpack.c.bf16 %v10894_v32, %v10893_v25  ;;  %v10904_v25 = vld [vmem:[#allocation2 + $0x312] sm:$0xff]  ;;  %v10935_v32 = vld [vmem:[#allocation2 + $0x44a] sm:$0xff] }
 0xd83   : > { %19076 = vmatpush3.bf16.xpose.msk.msra.mxu0 %vm21683_vm12, %v19074_v63  ;;  %v19155_v63 = vpack.c.bf16 %v10912_v23, %v10911_v9  ;;  %v10922_v9 = vld [vmem:[#allocation2 + $0x3ca] sm:$0xff]  ;;  %v10953_v23 = vld [vmem:[#allocation2 + $0x502] sm:$0xff] }
 0xd84   : > { %19079 = vmatprep.subr.msk.bf16.mxu0 %vm21683_vm12, %v19077_v18  ;;  %v24377_v18 = vld [vmem:[%s25057_s9 + $0x58] sm:$0xff] }
 0xd86   : > { %19124 = vmatpush3.bf16.xpose.msk.msra.mxu1 %vm21683_vm12, %v19122_v29  ;;  %v19203_v29 = vpack.c.bf16 %v10944_v42, %v10943_v24  ;;  %v10954_v24 = vld [vmem:[#allocation2 + $0x50a] sm:$0xff] }
 0xd87   : > { %19127 = vmatprep.subr.msk.bf16.mxu1 %vm21683_vm12, %v19125_v5  ;;  %v10895_v5 = vld [vmem:[#allocation2 + $0x2ba] sm:$0xff] }
 0xd88   : > { %v19158_v46 = vpack.c.bf16 %v10896_v28, %v10895_v5  ;;  %v10906_v5 = vld [vmem:[#allocation2 + $0x32a] sm:$0xff]  ;;  %v10937_v28 = vld [vmem:[#allocation2 + $0x462] sm:$0xff] }
 0xd8b   : > { %19082 = vmatpush3.bf16.xpose.msk.msra.mxu0 %vm21683_vm12, %v19080_v52  ;;  %v19206_v52 = vpack.c.bf16 %v10928_v14, %v10927_v50  ;;  %v10938_v50 = vld [vmem:[#allocation2 + $0x46a] sm:$0xff]  ;;  %v10923_v14 = vld [vmem:[#allocation2 + $0x3d2] sm:$0xff] }
 0xd8c   : > { %19085 = vmatprep.subr.msk.bf16.mxu0 %vm21683_vm12, %v19083_v19  ;;  %v19209_v19 = vpack.c.bf16 %v10946_v41, %v10945_v49  ;;  %v10956_v49 = vld [vmem:[#allocation2 + $0x51a] sm:$0xff] }
 0xd8e   : > { %19130 = vmatpush3.bf16.xpose.msk.msra.mxu1 %vm21683_vm12, %v19128_v38  ;;  %v19161_v38 = vpack.c.bf16 %v10914_v0, %v10913_v57  ;;  %v10924_v57 = vld [vmem:[#allocation2 + $0x3da] sm:$0xff]  ;;  %v10955_v0 = vld [vmem:[#allocation2 + $0x512] sm:$0xff] }
 0xd8f   : > { %19133 = vmatprep.subr.msk.bf16.mxu1 %vm21683_vm12, %v19131_v45  ;;  %v10897_v45 = vld [vmem:[#allocation2 + $0x2d2] sm:$0xff] }
 0xd90   : > { %v19164_v33 = vpack.c.bf16 %v10898_v20, %v10897_v45  ;;  %v10908_v45 = vld [vmem:[#allocation2 + $0x33a] sm:$0xff]  ;;  %v10939_v20 = vld [vmem:[#allocation2 + $0x472] sm:$0xff] }
 0xd93   : > { %19088 = vmatpush3.bf16.xpose.msk.msra.mxu0 %vm21683_vm12, %v19086_v55  ;;  %v19212_v55 = vpack.c.bf16 %v10930_v2, %v10929_v30  ;;  %v10940_v30 = vld [vmem:[#allocation2 + $0x47a] sm:$0xff]  ;;  %v11691_v2 = vld [vmem:[#allocation2 + $0xf0] sm:$0xff] }
 0xd94   : > { %19091 = vmatprep.subr.msk.bf16.mxu0 %vm21683_vm12, %v19089_v47  ;;  %v19215_v47 = vpack.c.bf16 %v10948_v53, %v10947_v51  ;;  %v11724_v51 = vld [vmem:[#allocation2 + $0x238] sm:$0xff] }
 0xd96   : > { %19136 = vmatpush3.bf16.xpose.msk.msra.mxu1 %vm21683_vm12, %v19134_v22  ;;  %v19167_v22 = vpack.c.bf16 %v10916_v62, %v10915_v54  ;;  %v11692_v54 = vld [vmem:[#allocation2 + $0xf8] sm:$0xff]  ;;  %v11723_v62 = vld [vmem:[#allocation2 + $0x230] sm:$0xff] }
 0xd97   : > { %19139 = vmatprep.subr.msk.bf16.mxu1 %vm21683_vm12, %v19137_v11  ;;  %v10899_v11 = vld [vmem:[#allocation2 + $0x2e2] sm:$0xff] }
 0xd98   : > { %v19170_v61 = vpack.c.bf16 %v10900_v43, %v10899_v11  ;;  %v11676_v11 = vld [vmem:[#allocation2 + $0x58] sm:$0xff]  ;;  %v11707_v43 = vld [vmem:[#allocation2 + $0x190] sm:$0xff] }
 0xd9b   : > { %19094 = vmatpush3.bf16.xpose.msk.msra.mxu0 %vm21683_vm12, %v19092_v10  ;;  %v19218_v10 = vpack.c.bf16 %v10932_v34, %v10931_v59  ;;  %v11708_v59 = vld [vmem:[#allocation2 + $0x198] sm:$0xff]  ;;  %v11693_v34 = vld [vmem:[#allocation2 + $0x100] sm:$0xff] }
 0xd9c   : > { %19097 = vmatprep.subr.msk.bf16.mxu0 %vm21683_vm12, %v19095_v31  ;;  %v19221_v31 = vpack.c.bf16 %v10950_v37, %v10949_v16  ;;  %v11726_v16 = vld [vmem:[#allocation2 + $0x248] sm:$0xff] }
 0xd9e   : > { %19142 = vmatpush3.bf16.xpose.msk.msra.mxu1 %vm21683_vm12, %v19140_v13  ;;  %v19173_v13 = vpack.c.bf16 %v10918_v17, %v10917_v35  ;;  %v11694_v35 = vld [vmem:[#allocation2 + $0x108] sm:$0xff]  ;;  %v11725_v17 = vld [vmem:[#allocation2 + $0x240] sm:$0xff] }
 0xd9f   : > { %19145 = vmatprep.subr.msk.bf16.mxu1 %vm21683_vm12, %v19143_v39  ;;  %v10901_v39 = vld [vmem:[#allocation2 + $0x2fa] sm:$0xff] }
 0xda0   : > { %v19176_v36 = vpack.c.bf16 %v10902_v3, %v10901_v39  ;;  %v11678_v39 = vld [vmem:[#allocation2 + $0x68] sm:$0xff]  ;;  %v11709_v3 = vld [vmem:[#allocation2 + $0x1a0] sm:$0xff] }
 0xda3   : > { %19100 = vmatpush3.bf16.xpose.msk.msra.mxu0 %vm21683_vm12, %v19098_v4  ;;  %v19224_v4 = vpack.c.bf16 %v10934_v56, %v10933_v44  ;;  %v24470_v44 = vld [vmem:[%s25057_s9 + $0x60] sm:$0xff]  ;;  %v11695_v56 = vld [vmem:[#allocation2 + $0x118] sm:$0xff] }
 0xda4   : > { %19151 = vmatprep.subr.msk.bf16.mxu0 %vm21683_vm12, %v19149_v60  ;;  %v19227_v60 = vpack.c.bf16 %v10952_v7, %v10951_v15  ;;  %v11728_v15 = vld [vmem:[#allocation2 + $0x260] sm:$0xff] }
 0xda6   : > { %19148 = vmatpush3.bf16.xpose.msk.msra.mxu1 %vm21683_vm12, %v19146_v6  ;;  %v19179_v6 = vpack.c.bf16 %v10920_v48, %v10919_v8  ;;  %v11696_v8 = vld [vmem:[#allocation2 + $0x120] sm:$0xff]  ;;  %v11727_v48 = vld [vmem:[#allocation2 + $0x258] sm:$0xff] }
 0xda7   : > { %19199 = vmatprep.subr.msk.bf16.mxu1 %vm21683_vm12, %v19197_v27  ;;  %v10903_v27 = vld [vmem:[#allocation2 + $0x30a] sm:$0xff] }
 0xda8   : > { %v19182_v42 = vpack.c.bf16 %v10904_v25, %v10903_v27  ;;  %v11711_v27 = vld [vmem:[#allocation2 + $0x1b8] sm:$0xff]  ;;  %v11712_v25 = vld [vmem:[#allocation2 + $0x1c0] sm:$0xff] }
 0xdaa   : > { %16987 = vmatmul.mubr.msk.f32.vlgmr.msra.gmra.mrb[158].mxu0 %vm720_vm0, %v24300_v21 }
 0xdab   : > { %19154 = vmatpush3.bf16.xpose.msk.msra.mxu0 %vm21683_vm12, %v19152_v40  ;;  %16988 = vmatprep.mubr.msk.f32.mxu0 %vm720_vm0, %v24377_v18  ;;  %v19230_v40 = vpack.c.bf16 %v10936_v1, %v10935_v32  ;;  %v11697_v32 = vld [vmem:[#allocation2 + $0x128] sm:$0xff]  ;;  %v11698_v1 = vld [vmem:[#allocation2 + $0x130] sm:$0xff] }
 0xdac   : > { %19157 = vmatprep.subr.msk.bf16.mxu0 %vm21683_vm12, %v19155_v63  ;;  %v19233_v63 = vpack.c.bf16 %v10954_v24, %v10953_v23  ;;  %v19308_v24 = vpack.c.bf16 %v11712_v25, %v11711_v27  ;;  %v11755_v27 = vld [vmem:[#allocation2 + $0x370] sm:$0xff]  ;;  %v11756_v25 = vld [vmem:[#allocation2 + $0x378] sm:$0xff] }
 0xdad   : > { %17023 = vmatmul.mubr.msk.f32.vlgmr.msra.gmra.mrb[132].mxu1 %vm720_vm0, %v24300_v21 }
 0xdae   : > { %19202 = vmatpush3.bf16.xpose.msk.msra.mxu1 %vm21683_vm12, %v19200_v12  ;;  %17024 = vmatprep.mubr.msk.f32.mxu1 %vm720_vm0, %v24377_v18  ;;  %v19185_v12 = vpack.c.bf16 %v10922_v9, %v10921_v26  ;;  %v11729_v26 = vld [vmem:[#allocation2 + $0x268] sm:$0xff]  ;;  %v11730_v9 = vld [vmem:[#allocation2 + $0x270] sm:$0xff] }
 0xdaf   : > { %19205 = vmatprep.subr.msk.bf16.mxu1 %vm21683_vm12, %v19203_v29  ;;  %16989 = vmatmul.mubr.msk.f32.gmra.mrb[160].mxu0 %vm720_vm0, %v24377_v18  ;;  %v10905_v29 = vld [vmem:[#allocation2 + $0x322] sm:$0xff] }
 0xdb0   : > { %17058 = vmatprep.mubr.msk.f32.mxu0 %vm720_vm0, %v24300_v21  ;;  %v19188_v41 = vpack.c.bf16 %v10906_v5, %v10905_v29  ;;  %v11713_v29 = vld [vmem:[#allocation2 + $0x1c8] sm:$0xff]  ;;  %v11714_v5 = vld [vmem:[#allocation2 + $0x1d0] sm:$0xff] }
 0xdb1   : > { %17025 = vmatmul.mubr.msk.f32.gmra.mrb[134].mxu1 %vm720_vm0, %v24377_v18 }
 0xdb2   : > { %17094 = vmatprep.mubr.msk.f32.mxu1 %vm720_vm0, %v24300_v21 }
 0xdb3   : > { %19160 = vmatpush3.bf16.xpose.msk.msra.mxu0 %vm21683_vm12, %v19158_v46  ;;  %v19236_v46 = vpack.c.bf16 %v10938_v50, %v10937_v28  ;;  %v11699_v28 = vld [vmem:[#allocation2 + $0x140] sm:$0xff]  ;;  %v11700_v50 = vld [vmem:[#allocation2 + $0x148] sm:$0xff] }
 0xdb4   : > { %19163 = vmatprep.subr.msk.bf16.mxu0 %vm21683_vm12, %v19161_v38  ;;  %v19239_v38 = vpack.c.bf16 %v10956_v49, %v10955_v0  ;;  %v19314_v49 = vpack.c.bf16 %v11714_v5, %v11713_v29  ;;  %v11757_v29 = vld [vmem:[#allocation2 + $0x380] sm:$0xff]  ;;  %v11758_v5 = vld [vmem:[#allocation2 + $0x388] sm:$0xff] }
 0xdb6   : > { %19208 = vmatpush3.bf16.xpose.msk.msra.mxu1 %vm21683_vm12, %v19206_v52  ;;  %v19191_v52 = vpack.c.bf16 %v10924_v57, %v10923_v14  ;;  %v11731_v14 = vld [vmem:[#allocation2 + $0x280] sm:$0xff]  ;;  %v11732_v57 = vld [vmem:[#allocation2 + $0x288] sm:$0xff] }
 0xdb7   : > { %19211 = vmatprep.subr.msk.bf16.mxu1 %vm21683_vm12, %v19209_v19  ;;  %v10907_v19 = vld [vmem:[#allocation2 + $0x332] sm:$0xff] }
 0xdb8   : > { %v19194_v53 = vpack.c.bf16 %v10908_v45, %v10907_v19  ;;  %v11715_v19 = vld [vmem:[#allocation2 + $0x1e0] sm:$0xff]  ;;  %v11716_v45 = vld [vmem:[#allocation2 + $0x1e8] sm:$0xff] }
 0xdbb   : > { %19166 = vmatpush3.bf16.xpose.msk.msra.mxu0 %vm21683_vm12, %v19164_v33  ;;  %v19242_v33 = vpack.c.bf16 %v10940_v30, %v10939_v20  ;;  %v11701_v20 = vld [vmem:[#allocation2 + $0x150] sm:$0xff]  ;;  %v11702_v30 = vld [vmem:[#allocation2 + $0x158] sm:$0xff] }
 0xdbc   : > { %19169 = vmatprep.subr.msk.bf16.mxu0 %vm21683_vm12, %v19167_v22  ;;  %v19293_v22 = vpack.c.bf16 %v11724_v51, %v11723_v62  ;;  %v19320_v51 = vpack.c.bf16 %v11716_v45, %v11715_v19  ;;  %v11774_v19 = vld [vmem:[#allocation2 + $0x428] sm:$0xff]  ;;  %v11759_v45 = vld [vmem:[#allocation2 + $0x398] sm:$0xff] }
 0xdbe   : > { %19214 = vmatpush3.bf16.xpose.msk.msra.mxu1 %vm21683_vm12, %v19212_v55  ;;  %v19245_v55 = vpack.c.bf16 %v11692_v54, %v11691_v2  ;;  %v11733_v2 = vld [vmem:[#allocation2 + $0x290] sm:$0xff]  ;;  %v11734_v54 = vld [vmem:[#allocation2 + $0x298] sm:$0xff] }
 0xdbf   : > { %19217 = vmatprep.subr.msk.bf16.mxu1 %vm21683_vm12, %v19215_v47  ;;  %v11675_v47 = vld [vmem:[#allocation2 + $0x50] sm:$0xff] }
 0xdc0   : > { %v19248_v37 = vpack.c.bf16 %v11676_v11, %v11675_v47  ;;  %v11717_v47 = vld [vmem:[#allocation2 + $0x1f0] sm:$0xff]  ;;  %v11718_v11 = vld [vmem:[#allocation2 + $0x1f8] sm:$0xff] }
 0xdc3   : > { %19172 = vmatpush3.bf16.xpose.msk.msra.mxu0 %vm21683_vm12, %v19170_v61  ;;  %v19296_v61 = vpack.c.bf16 %v11708_v59, %v11707_v43  ;;  %v11703_v43 = vld [vmem:[#allocation2 + $0x168] sm:$0xff]  ;;  %v11704_v59 = vld [vmem:[#allocation2 + $0x170] sm:$0xff] }
 0xdc4   : > { %19175 = vmatprep.subr.msk.bf16.mxu0 %vm21683_vm12, %v19173_v13  ;;  %v19299_v13 = vpack.c.bf16 %v11726_v16, %v11725_v17  ;;  %v19326_v16 = vpack.c.bf16 %v11718_v11, %v11717_v47  ;;  %v11776_v47 = vld [vmem:[#allocation2 + $0x440] sm:$0xff]  ;;  %v11761_v11 = vld [vmem:[#allocation2 + $0x3a8] sm:$0xff] }
 0xdc6   : > { %19220 = vmatpush3.bf16.xpose.msk.msra.mxu1 %vm21683_vm12, %v19218_v10  ;;  %v19251_v10 = vpack.c.bf16 %v11694_v35, %v11693_v34  ;;  %v11735_v34 = vld [vmem:[#allocation2 + $0x2a8] sm:$0xff]  ;;  %v11736_v35 = vld [vmem:[#allocation2 + $0x2b0] sm:$0xff] }
 0xdc7   : > { %19223 = vmatprep.subr.msk.bf16.mxu1 %vm21683_vm12, %v19221_v31  ;;  %v11677_v31 = vld [vmem:[#allocation2 + $0x60] sm:$0xff] }
 0xdc8   : > { %v19254_v7 = vpack.c.bf16 %v11678_v39, %v11677_v31  ;;  %v11719_v31 = vld [vmem:[#allocation2 + $0x208] sm:$0xff]  ;;  %v11720_v39 = vld [vmem:[#allocation2 + $0x210] sm:$0xff] }
 0xdcb   : > { %19178 = vmatpush3.bf16.xpose.msk.msra.mxu0 %vm21683_vm12, %v19176_v36 }
 0xdcc   : > { %19181 = vmatprep.subr.msk.bf16.mxu0 %vm21683_vm12, %v19179_v6  ;;  %v19305_v6 = vpack.c.bf16 %v11728_v15, %v11727_v48  ;;  %v19332_v15 = vpack.c.bf16 %v11720_v39, %v11719_v31  ;;  %v11778_v31 = vld [vmem:[#allocation2 + $0x450] sm:$0xff]  ;;  %v11763_v39 = vld [vmem:[#allocation2 + $0x3c0] sm:$0xff] }
 0xdce   : > { %19226 = vmatpush3.bf16.xpose.msk.msra.mxu1 %vm21683_vm12, %v19224_v4  ;;  %v19257_v4 = vpack.c.bf16 %v11696_v8, %v11695_v56  ;;  %v11737_v56 = vld [vmem:[#allocation2 + $0x2b8] sm:$0xff]  ;;  %v11738_v8 = vld [vmem:[#allocation2 + $0x2c0] sm:$0xff] }
 0xdcf   : > { %19229 = vmatprep.subr.msk.bf16.mxu1 %vm21683_vm12, %v19227_v60  ;;  %v11679_v60 = vld [vmem:[#allocation2 + $0x78] sm:$0xff] }
 0xdd3   : > { %19184 = vmatpush3.bf16.xpose.msk.msra.mxu0 %vm21683_vm12, %v19182_v42  ;;  %v19263_v42 = vpack.c.bf16 %v11698_v1, %v11697_v32  ;;  %v11787_v32 = vld [vmem:[#allocation2 + $0x4b0] sm:$0xff]  ;;  %v11788_v1 = vld [vmem:[#allocation2 + $0x4b8] sm:$0xff] }
 0xdd4   : > { %19187 = vmatprep.subr.msk.bf16.mxu0 %vm21683_vm12, %v19185_v12  ;;  %v11681_v12 = vld [vmem:[#allocation2 + $0x88] sm:$0xff] }
 0xdd6   : > { %19232 = vmatpush3.bf16.xpose.msk.msra.mxu1 %vm21683_vm12, %v19230_v40  ;;  %v19311_v40 = vpack.c.bf16 %v11730_v9, %v11729_v26 }
 0xdd7   : > { %19235 = vmatprep.subr.msk.bf16.mxu1 %vm21683_vm12, %v19233_v63  ;;  %v11682_v63 = vld [vmem:[#allocation2 + $0x90] sm:$0xff] }
 0xdd8   : > { %v19266_v0 = vpack.c.bf16 %v11682_v63, %v11681_v12  ;;  %v11771_v12 = vld [vmem:[#allocation2 + $0x410] sm:$0xff]  ;;  %v11772_v63 = vld [vmem:[#allocation2 + $0x418] sm:$0xff] }
 0xddb   : > { %19190 = vmatpush3.bf16.xpose.msk.msra.mxu0 %vm21683_vm12, %v19188_v41  ;;  %v19269_v41 = vpack.c.bf16 %v11700_v50, %v11699_v28  ;;  %v11789_v28 = vld [vmem:[#allocation2 + $0x4c0] sm:$0xff]  ;;  %v11790_v50 = vld [vmem:[#allocation2 + $0x4c8] sm:$0xff] }
 0xddc   : > { %19193 = vmatprep.subr.msk.bf16.mxu0 %vm21683_vm12, %v19191_v52  ;;  %v11683_v52 = vld [vmem:[#allocation2 + $0xa0] sm:$0xff] }
 0xdde   : > { %19238 = vmatpush3.bf16.xpose.msk.msra.mxu1 %vm21683_vm12, %v19236_v46  ;;  %v19317_v46 = vpack.c.bf16 %v11732_v57, %v11731_v14  ;;  %v19392_v57 = vpack.c.bf16 %v11772_v63, %v11771_v12  ;;  %v11782_v12 = vld [vmem:[#allocation2 + $0x478] sm:$0xff]  ;;  %v11767_v63 = vld [vmem:[#allocation2 + $0x3e8] sm:$0xff] }
 0xddf   : > { %19241 = vmatprep.subr.msk.bf16.mxu1 %vm21683_vm12, %v19239_v38  ;;  %v11684_v38 = vld [vmem:[#allocation2 + $0xa8] sm:$0xff] }
 0xde0   : > { %v19272_v62 = vpack.c.bf16 %v11684_v38, %v11683_v52  ;;  %v11742_v52 = vld [vmem:[#allocation2 + $0x2e8] sm:$0xff]  ;;  %v11773_v38 = vld [vmem:[#allocation2 + $0x420] sm:$0xff] }
 0xde3   : > { %19196 = vmatpush3.bf16.xpose.msk.msra.mxu0 %vm21683_vm12, %v19194_v53  ;;  %v19275_v53 = vpack.c.bf16 %v11702_v30, %v11701_v20  ;;  %v11760_v20 = vld [vmem:[#allocation2 + $0x3a0] sm:$0xff]  ;;  %v11791_v30 = vld [vmem:[#allocation2 + $0x4d8] sm:$0xff] }
 0xde4   : > { %19247 = vmatprep.subr.msk.bf16.mxu0 %vm21683_vm12, %v19245_v55  ;;  %v11685_v55 = vld [vmem:[#allocation2 + $0xb0] sm:$0xff] }
 0xde6   : > { %19244 = vmatpush3.bf16.xpose.msk.msra.mxu1 %vm21683_vm12, %v19242_v33  ;;  %v19323_v33 = vpack.c.bf16 %v11734_v54, %v11733_v2  ;;  %v11792_v2 = vld [vmem:[#allocation2 + $0x4e0] sm:$0xff] }
 0xde7   : > { %19295 = vmatprep.subr.msk.bf16.mxu1 %vm21683_vm12, %v19293_v22  ;;  %v11686_v22 = vld [vmem:[#allocation2 + $0xb8] sm:$0xff] }
 0xde8   : > { %v19278_v17 = vpack.c.bf16 %v11686_v22, %v11685_v55  ;;  %v11744_v55 = vld [vmem:[#allocation2 + $0x300] sm:$0xff]  ;;  %v11775_v22 = vld [vmem:[#allocation2 + $0x438] sm:$0xff] }
 0xdea   : > { %17059 = vmatmul.mubr.msk.f32.vlgmr.msra.gmra.mrb[162].mxu0 %vm720_vm0, %v24300_v21 }
 0xdeb   : > { %19250 = vmatpush3.bf16.xpose.msk.msra.mxu0 %vm21683_vm12, %v19248_v37  ;;  %17060 = vmatprep.mubr.msk.f32.mxu0 %vm720_vm0, %v24377_v18  ;;  %v19281_v37 = vpack.c.bf16 %v11704_v59, %v11703_v43  ;;  %v11762_v43 = vld [vmem:[#allocation2 + $0x3b0] sm:$0xff]  ;;  %v11793_v59 = vld [vmem:[#allocation2 + $0x4e8] sm:$0xff] }
 0xdec   : > { %19253 = vmatprep.subr.msk.bf16.mxu0 %vm21683_vm12, %v19251_v10  ;;  %v11687_v10 = vld [vmem:[#allocation2 + $0xc8] sm:$0xff] }
 0xded   : > { %17095 = vmatmul.mubr.msk.f32.vlgmr.msra.gmra.mrb[136].mxu1 %vm720_vm0, %v24300_v21  ;;  %v11710_v21 = vld [vmem:[#allocation2 + $0x1a8] sm:$0xff] }
 0xdee   : > { %19298 = vmatpush3.bf16.xpose.msk.msra.mxu1 %vm21683_vm12, %v19296_v61  ;;  %17096 = vmatprep.mubr.msk.f32.mxu1 %vm720_vm0, %v24377_v18  ;;  %v19302_v36 = vpack.c.bf16 %v11710_v21, %v11709_v3  ;;  %v19329_v61 = vpack.c.bf16 %v11736_v35, %v11735_v34  ;;  %v11705_v3 = vld [vmem:[#allocation2 + $0x178] sm:$0xff]  ;;  %v11706_v21 = vld [vmem:[#allocation2 + $0x180] sm:$0xff]  ;;  %v11794_v34 = vld [vmem:[#allocation2 + $0x4f0] sm:$0xff] }
 0xdef   : > { %19301 = vmatprep.subr.msk.bf16.mxu1 %vm21683_vm12, %v19299_v13  ;;  %17061 = vmatmul.mubr.msk.f32.gmra.mrb[164].mxu0 %vm720_vm0, %v24377_v18  ;;  %v11688_v13 = vld [vmem:[#allocation2 + $0xd0] sm:$0xff] }
 0xdf0   : > { %17130 = vmatprep.mubr.msk.f32.mxu0 %vm720_vm0, %v24470_v44  ;;  %v19284_v48 = vpack.c.bf16 %v11688_v13, %v11687_v10  ;;  %v11746_v10 = vld [vmem:[#allocation2 + $0x310] sm:$0xff]  ;;  %v11777_v13 = vld [vmem:[#allocation2 + $0x448] sm:$0xff] }
 0xdf1   : > { %17097 = vmatmul.mubr.msk.f32.gmra.mrb[138].mxu1 %vm720_vm0, %v24377_v18  ;;  %v11680_v18 = vld [vmem:[#allocation2 + $0x80] sm:$0xff] }
 0xdf2   : > { %17166 = vmatprep.mubr.msk.f32.mxu1 %vm720_vm0, %v24470_v44  ;;  %v19260_v23 = vpack.c.bf16 %v11680_v18, %v11679_v60  ;;  %v11721_v60 = vld [vmem:[#allocation2 + $0x218] sm:$0xff]  ;;  %v11722_v18 = vld [vmem:[#allocation2 + $0x220] sm:$0xff] }
 0xdf3   : > { %19256 = vmatpush3.bf16.xpose.msk.msra.mxu0 %vm21683_vm12, %v19254_v7  ;;  %v19287_v7 = vpack.c.bf16 %v11706_v21, %v11705_v3  ;;  %v19338_v9 = vpack.c.bf16 %v11722_v18, %v11721_v60  ;;  %v11764_v3 = vld [vmem:[#allocation2 + $0x3c8] sm:$0xff]  ;;  %v11795_v21 = vld [vmem:[#allocation2 + $0x500] sm:$0xff]  ;;  %v11765_v18 = vld [vmem:[#allocation2 + $0x3d0] sm:$0xff] }
 0xdf4   : > { %19259 = vmatprep.subr.msk.bf16.mxu0 %vm21683_vm12, %v19257_v4  ;;  %v11689_v4 = vld [vmem:[#allocation2 + $0xd8] sm:$0xff]  ;;  %v11780_v60 = vld [vmem:[#allocation2 + $0x468] sm:$0xff] }
 0xdf6   : > { %19304 = vmatpush3.bf16.xpose.msk.msra.mxu1 %vm21683_vm12, %v19302_v36  ;;  %v19335_v36 = vpack.c.bf16 %v11738_v8, %v11737_v56  ;;  %v11796_v56 = vld [vmem:[#allocation2 + $0x508] sm:$0xff] }
 0xdf7   : > { %19307 = vmatprep.subr.msk.bf16.mxu1 %vm21683_vm12, %v19305_v6  ;;  %v11690_v6 = vld [vmem:[#allocation2 + $0xe0] sm:$0xff] }
 0xdf8   : > { %v19290_v26 = vpack.c.bf16 %v11690_v6, %v11689_v4  ;;  %v11748_v4 = vld [vmem:[#allocation2 + $0x328] sm:$0xff]  ;;  %v11779_v6 = vld [vmem:[#allocation2 + $0x460] sm:$0xff] }
 0xdfb   : > { %19262 = vmatpush3.bf16.xpose.msk.msra.mxu0 %vm21683_vm12, %v19260_v23  ;;  %v19341_v23 = vpack.c.bf16 %v11756_v25, %v11755_v27  ;;  %v11766_v27 = vld [vmem:[#allocation2 + $0x3d8] sm:$0xff]  ;;  %v11797_v25 = vld [vmem:[#allocation2 + $0x510] sm:$0xff] }
 0xdfc   : > { %19265 = vmatprep.subr.msk.bf16.mxu0 %vm21683_vm12, %v19263_v42  ;;  %v11739_v42 = vld [vmem:[#allocation2 + $0x2d0] sm:$0xff] }
 0xdfe   : > { %19310 = vmatpush3.bf16.xpose.msk.msra.mxu1 %vm21683_vm12, %v19308_v24  ;;  %v19389_v24 = vpack.c.bf16 %v11788_v1, %v11787_v32  ;;  %v11798_v32 = vld [vmem:[#allocation2 + $0x518] sm:$0xff] }
 0xdff   : > { %19313 = vmatprep.subr.msk.bf16.mxu1 %vm21683_vm12, %v19311_v40  ;;  %v11740_v40 = vld [vmem:[#allocation2 + $0x2d8] sm:$0xff] }
 0xe00   : > { %v19344_v14 = vpack.c.bf16 %v11740_v40, %v11739_v42  ;;  %v11750_v42 = vld [vmem:[#allocation2 + $0x338] sm:$0xff]  ;;  %v11781_v40 = vld [vmem:[#allocation2 + $0x470] sm:$0xff] }
 0xe03   : > { %19268 = vmatpush3.bf16.xpose.msk.msra.mxu0 %vm21683_vm12, %v19266_v0  ;;  %v19347_v0 = vpack.c.bf16 %v11758_v5, %v11757_v29  ;;  %v11768_v29 = vld [vmem:[#allocation2 + $0x3f0] sm:$0xff]  ;;  %v11799_v5 = vld [vmem:[#allocation2 + $0x528] sm:$0xff] }
 0xe04   : > { %19271 = vmatprep.subr.msk.bf16.mxu0 %vm21683_vm12, %v19269_v41  ;;  %v24547_v41 = vld [vmem:[%s25057_s9 + $0x68] sm:$0xff] }
 0xe06   : > { %19316 = vmatpush3.bf16.xpose.msk.msra.mxu1 %vm21683_vm12, %v19314_v49  ;;  %v19395_v49 = vpack.c.bf16 %v11790_v50, %v11789_v28  ;;  %v11800_v28 = vld [vmem:[#allocation2 + $0x530] sm:$0xff] }
 0xe07   : > { %19319 = vmatprep.subr.msk.bf16.mxu1 %vm21683_vm12, %v19317_v46  ;;  %v11741_v46 = vld [vmem:[#allocation2 + $0x2e0] sm:$0xff] }
 0xe08   : > { %v19350_v54 = vpack.c.bf16 %v11742_v52, %v11741_v46  ;;  %v11752_v46 = vld [vmem:[#allocation2 + $0x350] sm:$0xff]  ;;  %v11783_v52 = vld [vmem:[#allocation2 + $0x488] sm:$0xff] }
 0xe0b   : > { %19274 = vmatpush3.bf16.xpose.msk.msra.mxu0 %vm21683_vm12, %v19272_v62  ;;  %v19398_v62 = vpack.c.bf16 %v11774_v19, %v11773_v38  ;;  %v11784_v38 = vld [vmem:[#allocation2 + $0x490] sm:$0xff]  ;;  %v11769_v19 = vld [vmem:[#allocation2 + $0x3f8] sm:$0xff] }
 0xe0c   : > { %19277 = vmatprep.subr.msk.bf16.mxu0 %vm21683_vm12, %v19275_v53  ;;  %v19401_v53 = vpack.c.bf16 %v11792_v2, %v11791_v30  ;;  %v11802_v30 = vld [vmem:[#allocation2 + $0x540] sm:$0xff] }
 0xe0e   : > { %19322 = vmatpush3.bf16.xpose.msk.msra.mxu1 %vm21683_vm12, %v19320_v51  ;;  %v19353_v51 = vpack.c.bf16 %v11760_v20, %v11759_v45  ;;  %v11770_v45 = vld [vmem:[#allocation2 + $0x400] sm:$0xff]  ;;  %v11801_v20 = vld [vmem:[#allocation2 + $0x538] sm:$0xff] }
 0xe0f   : > { %19325 = vmatprep.subr.msk.bf16.mxu1 %vm21683_vm12, %v19323_v33  ;;  %v11743_v33 = vld [vmem:[#allocation2 + $0x2f8] sm:$0xff] }
 0xe10   : > { %v19356_v35 = vpack.c.bf16 %v11744_v55, %v11743_v33  ;;  %v11754_v33 = vld [vmem:[#allocation2 + $0x360] sm:$0xff]  ;;  %v11785_v55 = vld [vmem:[#allocation2 + $0x498] sm:$0xff] }
 0xe13   : > { %19280 = vmatpush3.bf16.xpose.msk.msra.mxu0 %vm21683_vm12, %v19278_v17  ;;  %v19404_v17 = vpack.c.bf16 %v11776_v47, %v11775_v22  ;;  %v11786_v22 = vld [vmem:[#allocation2 + $0x4a0] sm:$0xff]  ;;  %v12536_v47 = vld [vmem:[#allocation2 + $0xf1] sm:$0xff] }
 0xe14   : > { %19283 = vmatprep.subr.msk.bf16.mxu0 %vm21683_vm12, %v19281_v37  ;;  %v19407_v37 = vpack.c.bf16 %v11794_v34, %v11793_v59  ;;  %v12569_v59 = vld [vmem:[#allocation2 + $0x239] sm:$0xff] }
 0xe16   : > { %19328 = vmatpush3.bf16.xpose.msk.msra.mxu1 %vm21683_vm12, %v19326_v16  ;;  %v19359_v16 = vpack.c.bf16 %v11762_v43, %v11761_v11  ;;  %v12537_v11 = vld [vmem:[#allocation2 + $0xf9] sm:$0xff]  ;;  %v12568_v43 = vld [vmem:[#allocation2 + $0x231] sm:$0xff] }
 0xe17   : > { %19331 = vmatprep.subr.msk.bf16.mxu1 %vm21683_vm12, %v19329_v61  ;;  %v11745_v61 = vld [vmem:[#allocation2 + $0x308] sm:$0xff] }
 0xe18   : > { %v19362_v8 = vpack.c.bf16 %v11746_v10, %v11745_v61  ;;  %v12521_v61 = vld [vmem:[#allocation2 + $0x59] sm:$0xff]  ;;  %v12552_v10 = vld [vmem:[#allocation2 + $0x191] sm:$0xff] }
 0xe1b   : > { %19286 = vmatpush3.bf16.xpose.msk.msra.mxu0 %vm21683_vm12, %v19284_v48  ;;  %v19410_v48 = vpack.c.bf16 %v11778_v31, %v11777_v13  ;;  %v12553_v13 = vld [vmem:[#allocation2 + $0x199] sm:$0xff]  ;;  %v12538_v31 = vld [vmem:[#allocation2 + $0x101] sm:$0xff] }
 0xe1c   : > { %19289 = vmatprep.subr.msk.bf16.mxu0 %vm21683_vm12, %v19287_v7  ;;  %v19413_v7 = vpack.c.bf16 %v11796_v56, %v11795_v21  ;;  %v12571_v21 = vld [vmem:[#allocation2 + $0x249] sm:$0xff] }
 0xe1e   : > { %19334 = vmatpush3.bf16.xpose.msk.msra.mxu1 %vm21683_vm12, %v19332_v15  ;;  %v19365_v15 = vpack.c.bf16 %v11764_v3, %v11763_v39  ;;  %v12539_v39 = vld [vmem:[#allocation2 + $0x109] sm:$0xff]  ;;  %v12570_v3 = vld [vmem:[#allocation2 + $0x241] sm:$0xff] }
 0xe1f   : > { %19337 = vmatprep.subr.msk.bf16.mxu1 %vm21683_vm12, %v19335_v36  ;;  %v11747_v36 = vld [vmem:[#allocation2 + $0x320] sm:$0xff] }
 0xe20   : > { %v19368_v1 = vpack.c.bf16 %v11748_v4, %v11747_v36  ;;  %v12523_v36 = vld [vmem:[#allocation2 + $0x69] sm:$0xff]  ;;  %v12554_v4 = vld [vmem:[#allocation2 + $0x1a1] sm:$0xff] }
 0xe23   : > { %19292 = vmatpush3.bf16.xpose.msk.msra.mxu0 %vm21683_vm12, %v19290_v26  ;;  %v19416_v26 = vpack.c.bf16 %v11780_v60, %v11779_v6  ;;  %v24640_v6 = vld [vmem:[%s25057_s9 + $0x70] sm:$0xff]  ;;  %v12540_v60 = vld [vmem:[#allocation2 + $0x119] sm:$0xff] }
 0xe24   : > { %19343 = vmatprep.subr.msk.bf16.mxu0 %vm21683_vm12, %v19341_v23  ;;  %v19419_v23 = vpack.c.bf16 %v11798_v32, %v11797_v25  ;;  %v12573_v25 = vld [vmem:[#allocation2 + $0x261] sm:$0xff] }
 0xe26   : > { %19340 = vmatpush3.bf16.xpose.msk.msra.mxu1 %vm21683_vm12, %v19338_v9  ;;  %v19371_v9 = vpack.c.bf16 %v11766_v27, %v11765_v18  ;;  %v12541_v18 = vld [vmem:[#allocation2 + $0x121] sm:$0xff]  ;;  %v12572_v27 = vld [vmem:[#allocation2 + $0x259] sm:$0xff] }
 0xe27   : > { %19391 = vmatprep.subr.msk.bf16.mxu1 %vm21683_vm12, %v19389_v24  ;;  %v11749_v24 = vld [vmem:[#allocation2 + $0x330] sm:$0xff] }
 0xe28   : > { %v19374_v50 = vpack.c.bf16 %v11750_v42, %v11749_v24  ;;  %v12556_v24 = vld [vmem:[#allocation2 + $0x1b9] sm:$0xff]  ;;  %v12557_v42 = vld [vmem:[#allocation2 + $0x1c1] sm:$0xff] }
 0xe2a   : > { %17131 = vmatmul.mubr.msk.f32.vlgmr.msra.gmra.mrb[158].mxu0 %vm720_vm0, %v24470_v44 }
 0xe2b   : > { %19346 = vmatpush3.bf16.xpose.msk.msra.mxu0 %vm21683_vm12, %v19344_v14  ;;  %17132 = vmatprep.mubr.msk.f32.mxu0 %vm720_vm0, %v24547_v41  ;;  %v19422_v14 = vpack.c.bf16 %v11782_v12, %v11781_v40  ;;  %v12542_v40 = vld [vmem:[#allocation2 + $0x129] sm:$0xff]  ;;  %v12543_v12 = vld [vmem:[#allocation2 + $0x131] sm:$0xff] }
 0xe2c   : > { %19349 = vmatprep.subr.msk.bf16.mxu0 %vm21683_vm12, %v19347_v0  ;;  %v19425_v0 = vpack.c.bf16 %v11800_v28, %v11799_v5  ;;  %v19500_v28 = vpack.c.bf16 %v12557_v42, %v12556_v24  ;;  %v12600_v24 = vld [vmem:[#allocation2 + $0x371] sm:$0xff]  ;;  %v12601_v42 = vld [vmem:[#allocation2 + $0x379] sm:$0xff] }
 0xe2d   : > { %17167 = vmatmul.mubr.msk.f32.vlgmr.msra.gmra.mrb[132].mxu1 %vm720_vm0, %v24470_v44 }
 0xe2e   : > { %19394 = vmatpush3.bf16.xpose.msk.msra.mxu1 %vm21683_vm12, %v19392_v57  ;;  %17168 = vmatprep.mubr.msk.f32.mxu1 %vm720_vm0, %v24547_v41  ;;  %v19377_v57 = vpack.c.bf16 %v11768_v29, %v11767_v63  ;;  %v12574_v63 = vld [vmem:[#allocation2 + $0x269] sm:$0xff]  ;;  %v12575_v29 = vld [vmem:[#allocation2 + $0x271] sm:$0xff] }
 0xe2f   : > { %19397 = vmatprep.subr.msk.bf16.mxu1 %vm21683_vm12, %v19395_v49  ;;  %17133 = vmatmul.mubr.msk.f32.gmra.mrb[160].mxu0 %vm720_vm0, %v24547_v41  ;;  %v11751_v49 = vld [vmem:[#allocation2 + $0x348] sm:$0xff] }
 0xe30   : > { %17202 = vmatprep.mubr.msk.f32.mxu0 %vm720_vm0, %v24470_v44  ;;  %v19380_v2 = vpack.c.bf16 %v11752_v46, %v11751_v49  ;;  %v12558_v49 = vld [vmem:[#allocation2 + $0x1c9] sm:$0xff]  ;;  %v12559_v46 = vld [vmem:[#allocation2 + $0x1d1] sm:$0xff] }
 0xe31   : > { %17169 = vmatmul.mubr.msk.f32.gmra.mrb[134].mxu1 %vm720_vm0, %v24547_v41 }
 0xe32   : > { %17238 = vmatprep.mubr.msk.f32.mxu1 %vm720_vm0, %v24470_v44 }
 0xe33   : > { %19352 = vmatpush3.bf16.xpose.msk.msra.mxu0 %vm21683_vm12, %v19350_v54  ;;  %v19428_v54 = vpack.c.bf16 %v11784_v38, %v11783_v52  ;;  %v12544_v52 = vld [vmem:[#allocation2 + $0x141] sm:$0xff]  ;;  %v12545_v38 = vld [vmem:[#allocation2 + $0x149] sm:$0xff] }
 0xe34   : > { %19355 = vmatprep.subr.msk.bf16.mxu0 %vm21683_vm12, %v19353_v51  ;;  %v19431_v51 = vpack.c.bf16 %v11802_v30, %v11801_v20  ;;  %v19506_v30 = vpack.c.bf16 %v12559_v46, %v12558_v49  ;;  %v12602_v49 = vld [vmem:[#allocation2 + $0x381] sm:$0xff]  ;;  %v12603_v46 = vld [vmem:[#allocation2 + $0x389] sm:$0xff] }
 0xe36   : > { %19400 = vmatpush3.bf16.xpose.msk.msra.mxu1 %vm21683_vm12, %v19398_v62  ;;  %v19383_v62 = vpack.c.bf16 %v11770_v45, %v11769_v19  ;;  %v12576_v19 = vld [vmem:[#allocation2 + $0x281] sm:$0xff]  ;;  %v12577_v45 = vld [vmem:[#allocation2 + $0x289] sm:$0xff] }
 0xe37   : > { %19403 = vmatprep.subr.msk.bf16.mxu1 %vm21683_vm12, %v19401_v53  ;;  %v11753_v53 = vld [vmem:[#allocation2 + $0x358] sm:$0xff] }
 0xe38   : > { %v19386_v34 = vpack.c.bf16 %v11754_v33, %v11753_v53  ;;  %v12560_v53 = vld [vmem:[#allocation2 + $0x1e1] sm:$0xff]  ;;  %v12561_v33 = vld [vmem:[#allocation2 + $0x1e9] sm:$0xff] }
 0xe3b   : > { %19358 = vmatpush3.bf16.xpose.msk.msra.mxu0 %vm21683_vm12, %v19356_v35  ;;  %v19434_v35 = vpack.c.bf16 %v11786_v22, %v11785_v55  ;;  %v12546_v55 = vld [vmem:[#allocation2 + $0x151] sm:$0xff]  ;;  %v12547_v22 = vld [vmem:[#allocation2 + $0x159] sm:$0xff] }
 0xe3c   : > { %19361 = vmatprep.subr.msk.bf16.mxu0 %vm21683_vm12, %v19359_v16  ;;  %v19485_v16 = vpack.c.bf16 %v12569_v59, %v12568_v43  ;;  %v19512_v59 = vpack.c.bf16 %v12561_v33, %v12560_v53  ;;  %v12619_v53 = vld [vmem:[#allocation2 + $0x429] sm:$0xff]  ;;  %v12604_v33 = vld [vmem:[#allocation2 + $0x399] sm:$0xff] }
 0xe3e   : > { %19406 = vmatpush3.bf16.xpose.msk.msra.mxu1 %vm21683_vm12, %v19404_v17  ;;  %v19437_v17 = vpack.c.bf16 %v12537_v11, %v12536_v47  ;;  %v12578_v47 = vld [vmem:[#allocation2 + $0x291] sm:$0xff]  ;;  %v12579_v11 = vld [vmem:[#allocation2 + $0x299] sm:$0xff] }
 0xe3f   : > { %19409 = vmatprep.subr.msk.bf16.mxu1 %vm21683_vm12, %v19407_v37  ;;  %v12520_v37 = vld [vmem:[#allocation2 + $0x51] sm:$0xff] }
 0xe40   : > { %v19440_v56 = vpack.c.bf16 %v12521_v61, %v12520_v37  ;;  %v12562_v37 = vld [vmem:[#allocation2 + $0x1f1] sm:$0xff]  ;;  %v12563_v61 = vld [vmem:[#allocation2 + $0x1f9] sm:$0xff] }
 0xe43   : > { %19364 = vmatpush3.bf16.xpose.msk.msra.mxu0 %vm21683_vm12, %v19362_v8  ;;  %v19488_v8 = vpack.c.bf16 %v12553_v13, %v12552_v10  ;;  %v12548_v10 = vld [vmem:[#allocation2 + $0x169] sm:$0xff]  ;;  %v12549_v13 = vld [vmem:[#allocation2 + $0x171] sm:$0xff] }
 0xe44   : > { %19367 = vmatprep.subr.msk.bf16.mxu0 %vm21683_vm12, %v19365_v15  ;;  %v19491_v15 = vpack.c.bf16 %v12571_v21, %v12570_v3  ;;  %v19518_v21 = vpack.c.bf16 %v12563_v61, %v12562_v37  ;;  %v12621_v37 = vld [vmem:[#allocation2 + $0x441] sm:$0xff]  ;;  %v12606_v61 = vld [vmem:[#allocation2 + $0x3a9] sm:$0xff] }
 0xe46   : > { %19412 = vmatpush3.bf16.xpose.msk.msra.mxu1 %vm21683_vm12, %v19410_v48  ;;  %v19443_v48 = vpack.c.bf16 %v12539_v39, %v12538_v31  ;;  %v12580_v31 = vld [vmem:[#allocation2 + $0x2a9] sm:$0xff]  ;;  %v12581_v39 = vld [vmem:[#allocation2 + $0x2b1] sm:$0xff] }
 0xe47   : > { %19415 = vmatprep.subr.msk.bf16.mxu1 %vm21683_vm12, %v19413_v7  ;;  %v12522_v7 = vld [vmem:[#allocation2 + $0x61] sm:$0xff] }
 0xe48   : > { %v19446_v32 = vpack.c.bf16 %v12523_v36, %v12522_v7  ;;  %v12564_v7 = vld [vmem:[#allocation2 + $0x209] sm:$0xff]  ;;  %v12565_v36 = vld [vmem:[#allocation2 + $0x211] sm:$0xff] }
 0xe4b   : > { %19370 = vmatpush3.bf16.xpose.msk.msra.mxu0 %vm21683_vm12, %v19368_v1 }
 0xe4c   : > { %19373 = vmatprep.subr.msk.bf16.mxu0 %vm21683_vm12, %v19371_v9  ;;  %v19497_v9 = vpack.c.bf16 %v12573_v25, %v12572_v27  ;;  %v19524_v25 = vpack.c.bf16 %v12565_v36, %v12564_v7  ;;  %v12623_v7 = vld [vmem:[#allocation2 + $0x451] sm:$0xff]  ;;  %v12608_v36 = vld [vmem:[#allocation2 + $0x3c1] sm:$0xff] }
 0xe4e   : > { %19418 = vmatpush3.bf16.xpose.msk.msra.mxu1 %vm21683_vm12, %v19416_v26  ;;  %v19449_v26 = vpack.c.bf16 %v12541_v18, %v12540_v60  ;;  %v12582_v60 = vld [vmem:[#allocation2 + $0x2b9] sm:$0xff]  ;;  %v12583_v18 = vld [vmem:[#allocation2 + $0x2c1] sm:$0xff] }
 0xe4f   : > { %19421 = vmatprep.subr.msk.bf16.mxu1 %vm21683_vm12, %v19419_v23  ;;  %v12524_v23 = vld [vmem:[#allocation2 + $0x79] sm:$0xff] }
 0xe53   : > { %19376 = vmatpush3.bf16.xpose.msk.msra.mxu0 %vm21683_vm12, %v19374_v50  ;;  %v19455_v50 = vpack.c.bf16 %v12543_v12, %v12542_v40  ;;  %v12632_v40 = vld [vmem:[#allocation2 + $0x4b1] sm:$0xff]  ;;  %v12633_v12 = vld [vmem:[#allocation2 + $0x4b9] sm:$0xff] }
 0xe54   : > { %19379 = vmatprep.subr.msk.bf16.mxu0 %vm21683_vm12, %v19377_v57  ;;  %v12526_v57 = vld [vmem:[#allocation2 + $0x89] sm:$0xff] }
 0xe56   : > { %19424 = vmatpush3.bf16.xpose.msk.msra.mxu1 %vm21683_vm12, %v19422_v14  ;;  %v19503_v14 = vpack.c.bf16 %v12575_v29, %v12574_v63 }
 0xe57   : > { %19427 = vmatprep.subr.msk.bf16.mxu1 %vm21683_vm12, %v19425_v0  ;;  %v12527_v0 = vld [vmem:[#allocation2 + $0x91] sm:$0xff] }
 0xe58   : > { %v19458_v20 = vpack.c.bf16 %v12527_v0, %v12526_v57  ;;  %v12616_v57 = vld [vmem:[#allocation2 + $0x411] sm:$0xff]  ;;  %v12617_v0 = vld [vmem:[#allocation2 + $0x419] sm:$0xff] }
 0xe5b   : > { %19382 = vmatpush3.bf16.xpose.msk.msra.mxu0 %vm21683_vm12, %v19380_v2  ;;  %v19461_v2 = vpack.c.bf16 %v12545_v38, %v12544_v52  ;;  %v12634_v52 = vld [vmem:[#allocation2 + $0x4c1] sm:$0xff]  ;;  %v12635_v38 = vld [vmem:[#allocation2 + $0x4c9] sm:$0xff] }
 0xe5c   : > { %19385 = vmatprep.subr.msk.bf16.mxu0 %vm21683_vm12, %v19383_v62  ;;  %v12528_v62 = vld [vmem:[#allocation2 + $0xa1] sm:$0xff] }
 0xe5e   : > { %19430 = vmatpush3.bf16.xpose.msk.msra.mxu1 %vm21683_vm12, %v19428_v54  ;;  %v19509_v54 = vpack.c.bf16 %v12577_v45, %v12576_v19  ;;  %v19584_v45 = vpack.c.bf16 %v12617_v0, %v12616_v57  ;;  %v12627_v57 = vld [vmem:[#allocation2 + $0x479] sm:$0xff]  ;;  %v12612_v0 = vld [vmem:[#allocation2 + $0x3e9] sm:$0xff] }
 0xe5f   : > { %19433 = vmatprep.subr.msk.bf16.mxu1 %vm21683_vm12, %v19431_v51  ;;  %v12529_v51 = vld [vmem:[#allocation2 + $0xa9] sm:$0xff] }
 0xe60   : > { %v19464_v43 = vpack.c.bf16 %v12529_v51, %v12528_v62  ;;  %v12587_v62 = vld [vmem:[#allocation2 + $0x2e9] sm:$0xff]  ;;  %v12618_v51 = vld [vmem:[#allocation2 + $0x421] sm:$0xff] }
 0xe63   : > { %19388 = vmatpush3.bf16.xpose.msk.msra.mxu0 %vm21683_vm12, %v19386_v34  ;;  %v19467_v34 = vpack.c.bf16 %v12547_v22, %v12546_v55  ;;  %v12605_v55 = vld [vmem:[#allocation2 + $0x3a1] sm:$0xff]  ;;  %v12636_v22 = vld [vmem:[#allocation2 + $0x4d9] sm:$0xff] }
 0xe64   : > { %19439 = vmatprep.subr.msk.bf16.mxu0 %vm21683_vm12, %v19437_v17  ;;  %v12530_v17 = vld [vmem:[#allocation2 + $0xb1] sm:$0xff] }
 0xe66   : > { %19436 = vmatpush3.bf16.xpose.msk.msra.mxu1 %vm21683_vm12, %v19434_v35  ;;  %v19515_v35 = vpack.c.bf16 %v12579_v11, %v12578_v47  ;;  %v12637_v47 = vld [vmem:[#allocation2 + $0x4e1] sm:$0xff] }
 0xe67   : > { %19487 = vmatprep.subr.msk.bf16.mxu1 %vm21683_vm12, %v19485_v16  ;;  %v12531_v16 = vld [vmem:[#allocation2 + $0xb9] sm:$0xff] }
 0xe68   : > { %v19470_v3 = vpack.c.bf16 %v12531_v16, %v12530_v17  ;;  %v12589_v17 = vld [vmem:[#allocation2 + $0x301] sm:$0xff]  ;;  %v12620_v16 = vld [vmem:[#allocation2 + $0x439] sm:$0xff] }
 0xe6a   : > { %17203 = vmatmul.mubr.msk.f32.vlgmr.msra.gmra.mrb[162].mxu0 %vm720_vm0, %v24470_v44 }
 0xe6b   : > { %19442 = vmatpush3.bf16.xpose.msk.msra.mxu0 %vm21683_vm12, %v19440_v56  ;;  %17204 = vmatprep.mubr.msk.f32.mxu0 %vm720_vm0, %v24547_v41  ;;  %v19473_v56 = vpack.c.bf16 %v12549_v13, %v12548_v10  ;;  %v12607_v10 = vld [vmem:[#allocation2 + $0x3b1] sm:$0xff]  ;;  %v12638_v13 = vld [vmem:[#allocation2 + $0x4e9] sm:$0xff] }
 0xe6c   : > { %19445 = vmatprep.subr.msk.bf16.mxu0 %vm21683_vm12, %v19443_v48  ;;  %v12532_v48 = vld [vmem:[#allocation2 + $0xc9] sm:$0xff] }
 0xe6d   : > { %17239 = vmatmul.mubr.msk.f32.vlgmr.msra.gmra.mrb[136].mxu1 %vm720_vm0, %v24470_v44  ;;  %v12555_v44 = vld [vmem:[#allocation2 + $0x1a9] sm:$0xff] }
 0xe6e   : > { %19490 = vmatpush3.bf16.xpose.msk.msra.mxu1 %vm21683_vm12, %v19488_v8  ;;  %17240 = vmatprep.mubr.msk.f32.mxu1 %vm720_vm0, %v24547_v41  ;;  %v19494_v1 = vpack.c.bf16 %v12555_v44, %v12554_v4  ;;  %v19521_v8 = vpack.c.bf16 %v12581_v39, %v12580_v31  ;;  %v12550_v4 = vld [vmem:[#allocation2 + $0x179] sm:$0xff]  ;;  %v12551_v44 = vld [vmem:[#allocation2 + $0x181] sm:$0xff]  ;;  %v12639_v31 = vld [vmem:[#allocation2 + $0x4f1] sm:$0xff] }
 0xe6f   : > { %19493 = vmatprep.subr.msk.bf16.mxu1 %vm21683_vm12, %v19491_v15  ;;  %17205 = vmatmul.mubr.msk.f32.gmra.mrb[164].mxu0 %vm720_vm0, %v24547_v41  ;;  %v12533_v15 = vld [vmem:[#allocation2 + $0xd1] sm:$0xff] }
 0xe70   : > { %17274 = vmatprep.mubr.msk.f32.mxu0 %vm720_vm0, %v24640_v6  ;;  %v19476_v27 = vpack.c.bf16 %v12533_v15, %v12532_v48  ;;  %v12591_v48 = vld [vmem:[#allocation2 + $0x311] sm:$0xff]  ;;  %v12622_v15 = vld [vmem:[#allocation2 + $0x449] sm:$0xff] }
 0xe71   : > { %17241 = vmatmul.mubr.msk.f32.gmra.mrb[138].mxu1 %vm720_vm0, %v24547_v41  ;;  %v12525_v41 = vld [vmem:[#allocation2 + $0x81] sm:$0xff] }
 0xe72   : > { %17310 = vmatprep.mubr.msk.f32.mxu1 %vm720_vm0, %v24640_v6  ;;  %v19452_v5 = vpack.c.bf16 %v12525_v41, %v12524_v23  ;;  %v12566_v23 = vld [vmem:[#allocation2 + $0x219] sm:$0xff]  ;;  %v12567_v41 = vld [vmem:[#allocation2 + $0x221] sm:$0xff] }
 0xe73   : > { %19448 = vmatpush3.bf16.xpose.msk.msra.mxu0 %vm21683_vm12, %v19446_v32  ;;  %v19479_v32 = vpack.c.bf16 %v12551_v44, %v12550_v4  ;;  %v19530_v29 = vpack.c.bf16 %v12567_v41, %v12566_v23  ;;  %v12609_v4 = vld [vmem:[#allocation2 + $0x3c9] sm:$0xff]  ;;  %v12640_v44 = vld [vmem:[#allocation2 + $0x501] sm:$0xff]  ;;  %v12610_v41 = vld [vmem:[#allocation2 + $0x3d1] sm:$0xff] }
 0xe74   : > { %19451 = vmatprep.subr.msk.bf16.mxu0 %vm21683_vm12, %v19449_v26  ;;  %v12534_v26 = vld [vmem:[#allocation2 + $0xd9] sm:$0xff]  ;;  %v12625_v23 = vld [vmem:[#allocation2 + $0x469] sm:$0xff] }
 0xe76   : > { %19496 = vmatpush3.bf16.xpose.msk.msra.mxu1 %vm21683_vm12, %v19494_v1  ;;  %v19527_v1 = vpack.c.bf16 %v12583_v18, %v12582_v60  ;;  %v12641_v60 = vld [vmem:[#allocation2 + $0x509] sm:$0xff] }
 0xe77   : > { %19499 = vmatprep.subr.msk.bf16.mxu1 %vm21683_vm12, %v19497_v9  ;;  %v12535_v9 = vld [vmem:[#allocation2 + $0xe1] sm:$0xff] }
 0xe78   : > { %v19482_v63 = vpack.c.bf16 %v12535_v9, %v12534_v26  ;;  %v12593_v26 = vld [vmem:[#allocation2 + $0x329] sm:$0xff]  ;;  %v12624_v9 = vld [vmem:[#allocation2 + $0x461] sm:$0xff] }
 0xe7b   : > { %19454 = vmatpush3.bf16.xpose.msk.msra.mxu0 %vm21683_vm12, %v19452_v5  ;;  %v19533_v5 = vpack.c.bf16 %v12601_v42, %v12600_v24  ;;  %v12611_v24 = vld [vmem:[#allocation2 + $0x3d9] sm:$0xff]  ;;  %v12642_v42 = vld [vmem:[#allocation2 + $0x511] sm:$0xff] }
 0xe7c   : > { %19457 = vmatprep.subr.msk.bf16.mxu0 %vm21683_vm12, %v19455_v50  ;;  %v12584_v50 = vld [vmem:[#allocation2 + $0x2d1] sm:$0xff] }
 0xe7e   : > { %19502 = vmatpush3.bf16.xpose.msk.msra.mxu1 %vm21683_vm12, %v19500_v28  ;;  %v19581_v28 = vpack.c.bf16 %v12633_v12, %v12632_v40  ;;  %v12643_v40 = vld [vmem:[#allocation2 + $0x519] sm:$0xff] }
 0xe7f   : > { %19505 = vmatprep.subr.msk.bf16.mxu1 %vm21683_vm12, %v19503_v14  ;;  %v12585_v14 = vld [vmem:[#allocation2 + $0x2d9] sm:$0xff] }
 0xe80   : > { %v19536_v19 = vpack.c.bf16 %v12585_v14, %v12584_v50  ;;  %v12595_v50 = vld [vmem:[#allocation2 + $0x339] sm:$0xff]  ;;  %v12626_v14 = vld [vmem:[#allocation2 + $0x471] sm:$0xff] }
 0xe83   : > { %19460 = vmatpush3.bf16.xpose.msk.msra.mxu0 %vm21683_vm12, %v19458_v20  ;;  %v19539_v20 = vpack.c.bf16 %v12603_v46, %v12602_v49  ;;  %v12613_v49 = vld [vmem:[#allocation2 + $0x3f1] sm:$0xff]  ;;  %v12644_v46 = vld [vmem:[#allocation2 + $0x529] sm:$0xff] }
 0xe84   : > { %19463 = vmatprep.subr.msk.bf16.mxu0 %vm21683_vm12, %v19461_v2  ;;  %v24717_v2 = vld [vmem:[%s25057_s9 + $0x78] sm:$0xff] }
 0xe86   : > { %19508 = vmatpush3.bf16.xpose.msk.msra.mxu1 %vm21683_vm12, %v19506_v30  ;;  %v19587_v30 = vpack.c.bf16 %v12635_v38, %v12634_v52  ;;  %v12645_v52 = vld [vmem:[#allocation2 + $0x531] sm:$0xff] }
 0xe87   : > { %19511 = vmatprep.subr.msk.bf16.mxu1 %vm21683_vm12, %v19509_v54  ;;  %v12586_v54 = vld [vmem:[#allocation2 + $0x2e1] sm:$0xff] }
 0xe88   : > { %v19542_v11 = vpack.c.bf16 %v12587_v62, %v12586_v54  ;;  %v12597_v54 = vld [vmem:[#allocation2 + $0x351] sm:$0xff]  ;;  %v12628_v62 = vld [vmem:[#allocation2 + $0x489] sm:$0xff] }
 0xe8b   : > { %19466 = vmatpush3.bf16.xpose.msk.msra.mxu0 %vm21683_vm12, %v19464_v43  ;;  %v19590_v43 = vpack.c.bf16 %v12619_v53, %v12618_v51  ;;  %v12629_v51 = vld [vmem:[#allocation2 + $0x491] sm:$0xff]  ;;  %v12614_v53 = vld [vmem:[#allocation2 + $0x3f9] sm:$0xff] }
 0xe8c   : > { %19469 = vmatprep.subr.msk.bf16.mxu0 %vm21683_vm12, %v19467_v34  ;;  %v19593_v34 = vpack.c.bf16 %v12637_v47, %v12636_v22  ;;  %v12647_v22 = vld [vmem:[#allocation2 + $0x541] sm:$0xff] }
 0xe8e   : > { %19514 = vmatpush3.bf16.xpose.msk.msra.mxu1 %vm21683_vm12, %v19512_v59  ;;  %v19545_v59 = vpack.c.bf16 %v12605_v55, %v12604_v33  ;;  %v12615_v33 = vld [vmem:[#allocation2 + $0x401] sm:$0xff]  ;;  %v12646_v55 = vld [vmem:[#allocation2 + $0x539] sm:$0xff] }
 0xe8f   : > { %19517 = vmatprep.subr.msk.bf16.mxu1 %vm21683_vm12, %v19515_v35  ;;  %v12588_v35 = vld [vmem:[#allocation2 + $0x2f9] sm:$0xff] }
 0xe90   : > { %v19548_v39 = vpack.c.bf16 %v12589_v17, %v12588_v35  ;;  %v12599_v35 = vld [vmem:[#allocation2 + $0x361] sm:$0xff]  ;;  %v12630_v17 = vld [vmem:[#allocation2 + $0x499] sm:$0xff] }
 0xe93   : > { %19472 = vmatpush3.bf16.xpose.msk.msra.mxu0 %vm21683_vm12, %v19470_v3  ;;  %v19596_v3 = vpack.c.bf16 %v12621_v37, %v12620_v16  ;;  %v12631_v16 = vld [vmem:[#allocation2 + $0x4a1] sm:$0xff]  ;;  %v13381_v37 = vld [vmem:[#allocation2 + $0xf2] sm:$0xff] }
 0xe94   : > { %19475 = vmatprep.subr.msk.bf16.mxu0 %vm21683_vm12, %v19473_v56  ;;  %v19599_v56 = vpack.c.bf16 %v12639_v31, %v12638_v13  ;;  %v13414_v13 = vld [vmem:[#allocation2 + $0x23a] sm:$0xff] }
 0xe96   : > { %19520 = vmatpush3.bf16.xpose.msk.msra.mxu1 %vm21683_vm12, %v19518_v21  ;;  %v19551_v21 = vpack.c.bf16 %v12607_v10, %v12606_v61  ;;  %v13382_v61 = vld [vmem:[#allocation2 + $0xfa] sm:$0xff]  ;;  %v13413_v10 = vld [vmem:[#allocation2 + $0x232] sm:$0xff] }
 0xe97   : > { %19523 = vmatprep.subr.msk.bf16.mxu1 %vm21683_vm12, %v19521_v8  ;;  %v12590_v8 = vld [vmem:[#allocation2 + $0x309] sm:$0xff] }
 0xe98   : > { %v19554_v18 = vpack.c.bf16 %v12591_v48, %v12590_v8  ;;  %v13366_v8 = vld [vmem:[#allocation2 + $0x5a] sm:$0xff]  ;;  %v13397_v48 = vld [vmem:[#allocation2 + $0x192] sm:$0xff] }
 0xe9b   : > { %19478 = vmatpush3.bf16.xpose.msk.msra.mxu0 %vm21683_vm12, %v19476_v27  ;;  %v19602_v27 = vpack.c.bf16 %v12623_v7, %v12622_v15  ;;  %v13398_v15 = vld [vmem:[#allocation2 + $0x19a] sm:$0xff]  ;;  %v13383_v7 = vld [vmem:[#allocation2 + $0x102] sm:$0xff] }
 0xe9c   : > { %19481 = vmatprep.subr.msk.bf16.mxu0 %vm21683_vm12, %v19479_v32  ;;  %v19605_v32 = vpack.c.bf16 %v12641_v60, %v12640_v44  ;;  %v13416_v44 = vld [vmem:[#allocation2 + $0x24a] sm:$0xff] }
 0xe9e   : > { %19526 = vmatpush3.bf16.xpose.msk.msra.mxu1 %vm21683_vm12, %v19524_v25  ;;  %v19557_v25 = vpack.c.bf16 %v12609_v4, %v12608_v36  ;;  %v13384_v36 = vld [vmem:[#allocation2 + $0x10a] sm:$0xff]  ;;  %v13415_v4 = vld [vmem:[#allocation2 + $0x242] sm:$0xff] }
 0xe9f   : > { %19529 = vmatprep.subr.msk.bf16.mxu1 %vm21683_vm12, %v19527_v1  ;;  %v12592_v1 = vld [vmem:[#allocation2 + $0x321] sm:$0xff] }
 0xea0   : > { %v19560_v12 = vpack.c.bf16 %v12593_v26, %v12592_v1  ;;  %v13368_v1 = vld [vmem:[#allocation2 + $0x6a] sm:$0xff]  ;;  %v13399_v26 = vld [vmem:[#allocation2 + $0x1a2] sm:$0xff] }
 0xea3   : > { %19484 = vmatpush3.bf16.xpose.msk.msra.mxu0 %vm21683_vm12, %v19482_v63  ;;  %v19608_v63 = vpack.c.bf16 %v12625_v23, %v12624_v9  ;;  %v24810_v9 = vld [vmem:[%s25057_s9 + $0x80] sm:$0xff] }
 0xea4   : > { %19535 = vmatprep.subr.msk.bf16.mxu0 %vm21683_vm12, %v19533_v5  ;;  %v19611_v5 = vpack.c.bf16 %v12643_v40, %v12642_v42  ;;  %v13385_v23 = vld [vmem:[#allocation2 + $0x11a] sm:$0xff]  ;;  %v13418_v42 = vld [vmem:[#allocation2 + $0x262] sm:$0xff] }
 0xea6   : > { %19532 = vmatpush3.bf16.xpose.msk.msra.mxu1 %vm21683_vm12, %v19530_v29  ;;  %v19563_v29 = vpack.c.bf16 %v12611_v24, %v12610_v41  ;;  %v13386_v41 = vld [vmem:[#allocation2 + $0x122] sm:$0xff]  ;;  %v13417_v24 = vld [vmem:[#allocation2 + $0x25a] sm:$0xff] }
 0xea7   : > { %19583 = vmatprep.subr.msk.bf16.mxu1 %vm21683_vm12, %v19581_v28  ;;  %v12594_v28 = vld [vmem:[#allocation2 + $0x331] sm:$0xff] }
 0xea8   : > { %v19566_v38 = vpack.c.bf16 %v12595_v50, %v12594_v28  ;;  %v19689_v28 = vpack.c.bf16 %v13418_v42, %v13417_v24  ;;  %v13369_v50 = vld [vmem:[#allocation2 + $0x7a] sm:$0xff]  ;;  %v13396_v24 = vld [vmem:[#allocation2 + $0x182] sm:$0xff] }
 0xea9   : > { %v13427_v42 = vld [vmem:[#allocation2 + $0x2ba] sm:$0xff] }
 0xeaa   : > { %17275 = vmatmul.mubr.msk.f32.vlgmr.msra.gmra.mrb[158].mxu0 %vm720_vm0, %v24640_v6 }
 0xeab   : > { %19538 = vmatpush3.bf16.xpose.msk.msra.mxu0 %vm21683_vm12, %v19536_v19  ;;  %17276 = vmatprep.mubr.msk.f32.mxu0 %vm720_vm0, %v24717_v2  ;;  %v19614_v19 = vpack.c.bf16 %v12627_v57, %v12626_v14  ;;  %v13370_v14 = vld [vmem:[#allocation2 + $0x82] sm:$0xff]  ;;  %v13401_v57 = vld [vmem:[#allocation2 + $0x1ba] sm:$0xff] }
 0xeac   : > { %19541 = vmatprep.subr.msk.bf16.mxu0 %vm21683_vm12, %v19539_v20  ;;  %v19617_v20 = vpack.c.bf16 %v12645_v52, %v12644_v46  ;;  %v13388_v46 = vld [vmem:[#allocation2 + $0x132] sm:$0xff]  ;;  %v13419_v52 = vld [vmem:[#allocation2 + $0x26a] sm:$0xff] }
 0xead   : > { %17311 = vmatmul.mubr.msk.f32.vlgmr.msra.gmra.mrb[132].mxu1 %vm720_vm0, %v24640_v6 }
 0xeae   : > { %19586 = vmatpush3.bf16.xpose.msk.msra.mxu1 %vm21683_vm12, %v19584_v45  ;;  %17312 = vmatprep.mubr.msk.f32.mxu1 %vm720_vm0, %v24717_v2  ;;  %v19569_v45 = vpack.c.bf16 %v12613_v49, %v12612_v0  ;;  %v13402_v0 = vld [vmem:[#allocation2 + $0x1c2] sm:$0xff]  ;;  %v13387_v49 = vld [vmem:[#allocation2 + $0x12a] sm:$0xff] }
 0xeaf   : > { %19589 = vmatprep.subr.msk.bf16.mxu1 %vm21683_vm12, %v19587_v30  ;;  %17277 = vmatmul.mubr.msk.f32.gmra.mrb[160].mxu0 %vm720_vm0, %v24717_v2  ;;  %v12596_v30 = vld [vmem:[#allocation2 + $0x349] sm:$0xff] }
 0xeb0   : > { %17346 = vmatprep.mubr.msk.f32.mxu0 %vm720_vm0, %v24640_v6  ;;  %v19572_v47 = vpack.c.bf16 %v12597_v54, %v12596_v30  ;;  %v13371_v54 = vld [vmem:[#allocation2 + $0x8a] sm:$0xff] }
 0xeb1   : > { %17313 = vmatmul.mubr.msk.f32.gmra.mrb[134].mxu1 %vm720_vm0, %v24717_v2 }
 0xeb2   : > { %17382 = vmatprep.mubr.msk.f32.mxu1 %vm720_vm0, %v24640_v6 }
 0xeb3   : > { %19544 = vmatpush3.bf16.xpose.msk.msra.mxu0 %vm21683_vm12, %v19542_v11  ;;  %v19620_v11 = vpack.c.bf16 %v12629_v51, %v12628_v62  ;;  %v13372_v62 = vld [vmem:[#allocation2 + $0x92] sm:$0xff]  ;;  %v13403_v51 = vld [vmem:[#allocation2 + $0x1ca] sm:$0xff] }
 0xeb4   : > { %19547 = vmatprep.subr.msk.bf16.mxu0 %vm21683_vm12, %v19545_v59  ;;  %v19623_v59 = vpack.c.bf16 %v12647_v22, %v12646_v55  ;;  %v13390_v55 = vld [vmem:[#allocation2 + $0x14a] sm:$0xff]  ;;  %v13421_v22 = vld [vmem:[#allocation2 + $0x282] sm:$0xff] }
 0xeb6   : > { %19592 = vmatpush3.bf16.xpose.msk.msra.mxu1 %vm21683_vm12, %v19590_v43  ;;  %v19575_v43 = vpack.c.bf16 %v12615_v33, %v12614_v53  ;;  %v13404_v53 = vld [vmem:[#allocation2 + $0x1d2] sm:$0xff]  ;;  %v13389_v33 = vld [vmem:[#allocation2 + $0x142] sm:$0xff] }
 0xeb7   : > { %19595 = vmatprep.subr.msk.bf16.mxu1 %vm21683_vm12, %v19593_v34  ;;  %v12598_v34 = vld [vmem:[#allocation2 + $0x359] sm:$0xff] }
 0xeb8   : > { %v19578_v31 = vpack.c.bf16 %v12599_v35, %v12598_v34  ;;  %v13373_v35 = vld [vmem:[#allocation2 + $0xa2] sm:$0xff] }
 0xebb   : > { %19550 = vmatpush3.bf16.xpose.msk.msra.mxu0 %vm21683_vm12, %v19548_v39  ;;  %v19626_v39 = vpack.c.bf16 %v12631_v16, %v12630_v17  ;;  %v13374_v17 = vld [vmem:[#allocation2 + $0xaa] sm:$0xff]  ;;  %v13405_v16 = vld [vmem:[#allocation2 + $0x1e2] sm:$0xff] }
 0xebc   : > { %19553 = vmatprep.subr.msk.bf16.mxu0 %vm21683_vm12, %v19551_v21  ;;  %v19677_v21 = vpack.c.bf16 %v13414_v13, %v13413_v10  ;;  %v13392_v10 = vld [vmem:[#allocation2 + $0x15a] sm:$0xff]  ;;  %v13423_v13 = vld [vmem:[#allocation2 + $0x292] sm:$0xff] }
 0xebe   : > { %19598 = vmatpush3.bf16.xpose.msk.msra.mxu1 %vm21683_vm12, %v19596_v3  ;;  %v19629_v3 = vpack.c.bf16 %v13382_v61, %v13381_v37  ;;  %v13406_v37 = vld [vmem:[#allocation2 + $0x1ea] sm:$0xff]  ;;  %v13391_v61 = vld [vmem:[#allocation2 + $0x152] sm:$0xff] }
 0xebf   : > { %19601 = vmatprep.subr.msk.bf16.mxu1 %vm21683_vm12, %v19599_v56  ;;  %v13365_v56 = vld [vmem:[#allocation2 + $0x52] sm:$0xff] }
 0xec0   : > { %v19632_v60 = vpack.c.bf16 %v13366_v8, %v13365_v56  ;;  %v13375_v8 = vld [vmem:[#allocation2 + $0xb2] sm:$0xff] }
 0xec3   : > { %19556 = vmatpush3.bf16.xpose.msk.msra.mxu0 %vm21683_vm12, %v19554_v18  ;;  %v19680_v18 = vpack.c.bf16 %v13398_v15, %v13397_v48  ;;  %v13376_v48 = vld [vmem:[#allocation2 + $0xba] sm:$0xff]  ;;  %v13407_v15 = vld [vmem:[#allocation2 + $0x1f2] sm:$0xff] }
 0xec4   : > { %19559 = vmatprep.subr.msk.bf16.mxu0 %vm21683_vm12, %v19557_v25  ;;  %v19683_v25 = vpack.c.bf16 %v13416_v44, %v13415_v4  ;;  %v13394_v4 = vld [vmem:[#allocation2 + $0x172] sm:$0xff]  ;;  %v13425_v44 = vld [vmem:[#allocation2 + $0x2aa] sm:$0xff] }
 0xec6   : > { %19604 = vmatpush3.bf16.xpose.msk.msra.mxu1 %vm21683_vm12, %v19602_v27  ;;  %v19635_v27 = vpack.c.bf16 %v13384_v36, %v13383_v7  ;;  %v13408_v7 = vld [vmem:[#allocation2 + $0x1fa] sm:$0xff]  ;;  %v13393_v36 = vld [vmem:[#allocation2 + $0x16a] sm:$0xff] }
 0xec7   : > { %19607 = vmatprep.subr.msk.bf16.mxu1 %vm21683_vm12, %v19605_v32  ;;  %v13367_v32 = vld [vmem:[#allocation2 + $0x62] sm:$0xff] }
 0xec8   : > { %v19638_v40 = vpack.c.bf16 %v13368_v1, %v13367_v32  ;;  %v13377_v1 = vld [vmem:[#allocation2 + $0xca] sm:$0xff] }
 0xecb   : > { %19562 = vmatpush3.bf16.xpose.msk.msra.mxu0 %vm21683_vm12, %v19560_v12  ;;  %v6593_v12 = vld [vmem:[%s25058_s10] sm:$0xff] }
 0xecc   : > { %19565 = vmatprep.subr.msk.bf16.mxu0 %vm21683_vm12, %v19563_v29  ;;  %v19641_v29 = vpack.c.bf16 %v13386_v41, %v13385_v23  ;;  %v13410_v23 = vld [vmem:[#allocation2 + $0x212] sm:$0xff]  ;;  %v13395_v41 = vld [vmem:[#allocation2 + $0x17a] sm:$0xff] }
 0xece   : > { %19610 = vmatpush3.bf16.xpose.msk.msra.mxu1 %vm21683_vm12, %v19608_v63 }
 0xecf   : > { %19613 = vmatprep.subr.msk.bf16.mxu1 %vm21683_vm12, %v19611_v5  ;;  %v20194_v5 = vmov 0  }
 0xed0   : > { %20071 = vset.pattern.permute.xlu0 %v20194_v5 }
 0xed1   : > { %6597 = vperm.xlu0 %20071, %v6593_v12  }
 0xed3   : > { %19568 = vmatpush3.bf16.xpose.msk.msra.mxu0 %vm21683_vm12, %v19566_v38  ;;  %v13420_v38 = vld [vmem:[#allocation2 + $0x272] sm:$0xff] }
 0xed4   : > { %19571 = vmatprep.subr.msk.bf16.mxu0 %vm21683_vm12, %v19569_v45  ;;  %v19692_v45 = vpack.c.bf16 %v13402_v0, %v13401_v57  ;;  %v19695_v30 = vpack.c.bf16 %v13420_v38, %v13419_v52  ;;  %v13445_v57 = vld [vmem:[#allocation2 + $0x372] sm:$0xff]  ;;  %v13446_v0 = vld [vmem:[#allocation2 + $0x37a] sm:$0xff] }
 0xed6   : > { %19616 = vmatpush3.bf16.xpose.msk.msra.mxu1 %vm21683_vm12, %v19614_v19  ;;  %v19644_v19 = vpack.c.bf16 %v13370_v14, %v13369_v50  ;;  %v13411_v50 = vld [vmem:[#allocation2 + $0x21a] sm:$0xff]  ;;  %v13412_v14 = vld [vmem:[#allocation2 + $0x222] sm:$0xff] }
 0xed7   : > { %19619 = vmatprep.subr.msk.bf16.mxu1 %vm21683_vm12, %v19617_v20  ;;  %v19647_v20 = vpack.c.bf16 %v13388_v46, %v13387_v49  ;;  %v13477_v49 = vld [vmem:[#allocation2 + $0x4b2] sm:$0xff]  ;;  %v13478_v46 = vld [vmem:[#allocation2 + $0x4ba] sm:$0xff]  ;;  %v19722_v38 = vpack.c.bf16 %v13412_v14, %v13411_v50  ;;  %v13470_v50 = vld [vmem:[#allocation2 + $0x46a] sm:$0xff] }
 0xed8   : > { %v13455_v14 = vld [vmem:[#allocation2 + $0x3d2] sm:$0xff] }
 0xedb   : > { %19574 = vmatpush3.bf16.xpose.msk.msra.mxu0 %vm21683_vm12, %v19572_v47  ;;  %v13422_v47 = vld [vmem:[#allocation2 + $0x28a] sm:$0xff] }
 0xedc   : > { %19577 = vmatprep.subr.msk.bf16.mxu0 %vm21683_vm12, %v19575_v43  ;;  %v19698_v43 = vpack.c.bf16 %v13404_v53, %v13403_v51  ;;  %v19701_v34 = vpack.c.bf16 %v13422_v47, %v13421_v22  ;;  %v13447_v51 = vld [vmem:[#allocation2 + $0x382] sm:$0xff]  ;;  %v13448_v53 = vld [vmem:[#allocation2 + $0x38a] sm:$0xff] }
 0xedd   : > { %v13480_v22 = vld [vmem:[#allocation2 + $0x4ca] sm:$0xff] }
 0xede   : > { %19622 = vmatpush3.bf16.xpose.msk.msra.mxu1 %vm21683_vm12, %v19620_v11  ;;  %v19650_v11 = vpack.c.bf16 %v13372_v62, %v13371_v54  ;;  %v13461_v54 = vld [vmem:[#allocation2 + $0x412] sm:$0xff]  ;;  %v13462_v62 = vld [vmem:[#allocation2 + $0x41a] sm:$0xff] }
 0xedf   : > { %19625 = vmatprep.subr.msk.bf16.mxu1 %vm21683_vm12, %v19623_v59  ;;  %v19653_v59 = vpack.c.bf16 %v13390_v55, %v13389_v33  ;;  %v13479_v55 = vld [vmem:[#allocation2 + $0x4c2] sm:$0xff]  ;;  %v19776_v47 = vpack.c.bf16 %v13462_v62, %v13461_v54  ;;  %v13472_v54 = vld [vmem:[#allocation2 + $0x47a] sm:$0xff]  ;;  %v13457_v62 = vld [vmem:[#allocation2 + $0x3ea] sm:$0xff] }
 0xee3   : > { %19580 = vmatpush3.bf16.xpose.msk.msra.mxu0 %vm21683_vm12, %v19578_v31  ;;  %v13424_v31 = vld [vmem:[#allocation2 + $0x29a] sm:$0xff] }
 0xee4   : > { %19631 = vmatprep.subr.msk.bf16.mxu0 %vm21683_vm12, %v19629_v3  ;;  %v19704_v3 = vpack.c.bf16 %v13406_v37, %v13405_v16  ;;  %v19707_v56 = vpack.c.bf16 %v13424_v31, %v13423_v13  ;;  %v13464_v16 = vld [vmem:[#allocation2 + $0x42a] sm:$0xff]  ;;  %v13449_v37 = vld [vmem:[#allocation2 + $0x39a] sm:$0xff]  ;;  %v13482_v13 = vld [vmem:[#allocation2 + $0x4e2] sm:$0xff] }
 0xee6   : > { %19628 = vmatpush3.bf16.xpose.msk.msra.mxu1 %vm21683_vm12, %v19626_v39  ;;  %v19656_v39 = vpack.c.bf16 %v13374_v17, %v13373_v35  ;;  %v13432_v35 = vld [vmem:[#allocation2 + $0x2ea] sm:$0xff]  ;;  %v13463_v17 = vld [vmem:[#allocation2 + $0x422] sm:$0xff] }
 0xee7   : > { %19679 = vmatprep.subr.msk.bf16.mxu1 %vm21683_vm12, %v19677_v21  ;;  %v19659_v21 = vpack.c.bf16 %v13392_v10, %v13391_v61  ;;  %v13450_v61 = vld [vmem:[#allocation2 + $0x3a2] sm:$0xff]  ;;  %v13481_v10 = vld [vmem:[#allocation2 + $0x4da] sm:$0xff] }
 0xeea   : > { %17347 = vmatmul.mubr.msk.f32.vlgmr.msra.gmra.mrb[162].mxu0 %vm720_vm0, %v24640_v6 }
 0xeeb   : > { %19634 = vmatpush3.bf16.xpose.msk.msra.mxu0 %vm21683_vm12, %v19632_v60  ;;  %17348 = vmatprep.mubr.msk.f32.mxu0 %vm720_vm0, %v24717_v2  ;;  %v13426_v60 = vld [vmem:[#allocation2 + $0x2b2] sm:$0xff] }
 0xeec   : > { %19637 = vmatprep.subr.msk.bf16.mxu0 %vm21683_vm12, %v19635_v27  ;;  %v19710_v27 = vpack.c.bf16 %v13408_v7, %v13407_v15  ;;  %v19713_v32 = vpack.c.bf16 %v13426_v60, %v13425_v44  ;;  %v13466_v15 = vld [vmem:[#allocation2 + $0x442] sm:$0xff]  ;;  %v13451_v7 = vld [vmem:[#allocation2 + $0x3aa] sm:$0xff]  ;;  %v13484_v44 = vld [vmem:[#allocation2 + $0x4f2] sm:$0xff] }
 0xeed   : > { %17383 = vmatmul.mubr.msk.f32.vlgmr.msra.gmra.mrb[136].mxu1 %vm720_vm0, %v24640_v6  ;;  %v13400_v6 = vld [vmem:[#allocation2 + $0x1aa] sm:$0xff] }
 0xeee   : > { %19682 = vmatpush3.bf16.xpose.msk.msra.mxu1 %vm21683_vm12, %v19680_v18  ;;  %17384 = vmatprep.mubr.msk.f32.mxu1 %vm720_vm0, %v24717_v2  ;;  %v19686_v63 = vpack.c.bf16 %v13400_v6, %v13399_v26  ;;  %v19662_v18 = vpack.c.bf16 %v13376_v48, %v13375_v8  ;;  %v13378_v26 = vld [vmem:[#allocation2 + $0xd2] sm:$0xff]  ;;  %v13409_v6 = vld [vmem:[#allocation2 + $0x20a] sm:$0xff]  ;;  %v13434_v8 = vld [vmem:[#allocation2 + $0x302] sm:$0xff] }
 0xeef   : > { %19685 = vmatprep.subr.msk.bf16.mxu1 %vm21683_vm12, %v19683_v25  ;;  %17349 = vmatmul.mubr.msk.f32.gmra.mrb[164].mxu0 %vm720_vm0, %v24717_v2  ;;  %v19665_v25 = vpack.c.bf16 %v13394_v4, %v13393_v36  ;;  %v19668_v12 = vpack.c.bf16 %v13378_v26, %v13377_v1  ;;  %v13465_v48 = vld [vmem:[#allocation2 + $0x43a] sm:$0xff]  ;;  %v13452_v36 = vld [vmem:[#allocation2 + $0x3b2] sm:$0xff]  ;;  %v13483_v4 = vld [vmem:[#allocation2 + $0x4ea] sm:$0xff] }
 0xef0   : > { %17418 = vmatprep.mubr.msk.f32.mxu0 %vm720_vm0, %v24810_v9  ;;  %v13436_v1 = vld [vmem:[#allocation2 + $0x312] sm:$0xff]  ;;  %v13467_v26 = vld [vmem:[#allocation2 + $0x44a] sm:$0xff] }
 0xef1   : > { %17385 = vmatmul.mubr.msk.f32.gmra.mrb[138].mxu1 %vm720_vm0, %v24717_v2  ;;  %v6594_v2 = vld [vmem:[%s25058_s10 + $0x8] sm:$0xff] }
 0xef2   : > { %17454 = vmatprep.mubr.msk.f32.mxu1 %vm720_vm0, %v24810_v9  ;;  %6602 = vperm.xlu0 %20071, %v6594_v2   ;;  %v13380_v2 = vld [vmem:[#allocation2 + $0xe2] sm:$0xff] }
 0xef3   : > { %19640 = vmatpush3.bf16.xpose.msk.msra.mxu0 %vm21683_vm12, %v19638_v40  ;;  %v13428_v40 = vld [vmem:[#allocation2 + $0x2c2] sm:$0xff] }
 0xef4   : > { %19643 = vmatprep.subr.msk.bf16.mxu0 %vm21683_vm12, %v19641_v29  ;;  %v19671_v29 = vpack.c.bf16 %v13396_v24, %v13395_v41  ;;  %v19719_v5 = vpack.c.bf16 %v13428_v40, %v13427_v42  ;;  %v13454_v41 = vld [vmem:[#allocation2 + $0x3ca] sm:$0xff]  ;;  %v13485_v24 = vld [vmem:[#allocation2 + $0x502] sm:$0xff] }
 0xef5   : > { %v13486_v42 = vld [vmem:[#allocation2 + $0x50a] sm:$0xff] }
 0xef6   : > { %19688 = vmatpush3.bf16.xpose.msk.msra.mxu1 %vm21683_vm12, %v19686_v63  ;;  %v19716_v63 = vpack.c.bf16 %v13410_v23, %v13409_v6  ;;  %v13468_v6 = vld [vmem:[#allocation2 + $0x452] sm:$0xff]  ;;  %v13453_v23 = vld [vmem:[#allocation2 + $0x3c2] sm:$0xff] }
 0xef7   : > { %19691 = vmatprep.subr.msk.bf16.mxu1 %vm21683_vm12, %v19689_v28  ;;  %v13379_v28 = vld [vmem:[#allocation2 + $0xda] sm:$0xff] }
 0xef8   : > { %v19674_v52 = vpack.c.bf16 %v13380_v2, %v13379_v28  ;;  %v13438_v28 = vld [vmem:[#allocation2 + $0x32a] sm:$0xff]  ;;  %v13469_v2 = vld [vmem:[#allocation2 + $0x462] sm:$0xff] }
 0xefb   : > { %19646 = vmatpush3.bf16.xpose.msk.msra.mxu0 %vm21683_vm12, %v19644_v19  ;;  %v19725_v19 = vpack.c.bf16 %v13446_v0, %v13445_v57  ;;  %v13456_v57 = vld [vmem:[#allocation2 + $0x3da] sm:$0xff]  ;;  %v13487_v0 = vld [vmem:[#allocation2 + $0x512] sm:$0xff] }
 0xefc   : > { %19649 = vmatprep.subr.msk.bf16.mxu0 %vm21683_vm12, %v19647_v20  ;;  %v13429_v20 = vld [vmem:[#allocation2 + $0x2d2] sm:$0xff] }
 0xefe   : > { %19694 = vmatpush3.bf16.xpose.msk.msra.mxu1 %vm21683_vm12, %v19692_v45  ;;  %v19773_v45 = vpack.c.bf16 %v13478_v46, %v13477_v49  ;;  %v13488_v49 = vld [vmem:[#allocation2 + $0x51a] sm:$0xff] }
 0xeff   : > { %19697 = vmatprep.subr.msk.bf16.mxu1 %vm21683_vm12, %v19695_v30  ;;  %v13430_v30 = vld [vmem:[#allocation2 + $0x2da] sm:$0xff] }
 0xf00   : > { %v19728_v33 = vpack.c.bf16 %v13430_v30, %v13429_v20  ;;  %v13440_v20 = vld [vmem:[#allocation2 + $0x33a] sm:$0xff]  ;;  %v13471_v30 = vld [vmem:[#allocation2 + $0x472] sm:$0xff] }
 0xf03   : > { %19652 = vmatpush3.bf16.xpose.msk.msra.mxu0 %vm21683_vm12, %v19650_v11  ;;  %v24891_v11 = vld [vmem:[%s25057_s9 + $0x88] sm:$0xff] }
 0xf04   : > { %19655 = vmatprep.subr.msk.bf16.mxu0 %vm21683_vm12, %v19653_v59  ;;  %v19779_v59 = vpack.c.bf16 %v13480_v22, %v13479_v55  ;;  %v19806_v22 = vpack.c.bf16 %v13472_v54, %v13471_v30 }
 0xf06   : > { %19700 = vmatpush3.bf16.xpose.msk.msra.mxu1 %vm21683_vm12, %v19698_v43  ;;  %v19731_v43 = vpack.c.bf16 %v13448_v53, %v13447_v51  ;;  %v13458_v51 = vld [vmem:[#allocation2 + $0x3f2] sm:$0xff]  ;;  %v13489_v53 = vld [vmem:[#allocation2 + $0x52a] sm:$0xff] }
 0xf07   : > { %19703 = vmatprep.subr.msk.bf16.mxu1 %vm21683_vm12, %v19701_v34  ;;  %v13431_v34 = vld [vmem:[#allocation2 + $0x2e2] sm:$0xff] }
 0xf08   : > { %v19734_v31 = vpack.c.bf16 %v13432_v35, %v13431_v34  ;;  %v13442_v34 = vld [vmem:[#allocation2 + $0x352] sm:$0xff]  ;;  %v13473_v35 = vld [vmem:[#allocation2 + $0x48a] sm:$0xff] }
 0xf0b   : > { %19658 = vmatpush3.bf16.xpose.msk.msra.mxu0 %vm21683_vm12, %v19656_v39  ;;  %v19782_v39 = vpack.c.bf16 %v13464_v16, %v13463_v17  ;;  %v13474_v17 = vld [vmem:[#allocation2 + $0x492] sm:$0xff]  ;;  %v13459_v16 = vld [vmem:[#allocation2 + $0x3fa] sm:$0xff] }
 0xf0c   : > { %19661 = vmatprep.subr.msk.bf16.mxu0 %vm21683_vm12, %v19659_v21  ;;  %v19785_v21 = vpack.c.bf16 %v13482_v13, %v13481_v10  ;;  %v13492_v10 = vld [vmem:[#allocation2 + $0x542] sm:$0xff] }
 0xf0e   : > { %19706 = vmatpush3.bf16.xpose.msk.msra.mxu1 %vm21683_vm12, %v19704_v3  ;;  %v19737_v3 = vpack.c.bf16 %v13450_v61, %v13449_v37  ;;  %v13460_v37 = vld [vmem:[#allocation2 + $0x402] sm:$0xff]  ;;  %v13491_v61 = vld [vmem:[#allocation2 + $0x53a] sm:$0xff] }
 0xf0f   : > { %19709 = vmatprep.subr.msk.bf16.mxu1 %vm21683_vm12, %v19707_v56  ;;  %v13433_v56 = vld [vmem:[#allocation2 + $0x2fa] sm:$0xff] }
 0xf10   : > { %v19740_v60 = vpack.c.bf16 %v13434_v8, %v13433_v56  ;;  %v13444_v56 = vld [vmem:[#allocation2 + $0x362] sm:$0xff]  ;;  %v13475_v8 = vld [vmem:[#allocation2 + $0x49a] sm:$0xff] }
 0xf13   : > { %19664 = vmatpush3.bf16.xpose.msk.msra.mxu0 %vm21683_vm12, %v19662_v18  ;;  %v19788_v18 = vpack.c.bf16 %v13466_v15, %v13465_v48  ;;  %v13476_v48 = vld [vmem:[#allocation2 + $0x4a2] sm:$0xff] }
 0xf14   : > { %19667 = vmatprep.subr.msk.bf16.mxu0 %vm21683_vm12, %v19665_v25  ;;  %v19791_v25 = vpack.c.bf16 %v13484_v44, %v13483_v4 }
 0xf16   : > { %19712 = vmatpush3.bf16.xpose.msk.msra.mxu1 %vm21683_vm12, %v19710_v27  ;;  %v19743_v27 = vpack.c.bf16 %v13452_v36, %v13451_v7  ;;  %v19818_v7 = vpack.c.bf16 %v13476_v48, %v13475_v8 }
 0xf17   : > { %19715 = vmatprep.subr.msk.bf16.mxu1 %vm21683_vm12, %v19713_v32  ;;  %v13435_v32 = vld [vmem:[#allocation2 + $0x30a] sm:$0xff] }
 0xf18   : > { %v19746_v40 = vpack.c.bf16 %v13436_v1, %v13435_v32 }
 0xf1b   : > { %19670 = vmatpush3.bf16.xpose.msk.msra.mxu0 %vm21683_vm12, %v19668_v12  ;;  %v19794_v12 = vpack.c.bf16 %v13468_v6, %v13467_v26 }
 0xf1c   : > { %19673 = vmatprep.subr.msk.bf16.mxu0 %vm21683_vm12, %v19671_v29  ;;  %v19797_v29 = vpack.c.bf16 %v13486_v42, %v13485_v24 }
 0xf1e   : > { %19718 = vmatpush3.bf16.xpose.msk.msra.mxu1 %vm21683_vm12, %v19716_v63  ;;  %v19749_v63 = vpack.c.bf16 %v13454_v41, %v13453_v23 }
 0xf1f   : > { %19721 = vmatprep.subr.msk.bf16.mxu1 %vm21683_vm12, %v19719_v5  ;;  %v13437_v5 = vld [vmem:[#allocation2 + $0x322] sm:$0xff] }
 0xf20   : > { %v19752_v46 = vpack.c.bf16 %v13438_v28, %v13437_v5 }
 0xf23   : > { %19676 = vmatpush3.bf16.xpose.msk.msra.mxu0 %vm21683_vm12, %v19674_v52  ;;  %v19800_v52 = vpack.c.bf16 %v13470_v50, %v13469_v2 }
 0xf24   : > { %19727 = vmatprep.subr.msk.bf16.mxu0 %vm21683_vm12, %v19725_v19  ;;  %v19803_v19 = vpack.c.bf16 %v13488_v49, %v13487_v0 }
 0xf26   : > { %19724 = vmatpush3.bf16.xpose.msk.msra.mxu1 %vm21683_vm12, %v19722_v38  ;;  %v19755_v38 = vpack.c.bf16 %v13456_v57, %v13455_v14 }
 0xf27   : > { %19775 = vmatprep.subr.msk.bf16.mxu1 %vm21683_vm12, %v19773_v45  ;;  %v13439_v45 = vld [vmem:[#allocation2 + $0x332] sm:$0xff] }
 0xf28   : > { %v19758_v55 = vpack.c.bf16 %v13440_v20, %v13439_v45 }
 0xf2a   : > { %17419 = vmatmul.mubr.msk.f32.vlgmr.msra.gmra.mrb[158].mxu0 %vm720_vm0, %v24810_v9 }
 0xf2b   : > { %19730 = vmatpush3.bf16.xpose.msk.msra.mxu0 %vm21683_vm12, %v19728_v33  ;;  %17420 = vmatprep.mubr.msk.f32.mxu0 %vm720_vm0, %v24891_v11  ;;  %v13490_v33 = vld [vmem:[#allocation2 + $0x532] sm:$0xff] }
 0xf2c   : > { %19733 = vmatprep.subr.msk.bf16.mxu0 %vm21683_vm12, %v19731_v43  ;;  %v19809_v43 = vpack.c.bf16 %v13490_v33, %v13489_v53 }
 0xf2d   : > { %17455 = vmatmul.mubr.msk.f32.vlgmr.msra.gmra.mrb[132].mxu1 %vm720_vm0, %v24810_v9 }
 0xf2e   : > { %19778 = vmatpush3.bf16.xpose.msk.msra.mxu1 %vm21683_vm12, %v19776_v47  ;;  %17456 = vmatprep.mubr.msk.f32.mxu1 %vm720_vm0, %v24891_v11  ;;  %v19761_v47 = vpack.c.bf16 %v13458_v51, %v13457_v62 }
 0xf2f   : > { %17421 = vmatmul.mubr.msk.f32.gmra.mrb[160].mxu0 %vm720_vm0, %v24891_v11  ;;  %19781 = vmatprep.subr.msk.bf16.mxu1 %vm21683_vm12, %v19779_v59  ;;  %v13441_v59 = vld [vmem:[#allocation2 + $0x34a] sm:$0xff] }
 0xf30   : > { %17490 = vmatprep.mubr.msk.f32.mxu0 %vm720_vm0, %v24810_v9  ;;  %v19764_v13 = vpack.c.bf16 %v13442_v34, %v13441_v59 }
 0xf31   : > { %17457 = vmatmul.mubr.msk.f32.gmra.mrb[134].mxu1 %vm720_vm0, %v24891_v11 }
 0xf32   : > { %17526 = vmatprep.mubr.msk.f32.mxu1 %vm720_vm0, %v24810_v9 }
 0xf33   : > { %19736 = vmatpush3.bf16.xpose.msk.msra.mxu0 %vm21683_vm12, %v19734_v31  ;;  %v19812_v31 = vpack.c.bf16 %v13474_v17, %v13473_v35 }
 0xf34   : > { %19739 = vmatprep.subr.msk.bf16.mxu0 %vm21683_vm12, %v19737_v3  ;;  %v19815_v3 = vpack.c.bf16 %v13492_v10, %v13491_v61 }
 0xf36   : > { %19784 = vmatpush3.bf16.xpose.msk.msra.mxu1 %vm21683_vm12, %v19782_v39  ;;  %v19767_v39 = vpack.c.bf16 %v13460_v37, %v13459_v16 }
 0xf37   : > { %19787 = vmatprep.subr.msk.bf16.mxu1 %vm21683_vm12, %v19785_v21  ;;  %v13443_v21 = vld [vmem:[#allocation2 + $0x35a] sm:$0xff] }
 0xf38   : > { %v19770_v15 = vpack.c.bf16 %v13444_v56, %v13443_v21 }
 0xf3b   : > { %19742 = vmatpush3.bf16.xpose.msk.msra.mxu0 %vm21683_vm12, %v19740_v60 }
 0xf3c   : > { %19745 = vmatprep.subr.msk.bf16.mxu0 %vm21683_vm12, %v19743_v27 }
 0xf3e   : > { %19790 = vmatpush3.bf16.xpose.msk.msra.mxu1 %vm21683_vm12, %v19788_v18 }
 0xf3f   : > { %19793 = vmatprep.subr.msk.bf16.mxu1 %vm21683_vm12, %v19791_v25 }
 0xf43   : > { %19748 = vmatpush3.bf16.xpose.msk.msra.mxu0 %vm21683_vm12, %v19746_v40 }
 0xf44   : > { %19751 = vmatprep.subr.msk.bf16.mxu0 %vm21683_vm12, %v19749_v63 }
 0xf46   : > { %19796 = vmatpush3.bf16.xpose.msk.msra.mxu1 %vm21683_vm12, %v19794_v12 }
 0xf47   : > { %19799 = vmatprep.subr.msk.bf16.mxu1 %vm21683_vm12, %v19797_v29 }
 0xf4b   : > { %19754 = vmatpush3.bf16.xpose.msk.msra.mxu0 %vm21683_vm12, %v19752_v46 }
 0xf4c   : > { %19757 = vmatprep.subr.msk.bf16.mxu0 %vm21683_vm12, %v19755_v38 }
 0xf4e   : > { %19802 = vmatpush3.bf16.xpose.msk.msra.mxu1 %vm21683_vm12, %v19800_v52 }
 0xf4f   : > { %19805 = vmatprep.subr.msk.bf16.mxu1 %vm21683_vm12, %v19803_v19 }
 0xf50   : > { %v6598_v58 = vpop.permute.xlu0 %6597 }
 0xf53   : > { %19760 = vmatpush3.bf16.xpose.msk.msra.mxu0 %vm21683_vm12, %v19758_v55 }
 0xf54   : > { %19763 = vmatprep.subr.msk.bf16.mxu0 %vm21683_vm12, %v19761_v47 }
 0xf56   : > { %19808 = vmatpush3.bf16.xpose.msk.msra.mxu1 %vm21683_vm12, %v19806_v22 }
 0xf57   : > { %19811 = vmatprep.subr.msk.bf16.mxu1 %vm21683_vm12, %v19809_v43 }
 0xf5b   : > { %19766 = vmatpush3.bf16.xpose.msk.msra.mxu0 %vm21683_vm12, %v19764_v13 }
 0xf5c   : > { %19769 = vmatprep.subr.msk.bf16.mxu0 %vm21683_vm12, %v19767_v39 }
 0xf5e   : > { %19814 = vmatpush3.bf16.xpose.msk.msra.mxu1 %vm21683_vm12, %v19812_v31 }
 0xf5f   : > { %19817 = vmatprep.subr.msk.bf16.mxu1 %vm21683_vm12, %v19815_v3 }
 0xf63   : > { %19772 = vmatpush3.bf16.xpose.msk.msra.mxu0 %vm21683_vm12, %v19770_v15 }
 0xf66   : > { %19820 = vmatpush3.bf16.xpose.msk.msra.mxu1 %vm21683_vm12, %v19818_v7 }
 0xf6a   : > { %17491 = vmatmul.mubr.msk.f32.vlgmr.msra.gmra.mrb[162].mxu0 %vm720_vm0, %v24810_v9 }
 0xf6b   : > { %17492 = vmatprep.mubr.msk.f32.mxu0 %vm720_vm0, %v24891_v11 }
 0xf6d   : > { %17527 = vmatmul.mubr.msk.f32.vlgmr.msra.gmra.mrb[136].mxu1 %vm720_vm0, %v24810_v9 }
 0xf6e   : > { %17528 = vmatprep.mubr.msk.f32.mxu1 %vm720_vm0, %v24891_v11  ;;  %17493 = vmatmul.mubr.msk.f32.gmra.mrb[164].mxu0 %vm720_vm0, %v24891_v11 }
 0xf71   : > { %17529 = vmatmul.mubr.msk.f32.gmra.mrb[138].mxu1 %vm720_vm0, %v24891_v11  ;;  %v6603_v25 = vpop.permute.xlu0 %6602 }
 0xffd   : > { %v13952_v36 = vpop.f32.mrb[158].mxu0 }
 0xffe   : > { %v19823_v4 = vadd.f32 %v13952_v36, %v6598_v58  ;;  %v13954_v9 = vpop.f32.mrb[159].mxu0 }
 0xfff   : > { %v19824_v18 = vadd.f32 %v13954_v9, %v6598_v58 }
0x1000   : > { %v14029_v44 = vpop.f32.mrb[132].mxu1  ;;  %14210 = vst [vmem:[%s22845_s20] sm:$0xff] %v19823_v4 }
0x1001   : > { %v19827_v60 = vadd.f32 %v14029_v44, %v6598_v58  ;;  %v14031_v27 = vpop.f32.mrb[133].mxu1  ;;  %14211 = vst [vmem:[%s22845_s20 + $0x8] sm:$0xff] %v19824_v18 }
0x1002   : > { %v19828_v32 = vadd.f32 %v14031_v27, %v6598_v58  ;;  %v13958_v1 = vpop.f32.mrb[160].mxu0 }
0x1003   : > { %14212 = vst [vmem:[%s22845_s20 + $0x10] sm:$0xff] %v19827_v60  ;;  %v19825_v11 = vadd.f32 %v13958_v1, %v6603_v25  ;;  %v13960_v6 = vpop.f32.mrb[161].mxu0 }
0x1004   : > { %14213 = vst [vmem:[%s22845_s20 + $0x18] sm:$0xff] %v19828_v32  ;;  %v14035_v26 = vpop.f32.mrb[134].mxu1  ;;  %v19826_v41 = vadd.f32 %v13960_v6, %v6603_v25 }
0x1005   : > { %v19829_v23 = vadd.f32 %v14035_v26, %v6603_v25  ;;  %v14037_v24 = vpop.f32.mrb[135].mxu1  ;;  %14218 = vst [vmem:[%s22845_s20 + $0x40] sm:$0xff] %v19825_v11 }
0x1006   : > { %v19830_v42 = vadd.f32 %v14037_v24, %v6603_v25  ;;  %14219 = vst [vmem:[%s22845_s20 + $0x48] sm:$0xff] %v19826_v41 }
0x1007   : > { %14220 = vst [vmem:[%s22845_s20 + $0x50] sm:$0xff] %v19829_v23 }
0x1008   : > { %14221 = vst [vmem:[%s22845_s20 + $0x58] sm:$0xff] %v19830_v42 }
0x103d   : > { %v14106_v40 = vpop.f32.mrb[162].mxu0 }
0x103e   : > { %v19831_v12 = vadd.f32 %v14106_v40, %v6598_v58  ;;  %v14108_v29 = vpop.f32.mrb[163].mxu0 }
0x103f   : > { %v19832_v28 = vadd.f32 %v14108_v29, %v6598_v58 }
0x1040   : > { %v14183_v63 = vpop.f32.mrb[136].mxu1  ;;  %14214 = vst [vmem:[%s22845_s20 + $0x20] sm:$0xff] %v19831_v12 }
0x1041   : > { %v19835_v5 = vadd.f32 %v14183_v63, %v6598_v58  ;;  %v14185_v2 = vpop.f32.mrb[137].mxu1  ;;  %14215 = vst [vmem:[%s22845_s20 + $0x28] sm:$0xff] %v19832_v28  ;;  %v14112_v14 = vpop.f32.mrb[164].mxu0 }
0x1042   : > { %v19836_v50 = vadd.f32 %v14185_v2, %v6598_v58  ;;  %v19833_v57 = vadd.f32 %v14112_v14, %v6603_v25  ;;  %v14114_v49 = vpop.f32.mrb[165].mxu0 }
0x1043   : > { %14216 = vst [vmem:[%s22845_s20 + $0x30] sm:$0xff] %v19835_v5  ;;  %v19834_v52 = vadd.f32 %v14114_v49, %v6603_v25 }
0x1044   : > { %14217 = vst [vmem:[%s22845_s20 + $0x38] sm:$0xff] %v19836_v50  ;;  %v14189_v0 = vpop.f32.mrb[138].mxu1  ;;  %14222 = vst [vmem:[%s22845_s20 + $0x60] sm:$0xff] %v19833_v57 }
0x1045   : > { %v19837_v46 = vadd.f32 %v14189_v0, %v6603_v25  ;;  %v14191_v38 = vpop.f32.mrb[139].mxu1  ;;  %14223 = vst [vmem:[%s22845_s20 + $0x68] sm:$0xff] %v19834_v52 }
0x1046   : > { %v19838_v19 = vadd.f32 %v14191_v38, %v6603_v25 }
0x1047   : > { %14224 = vst [vmem:[%s22845_s20 + $0x70] sm:$0xff] %v19837_v46 }
0x1048   : > { %14225 = vst [vmem:[%s22845_s20 + $0x78] sm:$0xff] %v19838_v19 }
0x1049   : > { %20130 = shalt.err (!%p20127_p1)
}
0x104a   : > { %s20131_s20 = scalar_lea.hbm %s24998_s25, 2048  ;;  %s20135_s27 = scalar_lea.hbm %s25060_s12, 4096 }
0x104b   : > { %p20132_p0 = scmp.ne.s32.totalorder %s24998_s25, %s20131_s20  ;;  %p20136_p8 = scmp.lt.u32.totalorder %s24998_s25, %s25060_s12 }
0x104c   : > { %p20137_p13 = scmp.lt.u32.totalorder %s20135_s27, %s20131_s20  ;;  %p20139_p12 = scmp.lt.u32.totalorder %s20131_s20, %s24998_s25 }
0x104d   : > { %p20133_p7 = pnand %p20132_p0, %p25970_p3 }
0x104e   : > { %p20138_p5 = por %p20137_p13, %p20136_p8 }
0x104f   : > { %p20134_p6 = pneg %p20133_p7 }
0x1050   : > { %p20140_p9 = por %p20139_p12, %p20138_p5 }
0x1052   : > { %p20141_p10 = pnand %p20140_p9, %p20134_p6 }
0x1054   : > { %20144 = shalt.err (!%p20141_p10)
}
0x1055   : > { %s20196_s14 = smov 1024   ;;  %s20197_s17 = smov 64  }
0x1056   : > { %19981 = dma.vmem_to_hbm [thread:$0]  (%p25970_p3), %s25000_s23, 2048, %s24998_s25, %s14227_s29, %s20196_s14, %s20196_s14, %s20197_s17  }
0x1057 PF: > { %s25971_s28 = sld [smem:[#allocation12_spill]]  ;;  %s25972_s18 = sld [smem:[#allocation16_spill]] }
0x1058   : > { %p25974_p4 = scmp.ge.s32.totalorder %s20187_s24, 2 }
0x105d   : > { %s14255_s19 = sand.u32 1, %s25971_s28   ;;  %p25973_p2 = scmp.ne.s32.totalorder %s25972_s18, 0 }
0x105e   : > { %s14256_s13 = scalar_lea.sflag [#allocation5], %s14255_s19 }
0x105f   : > { %p19992_p11 = pnand %p25974_p4, %p25973_p2 }
0x1061   : > { %20170 = dma.done.wait (!%p19992_p11), %s14256_s13, 2048  }
0x1062   : > { %20172 = vsyncadd (!%p19992_p11), %s14256_s13, 4294965248  ;;  %s25975_s24 = sld [smem:[#allocation14_spill]]  ;;  %s25976_s20 = sld [smem:[#allocation13_spill]] }
0x1063   : > { %s25977_s23 = sld [smem:[#allocation15_spill]]  ;;  %s25978_s21 = smov %s20179_s22 }
0x1068   : > { %p26_p1 = scmp.ge.s32.totalorder %s25975_s24, 4   ;;  %s25979_s22 = smov %s25976_s20 }
0x106a   :  { %28 = sbr.rel (!%p26_p1) target bundleno = 8 (0x8), region = 132 }
0x1071   :  { %14261 = vsyncpa [#allocation4], 1 }
0x1072   :  { %14263 = vsyncpa [#allocation4 + $0x1], 1 }
0x1073   :  { %14264 = vsyncpa [#allocation5], 1 }
0x1074   :  { %14266 = vsyncpa [#allocation5 + $0x1], 1 }
0x1075   :  { %14267 = vsyncpa [#allocation6], 1 }
0x1076   :  { %14269 = vsyncpa [#allocation6 + $0x1], 1 }

</bundles_post_ra>
